<compile_context>
chip_gen: v7x
topology: tpu7x:2x2x1
jax: 0.10.0
libtpu: 0.0.40
codegen_flags: <defaults>
</compile_context>

<pallas_src>
import functools
import math

import numpy as np
import jax
import jax.numpy as jnp
from jax import lax
from jax.experimental import pallas as pl
from jax.experimental.pallas import tpu as pltpu

WINDOW_SIZE = 11
SIGMA = 1.5
PAD = WINDOW_SIZE // 2
C1 = 0.01 ** 2
C2 = 0.03 ** 2


def _gaussian_1d(window_size=WINDOW_SIZE, sigma=SIGMA):
    g = np.array(
        [math.exp(-((x - window_size // 2) ** 2) / (2.0 * sigma ** 2))
         for x in range(window_size)],
        dtype=np.float64,
    )
    return g / g.sum()


# Deterministic "parameter" of SSIM (the Gaussian window profile).
_G1D = _gaussian_1d()


def _band_matrix(length):
    """Symmetric band matrix B with B[i, j] = g[j - i + PAD] (|i-j| <= PAD).

    Multiplying by B implements the zero-padded 11-tap Gaussian conv along one
    axis (boundary taps simply fall outside the band => zero padding).
    """
    idx = np.arange(length)
    d = idx[None, :] - idx[:, None]                 # d[i, j] = j - i
    taps = np.where(np.abs(d) <= PAD,
                    _G1D[np.clip(d + PAD, 0, WINDOW_SIZE - 1)],
                    0.0)
    return jnp.asarray(taps, dtype=jnp.float32)


def _ssim_batch_kernel(x1_ref, x2_ref, bw_ref, bh_ref, o_ref, *, P, H, W):
    """One grid step: per-plane SSIM-map sums for a (P, H, W) block of planes.

    x1_ref/x2_ref: (P, H, W) fake/real plane blocks (native dtype).
    bw_ref: (W, W) band matrix (width conv), bh_ref: (H, H) band matrix.
    o_ref:  (P, 1) per-plane SSIM-map partial sums for this block.
    """
    f32 = jnp.float32
    x1 = x1_ref[...].astype(f32)                      # (P, H, W)
    x2 = x2_ref[...].astype(f32)

    # Broadcast the band matrices over the plane batch so both conv passes are
    # clean batched MXU matmuls (same pattern as batched attention einsums).
    bw = jnp.broadcast_to(bw_ref[...], (P, W, W))     # lane-axis (width) conv
    bh = jnp.broadcast_to(bh_ref[...], (P, H, H))     # sublane-axis (height) conv
    prec = lax.Precision.HIGHEST                      # true-f32 conv accuracy

    def gconv(a):                                     # (P, H, W) -> (P, H, W)
        t = jnp.einsum('phw,pwv->phv', a, bw,
                       preferred_element_type=f32, precision=prec)
        return jnp.einsum('pik,pkw->piw', bh, t,
                          preferred_element_type=f32, precision=prec)

    mu1 = gconv(x1)
    mu2 = gconv(x2)
    e11 = gconv(x1 * x1)
    e22 = gconv(x2 * x2)
    e12 = gconv(x1 * x2)

    mu1_sq = mu1 * mu1
    mu2_sq = mu2 * mu2
    mu1_mu2 = mu1 * mu2
    sigma1_sq = e11 - mu1_sq
    sigma2_sq = e22 - mu2_sq
    sigma12 = e12 - mu1_mu2

    num = (2.0 * mu1_mu2 + C1) * (2.0 * sigma12 + C2)
    den = (mu1_sq + mu2_sq + C1) * (sigma1_sq + sigma2_sq + C2)
    ssim_map = num / den                              # exact div (keeps 1e-5 rtol)

    row_sums = jnp.sum(ssim_map, axis=2)              # (P, H)
    o_ref[...] = jnp.sum(row_sums, axis=1, keepdims=True)   # (P, 1)


def _choose_plane_batch(n, h, w, budget_bytes=16 * 1024 * 1024):
    """Planes per grid step, sized against a conservative VMEM working-set
    budget so the same kernel fits v7x (64 MiB VMEM) and v5e/v6e (128 MiB)."""
    # rough per-plane f32 working set: 2 double-buffered input blocks (16x) +
    # conv inputs/outputs + SSIM temps (~13x) + broadcast band matrices.
    per_plane = 29 * (h * w) * 4 + 4 * (h * h + w * w)
    p = max(1, budget_bytes // per_plane)
    return int(min(p, 32, n))


def ssim_loss_pallas(fake_imgs, real_imgs):
    """SSIM(fake, real) with size_average=True, matching SSIM().forward."""
    b, t, c, h, w = fake_imgs.shape
    n = b * t * c
    x1 = fake_imgs.reshape(n, h, w)       # keep native dtype; cast in-kernel
    x2 = real_imgs.reshape(n, h, w)

    P = _choose_plane_batch(n, h, w)
    num_blocks = (n + P - 1) // P
    n_pad = num_blocks * P
    if n_pad != n:
        pad_cfg = ((0, n_pad - n), (0, 0), (0, 0))
        x1 = jnp.pad(x1, pad_cfg)         # tiny: only pads the plane axis
        x2 = jnp.pad(x2, pad_cfg)

    bw = _band_matrix(w)                  # (w, w)
    bh = _band_matrix(h)                  # (h, h)

    kernel = functools.partial(_ssim_batch_kernel, P=P, H=h, W=w)
    psums = pl.pallas_call(
        kernel,
        out_shape=jax.ShapeDtypeStruct((num_blocks, P, 1), jnp.float32),
        grid=(num_blocks,),
        in_specs=[
            pl.BlockSpec((P, h, w), lambda i: (i, 0, 0)),
            pl.BlockSpec((P, h, w), lambda i: (i, 0, 0)),
            pl.BlockSpec((w, w), lambda i: (0, 0)),   # resident; DMA'd once
            pl.BlockSpec((h, h), lambda i: (0, 0)),   # resident; DMA'd once
        ],
        out_specs=pl.BlockSpec((None, P, 1), lambda i: (i, 0, 0)),
        compiler_params=pltpu.CompilerParams(
            dimension_semantics=("parallel",),        # megacore-splittable
            vmem_limit_bytes=48 * 1024 * 1024),
    )(x1, x2, bw, bh)

    # Drop the zero-padded tail planes, then reduce the tiny partial-sum vector.
    total = jnp.sum(psums.reshape(n_pad)[:n])
    return total / jnp.float32(n * h * w)


def loss_wrapper_forward(data_dict, losses_dict=None, use_masks=False,
                         calc_grad=False):
    """JAX equivalent of LossWrapper.forward."""
    if losses_dict is None:
        losses_dict = {}
    real_imgs = data_dict['target_imgs']
    fake_imgs = data_dict['pred_target_imgs']
    b, t, c, h, w = real_imgs.shape
    real = real_imgs.reshape(-1, c, h, w)
    fake = fake_imgs.reshape(-1, c, h, w)
    if use_masks:
        segs = data_dict['real_segs'].reshape(b * t, -1, h, w)
        real = real * segs
        fake = fake * segs
    if not calc_grad:
        fake = lax.stop_gradient(fake)  # mirrors torch.no_grad()/detach()
    # TODO(synk): calc_grad only changes differentiability, not forward value.
    loss = ssim_loss_pallas(
        fake.reshape(b, t, c, h, w), real.reshape(b, t, c, h, w))
    losses_dict['G_SSIM'] = jnp.mean(loss)  # scalar; .mean() is identity
    return losses_dict


# ----------------------- pure-JAX reference (for checking) ------------------
def _ssim_ref(img1, img2):
    # img1/img2: (N, C, H, W) float32 — mirrors torch _ssim with size_average.
    n, c, h, w = img1.shape
    g = jnp.asarray(_G1D, jnp.float32)
    w2d = jnp.outer(g, g)[None, None]           # (1, 1, K, K)
    win = jnp.tile(w2d, (c, 1, 1, 1))           # (C, 1, K, K)

    def conv(x):
        return lax.conv_general_dilated(
            x, win, window_strides=(1, 1),
            padding=[(PAD, PAD), (PAD, PAD)],
            dimension_numbers=('NCHW', 'OIHW', 'NCHW'),
            feature_group_count=c,
            precision=lax.Precision.HIGHEST)

    mu1, mu2 = conv(img1), conv(img2)
    mu1_sq, mu2_sq, mu1_mu2 = mu1 * mu1, mu2 * mu2, mu1 * mu2
    s1 = conv(img1 * img1) - mu1_sq
    s2 = conv(img2 * img2) - mu2_sq
    s12 = conv(img1 * img2) - mu1_mu2
    ssim_map = ((2 * mu1_mu2 + C1) * (2 * s12 + C2)
                / ((mu1_sq + mu2_sq + C1) * (s1 + s2 + C2)))
    return ssim_map.mean()


if __name__ == "__main__":
    key = jax.random.PRNGKey(0)
    k1, k2 = jax.random.split(key)
    b, t, c, h, w = 2, 2, 3, 16, 16
    target = jax.random.uniform(k1, (b, t, c, h, w), jnp.float32)
    pred = jax.random.uniform(k2, (b, t, c, h, w), jnp.float32)

    data_dict = {'target_imgs': target, 'pred_target_imgs': pred}
    losses = loss_wrapper_forward(data_dict, {}, use_masks=False,
                                  calc_grad=False)
    g_ssim = jax.block_until_ready(losses['G_SSIM'])

    # sanity check against a pure-JAX reference of the torch implementation
    ref = _ssim_ref(pred.reshape(-1, c, h, w).astype(jnp.float32),
                    target.reshape(-1, c, h, w).astype(jnp.float32))
    np.testing.assert_allclose(np.asarray(g_ssim), np.asarray(ref),
                               rtol=1e-4, atol=1e-6)
    print("KERNEL_OK")
</pallas_src>

<mosaic_0001>
module attributes {stable_mosaic.version = 11 : i64} {
  func.func @_ssim_batch_kernel(%arg0: i32, %arg1: memref<12x16x16xf32, #tpu.memory_space<vmem>>, %arg2: memref<12x16x16xf32, #tpu.memory_space<vmem>>, %arg3: memref<16x16xf32, #tpu.memory_space<vmem>>, %arg4: memref<16x16xf32, #tpu.memory_space<vmem>>, %arg5: memref<1x12x1xf32, #tpu.memory_space<vmem>>) attributes {dimension_semantics = [#tpu.dimension_semantics<parallel>], iteration_bounds = array<i64: 1>, scalar_prefetch = 0 : i64, scratch_operands = 0 : i64, tpu.core_type = #tpu.core_type<tc>, window_params = [{transform_indices = @transform_0, window_bounds = array<i64: 12, 16, 16>}, {transform_indices = @transform_1, window_bounds = array<i64: 12, 16, 16>}, {pipeline_mode = #tpu.pipeline_mode<synchronous>, transform_indices = @transform_2, window_bounds = array<i64: 16, 16>}, {pipeline_mode = #tpu.pipeline_mode<synchronous>, transform_indices = @transform_3, window_bounds = array<i64: 16, 16>}, {transform_indices = @transform_4, window_bounds = array<i64: 1, 12, 1>}]} {
    %c0 = arith.constant 0 : index
    %c0_0 = arith.constant 0 : index
    %c0_1 = arith.constant 0 : index
    %0 = vector.load %arg1[%c0, %c0_0, %c0_1] : memref<12x16x16xf32, #tpu.memory_space<vmem>>, vector<12x16x16xf32>
    %c0_2 = arith.constant 0 : index
    %c0_3 = arith.constant 0 : index
    %c0_4 = arith.constant 0 : index
    %1 = vector.load %arg2[%c0_2, %c0_3, %c0_4] : memref<12x16x16xf32, #tpu.memory_space<vmem>>, vector<12x16x16xf32>
    %c0_5 = arith.constant 0 : index
    %c0_6 = arith.constant 0 : index
    %2 = vector.load %arg3[%c0_5, %c0_6] : memref<16x16xf32, #tpu.memory_space<vmem>>, vector<16x16xf32>
    %3 = vector.shape_cast %2 : vector<16x16xf32> to vector<1x16x16xf32>
    %4 = vector.broadcast %3 : vector<1x16x16xf32> to vector<12x16x16xf32>
    %c0_7 = arith.constant 0 : index
    %c0_8 = arith.constant 0 : index
    %5 = vector.load %arg4[%c0_7, %c0_8] : memref<16x16xf32, #tpu.memory_space<vmem>>, vector<16x16xf32>
    %6 = vector.shape_cast %5 : vector<16x16xf32> to vector<1x16x16xf32>
    %7 = vector.broadcast %6 : vector<1x16x16xf32> to vector<12x16x16xf32>
    "tpu.trace_start"() <{level = 10 : i32, message = "phw,pwv->phv"}> : () -> ()
    %cst = arith.constant dense<0.000000e+00> : vector<12x16x16xf32>
    %8 = tpu.matmul %0, %4, %cst {dimension_numbers = #tpu.dot_dimension_numbers<[2], [1], [1], [2], [0, 0, 0, 1, 1, 2], [0], [0]>, precision = #tpu.contract_precision<fp32>} : vector<12x16x16xf32>, vector<12x16x16xf32>, vector<12x16x16xf32> -> vector<12x16x16xf32>
    "tpu.trace_stop"() : () -> ()
    "tpu.trace_start"() <{level = 10 : i32, message = "pik,pkw->piw"}> : () -> ()
    %cst_9 = arith.constant dense<0.000000e+00> : vector<12x16x16xf32>
    %9 = tpu.matmul %7, %8, %cst_9 {dimension_numbers = #tpu.dot_dimension_numbers<[2], [1], [1], [2], [0, 0, 0, 1, 1, 2], [0], [0]>, precision = #tpu.contract_precision<fp32>} : vector<12x16x16xf32>, vector<12x16x16xf32>, vector<12x16x16xf32> -> vector<12x16x16xf32>
    "tpu.trace_stop"() : () -> ()
    "tpu.trace_start"() <{level = 10 : i32, message = "phw,pwv->phv"}> : () -> ()
    %cst_10 = arith.constant dense<0.000000e+00> : vector<12x16x16xf32>
    %10 = tpu.matmul %1, %4, %cst_10 {dimension_numbers = #tpu.dot_dimension_numbers<[2], [1], [1], [2], [0, 0, 0, 1, 1, 2], [0], [0]>, precision = #tpu.contract_precision<fp32>} : vector<12x16x16xf32>, vector<12x16x16xf32>, vector<12x16x16xf32> -> vector<12x16x16xf32>
    "tpu.trace_stop"() : () -> ()
    "tpu.trace_start"() <{level = 10 : i32, message = "pik,pkw->piw"}> : () -> ()
    %cst_11 = arith.constant dense<0.000000e+00> : vector<12x16x16xf32>
    %11 = tpu.matmul %7, %10, %cst_11 {dimension_numbers = #tpu.dot_dimension_numbers<[2], [1], [1], [2], [0, 0, 0, 1, 1, 2], [0], [0]>, precision = #tpu.contract_precision<fp32>} : vector<12x16x16xf32>, vector<12x16x16xf32>, vector<12x16x16xf32> -> vector<12x16x16xf32>
    "tpu.trace_stop"() : () -> ()
    %12 = arith.mulf %0, %0 : vector<12x16x16xf32>
    "tpu.trace_start"() <{level = 10 : i32, message = "phw,pwv->phv"}> : () -> ()
    %cst_12 = arith.constant dense<0.000000e+00> : vector<12x16x16xf32>
    %13 = tpu.matmul %12, %4, %cst_12 {dimension_numbers = #tpu.dot_dimension_numbers<[2], [1], [1], [2], [0, 0, 0, 1, 1, 2], [0], [0]>, precision = #tpu.contract_precision<fp32>} : vector<12x16x16xf32>, vector<12x16x16xf32>, vector<12x16x16xf32> -> vector<12x16x16xf32>
    "tpu.trace_stop"() : () -> ()
    "tpu.trace_start"() <{level = 10 : i32, message = "pik,pkw->piw"}> : () -> ()
    %cst_13 = arith.constant dense<0.000000e+00> : vector<12x16x16xf32>
    %14 = tpu.matmul %7, %13, %cst_13 {dimension_numbers = #tpu.dot_dimension_numbers<[2], [1], [1], [2], [0, 0, 0, 1, 1, 2], [0], [0]>, precision = #tpu.contract_precision<fp32>} : vector<12x16x16xf32>, vector<12x16x16xf32>, vector<12x16x16xf32> -> vector<12x16x16xf32>
    "tpu.trace_stop"() : () -> ()
    %15 = arith.mulf %1, %1 : vector<12x16x16xf32>
    "tpu.trace_start"() <{level = 10 : i32, message = "phw,pwv->phv"}> : () -> ()
    %cst_14 = arith.constant dense<0.000000e+00> : vector<12x16x16xf32>
    %16 = tpu.matmul %15, %4, %cst_14 {dimension_numbers = #tpu.dot_dimension_numbers<[2], [1], [1], [2], [0, 0, 0, 1, 1, 2], [0], [0]>, precision = #tpu.contract_precision<fp32>} : vector<12x16x16xf32>, vector<12x16x16xf32>, vector<12x16x16xf32> -> vector<12x16x16xf32>
    "tpu.trace_stop"() : () -> ()
    "tpu.trace_start"() <{level = 10 : i32, message = "pik,pkw->piw"}> : () -> ()
    %cst_15 = arith.constant dense<0.000000e+00> : vector<12x16x16xf32>
    %17 = tpu.matmul %7, %16, %cst_15 {dimension_numbers = #tpu.dot_dimension_numbers<[2], [1], [1], [2], [0, 0, 0, 1, 1, 2], [0], [0]>, precision = #tpu.contract_precision<fp32>} : vector<12x16x16xf32>, vector<12x16x16xf32>, vector<12x16x16xf32> -> vector<12x16x16xf32>
    "tpu.trace_stop"() : () -> ()
    %18 = arith.mulf %0, %1 : vector<12x16x16xf32>
    "tpu.trace_start"() <{level = 10 : i32, message = "phw,pwv->phv"}> : () -> ()
    %cst_16 = arith.constant dense<0.000000e+00> : vector<12x16x16xf32>
    %19 = tpu.matmul %18, %4, %cst_16 {dimension_numbers = #tpu.dot_dimension_numbers<[2], [1], [1], [2], [0, 0, 0, 1, 1, 2], [0], [0]>, precision = #tpu.contract_precision<fp32>} : vector<12x16x16xf32>, vector<12x16x16xf32>, vector<12x16x16xf32> -> vector<12x16x16xf32>
    "tpu.trace_stop"() : () -> ()
    "tpu.trace_start"() <{level = 10 : i32, message = "pik,pkw->piw"}> : () -> ()
    %cst_17 = arith.constant dense<0.000000e+00> : vector<12x16x16xf32>
    %20 = tpu.matmul %7, %19, %cst_17 {dimension_numbers = #tpu.dot_dimension_numbers<[2], [1], [1], [2], [0, 0, 0, 1, 1, 2], [0], [0]>, precision = #tpu.contract_precision<fp32>} : vector<12x16x16xf32>, vector<12x16x16xf32>, vector<12x16x16xf32> -> vector<12x16x16xf32>
    "tpu.trace_stop"() : () -> ()
    %21 = arith.mulf %9, %9 : vector<12x16x16xf32>
    %22 = arith.mulf %11, %11 : vector<12x16x16xf32>
    %23 = arith.mulf %9, %11 : vector<12x16x16xf32>
    %24 = arith.subf %14, %21 : vector<12x16x16xf32>
    %25 = arith.subf %17, %22 : vector<12x16x16xf32>
    %26 = arith.subf %20, %23 : vector<12x16x16xf32>
    %cst_18 = arith.constant 2.000000e+00 : f32
    %27 = vector.broadcast %cst_18 : f32 to vector<12x16x16xf32>
    %28 = arith.mulf %27, %23 : vector<12x16x16xf32>
    %cst_19 = arith.constant 9.99999974E-5 : f32
    %29 = vector.broadcast %cst_19 : f32 to vector<12x16x16xf32>
    %30 = arith.addf %28, %29 : vector<12x16x16xf32>
    %cst_20 = arith.constant 2.000000e+00 : f32
    %31 = vector.broadcast %cst_20 : f32 to vector<12x16x16xf32>
    %32 = arith.mulf %31, %26 : vector<12x16x16xf32>
    %cst_21 = arith.constant 8.99999984E-4 : f32
    %33 = vector.broadcast %cst_21 : f32 to vector<12x16x16xf32>
    %34 = arith.addf %32, %33 : vector<12x16x16xf32>
    %35 = arith.mulf %30, %34 : vector<12x16x16xf32>
    %36 = arith.addf %21, %22 : vector<12x16x16xf32>
    %cst_22 = arith.constant 9.99999974E-5 : f32
    %37 = vector.broadcast %cst_22 : f32 to vector<12x16x16xf32>
    %38 = arith.addf %36, %37 : vector<12x16x16xf32>
    %39 = arith.addf %24, %25 : vector<12x16x16xf32>
    %cst_23 = arith.constant 8.99999984E-4 : f32
    %40 = vector.broadcast %cst_23 : f32 to vector<12x16x16xf32>
    %41 = arith.addf %39, %40 : vector<12x16x16xf32>
    %42 = arith.mulf %38, %41 : vector<12x16x16xf32>
    %43 = arith.divf %35, %42 : vector<12x16x16xf32>
    %cst_24 = arith.constant dense<0.000000e+00> : vector<12x16xf32>
    %44 = vector.multi_reduction <add>, %43, %cst_24 [2] : vector<12x16x16xf32> to vector<12x16xf32>
    %cst_25 = arith.constant dense<0.000000e+00> : vector<12xf32>
    %45 = vector.multi_reduction <add>, %44, %cst_25 [1] : vector<12x16xf32> to vector<12xf32>
    %46 = vector.shape_cast %45 : vector<12xf32> to vector<12x1xf32>
    %c0_26 = arith.constant 0 : index
    %c0_27 = arith.constant 0 : index
    %c0_28 = arith.constant 0 : index
    %47 = vector.load %arg5[%c0_26, %c0_27, %c0_28] : memref<1x12x1xf32, #tpu.memory_space<vmem>>, vector<1x12x1xf32>
    %48 = vector.shape_cast %47 : vector<1x12x1xf32> to vector<12x1xf32>
    %49 = vector.shape_cast %46 : vector<12x1xf32> to vector<1x12x1xf32>
    tpu.vector_store %arg5[%c0_26, %c0_27, %c0_28], %49 {strides = array<i32>} : memref<1x12x1xf32, #tpu.memory_space<vmem>>, vector<1x12x1xf32>,
    return
  }
  func.func @transform_0(%arg0: i32) -> (i32, i32, i32) {
    %c0_i32 = arith.constant 0 : i32
    %c0_i32_0 = arith.constant 0 : i32
    %c0_i32_1 = arith.constant 0 : i32
    return %arg0, %c0_i32, %c0_i32_0 : i32, i32, i32
  }
  func.func @transform_1(%arg0: i32) -> (i32, i32, i32) {
    %c0_i32 = arith.constant 0 : i32
    %c0_i32_0 = arith.constant 0 : i32
    %c0_i32_1 = arith.constant 0 : i32
    return %arg0, %c0_i32, %c0_i32_0 : i32, i32, i32
  }
  func.func @transform_2(%arg0: i32) -> (i32, i32) {
    %c0_i32 = arith.constant 0 : i32
    %c0_i32_0 = arith.constant 0 : i32
    %c0_i32_1 = arith.constant 0 : i32
    return %c0_i32, %c0_i32_0 : i32, i32
  }
  func.func @transform_3(%arg0: i32) -> (i32, i32) {
    %c0_i32 = arith.constant 0 : i32
    %c0_i32_0 = arith.constant 0 : i32
    %c0_i32_1 = arith.constant 0 : i32
    return %c0_i32, %c0_i32_0 : i32, i32
  }
  func.func @transform_4(%arg0: i32) -> (i32, i32, i32) {
    %c0_i32 = arith.constant 0 : i32
    %c0_i32_0 = arith.constant 0 : i32
    %c0_i32_1 = arith.constant 0 : i32
    return %arg0, %c0_i32, %c0_i32_0 : i32, i32, i32
  }
}

</mosaic_0001>

<bundles_post_ra>
// kernel: tpu_custom_call.1
= control target key start
LH: loop header
LB: loop body
LE: loop exit
PB: predicated region body
PF: predicated region fallthrough
CT: control target
= control target key end

     0   :  { %9 = vsyncpa [#allocation3], 0  ;;  %s78056_s0 = inlined_call_operand.hbm [shape: f32[12,16,16], index: 0, kind: input, shape index: {}]   ;;  %s78057_s1 = inlined_call_operand.hbm [shape: f32[12,16,16], index: 1, kind: input, shape index: {}]   ;;  %s78058_s2 = inlined_call_operand.hbm [shape: f32[16,16], index: 2, kind: input, shape index: {}]   ;;  %s78059_s3 = inlined_call_operand.hbm [shape: f32[16,16], index: 3, kind: input, shape index: {}]   ;;  %s78060_s4 = inlined_call_operand.vmem [shape: f32[1,12,1], index: 4, kind: output, shape index: {}]  }
   0x1   :  { %10 = vsyncpa [#allocation5], 0 }
   0x2   :  { %11 = vsyncpa [#allocation8], 0  ;;  %s73724_s15 = smov [#allocation4]   ;;  %s73725_s17 = smov [#allocation2]  }
   0x3   :  { %s29_s16 = sshll.u32 %s73724_s15, 4  ;;  %s17_s18 = sshll.u32 %s73725_s17, 4  ;;  %s30_s16 = int_to_ptr.vmem [resolvable:$true] %s29_s16  ;;  %s73755_s18 = int_to_ptr.vmem [resolvable:$true] %s17_s18 }
   0x4   :  { %s73630_s21 = scalar_lea.hbm %s78057_s1, 3072 }
   0x5   :  { %p73631_p0 = scmp.ne.s32.totalorder %s78057_s1, %s73630_s21  ;;  %p73634_p1 = scmp.lt.u32.totalorder %s73630_s21, %s78057_s1 }
   0x7   :  { %p73636_p2 = pnand %p73634_p1, %p73631_p0 }
   0x9   :  { %73639 = shalt.err (!%p73636_p2)
}
   0xa   :  { %s73640_s26 = scalar_lea.vmem %s30_s16, 3072  ;;  %p73645_p4 = scmp.lt.s32.totalorder %s30_s16, %s30_s16 }
   0xb   :  { %p73641_p3 = scmp.ne.s32.totalorder %s30_s16, %s73640_s26  ;;  %p73646_p5 = scmp.lt.s32.totalorder %s73640_s26, %s73640_s26 }
   0xd   :  { %p73647_p6 = por %p73646_p5, %p73645_p4 }
   0xf   :  { %p73648_p7 = pnand %p73647_p6, %p73641_p3 }
  0x11   :  { %73651 = shalt.err (!%p73648_p7)
}
  0x12   :  { %s73726_s27 = smov 128   ;;  %s73727_s28 = smov 8  }
  0x13   :  { %35 = dma.hbm_to_vmem [thread:$0]  %s78057_s1, 3072, %s30_s16, [#allocation5], %s73726_s27, %s73726_s27, %s73727_s28  }
  0x14   :  { %s73652_s7 = scalar_lea.hbm %s78056_s0, 3072 }
  0x15   :  { %p73653_p8 = scmp.ne.s32.totalorder %s78056_s0, %s73652_s7  ;;  %p73656_p9 = scmp.lt.u32.totalorder %s73652_s7, %s78056_s0 }
  0x17   :  { %p73658_p10 = pnand %p73656_p9, %p73653_p8 }
  0x19   :  { %73661 = shalt.err (!%p73658_p10)
}
  0x1a   :  { %s73662_s12 = scalar_lea.vmem %s73755_s18, 3072  ;;  %p73667_p12 = scmp.lt.s32.totalorder %s73755_s18, %s73755_s18 }
  0x1b   :  { %p73663_p11 = scmp.ne.s32.totalorder %s73755_s18, %s73662_s12  ;;  %p73668_p13 = scmp.lt.s32.totalorder %s73662_s12, %s73662_s12 }
  0x1d   :  { %p73669_p0 = por %p73668_p13, %p73667_p12 }
  0x1f   :  { %p73670_p1 = pnand %p73669_p0, %p73663_p11 }
  0x21   :  { %73673 = shalt.err (!%p73670_p1)
}
  0x22   :  { %23 = dma.hbm_to_vmem [thread:$0]  %s78056_s0, 3072, %s73755_s18, [#allocation3], %s73726_s27, %s73726_s27, %s73727_s28  }
  0x23   :  { %s73728_s14 = smov [#allocation6]   ;;  %s73729_s16 = smov [#allocation7]  }
  0x24   :  { %s41_s15 = sshll.u32 %s73728_s14, 4  ;;  %s53_s17 = sshll.u32 %s73729_s16, 4  ;;  %s42_s15 = int_to_ptr.vmem [resolvable:$true] %s41_s15  ;;  %s73792_s17 = int_to_ptr.vmem [resolvable:$true] %s53_s17 }
  0x25   :  { %s73674_s21 = scalar_lea.hbm %s78058_s2, 256 }
  0x26   :  { %p73675_p2 = scmp.ne.s32.totalorder %s78058_s2, %s73674_s21  ;;  %p73678_p3 = scmp.lt.u32.totalorder %s73674_s21, %s78058_s2 }
  0x28   :  { %p73680_p4 = pnand %p73678_p3, %p73675_p2 }
  0x2a   :  { %73683 = shalt.err (!%p73680_p4)
}
  0x2b   :  { %s73684_s0 = scalar_lea.vmem %s42_s15, 256  ;;  %p73689_p6 = scmp.lt.s32.totalorder %s42_s15, %s42_s15 }
  0x2c   :  { %p73685_p5 = scmp.ne.s32.totalorder %s42_s15, %s73684_s0  ;;  %p73690_p7 = scmp.lt.s32.totalorder %s73684_s0, %s73684_s0 }
  0x2e   :  { %p73691_p8 = por %p73690_p7, %p73689_p6 }
  0x30   :  { %p73692_p9 = pnand %p73691_p8, %p73685_p5 }
  0x32   :  { %73695 = shalt.err (!%p73692_p9)
}
  0x33   :  { %47 = dma.hbm_to_vmem [thread:$0]  %s78058_s2, 256, %s42_s15, [#allocation5], %s73726_s27, %s73726_s27, %s73727_s28  }
  0x34   :  { %s73696_s5 = scalar_lea.hbm %s78059_s3, 256 }
  0x35   :  { %p73697_p10 = scmp.ne.s32.totalorder %s78059_s3, %s73696_s5  ;;  %p73700_p11 = scmp.lt.u32.totalorder %s73696_s5, %s78059_s3 }
  0x37   :  { %p73702_p12 = pnand %p73700_p11, %p73697_p10 }
  0x39   :  { %73705 = shalt.err (!%p73702_p12)
}
  0x3a   :  { %s73706_s10 = scalar_lea.vmem %s73792_s17, 256  ;;  %p73711_p0 = scmp.lt.s32.totalorder %s73792_s17, %s73792_s17 }
  0x3b   :  { %p73707_p13 = scmp.ne.s32.totalorder %s73792_s17, %s73706_s10  ;;  %p73712_p1 = scmp.lt.s32.totalorder %s73706_s10, %s73706_s10 }
  0x3d   :  { %p73713_p2 = por %p73712_p1, %p73711_p0 }
  0x3f   :  { %p73714_p3 = pnand %p73713_p2, %p73707_p13 }
  0x41   :  { %73717 = shalt.err (!%p73714_p3)
}
  0x42   :  { %59 = dma.hbm_to_vmem [thread:$0]  %s78059_s3, 256, %s73792_s17, [#allocation8], %s73726_s27, %s73726_s27, %s73727_s28  }
  0x43   :  { %73718 = dma.done.wait [#allocation3], 3072  }
  0x44   :  { %73719 = vsyncadd [#allocation3], 4294964224 }
  0x45   :  { %73720 = dma.done.wait [#allocation5], 3328  }
  0x46   :  { %73721 = vsyncadd [#allocation5], 4294963968 }
  0x47   :  { %73722 = dma.done.wait [#allocation8], 256  }
  0x48   :  { %73723 = vsyncadd [#allocation8], 4294967040  ;;  %vm124_vm0 = vcmask 130048   ;;  %v120_v0 = vld [vmem:[#allocation6] sm:$0xff]  ;;  %v121_v1 = vld [vmem:[#allocation6 + $0x8] sm:$0xff]  ;;  %vm61342_vm1 = vcmask 130112  }
  0x49   :  { %v72_v2 = vld [vmem:[#allocation2] sm:$0xff]  ;;  %v132_v3 = vand.u32 4294901760, %v120_v0  ;;  %v135_v4 = vand.u32 4294901760, %v121_v1  ;;  %v74_v6 = vld [vmem:[#allocation2 + $0x10] sm:$0xff]  ;;  %v73_v9 = vld [vmem:[#allocation2 + $0x8] sm:$0xff]  ;;  %vm61443_vm2 = vcmask 1041409  }
  0x4a   :  { %v126_v5 = vsel %vm124_vm0, %v72_v2, 0  ;;  %v634_v8 = vsel %vm124_vm0, %v74_v6, 0  ;;  %v75_v14 = vld [vmem:[#allocation2 + $0x18] sm:$0xff]  ;;  %v129_v16 = vsel %vm124_vm0, %v73_v9, 0  ;;  %v76_v44 = vld [vmem:[#allocation2 + $0x20] sm:$0xff]  ;;  %v78_v45 = vld [vmem:[#allocation2 + $0x30] sm:$0xff] }
  0x4b   :  { %v73830_v7 = vand.u32 4294901760, %v126_v5  ;;  %v73833_v10 = vpack.c.bf16 %v135_v4, %v132_v3  ;;  %v220_v11 = vsub.f32 %v120_v0, %v132_v3  ;;  %v227_v12 = vsub.f32 %v121_v1, %v135_v4  ;;  %v77_v47 = vld [vmem:[#allocation2 + $0x28] sm:$0xff]  ;;  %v79_v49 = vld [vmem:[#allocation2 + $0x38] sm:$0xff]  ;;  %v82_v9 = vld [vmem:[#allocation2 + $0x50] sm:$0xff] }
  0x4c   :  { %v73835_v13 = vand.u32 4294901760, %v634_v8  ;;  %v73844_v21 = vand.u32 4294901760, %v129_v16  ;;  %v637_v22 = vsel %vm124_vm0, %v75_v14, 0  ;;  %v1142_v46 = vsel %vm124_vm0, %v76_v44, 0  ;;  %v83_v14 = vld [vmem:[#allocation2 + $0x58] sm:$0xff] }
  0x4d   :  { %v199_v15 = vsub.f32 %v126_v5, %v73830_v7  ;;  %v221_v17 = vand.u32 4294901760, %v220_v11  ;;  %v228_v18 = vand.u32 4294901760, %v227_v12  ;;  %69401 = vmatprep.subr.bf16.mxu0 %v73833_v10  ;;  %69425 = vmatprep.subr.bf16.mxu1 %v73833_v10  ;;  %v73848_v28 = vand.u32 4294901760, %v637_v22 }
  0x4e   :  { %v707_v19 = vsub.f32 %v634_v8, %v73835_v13  ;;  %69403 = vmatpush3.bf16.msra.mxu0 %v73833_v10  ;;  %69427 = vmatpush3.bf16.msra.mxu1 %v73833_v10  ;;  %v209_v27 = vsub.f32 %v129_v16, %v73844_v21  ;;  %v73854_v39 = vpack.c.bf16 %v227_v12, %v220_v11  ;;  %v1650_v48 = vsel %vm124_vm0, %v78_v45, 0  ;;  %v80_v8 = vld [vmem:[#allocation2 + $0x40] sm:$0xff]  ;;  %v87_v45 = vld [vmem:[#allocation2 + $0x78] sm:$0xff] }
  0x4f   :  { %v200_v20 = vand.u32 4294901760, %v199_v15  ;;  %v222_v23 = vsub.f32 %v220_v11, %v221_v17  ;;  %v229_v24 = vsub.f32 %v227_v12, %v228_v18  ;;  %v717_v34 = vsub.f32 %v637_v22, %v73848_v28  ;;  %v81_v12 = vld [vmem:[#allocation2 + $0x48] sm:$0xff] }
  0x50   :  { %v708_v25 = vand.u32 4294901760, %v707_v19  ;;  %v210_v33 = vand.u32 4294901760, %v209_v27  ;;  %v73869_v43 = vpack.c.bf16 %v228_v18, %v221_v17  ;;  %v73877_v50 = vand.u32 4294901760, %v1142_v46 }
  0x51   :  { %v201_v26 = vsub.f32 %v199_v15, %v200_v20  ;;  %v223_v29 = vand.u32 4294901760, %v222_v23  ;;  %v230_v30 = vand.u32 4294901760, %v229_v24  ;;  %v718_v38 = vand.u32 4294901760, %v717_v34 }
  0x52   :  { %v709_v31 = vsub.f32 %v707_v19, %v708_v25  ;;  %v211_v37 = vsub.f32 %v209_v27, %v210_v33  ;;  %v1145_v51 = vsel %vm124_vm0, %v77_v47, 0  ;;  %v73880_v52 = vand.u32 4294901760, %v1650_v48 }
  0x53   :  { %v202_v32 = vand.u32 4294901760, %v201_v26  ;;  %v73851_v35 = vpack.c.bf16 %v230_v30, %v223_v29  ;;  %v719_v41 = vsub.f32 %v717_v34, %v718_v38  ;;  %v1653_v53 = vsel %vm124_vm0, %v79_v49, 0 }
  0x54   :  { %v710_v36 = vand.u32 4294901760, %v709_v31  ;;  %v212_v40 = vand.u32 4294901760, %v211_v37  ;;  %v73883_v54 = vand.u32 4294901760, %v1145_v51  ;;  %v1215_v55 = vsub.f32 %v1142_v46, %v73877_v50 }
  0x55   :  { %64364 = vmatprep.mubr.f32.mxu0 %v202_v32  ;;  %69405 = vmatprep.subr.bf16.mxu0 %v73851_v35  ;;  %v720_v42 = vand.u32 4294901760, %v719_v41  ;;  %v73889_v56 = vand.u32 4294901760, %v1653_v53  ;;  %v1723_v57 = vsub.f32 %v1650_v48, %v73880_v52  ;;  %v2158_v11 = vsel %vm124_vm0, %v80_v8, 0 }
  0x56   :  { %64406 = vmatprep.mubr.f32.mxu1 %v710_v36  ;;  %69429 = vmatprep.subr.bf16.mxu1 %v73851_v35  ;;  %v73896_v58 = vsub.f32 %v1145_v51, %v73883_v54  ;;  %v1216_v59 = vand.u32 4294901760, %v1215_v55  ;;  %v2161_v16 = vsel %vm124_vm0, %v81_v12, 0  ;;  %v2669_v18 = vsel %vm124_vm0, %v83_v14, 0 }
  0x57   :  { %64365 = vmatmul.mubr.f32.vlgmr.msra.gmra.mrb[0].mxu0 %v212_v40  ;;  %64407 = vmatmul.mubr.f32.vlgmr.msra.gmra.mrb[0].mxu1 %v720_v42  ;;  %v73899_v60 = vsub.f32 %v1653_v53, %v73889_v56  ;;  %v1724_v61 = vand.u32 4294901760, %v1723_v57  ;;  %v86_v40 = vld [vmem:[#allocation2 + $0x70] sm:$0xff]  ;;  %v85_v42 = vld [vmem:[#allocation2 + $0x68] sm:$0xff]  ;;  %v3685_v49 = vsel %vm124_vm0, %v87_v45, 0  ;;  %vm61445_vm3 = vcmask 1042434  }
  0x58   :  { %69407 = vmatpush3.bf16.msra.mxu0 %v73851_v35  ;;  %64371 = vmatprep.mubr.f32.mxu0 %v73830_v7  ;;  %v1226_v62 = vand.u32 4294901760, %v73896_v58  ;;  %v1217_v63 = vsub.f32 %v1215_v55, %v1216_v59  ;;  %v3682_v44 = vsel %vm124_vm0, %v86_v40, 0  ;;  %v3177_v47 = vsel %vm124_vm0, %v85_v42, 0  ;;  %v95_v40 = vld [vmem:[#allocation2 + $0xb8] sm:$0xff] }
  0x59   :  { %69409 = vmatprep.subr.bf16.mxu0 %v73854_v39  ;;  %69431 = vmatpush3.bf16.msra.mxu1 %v73851_v35  ;;  %v1734_v0 = vand.u32 4294901760, %v73899_v60  ;;  %v1725_v1 = vsub.f32 %v1723_v57, %v1724_v61  ;;  %v74004_v48 = vand.u32 4294901760, %v3682_v44  ;;  %v5717_v45 = vsel %vm124_vm0, %v95_v40, 0 }
  0x5a   :  { %64413 = vmatprep.mubr.f32.mxu1 %v73835_v13  ;;  %69433 = vmatprep.subr.bf16.mxu1 %v73854_v39  ;;  %v1227_v2 = vsub.f32 %v73896_v58, %v1226_v62  ;;  %v1218_v3 = vand.u32 4294901760, %v1217_v63  ;;  %vm61447_vm4 = vcmask 1043459   ;;  %vm61449_vm5 = vcmask 1044484  }
  0x5b   :  { %v1735_v4 = vsub.f32 %v73899_v60, %v1734_v0  ;;  %v1726_v5 = vand.u32 4294901760, %v1725_v1  ;;  %v3755_v53 = vsub.f32 %v3682_v44, %v74004_v48  ;;  %vm61451_vm6 = vcmask 1045509  }
  0x5c   :  { %v1228_v6 = vand.u32 4294901760, %v1227_v2  ;;  %vm61453_vm7 = vcmask 1046534   ;;  %vm61455_vm8 = vcmask 1047559   ;;  %vm61465_vm9 = vcmask 125952  }
  0x5d   :  { %vm61469_vm10 = vcmask 7168   ;;  %vm61471_vm11 = vcmask 3072  }
  0x5f   :  { %64372 = vmatmul.mubr.f32.vlgmr.msra.gmra.mrb[0].mxu0 %v73844_v21  ;;  %64414 = vmatmul.mubr.f32.vlgmr.msra.gmra.mrb[0].mxu1 %v73848_v28 }
  0x60   :  { %69411 = vmatpush3.bf16.msra.mxu0 %v73854_v39  ;;  %64378 = vmatprep.mubr.f32.mxu0 %v199_v15  ;;  %v73939_v15 = vand.u32 4294901760, %v2158_v11 }
  0x61   :  { %69413 = vmatprep.subr.bf16.mxu0 %v73833_v10  ;;  %69435 = vmatpush3.bf16.msra.mxu1 %v73854_v39 }
  0x62   :  { %64420 = vmatprep.mubr.f32.mxu1 %v707_v19  ;;  %69437 = vmatprep.subr.bf16.mxu1 %v73833_v10  ;;  %v73945_v19 = vand.u32 4294901760, %v2161_v16 }
  0x64   :  { %v73958_v23 = vsub.f32 %v2161_v16, %v73945_v19 }
  0x67   :  { %64379 = vmatmul.mubr.f32.vlgmr.msra.gmra.mrb[0].mxu0 %v209_v27  ;;  %64421 = vmatmul.mubr.f32.vlgmr.msra.gmra.mrb[0].mxu1 %v717_v34  ;;  %v2242_v27 = vand.u32 4294901760, %v73958_v23 }
  0x68   :  { %69415 = vmatpush3.bf16.msra.mxu0 %v73833_v10  ;;  %64385 = vmatprep.mubr.f32.mxu0 %v200_v20  ;;  %v2231_v20 = vsub.f32 %v2158_v11, %v73939_v15 }
  0x69   :  { %69417 = vmatprep.subr.bf16.mxu0 %v73869_v43  ;;  %69439 = vmatpush3.bf16.msra.mxu1 %v73833_v10  ;;  %v2243_v31 = vsub.f32 %v73958_v23, %v2242_v27 }
  0x6a   :  { %64427 = vmatprep.mubr.f32.mxu1 %v708_v25  ;;  %69441 = vmatprep.subr.bf16.mxu1 %v73869_v43  ;;  %v2232_v24 = vand.u32 4294901760, %v2231_v20 }
  0x6b   :  { %v2244_v36 = vand.u32 4294901760, %v2243_v31 }
  0x6f   :  { %64386 = vmatmul.mubr.f32.vlgmr.msra.gmra.mrb[0].mxu0 %v210_v33  ;;  %64428 = vmatmul.mubr.f32.vlgmr.msra.gmra.mrb[0].mxu1 %v718_v38  ;;  %v84_v38 = vld [vmem:[#allocation2 + $0x60] sm:$0xff] }
  0x70   :  { %69419 = vmatpush3.bf16.msra.mxu0 %v73869_v43  ;;  %64392 = vmatprep.mubr.f32.mxu0 %v73830_v7  ;;  %v3174_v41 = vsel %vm124_vm0, %v84_v38, 0 }
  0x71   :  { %69421 = vmatprep.subr.bf16.mxu0 %v73833_v10  ;;  %69443 = vmatpush3.bf16.msra.mxu1 %v73869_v43  ;;  %v74001_v46 = vand.u32 4294901760, %v3174_v41 }
  0x72   :  { %64434 = vmatprep.mubr.f32.mxu1 %v73835_v13  ;;  %69445 = vmatprep.subr.bf16.mxu1 %v73833_v10 }
  0x73   :  { %v3247_v51 = vsub.f32 %v3174_v41, %v74001_v46 }
  0x77   :  { %64393 = vmatmul.mubr.f32.vlgmr.msra.gmra.mrb[0].mxu0 %v73844_v21  ;;  %64435 = vmatmul.mubr.f32.vlgmr.msra.gmra.mrb[0].mxu1 %v73848_v28 }
  0x78   :  { %69423 = vmatpush3.bf16.msra.mxu0 %v73833_v10  ;;  %64399 = vmatprep.mubr.f32.mxu0 %v73830_v7  ;;  %v1736_v7 = vand.u32 4294901760, %v1735_v4  ;;  %v88_v4 = vld [vmem:[#allocation2 + $0x80] sm:$0xff] }
  0x79   :  { %69449 = vmatprep.subr.bf16.mxu0 %v73833_v10  ;;  %69447 = vmatpush3.bf16.msra.mxu1 %v73833_v10 }
  0x7a   :  { %64441 = vmatprep.mubr.f32.mxu1 %v73835_v13  ;;  %69473 = vmatprep.subr.bf16.mxu1 %v73833_v10  ;;  %v2666_v13 = vsel %vm124_vm0, %v82_v9, 0  ;;  %v91_v9 = vld [vmem:[#allocation2 + $0x98] sm:$0xff] }
  0x7b   :  { %v73942_v17 = vand.u32 4294901760, %v2666_v13  ;;  %v4701_v14 = vsel %vm124_vm0, %v91_v9, 0 }
  0x7d   :  { %v2739_v22 = vsub.f32 %v2666_v13, %v73942_v17 }
  0x7f   :  { %64400 = vmatmul.mubr.f32.vlgmr.msra.gmra.mrb[0].mxu0 %v73844_v21  ;;  %64442 = vmatmul.mubr.f32.vlgmr.msra.gmra.mrb[0].mxu1 %v73848_v28  ;;  %v73951_v21 = vand.u32 4294901760, %v2669_v18  ;;  %v2740_v26 = vand.u32 4294901760, %v2739_v22  ;;  %v2233_v28 = vsub.f32 %v2231_v20, %v2232_v24 }
  0x80   :  { %69451 = vmatpush3.bf16.msra.mxu0 %v73833_v10  ;;  %64448 = vmatprep.mubr.f32.mxu0 %v1218_v3 }
  0x81   :  { %69453 = vmatprep.subr.bf16.mxu0 %v73851_v35  ;;  %69475 = vmatpush3.bf16.msra.mxu1 %v73833_v10  ;;  %v73961_v25 = vsub.f32 %v2669_v18, %v73951_v21  ;;  %v2741_v30 = vsub.f32 %v2739_v22, %v2740_v26  ;;  %v2234_v32 = vand.u32 4294901760, %v2233_v28 }
  0x82   :  { %64490 = vmatprep.mubr.f32.mxu1 %v1726_v5  ;;  %69477 = vmatprep.subr.bf16.mxu1 %v73851_v35  ;;  %v90_v5 = vld [vmem:[#allocation2 + $0x90] sm:$0xff] }
  0x83   :  { %64449 = vmatmul.mubr.f32.vlgmr.msra.gmra.mrb[2].mxu0 %v1228_v6  ;;  %v2750_v29 = vand.u32 4294901760, %v73961_v25  ;;  %v2742_v34 = vand.u32 4294901760, %v2741_v30  ;;  %v4190_v6 = vsel %vm124_vm0, %v88_v4, 0  ;;  %v4698_v8 = vsel %vm124_vm0, %v90_v5, 0 }
  0x84   :  { %69455 = vmatpush3.bf16.msra.mxu0 %v73851_v35  ;;  %64455 = vmatprep.mubr.f32.mxu0 %v73877_v50  ;;  %v74063_v11 = vand.u32 4294901760, %v4190_v6  ;;  %v74066_v13 = vand.u32 4294901760, %v4698_v8 }
  0x85   :  { %64491 = vmatmul.mubr.f32.vlgmr.msra.gmra.mrb[2].mxu1 %v1736_v7  ;;  %69457 = vmatprep.subr.bf16.mxu0 %v73854_v39  ;;  %v2751_v33 = vsub.f32 %v73961_v25, %v2750_v29  ;;  %v89_v7 = vld [vmem:[#allocation2 + $0x88] sm:$0xff] }
  0x86   :  { %69479 = vmatpush3.bf16.msra.mxu1 %v73851_v35  ;;  %64497 = vmatprep.mubr.f32.mxu1 %v73880_v52  ;;  %v4193_v12 = vsel %vm124_vm0, %v89_v7, 0  ;;  %v4263_v16 = vsub.f32 %v4190_v6, %v74063_v11  ;;  %v4771_v18 = vsub.f32 %v4698_v8, %v74066_v13 }
  0x87   :  { %69481 = vmatprep.subr.bf16.mxu1 %v73854_v39  ;;  %v2752_v37 = vand.u32 4294901760, %v2751_v33  ;;  %v92_v33 = vld [vmem:[#allocation2 + $0xa0] sm:$0xff] }
  0x8b   :  { %64456 = vmatmul.mubr.f32.vlgmr.msra.gmra.mrb[2].mxu0 %v73883_v54 }
  0x8c   :  { %69459 = vmatpush3.bf16.msra.mxu0 %v73854_v39  ;;  %64462 = vmatprep.mubr.f32.mxu0 %v1215_v55  ;;  %v3248_v55 = vand.u32 4294901760, %v3247_v51 }
  0x8d   :  { %64498 = vmatmul.mubr.f32.vlgmr.msra.gmra.mrb[2].mxu1 %v73889_v56  ;;  %69461 = vmatprep.subr.bf16.mxu0 %v73833_v10 }
  0x8e   :  { %69483 = vmatpush3.bf16.msra.mxu1 %v73854_v39  ;;  %64504 = vmatprep.mubr.f32.mxu1 %v1723_v57  ;;  %v3756_v57 = vand.u32 4294901760, %v3755_v53 }
  0x8f   :  { %69485 = vmatprep.subr.bf16.mxu1 %v73833_v10 }
  0x93   :  { %64463 = vmatmul.mubr.f32.vlgmr.msra.gmra.mrb[2].mxu0 %v73896_v58 }
  0x94   :  { %69463 = vmatpush3.bf16.msra.mxu0 %v73833_v10  ;;  %64469 = vmatprep.mubr.f32.mxu0 %v1216_v59  ;;  %v3249_v59 = vsub.f32 %v3247_v51, %v3248_v55 }
  0x95   :  { %64505 = vmatmul.mubr.f32.vlgmr.msra.gmra.mrb[2].mxu1 %v73899_v60  ;;  %69465 = vmatprep.subr.bf16.mxu0 %v73869_v43 }
  0x96   :  { %69487 = vmatpush3.bf16.msra.mxu1 %v73833_v10  ;;  %64511 = vmatprep.mubr.f32.mxu1 %v1724_v61  ;;  %v3757_v61 = vsub.f32 %v3755_v53, %v3756_v57  ;;  %v3250_v63 = vand.u32 4294901760, %v3249_v59 }
  0x97   :  { %69489 = vmatprep.subr.bf16.mxu1 %v73869_v43 }
  0x98   :  { %v3758_v1 = vand.u32 4294901760, %v3757_v61 }
  0x9b   :  { %64470 = vmatmul.mubr.f32.vlgmr.msra.gmra.mrb[2].mxu0 %v1226_v62 }
  0x9c   :  { %69467 = vmatpush3.bf16.msra.mxu0 %v73869_v43  ;;  %64476 = vmatprep.mubr.f32.mxu0 %v73877_v50 }
  0x9d   :  { %64512 = vmatmul.mubr.f32.vlgmr.msra.gmra.mrb[2].mxu1 %v1734_v0  ;;  %69469 = vmatprep.subr.bf16.mxu0 %v73833_v10 }
  0x9e   :  { %69491 = vmatpush3.bf16.msra.mxu1 %v73869_v43  ;;  %64518 = vmatprep.mubr.f32.mxu1 %v73880_v52 }
  0x9f   :  { %69493 = vmatprep.subr.bf16.mxu1 %v73833_v10 }
  0xa3   :  { %64477 = vmatmul.mubr.f32.vlgmr.msra.gmra.mrb[2].mxu0 %v73883_v54 }
  0xa4   :  { %69471 = vmatpush3.bf16.msra.mxu0 %v73833_v10  ;;  %64483 = vmatprep.mubr.f32.mxu0 %v73877_v50  ;;  %v74007_v50 = vand.u32 4294901760, %v3177_v47 }
  0xa5   :  { %64519 = vmatmul.mubr.f32.vlgmr.msra.gmra.mrb[2].mxu1 %v73889_v56  ;;  %69497 = vmatprep.subr.bf16.mxu0 %v73833_v10 }
  0xa6   :  { %69495 = vmatpush3.bf16.msra.mxu1 %v73833_v10  ;;  %64525 = vmatprep.mubr.f32.mxu1 %v73880_v52  ;;  %v74013_v52 = vand.u32 4294901760, %v3685_v49 }
  0xa7   :  { %69521 = vmatprep.subr.bf16.mxu1 %v73833_v10 }
  0xab   :  { %64484 = vmatmul.mubr.f32.vlgmr.msra.gmra.mrb[2].mxu0 %v73883_v54  ;;  %v74020_v54 = vsub.f32 %v3177_v47, %v74007_v50 }
  0xac   :  { %69499 = vmatpush3.bf16.msra.mxu0 %v73833_v10  ;;  %64532 = vmatprep.mubr.f32.mxu0 %v2234_v32 }
  0xad   :  { %64526 = vmatmul.mubr.f32.vlgmr.msra.gmra.mrb[2].mxu1 %v73889_v56  ;;  %69501 = vmatprep.subr.bf16.mxu0 %v73851_v35  ;;  %v74023_v56 = vsub.f32 %v3685_v49, %v74013_v52  ;;  %v3258_v58 = vand.u32 4294901760, %v74020_v54 }
  0xae   :  { %69523 = vmatpush3.bf16.msra.mxu1 %v73833_v10  ;;  %64574 = vmatprep.mubr.f32.mxu1 %v2742_v34  ;;  %v94_v34 = vld [vmem:[#allocation2 + $0xb0] sm:$0xff] }
  0xaf   :  { %64533 = vmatmul.mubr.f32.vlgmr.msra.gmra.mrb[4].mxu0 %v2244_v36  ;;  %69525 = vmatprep.subr.bf16.mxu1 %v73851_v35  ;;  %v3766_v60 = vand.u32 4294901760, %v74023_v56  ;;  %v3259_v62 = vsub.f32 %v74020_v54, %v3258_v58  ;;  %v5206_v36 = vsel %vm124_vm0, %v92_v33, 0  ;;  %v5714_v38 = vsel %vm124_vm0, %v94_v34, 0 }
  0xb0   :  { %69503 = vmatpush3.bf16.msra.mxu0 %v73851_v35  ;;  %64539 = vmatprep.mubr.f32.mxu0 %v73939_v15  ;;  %v74125_v41 = vand.u32 4294901760, %v5206_v36  ;;  %v74128_v44 = vand.u32 4294901760, %v5714_v38 }
  0xb1   :  { %64575 = vmatmul.mubr.f32.vlgmr.msra.gmra.mrb[4].mxu1 %v2752_v37  ;;  %69505 = vmatprep.subr.bf16.mxu0 %v73854_v39  ;;  %v3767_v0 = vsub.f32 %v74023_v56, %v3766_v60  ;;  %v3260_v2 = vand.u32 4294901760, %v3259_v62  ;;  %v93_v37 = vld [vmem:[#allocation2 + $0xa8] sm:$0xff] }
  0xb2   :  { %69527 = vmatpush3.bf16.msra.mxu1 %v73851_v35  ;;  %64581 = vmatprep.mubr.f32.mxu1 %v73942_v17  ;;  %v5209_v42 = vsel %vm124_vm0, %v93_v37, 0  ;;  %v5279_v47 = vsub.f32 %v5206_v36, %v74125_v41  ;;  %v5787_v49 = vsub.f32 %v5714_v38, %v74128_v44 }
  0xb3   :  { %69529 = vmatprep.subr.bf16.mxu1 %v73854_v39  ;;  %v3768_v3 = vand.u32 4294901760, %v3767_v0  ;;  %v122_v0 = vld [vmem:[#allocation7] sm:$0xff] }
  0xb7   :  { %64540 = vmatmul.mubr.f32.vlgmr.msra.gmra.mrb[4].mxu0 %v73945_v19 }
  0xb8   :  { %69507 = vmatpush3.bf16.msra.mxu0 %v73854_v39  ;;  %64546 = vmatprep.mubr.f32.mxu0 %v2231_v20  ;;  %v4264_v20 = vand.u32 4294901760, %v4263_v16 }
  0xb9   :  { %64582 = vmatmul.mubr.f32.vlgmr.msra.gmra.mrb[4].mxu1 %v73951_v21  ;;  %69509 = vmatprep.subr.bf16.mxu0 %v73833_v10 }
  0xba   :  { %69531 = vmatpush3.bf16.msra.mxu1 %v73854_v39  ;;  %64588 = vmatprep.mubr.f32.mxu1 %v2739_v22  ;;  %v4772_v22 = vand.u32 4294901760, %v4771_v18 }
  0xbb   :  { %69533 = vmatprep.subr.bf16.mxu1 %v73833_v10 }
  0xbf   :  { %64547 = vmatmul.mubr.f32.vlgmr.msra.gmra.mrb[4].mxu0 %v73958_v23 }
  0xc0   :  { %69511 = vmatpush3.bf16.msra.mxu0 %v73833_v10  ;;  %64553 = vmatprep.mubr.f32.mxu0 %v2232_v24  ;;  %v4265_v24 = vsub.f32 %v4263_v16, %v4264_v20 }
  0xc1   :  { %64589 = vmatmul.mubr.f32.vlgmr.msra.gmra.mrb[4].mxu1 %v73961_v25  ;;  %69513 = vmatprep.subr.bf16.mxu0 %v73869_v43 }
  0xc2   :  { %69535 = vmatpush3.bf16.msra.mxu1 %v73833_v10  ;;  %64595 = vmatprep.mubr.f32.mxu1 %v2740_v26  ;;  %v4773_v26 = vsub.f32 %v4771_v18, %v4772_v22  ;;  %v4266_v28 = vand.u32 4294901760, %v4265_v24 }
  0xc3   :  { %69537 = vmatprep.subr.bf16.mxu1 %v73869_v43 }
  0xc4   :  { %v4774_v30 = vand.u32 4294901760, %v4773_v26 }
  0xc7   :  { %64554 = vmatmul.mubr.f32.vlgmr.msra.gmra.mrb[4].mxu0 %v2242_v27 }
  0xc8   :  { %69515 = vmatpush3.bf16.msra.mxu0 %v73869_v43  ;;  %64560 = vmatprep.mubr.f32.mxu0 %v73939_v15 }
  0xc9   :  { %64596 = vmatmul.mubr.f32.vlgmr.msra.gmra.mrb[4].mxu1 %v2750_v29  ;;  %69517 = vmatprep.subr.bf16.mxu0 %v73833_v10 }
  0xca   :  { %69539 = vmatpush3.bf16.msra.mxu1 %v73869_v43  ;;  %64602 = vmatprep.mubr.f32.mxu1 %v73942_v17 }
  0xcb   :  { %69541 = vmatprep.subr.bf16.mxu1 %v73833_v10 }
  0xcf   :  { %64561 = vmatmul.mubr.f32.vlgmr.msra.gmra.mrb[4].mxu0 %v73945_v19 }
  0xd0   :  { %69519 = vmatpush3.bf16.msra.mxu0 %v73833_v10  ;;  %64567 = vmatprep.mubr.f32.mxu0 %v73939_v15  ;;  %v74069_v15 = vand.u32 4294901760, %v4193_v12 }
  0xd1   :  { %64603 = vmatmul.mubr.f32.vlgmr.msra.gmra.mrb[4].mxu1 %v73951_v21  ;;  %69545 = vmatprep.subr.bf16.mxu0 %v73833_v10 }
  0xd2   :  { %69543 = vmatpush3.bf16.msra.mxu1 %v73833_v10  ;;  %64609 = vmatprep.mubr.f32.mxu1 %v73942_v17  ;;  %v74075_v17 = vand.u32 4294901760, %v4701_v14 }
  0xd3   :  { %69569 = vmatprep.subr.bf16.mxu1 %v73833_v10 }
  0xd7   :  { %64568 = vmatmul.mubr.f32.vlgmr.msra.gmra.mrb[4].mxu0 %v73945_v19  ;;  %v74082_v19 = vsub.f32 %v4193_v12, %v74069_v15 }
  0xd8   :  { %69547 = vmatpush3.bf16.msra.mxu0 %v73833_v10  ;;  %64616 = vmatprep.mubr.f32.mxu0 %v3250_v63 }
  0xd9   :  { %64610 = vmatmul.mubr.f32.vlgmr.msra.gmra.mrb[4].mxu1 %v73951_v21  ;;  %69549 = vmatprep.subr.bf16.mxu0 %v73851_v35  ;;  %v74085_v21 = vsub.f32 %v4701_v14, %v74075_v17  ;;  %v4274_v23 = vand.u32 4294901760, %v74082_v19 }
  0xda   :  { %69571 = vmatpush3.bf16.msra.mxu1 %v73833_v10  ;;  %64658 = vmatprep.mubr.f32.mxu1 %v3758_v1  ;;  %v6222_v1 = vsel %vm124_vm0, %v122_v0, 0 }
  0xdb   :  { %64617 = vmatmul.mubr.f32.vlgmr.msra.gmra.mrb[6].mxu0 %v3260_v2  ;;  %69573 = vmatprep.subr.bf16.mxu1 %v73851_v35  ;;  %v4782_v25 = vand.u32 4294901760, %v74085_v21  ;;  %v4275_v27 = vsub.f32 %v74082_v19, %v4274_v23  ;;  %v123_v2 = vld [vmem:[#allocation7 + $0x8] sm:$0xff] }
  0xdc   :  { %69551 = vmatpush3.bf16.msra.mxu0 %v73851_v35  ;;  %64623 = vmatprep.mubr.f32.mxu0 %v74001_v46  ;;  %v6225_v4 = vsel %vm124_vm0, %v123_v2, 0 }
  0xdd   :  { %64659 = vmatmul.mubr.f32.vlgmr.msra.gmra.mrb[6].mxu1 %v3768_v3  ;;  %69553 = vmatprep.subr.bf16.mxu0 %v73854_v39  ;;  %v4783_v29 = vsub.f32 %v74085_v21, %v4782_v25  ;;  %v4276_v31 = vand.u32 4294901760, %v4275_v27  ;;  %v74176_v3 = vand.u32 4294901760, %v6222_v1  ;;  %v74182_v6 = vand.u32 4294901760, %v6225_v4 }
  0xde   :  { %69575 = vmatpush3.bf16.msra.mxu1 %v73851_v35  ;;  %64665 = vmatprep.mubr.f32.mxu1 %v74004_v48 }
  0xdf   :  { %69577 = vmatprep.subr.bf16.mxu1 %v73854_v39  ;;  %v4784_v32 = vand.u32 4294901760, %v4783_v29  ;;  %v74180_v5 = vsub.f32 %v6222_v1, %v74176_v3  ;;  %v74194_v8 = vsub.f32 %v6225_v4, %v74182_v6 }
  0xe1   :  { %v74191_v7 = vand.u32 4294901760, %v74180_v5  ;;  %78155 = vst [vmem:[#allocation13_spill] sm:$0xff] %v74194_v8  ;;  %v74200_v14 = vand.u32 4294901760, %v74194_v8 }
  0xe3   :  { %64624 = vmatmul.mubr.f32.vlgmr.msra.gmra.mrb[6].mxu0 %v74007_v50  ;;  %78154 = vst [vmem:[#allocation12_spill] sm:$0xff] %v74191_v7  ;;  %78156 = vst [vmem:[#allocation14_spill] sm:$0xff] %v74200_v14  ;;  %v6307_v26 = vsub.f32 %v74194_v8, %v74200_v14 }
  0xe4   :  { %69555 = vmatpush3.bf16.msra.mxu0 %v73854_v39  ;;  %64630 = vmatprep.mubr.f32.mxu0 %v3247_v51  ;;  %v5280_v51 = vand.u32 4294901760, %v5279_v47 }
  0xe5   :  { %64666 = vmatmul.mubr.f32.vlgmr.msra.gmra.mrb[6].mxu1 %v74013_v52  ;;  %69557 = vmatprep.subr.bf16.mxu0 %v73833_v10  ;;  %v74218_v40 = vand.u32 4294901760, %v6307_v26 }
  0xe6   :  { %69579 = vmatpush3.bf16.msra.mxu1 %v73854_v39  ;;  %64672 = vmatprep.mubr.f32.mxu1 %v3755_v53  ;;  %v5788_v53 = vand.u32 4294901760, %v5787_v49 }
  0xe7   :  { %69581 = vmatprep.subr.bf16.mxu1 %v73833_v10 }
  0xeb   :  { %64631 = vmatmul.mubr.f32.vlgmr.msra.gmra.mrb[6].mxu0 %v74020_v54 }
  0xec   :  { %69559 = vmatpush3.bf16.msra.mxu0 %v73833_v10  ;;  %64637 = vmatprep.mubr.f32.mxu0 %v3248_v55  ;;  %v5281_v55 = vsub.f32 %v5279_v47, %v5280_v51 }
  0xed   :  { %64673 = vmatmul.mubr.f32.vlgmr.msra.gmra.mrb[6].mxu1 %v74023_v56  ;;  %69561 = vmatprep.subr.bf16.mxu0 %v73869_v43 }
  0xee   :  { %69583 = vmatpush3.bf16.msra.mxu1 %v73833_v10  ;;  %64679 = vmatprep.mubr.f32.mxu1 %v3756_v57  ;;  %v5789_v57 = vsub.f32 %v5787_v49, %v5788_v53  ;;  %v5282_v59 = vand.u32 4294901760, %v5281_v55 }
  0xef   :  { %69585 = vmatprep.subr.bf16.mxu1 %v73869_v43 }
  0xf0   :  { %v5790_v61 = vand.u32 4294901760, %v5789_v57 }
  0xf3   :  { %64638 = vmatmul.mubr.f32.vlgmr.msra.gmra.mrb[6].mxu0 %v3258_v58 }
  0xf4   :  { %69563 = vmatpush3.bf16.msra.mxu0 %v73869_v43  ;;  %64644 = vmatprep.mubr.f32.mxu0 %v74001_v46 }
  0xf5   :  { %64680 = vmatmul.mubr.f32.vlgmr.msra.gmra.mrb[6].mxu1 %v3766_v60  ;;  %69565 = vmatprep.subr.bf16.mxu0 %v73833_v10 }
  0xf6   :  { %69587 = vmatpush3.bf16.msra.mxu1 %v73869_v43  ;;  %64686 = vmatprep.mubr.f32.mxu1 %v74004_v48 }
  0xf7   :  { %69589 = vmatprep.subr.bf16.mxu1 %v73833_v10 }
  0xfb   :  { %64645 = vmatmul.mubr.f32.vlgmr.msra.gmra.mrb[6].mxu0 %v74007_v50 }
  0xfc   :  { %69567 = vmatpush3.bf16.msra.mxu0 %v73833_v10  ;;  %64651 = vmatprep.mubr.f32.mxu0 %v74001_v46  ;;  %v74131_v46 = vand.u32 4294901760, %v5209_v42 }
  0xfd   :  { %64687 = vmatmul.mubr.f32.vlgmr.msra.gmra.mrb[6].mxu1 %v74013_v52  ;;  %69593 = vmatprep.subr.bf16.mxu0 %v73833_v10 }
  0xfe   :  { %69591 = vmatpush3.bf16.msra.mxu1 %v73833_v10  ;;  %64693 = vmatprep.mubr.f32.mxu1 %v74004_v48  ;;  %v74137_v48 = vand.u32 4294901760, %v5717_v45 }
  0xff   :  { %69617 = vmatprep.subr.bf16.mxu1 %v73833_v10 }
 0x103   :  { %64652 = vmatmul.mubr.f32.vlgmr.msra.gmra.mrb[6].mxu0 %v74007_v50  ;;  %v5289_v50 = vsub.f32 %v5209_v42, %v74131_v46 }
 0x104   :  { %69595 = vmatpush3.bf16.msra.mxu0 %v73833_v10  ;;  %64700 = vmatprep.mubr.f32.mxu0 %v4266_v28 }
 0x105   :  { %64694 = vmatmul.mubr.f32.vlgmr.msra.gmra.mrb[6].mxu1 %v74013_v52  ;;  %69597 = vmatprep.subr.bf16.mxu0 %v73851_v35  ;;  %v5797_v52 = vsub.f32 %v5717_v45, %v74137_v48  ;;  %v5290_v54 = vand.u32 4294901760, %v5289_v50 }
 0x106   :  { %69619 = vmatpush3.bf16.msra.mxu1 %v73833_v10  ;;  %64742 = vmatprep.mubr.f32.mxu1 %v4774_v30 }
 0x107   :  { %64701 = vmatmul.mubr.f32.vlgmr.msra.gmra.mrb[8].mxu0 %v4276_v31  ;;  %69621 = vmatprep.subr.bf16.mxu1 %v73851_v35  ;;  %v5798_v56 = vand.u32 4294901760, %v5797_v52  ;;  %v5291_v58 = vsub.f32 %v5289_v50, %v5290_v54 }
 0x108   :  { %69599 = vmatpush3.bf16.msra.mxu0 %v73851_v35  ;;  %64707 = vmatprep.mubr.f32.mxu0 %v74063_v11 }
 0x109   :  { %64743 = vmatmul.mubr.f32.vlgmr.msra.gmra.mrb[8].mxu1 %v4784_v32  ;;  %69601 = vmatprep.subr.bf16.mxu0 %v73854_v39  ;;  %v5799_v60 = vsub.f32 %v5797_v52, %v5798_v56  ;;  %v5292_v62 = vand.u32 4294901760, %v5291_v58 }
 0x10a   :  { %69623 = vmatpush3.bf16.msra.mxu1 %v73851_v35  ;;  %64749 = vmatprep.mubr.f32.mxu1 %v74066_v13 }
 0x10b   :  { %69625 = vmatprep.subr.bf16.mxu1 %v73854_v39  ;;  %v5800_v63 = vand.u32 4294901760, %v5799_v60 }
 0x10f   :  { %64708 = vmatmul.mubr.f32.vlgmr.msra.gmra.mrb[8].mxu0 %v74069_v15 }
 0x110   :  { %69603 = vmatpush3.bf16.msra.mxu0 %v73854_v39  ;;  %64714 = vmatprep.mubr.f32.mxu0 %v4263_v16 }
 0x111   :  { %64750 = vmatmul.mubr.f32.vlgmr.msra.gmra.mrb[8].mxu1 %v74075_v17  ;;  %69605 = vmatprep.subr.bf16.mxu0 %v73833_v10 }
 0x112   :  { %69627 = vmatpush3.bf16.msra.mxu1 %v73854_v39  ;;  %64756 = vmatprep.mubr.f32.mxu1 %v4771_v18 }
 0x113   :  { %69629 = vmatprep.subr.bf16.mxu1 %v73833_v10 }
 0x117   :  { %64715 = vmatmul.mubr.f32.vlgmr.msra.gmra.mrb[8].mxu0 %v74082_v19 }
 0x118   :  { %69607 = vmatpush3.bf16.msra.mxu0 %v73833_v10  ;;  %64721 = vmatprep.mubr.f32.mxu0 %v4264_v20 }
 0x119   :  { %64757 = vmatmul.mubr.f32.vlgmr.msra.gmra.mrb[8].mxu1 %v74085_v21  ;;  %69609 = vmatprep.subr.bf16.mxu0 %v73869_v43 }
 0x11a   :  { %69631 = vmatpush3.bf16.msra.mxu1 %v73833_v10  ;;  %64763 = vmatprep.mubr.f32.mxu1 %v4772_v22 }
 0x11b   :  { %69633 = vmatprep.subr.bf16.mxu1 %v73869_v43 }
 0x11f   :  { %64722 = vmatmul.mubr.f32.vlgmr.msra.gmra.mrb[8].mxu0 %v4274_v23 }
 0x120   :  { %69611 = vmatpush3.bf16.msra.mxu0 %v73869_v43  ;;  %64728 = vmatprep.mubr.f32.mxu0 %v74063_v11 }
 0x121   :  { %64764 = vmatmul.mubr.f32.vlgmr.msra.gmra.mrb[8].mxu1 %v4782_v25  ;;  %69613 = vmatprep.subr.bf16.mxu0 %v73833_v10 }
 0x122   :  { %69635 = vmatpush3.bf16.msra.mxu1 %v73869_v43  ;;  %64770 = vmatprep.mubr.f32.mxu1 %v74066_v13 }
 0x123   :  { %69637 = vmatprep.subr.bf16.mxu1 %v73833_v10 }
 0x127   :  { %64729 = vmatmul.mubr.f32.vlgmr.msra.gmra.mrb[8].mxu0 %v74069_v15 }
 0x128   :  { %69615 = vmatpush3.bf16.msra.mxu0 %v73833_v10  ;;  %64735 = vmatprep.mubr.f32.mxu0 %v74063_v11 }
 0x129   :  { %64771 = vmatmul.mubr.f32.vlgmr.msra.gmra.mrb[8].mxu1 %v74075_v17  ;;  %69641 = vmatprep.subr.bf16.mxu0 %v73833_v10 }
 0x12a   :  { %69639 = vmatpush3.bf16.msra.mxu1 %v73833_v10  ;;  %64777 = vmatprep.mubr.f32.mxu1 %v74066_v13  ;;  %v6297_v13 = vsub.f32 %v74180_v5, %v74191_v7 }
 0x12b   :  { %69665 = vmatprep.subr.bf16.mxu1 %v73833_v10 }
 0x12c   :  { %v74209_v25 = vand.u32 4294901760, %v6297_v13 }
 0x12f   :  { %64736 = vmatmul.mubr.f32.vlgmr.msra.gmra.mrb[8].mxu0 %v74069_v15 }
 0x130   :  { %69643 = vmatpush3.bf16.msra.mxu0 %v73833_v10  ;;  %64784 = vmatprep.mubr.f32.mxu0 %v5282_v59 }
 0x131   :  { %64778 = vmatmul.mubr.f32.vlgmr.msra.gmra.mrb[8].mxu1 %v74075_v17  ;;  %69645 = vmatprep.subr.bf16.mxu0 %v73851_v35 }
 0x132   :  { %69667 = vmatpush3.bf16.msra.mxu1 %v73833_v10  ;;  %64826 = vmatprep.mubr.f32.mxu1 %v5790_v61 }
 0x133   :  { %64785 = vmatmul.mubr.f32.vlgmr.msra.gmra.mrb[10].mxu0 %v5292_v62  ;;  %69669 = vmatprep.subr.bf16.mxu1 %v73851_v35 }
 0x134   :  { %69647 = vmatpush3.bf16.msra.mxu0 %v73851_v35  ;;  %64791 = vmatprep.mubr.f32.mxu0 %v74125_v41 }
 0x135   :  { %64827 = vmatmul.mubr.f32.vlgmr.msra.gmra.mrb[10].mxu1 %v5800_v63  ;;  %69649 = vmatprep.subr.bf16.mxu0 %v73854_v39 }
 0x136   :  { %69671 = vmatpush3.bf16.msra.mxu1 %v73851_v35  ;;  %64833 = vmatprep.mubr.f32.mxu1 %v74128_v44 }
 0x137   :  { %69673 = vmatprep.subr.bf16.mxu1 %v73854_v39 }
 0x13b   :  { %64792 = vmatmul.mubr.f32.vlgmr.msra.gmra.mrb[10].mxu0 %v74131_v46 }
 0x13c   :  { %69651 = vmatpush3.bf16.msra.mxu0 %v73854_v39  ;;  %64798 = vmatprep.mubr.f32.mxu0 %v5279_v47 }
 0x13d   :  { %64834 = vmatmul.mubr.f32.vlgmr.msra.gmra.mrb[10].mxu1 %v74137_v48  ;;  %69653 = vmatprep.subr.bf16.mxu0 %v73833_v10 }
 0x13e   :  { %69675 = vmatpush3.bf16.msra.mxu1 %v73854_v39  ;;  %64840 = vmatprep.mubr.f32.mxu1 %v5787_v49 }
 0x13f   :  { %69677 = vmatprep.subr.bf16.mxu1 %v73833_v10 }
 0x143   :  { %64799 = vmatmul.mubr.f32.vlgmr.msra.gmra.mrb[10].mxu0 %v5289_v50 }
 0x144   :  { %69655 = vmatpush3.bf16.msra.mxu0 %v73833_v10  ;;  %64805 = vmatprep.mubr.f32.mxu0 %v5280_v51 }
 0x145   :  { %64841 = vmatmul.mubr.f32.vlgmr.msra.gmra.mrb[10].mxu1 %v5797_v52  ;;  %69657 = vmatprep.subr.bf16.mxu0 %v73869_v43 }
 0x146   :  { %69679 = vmatpush3.bf16.msra.mxu1 %v73833_v10  ;;  %64847 = vmatprep.mubr.f32.mxu1 %v5788_v53 }
 0x147   :  { %69681 = vmatprep.subr.bf16.mxu1 %v73869_v43 }
 0x14b   :  { %64806 = vmatmul.mubr.f32.vlgmr.msra.gmra.mrb[10].mxu0 %v5290_v54 }
 0x14c   :  { %69659 = vmatpush3.bf16.msra.mxu0 %v73869_v43  ;;  %64812 = vmatprep.mubr.f32.mxu0 %v74125_v41 }
 0x14d   :  { %64848 = vmatmul.mubr.f32.vlgmr.msra.gmra.mrb[10].mxu1 %v5798_v56  ;;  %69661 = vmatprep.subr.bf16.mxu0 %v73833_v10 }
 0x14e   :  { %69683 = vmatpush3.bf16.msra.mxu1 %v73869_v43  ;;  %64854 = vmatprep.mubr.f32.mxu1 %v74128_v44 }
 0x14f   :  { %69685 = vmatprep.subr.bf16.mxu1 %v73833_v10 }
 0x152   :  { %v64401_v9 = vpop.f32.mrb[0].mxu0  ;;  %v64443_v15 = vpop.f32.mrb[0].mxu1 }
 0x153   :  { %v6231_v11 = vand.u32 4294901760, %v64401_v9  ;;  %v623_v12 = vpop.f32.mrb[1].mxu0  ;;  %64813 = vmatmul.mubr.f32.vlgmr.msra.gmra.mrb[10].mxu0 %v74131_v46  ;;  %v6733_v18 = vand.u32 4294901760, %v64443_v15  ;;  %v1131_v19 = vpop.f32.mrb[1].mxu1 }
 0x154   :  { %v6228_v16 = vand.u32 4294901760, %v623_v12  ;;  %69663 = vmatpush3.bf16.msra.mxu0 %v73833_v10  ;;  %64819 = vmatprep.mubr.f32.mxu0 %v74125_v41  ;;  %v6730_v22 = vand.u32 4294901760, %v1131_v19 }
 0x155   :  { %v6323_v17 = vsub.f32 %v64401_v9, %v6231_v11  ;;  %64855 = vmatmul.mubr.f32.vlgmr.msra.gmra.mrb[10].mxu1 %v74137_v48  ;;  %v6825_v24 = vsub.f32 %v64443_v15, %v6733_v18 }
 0x156   :  { %v74205_v20 = vpack.c.bf16 %v6231_v11, %v6228_v16  ;;  %v6316_v21 = vsub.f32 %v623_v12, %v6228_v16  ;;  %69687 = vmatpush3.bf16.msra.mxu1 %v73833_v10  ;;  %64861 = vmatprep.mubr.f32.mxu1 %v74128_v44  ;;  %v74213_v28 = vpack.c.bf16 %v6733_v18, %v6730_v22 }
 0x157   :  { %v6324_v23 = vand.u32 4294901760, %v6323_v17  ;;  %v6818_v29 = vsub.f32 %v1131_v19, %v6730_v22  ;;  %v6826_v32 = vand.u32 4294901760, %v6825_v24 }
 0x158   :  { %v6317_v27 = vand.u32 4294901760, %v6316_v21  ;;  %69689 = vmatprep.subr.bf16.mxu0 %v74205_v20  ;;  %v69696_v30 = vpack.c.bf16 %v6323_v17, %v6316_v21  ;;  %69713 = vmatprep.subr.bf16.mxu1 %v74213_v28 }
 0x159   :  { %v6325_v31 = vsub.f32 %v6323_v17, %v6324_v23  ;;  %v6819_v34 = vand.u32 4294901760, %v6818_v29  ;;  %v69720_v36 = vpack.c.bf16 %v6825_v24, %v6818_v29  ;;  %v6827_v38 = vsub.f32 %v6825_v24, %v6826_v32 }
 0x15a   :  { %v6318_v33 = vsub.f32 %v6316_v21, %v6317_v27  ;;  %v69704_v37 = vpack.c.bf16 %v6324_v23, %v6317_v27 }
 0x15b   :  { %64820 = vmatmul.mubr.f32.vlgmr.msra.gmra.mrb[10].mxu0 %v74131_v46  ;;  %v6326_v41 = vand.u32 4294901760, %v6325_v31  ;;  %v6820_v42 = vsub.f32 %v6818_v29, %v6819_v34  ;;  %v69728_v45 = vpack.c.bf16 %v6826_v32, %v6819_v34  ;;  %v6828_v47 = vand.u32 4294901760, %v6827_v38 }
 0x15c   :  { %69691 = vmatpush3.bf16.msra.mxu0 %v74205_v20  ;;  %64868 = vmatprep.mubr.f32.mxu0 %v74209_v25  ;;  %v6319_v44 = vand.u32 4294901760, %v6318_v33 }
 0x15d   :  { %64862 = vmatmul.mubr.f32.vlgmr.msra.gmra.mrb[10].mxu1 %v74137_v48  ;;  %v6821_v50 = vand.u32 4294901760, %v6820_v42 }
 0x15e   :  { %69715 = vmatpush3.bf16.msra.mxu1 %v74213_v28  ;;  %64910 = vmatprep.mubr.f32.mxu1 %v74209_v25  ;;  %v69692_v49 = vpack.c.bf16 %v6326_v41, %v6319_v44 }
 0x15f   :  { %64869 = vmatmul.mubr.f32.vlgmr.msra.gmra.mrb[12].mxu0 %v74218_v40  ;;  %v69716_v46 = vpack.c.bf16 %v6828_v47, %v6821_v50 }
 0x160   :  { %69693 = vmatprep.subr.bf16.mxu0 %v69692_v49  ;;  %64875 = vmatprep.mubr.f32.mxu0 %v74176_v3 }
 0x161   :  { %64911 = vmatmul.mubr.f32.vlgmr.msra.gmra.mrb[12].mxu1 %v74218_v40  ;;  %69695 = vmatpush3.bf16.msra.mxu0 %v69692_v49 }
 0x162   :  { %69717 = vmatprep.subr.bf16.mxu1 %v69716_v46  ;;  %69697 = vmatprep.subr.bf16.mxu0 %v69696_v30 }
 0x163   :  { %69719 = vmatpush3.bf16.msra.mxu1 %v69716_v46  ;;  %64917 = vmatprep.mubr.f32.mxu1 %v74176_v3 }
 0x164   :  { %69721 = vmatprep.subr.bf16.mxu1 %v69720_v36 }
 0x167   :  { %64876 = vmatmul.mubr.f32.vlgmr.msra.gmra.mrb[12].mxu0 %v74182_v6 }
 0x168   :  { %69699 = vmatpush3.bf16.msra.mxu0 %v69696_v30  ;;  %64882 = vmatprep.mubr.f32.mxu0 %v74180_v5 }
 0x169   :  { %64918 = vmatmul.mubr.f32.vlgmr.msra.gmra.mrb[12].mxu1 %v74182_v6  ;;  %69701 = vmatprep.subr.bf16.mxu0 %v74205_v20 }
 0x16a   :  { %69723 = vmatpush3.bf16.msra.mxu1 %v69720_v36  ;;  %64924 = vmatprep.mubr.f32.mxu1 %v74180_v5 }
 0x16b   :  { %69725 = vmatprep.subr.bf16.mxu1 %v74213_v28 }
 0x16f   :  { %64883 = vmatmul.mubr.f32.vlgmr.msra.gmra.mrb[12].mxu0 %v74194_v8 }
 0x170   :  { %69703 = vmatpush3.bf16.msra.mxu0 %v74205_v20  ;;  %64889 = vmatprep.mubr.f32.mxu0 %v74191_v7 }
 0x171   :  { %64925 = vmatmul.mubr.f32.vlgmr.msra.gmra.mrb[12].mxu1 %v74194_v8  ;;  %69705 = vmatprep.subr.bf16.mxu0 %v69704_v37 }
 0x172   :  { %69727 = vmatpush3.bf16.msra.mxu1 %v74213_v28  ;;  %64931 = vmatprep.mubr.f32.mxu1 %v74191_v7 }
 0x173   :  { %69729 = vmatprep.subr.bf16.mxu1 %v69728_v45 }
 0x177   :  { %64890 = vmatmul.mubr.f32.vlgmr.msra.gmra.mrb[12].mxu0 %v74200_v14 }
 0x178   :  { %69707 = vmatpush3.bf16.msra.mxu0 %v69704_v37  ;;  %64896 = vmatprep.mubr.f32.mxu0 %v74176_v3 }
 0x179   :  { %64932 = vmatmul.mubr.f32.vlgmr.msra.gmra.mrb[12].mxu1 %v74200_v14  ;;  %69709 = vmatprep.subr.bf16.mxu0 %v74205_v20 }
 0x17a   :  { %69731 = vmatpush3.bf16.msra.mxu1 %v69728_v45  ;;  %64938 = vmatprep.mubr.f32.mxu1 %v74176_v3 }
 0x17b   :  { %69733 = vmatprep.subr.bf16.mxu1 %v74213_v28 }
 0x17e   :  { %v64485_v48 = vpop.f32.mrb[2].mxu0 }
 0x17f   :  { %v7235_v51 = vand.u32 4294901760, %v64485_v48  ;;  %v1639_v52 = vpop.f32.mrb[3].mxu0  ;;  %64897 = vmatmul.mubr.f32.vlgmr.msra.gmra.mrb[12].mxu0 %v74182_v6 }
 0x180   :  { %v64527_v53 = vpop.f32.mrb[2].mxu1  ;;  %v7232_v54 = vand.u32 4294901760, %v1639_v52  ;;  %69711 = vmatpush3.bf16.msra.mxu0 %v74205_v20  ;;  %64903 = vmatprep.mubr.f32.mxu0 %v74176_v3 }
 0x181   :  { %v7327_v55 = vsub.f32 %v64485_v48, %v7235_v51  ;;  %v7737_v56 = vand.u32 4294901760, %v64527_v53  ;;  %v2147_v57 = vpop.f32.mrb[3].mxu1  ;;  %64939 = vmatmul.mubr.f32.vlgmr.msra.gmra.mrb[12].mxu1 %v74182_v6 }
 0x182   :  { %v74251_v58 = vpack.c.bf16 %v7235_v51, %v7232_v54  ;;  %v7320_v59 = vsub.f32 %v1639_v52, %v7232_v54  ;;  %v7734_v60 = vand.u32 4294901760, %v2147_v57  ;;  %69735 = vmatpush3.bf16.msra.mxu1 %v74213_v28  ;;  %64945 = vmatprep.mubr.f32.mxu1 %v74176_v3 }
 0x183   :  { %v7328_v61 = vand.u32 4294901760, %v7327_v55  ;;  %v7829_v62 = vsub.f32 %v64527_v53, %v7737_v56 }
 0x184   :  { %v7321_v63 = vand.u32 4294901760, %v7320_v59  ;;  %v74255_v0 = vpack.c.bf16 %v7737_v56, %v7734_v60  ;;  %v7822_v1 = vsub.f32 %v2147_v57, %v7734_v60  ;;  %69737 = vmatprep.subr.bf16.mxu0 %v74251_v58  ;;  %v69744_v2 = vpack.c.bf16 %v7327_v55, %v7320_v59 }
 0x185   :  { %v7329_v4 = vsub.f32 %v7327_v55, %v7328_v61  ;;  %v7830_v9 = vand.u32 4294901760, %v7829_v62 }
 0x186   :  { %v7322_v11 = vsub.f32 %v7320_v59, %v7321_v63  ;;  %v7823_v12 = vand.u32 4294901760, %v7822_v1  ;;  %69761 = vmatprep.subr.bf16.mxu1 %v74255_v0  ;;  %v69768_v13 = vpack.c.bf16 %v7829_v62, %v7822_v1  ;;  %v69752_v15 = vpack.c.bf16 %v7328_v61, %v7321_v63 }
 0x187   :  { %v7831_v16 = vsub.f32 %v7829_v62, %v7830_v9  ;;  %64904 = vmatmul.mubr.f32.vlgmr.msra.gmra.mrb[12].mxu0 %v74182_v6  ;;  %v7330_v17 = vand.u32 4294901760, %v7329_v4 }
 0x188   :  { %v7824_v18 = vsub.f32 %v7822_v1, %v7823_v12  ;;  %69739 = vmatpush3.bf16.msra.mxu0 %v74251_v58  ;;  %64952 = vmatprep.mubr.f32.mxu0 %v74209_v25  ;;  %v7323_v19 = vand.u32 4294901760, %v7322_v11  ;;  %v69776_v20 = vpack.c.bf16 %v7830_v9, %v7823_v12 }
 0x189   :  { %64946 = vmatmul.mubr.f32.vlgmr.msra.gmra.mrb[12].mxu1 %v74182_v6  ;;  %v7832_v21 = vand.u32 4294901760, %v7831_v16 }
 0x18a   :  { %69763 = vmatpush3.bf16.msra.mxu1 %v74255_v0  ;;  %64994 = vmatprep.mubr.f32.mxu1 %v74209_v25  ;;  %v69740_v22 = vpack.c.bf16 %v7330_v17, %v7323_v19  ;;  %v7825_v23 = vand.u32 4294901760, %v7824_v18 }
 0x18b   :  { %64953 = vmatmul.mubr.f32.vlgmr.msra.gmra.mrb[14].mxu0 %v74218_v40 }
 0x18c   :  { %69741 = vmatprep.subr.bf16.mxu0 %v69740_v22  ;;  %v69764_v24 = vpack.c.bf16 %v7832_v21, %v7825_v23  ;;  %64959 = vmatprep.mubr.f32.mxu0 %v74176_v3 }
 0x18d   :  { %64995 = vmatmul.mubr.f32.vlgmr.msra.gmra.mrb[14].mxu1 %v74218_v40  ;;  %69743 = vmatpush3.bf16.msra.mxu0 %v69740_v22 }
 0x18e   :  { %69765 = vmatprep.subr.bf16.mxu1 %v69764_v24  ;;  %69745 = vmatprep.subr.bf16.mxu0 %v69744_v2 }
 0x18f   :  { %69767 = vmatpush3.bf16.msra.mxu1 %v69764_v24  ;;  %65001 = vmatprep.mubr.f32.mxu1 %v74176_v3 }
 0x190   :  { %69769 = vmatprep.subr.bf16.mxu1 %v69768_v13 }
 0x193   :  { %64960 = vmatmul.mubr.f32.vlgmr.msra.gmra.mrb[14].mxu0 %v74182_v6 }
 0x194   :  { %69747 = vmatpush3.bf16.msra.mxu0 %v69744_v2  ;;  %64966 = vmatprep.mubr.f32.mxu0 %v74180_v5 }
 0x195   :  { %65002 = vmatmul.mubr.f32.vlgmr.msra.gmra.mrb[14].mxu1 %v74182_v6  ;;  %69749 = vmatprep.subr.bf16.mxu0 %v74251_v58 }
 0x196   :  { %69771 = vmatpush3.bf16.msra.mxu1 %v69768_v13  ;;  %65008 = vmatprep.mubr.f32.mxu1 %v74180_v5 }
 0x197   :  { %69773 = vmatprep.subr.bf16.mxu1 %v74255_v0 }
 0x19b   :  { %64967 = vmatmul.mubr.f32.vlgmr.msra.gmra.mrb[14].mxu0 %v74194_v8 }
 0x19c   :  { %69751 = vmatpush3.bf16.msra.mxu0 %v74251_v58  ;;  %64973 = vmatprep.mubr.f32.mxu0 %v74191_v7 }
 0x19d   :  { %65009 = vmatmul.mubr.f32.vlgmr.msra.gmra.mrb[14].mxu1 %v74194_v8  ;;  %69753 = vmatprep.subr.bf16.mxu0 %v69752_v15 }
 0x19e   :  { %69775 = vmatpush3.bf16.msra.mxu1 %v74255_v0  ;;  %65015 = vmatprep.mubr.f32.mxu1 %v74191_v7 }
 0x19f   :  { %69777 = vmatprep.subr.bf16.mxu1 %v69776_v20 }
 0x1a3   :  { %64974 = vmatmul.mubr.f32.vlgmr.msra.gmra.mrb[14].mxu0 %v74200_v14 }
 0x1a4   :  { %69755 = vmatpush3.bf16.msra.mxu0 %v69752_v15  ;;  %64980 = vmatprep.mubr.f32.mxu0 %v74176_v3 }
 0x1a5   :  { %65016 = vmatmul.mubr.f32.vlgmr.msra.gmra.mrb[14].mxu1 %v74200_v14  ;;  %69757 = vmatprep.subr.bf16.mxu0 %v74251_v58 }
 0x1a6   :  { %69779 = vmatpush3.bf16.msra.mxu1 %v69776_v20  ;;  %65022 = vmatprep.mubr.f32.mxu1 %v74176_v3 }
 0x1a7   :  { %69781 = vmatprep.subr.bf16.mxu1 %v74255_v0 }
 0x1aa   :  { %v64569_v26 = vpop.f32.mrb[4].mxu0 }
 0x1ab   :  { %v8239_v27 = vand.u32 4294901760, %v64569_v26  ;;  %v2655_v28 = vpop.f32.mrb[5].mxu0  ;;  %64981 = vmatmul.mubr.f32.vlgmr.msra.gmra.mrb[14].mxu0 %v74182_v6 }
 0x1ac   :  { %v64611_v29 = vpop.f32.mrb[4].mxu1  ;;  %v8236_v30 = vand.u32 4294901760, %v2655_v28  ;;  %69759 = vmatpush3.bf16.msra.mxu0 %v74251_v58  ;;  %64987 = vmatprep.mubr.f32.mxu0 %v74176_v3 }
 0x1ad   :  { %v8331_v31 = vsub.f32 %v64569_v26, %v8239_v27  ;;  %v8741_v32 = vand.u32 4294901760, %v64611_v29  ;;  %v3163_v33 = vpop.f32.mrb[5].mxu1  ;;  %65023 = vmatmul.mubr.f32.vlgmr.msra.gmra.mrb[14].mxu1 %v74182_v6 }
 0x1ae   :  { %v74291_v34 = vpack.c.bf16 %v8239_v27, %v8236_v30  ;;  %v8324_v36 = vsub.f32 %v2655_v28, %v8236_v30  ;;  %v8738_v37 = vand.u32 4294901760, %v3163_v33  ;;  %69783 = vmatpush3.bf16.msra.mxu1 %v74255_v0  ;;  %65029 = vmatprep.mubr.f32.mxu1 %v74176_v3 }
 0x1af   :  { %v8332_v38 = vand.u32 4294901760, %v8331_v31  ;;  %v8833_v41 = vsub.f32 %v64611_v29, %v8741_v32 }
 0x1b0   :  { %v8325_v42 = vand.u32 4294901760, %v8324_v36  ;;  %v74295_v44 = vpack.c.bf16 %v8741_v32, %v8738_v37  ;;  %v8826_v45 = vsub.f32 %v3163_v33, %v8738_v37  ;;  %69785 = vmatprep.subr.bf16.mxu0 %v74291_v34  ;;  %v69792_v47 = vpack.c.bf16 %v8331_v31, %v8324_v36 }
 0x1b1   :  { %v8333_v49 = vsub.f32 %v8331_v31, %v8332_v38  ;;  %v8834_v50 = vand.u32 4294901760, %v8833_v41 }
 0x1b2   :  { %v8326_v46 = vsub.f32 %v8324_v36, %v8325_v42  ;;  %v8827_v48 = vand.u32 4294901760, %v8826_v45  ;;  %69809 = vmatprep.subr.bf16.mxu1 %v74295_v44  ;;  %v69816_v51 = vpack.c.bf16 %v8833_v41, %v8826_v45  ;;  %v69800_v52 = vpack.c.bf16 %v8332_v38, %v8325_v42 }
 0x1b3   :  { %v8835_v53 = vsub.f32 %v8833_v41, %v8834_v50  ;;  %64988 = vmatmul.mubr.f32.vlgmr.msra.gmra.mrb[14].mxu0 %v74182_v6  ;;  %v8334_v54 = vand.u32 4294901760, %v8333_v49 }
 0x1b4   :  { %v8828_v55 = vsub.f32 %v8826_v45, %v8827_v48  ;;  %69787 = vmatpush3.bf16.msra.mxu0 %v74291_v34  ;;  %65036 = vmatprep.mubr.f32.mxu0 %v74209_v25  ;;  %v8327_v56 = vand.u32 4294901760, %v8326_v46  ;;  %v69824_v57 = vpack.c.bf16 %v8834_v50, %v8827_v48 }
 0x1b5   :  { %65030 = vmatmul.mubr.f32.vlgmr.msra.gmra.mrb[14].mxu1 %v74182_v6  ;;  %v8836_v58 = vand.u32 4294901760, %v8835_v53 }
 0x1b6   :  { %69811 = vmatpush3.bf16.msra.mxu1 %v74295_v44  ;;  %65078 = vmatprep.mubr.f32.mxu1 %v74209_v25  ;;  %v69788_v59 = vpack.c.bf16 %v8334_v54, %v8327_v56  ;;  %v8829_v60 = vand.u32 4294901760, %v8828_v55 }
 0x1b7   :  { %65037 = vmatmul.mubr.f32.vlgmr.msra.gmra.mrb[16].mxu0 %v74218_v40 }
 0x1b8   :  { %69789 = vmatprep.subr.bf16.mxu0 %v69788_v59  ;;  %v69812_v61 = vpack.c.bf16 %v8836_v58, %v8829_v60  ;;  %65043 = vmatprep.mubr.f32.mxu0 %v74176_v3 }
 0x1b9   :  { %65079 = vmatmul.mubr.f32.vlgmr.msra.gmra.mrb[16].mxu1 %v74218_v40  ;;  %69791 = vmatpush3.bf16.msra.mxu0 %v69788_v59 }
 0x1ba   :  { %69813 = vmatprep.subr.bf16.mxu1 %v69812_v61  ;;  %69793 = vmatprep.subr.bf16.mxu0 %v69792_v47 }
 0x1bb   :  { %69815 = vmatpush3.bf16.msra.mxu1 %v69812_v61  ;;  %65085 = vmatprep.mubr.f32.mxu1 %v74176_v3 }
 0x1bc   :  { %69817 = vmatprep.subr.bf16.mxu1 %v69816_v51 }
 0x1bf   :  { %65044 = vmatmul.mubr.f32.vlgmr.msra.gmra.mrb[16].mxu0 %v74182_v6 }
 0x1c0   :  { %69795 = vmatpush3.bf16.msra.mxu0 %v69792_v47  ;;  %65050 = vmatprep.mubr.f32.mxu0 %v74180_v5 }
 0x1c1   :  { %65086 = vmatmul.mubr.f32.vlgmr.msra.gmra.mrb[16].mxu1 %v74182_v6  ;;  %69797 = vmatprep.subr.bf16.mxu0 %v74291_v34 }
 0x1c2   :  { %69819 = vmatpush3.bf16.msra.mxu1 %v69816_v51  ;;  %65092 = vmatprep.mubr.f32.mxu1 %v74180_v5 }
 0x1c3   :  { %69821 = vmatprep.subr.bf16.mxu1 %v74295_v44 }
 0x1c7   :  { %65051 = vmatmul.mubr.f32.vlgmr.msra.gmra.mrb[16].mxu0 %v74194_v8 }
 0x1c8   :  { %69799 = vmatpush3.bf16.msra.mxu0 %v74291_v34  ;;  %65057 = vmatprep.mubr.f32.mxu0 %v74191_v7 }
 0x1c9   :  { %65093 = vmatmul.mubr.f32.vlgmr.msra.gmra.mrb[16].mxu1 %v74194_v8  ;;  %69801 = vmatprep.subr.bf16.mxu0 %v69800_v52 }
 0x1ca   :  { %69823 = vmatpush3.bf16.msra.mxu1 %v74295_v44  ;;  %65099 = vmatprep.mubr.f32.mxu1 %v74191_v7 }
 0x1cb   :  { %69825 = vmatprep.subr.bf16.mxu1 %v69824_v57 }
 0x1cf   :  { %65058 = vmatmul.mubr.f32.vlgmr.msra.gmra.mrb[16].mxu0 %v74200_v14 }
 0x1d0   :  { %69803 = vmatpush3.bf16.msra.mxu0 %v69800_v52  ;;  %65064 = vmatprep.mubr.f32.mxu0 %v74176_v3 }
 0x1d1   :  { %65100 = vmatmul.mubr.f32.vlgmr.msra.gmra.mrb[16].mxu1 %v74200_v14  ;;  %69805 = vmatprep.subr.bf16.mxu0 %v74291_v34 }
 0x1d2   :  { %69827 = vmatpush3.bf16.msra.mxu1 %v69824_v57  ;;  %65106 = vmatprep.mubr.f32.mxu1 %v74176_v3 }
 0x1d3   :  { %69829 = vmatprep.subr.bf16.mxu1 %v74295_v44 }
 0x1d6   :  { %v64653_v62 = vpop.f32.mrb[6].mxu0 }
 0x1d7   :  { %v9243_v63 = vand.u32 4294901760, %v64653_v62  ;;  %v3671_v0 = vpop.f32.mrb[7].mxu0  ;;  %65065 = vmatmul.mubr.f32.vlgmr.msra.gmra.mrb[16].mxu0 %v74182_v6 }
 0x1d8   :  { %v64695_v1 = vpop.f32.mrb[6].mxu1  ;;  %v9240_v2 = vand.u32 4294901760, %v3671_v0  ;;  %69807 = vmatpush3.bf16.msra.mxu0 %v74291_v34  ;;  %65071 = vmatprep.mubr.f32.mxu0 %v74176_v3 }
 0x1d9   :  { %v9335_v4 = vsub.f32 %v64653_v62, %v9243_v63  ;;  %v9745_v9 = vand.u32 4294901760, %v64695_v1  ;;  %v4179_v11 = vpop.f32.mrb[7].mxu1  ;;  %65107 = vmatmul.mubr.f32.vlgmr.msra.gmra.mrb[16].mxu1 %v74182_v6 }
 0x1da   :  { %v74331_v12 = vpack.c.bf16 %v9243_v63, %v9240_v2  ;;  %v9328_v13 = vsub.f32 %v3671_v0, %v9240_v2  ;;  %v9742_v15 = vand.u32 4294901760, %v4179_v11  ;;  %69831 = vmatpush3.bf16.msra.mxu1 %v74295_v44  ;;  %65113 = vmatprep.mubr.f32.mxu1 %v74176_v3 }
 0x1db   :  { %v9336_v16 = vand.u32 4294901760, %v9335_v4  ;;  %v9837_v17 = vsub.f32 %v64695_v1, %v9745_v9 }
 0x1dc   :  { %v9329_v18 = vand.u32 4294901760, %v9328_v13  ;;  %v74335_v19 = vpack.c.bf16 %v9745_v9, %v9742_v15  ;;  %v9830_v20 = vsub.f32 %v4179_v11, %v9742_v15  ;;  %69833 = vmatprep.subr.bf16.mxu0 %v74331_v12  ;;  %v69840_v21 = vpack.c.bf16 %v9335_v4, %v9328_v13 }
 0x1dd   :  { %v9337_v22 = vsub.f32 %v9335_v4, %v9336_v16  ;;  %v9838_v23 = vand.u32 4294901760, %v9837_v17 }
 0x1de   :  { %v9330_v24 = vsub.f32 %v9328_v13, %v9329_v18  ;;  %v9831_v26 = vand.u32 4294901760, %v9830_v20  ;;  %69857 = vmatprep.subr.bf16.mxu1 %v74335_v19  ;;  %v69864_v27 = vpack.c.bf16 %v9837_v17, %v9830_v20  ;;  %v69848_v28 = vpack.c.bf16 %v9336_v16, %v9329_v18 }
 0x1df   :  { %v9839_v29 = vsub.f32 %v9837_v17, %v9838_v23  ;;  %65072 = vmatmul.mubr.f32.vlgmr.msra.gmra.mrb[16].mxu0 %v74182_v6  ;;  %v9338_v30 = vand.u32 4294901760, %v9337_v22 }
 0x1e0   :  { %v9832_v31 = vsub.f32 %v9830_v20, %v9831_v26  ;;  %69835 = vmatpush3.bf16.msra.mxu0 %v74331_v12  ;;  %65120 = vmatprep.mubr.f32.mxu0 %v74209_v25  ;;  %v9331_v32 = vand.u32 4294901760, %v9330_v24  ;;  %v69872_v33 = vpack.c.bf16 %v9838_v23, %v9831_v26 }
 0x1e1   :  { %65114 = vmatmul.mubr.f32.vlgmr.msra.gmra.mrb[16].mxu1 %v74182_v6  ;;  %v9840_v34 = vand.u32 4294901760, %v9839_v29 }
 0x1e2   :  { %69859 = vmatpush3.bf16.msra.mxu1 %v74335_v19  ;;  %65162 = vmatprep.mubr.f32.mxu1 %v74209_v25  ;;  %v69836_v36 = vpack.c.bf16 %v9338_v30, %v9331_v32  ;;  %v9833_v37 = vand.u32 4294901760, %v9832_v31 }
 0x1e3   :  { %65121 = vmatmul.mubr.f32.vlgmr.msra.gmra.mrb[18].mxu0 %v74218_v40 }
 0x1e4   :  { %69837 = vmatprep.subr.bf16.mxu0 %v69836_v36  ;;  %v69860_v38 = vpack.c.bf16 %v9840_v34, %v9833_v37  ;;  %65127 = vmatprep.mubr.f32.mxu0 %v74176_v3 }
 0x1e5   :  { %65163 = vmatmul.mubr.f32.vlgmr.msra.gmra.mrb[18].mxu1 %v74218_v40  ;;  %69839 = vmatpush3.bf16.msra.mxu0 %v69836_v36 }
 0x1e6   :  { %69861 = vmatprep.subr.bf16.mxu1 %v69860_v38  ;;  %69841 = vmatprep.subr.bf16.mxu0 %v69840_v21 }
 0x1e7   :  { %69863 = vmatpush3.bf16.msra.mxu1 %v69860_v38  ;;  %65169 = vmatprep.mubr.f32.mxu1 %v74176_v3 }
 0x1e8   :  { %69865 = vmatprep.subr.bf16.mxu1 %v69864_v27 }
 0x1eb   :  { %65128 = vmatmul.mubr.f32.vlgmr.msra.gmra.mrb[18].mxu0 %v74182_v6 }
 0x1ec   :  { %69843 = vmatpush3.bf16.msra.mxu0 %v69840_v21  ;;  %65134 = vmatprep.mubr.f32.mxu0 %v74180_v5 }
 0x1ed   :  { %65170 = vmatmul.mubr.f32.vlgmr.msra.gmra.mrb[18].mxu1 %v74182_v6  ;;  %69845 = vmatprep.subr.bf16.mxu0 %v74331_v12 }
 0x1ee   :  { %69867 = vmatpush3.bf16.msra.mxu1 %v69864_v27  ;;  %65176 = vmatprep.mubr.f32.mxu1 %v74180_v5 }
 0x1ef   :  { %69869 = vmatprep.subr.bf16.mxu1 %v74335_v19 }
 0x1f3   :  { %65135 = vmatmul.mubr.f32.vlgmr.msra.gmra.mrb[18].mxu0 %v74194_v8 }
 0x1f4   :  { %69847 = vmatpush3.bf16.msra.mxu0 %v74331_v12  ;;  %65141 = vmatprep.mubr.f32.mxu0 %v74191_v7 }
 0x1f5   :  { %65177 = vmatmul.mubr.f32.vlgmr.msra.gmra.mrb[18].mxu1 %v74194_v8  ;;  %69849 = vmatprep.subr.bf16.mxu0 %v69848_v28 }
 0x1f6   :  { %69871 = vmatpush3.bf16.msra.mxu1 %v74335_v19  ;;  %65183 = vmatprep.mubr.f32.mxu1 %v74191_v7 }
 0x1f7   :  { %69873 = vmatprep.subr.bf16.mxu1 %v69872_v33 }
 0x1fb   :  { %65142 = vmatmul.mubr.f32.vlgmr.msra.gmra.mrb[18].mxu0 %v74200_v14 }
 0x1fc   :  { %69851 = vmatpush3.bf16.msra.mxu0 %v69848_v28  ;;  %65148 = vmatprep.mubr.f32.mxu0 %v74176_v3 }
 0x1fd   :  { %65184 = vmatmul.mubr.f32.vlgmr.msra.gmra.mrb[18].mxu1 %v74200_v14  ;;  %69853 = vmatprep.subr.bf16.mxu0 %v74331_v12 }
 0x1fe   :  { %69875 = vmatpush3.bf16.msra.mxu1 %v69872_v33  ;;  %65190 = vmatprep.mubr.f32.mxu1 %v74176_v3 }
 0x1ff   :  { %69877 = vmatprep.subr.bf16.mxu1 %v74335_v19 }
 0x202   :  { %v64737_v41 = vpop.f32.mrb[8].mxu0 }
 0x203   :  { %v10247_v42 = vand.u32 4294901760, %v64737_v41  ;;  %v4687_v44 = vpop.f32.mrb[9].mxu0  ;;  %65149 = vmatmul.mubr.f32.vlgmr.msra.gmra.mrb[18].mxu0 %v74182_v6 }
 0x204   :  { %v64779_v45 = vpop.f32.mrb[8].mxu1  ;;  %v10244_v47 = vand.u32 4294901760, %v4687_v44  ;;  %69855 = vmatpush3.bf16.msra.mxu0 %v74331_v12  ;;  %65155 = vmatprep.mubr.f32.mxu0 %v74176_v3 }
 0x205   :  { %v10339_v49 = vsub.f32 %v64737_v41, %v10247_v42  ;;  %v10749_v50 = vand.u32 4294901760, %v64779_v45  ;;  %v5195_v46 = vpop.f32.mrb[9].mxu1  ;;  %65191 = vmatmul.mubr.f32.vlgmr.msra.gmra.mrb[18].mxu1 %v74182_v6 }
 0x206   :  { %v74371_v48 = vpack.c.bf16 %v10247_v42, %v10244_v47  ;;  %v10332_v51 = vsub.f32 %v4687_v44, %v10244_v47  ;;  %v10746_v52 = vand.u32 4294901760, %v5195_v46  ;;  %69879 = vmatpush3.bf16.msra.mxu1 %v74335_v19  ;;  %65197 = vmatprep.mubr.f32.mxu1 %v74176_v3 }
 0x207   :  { %v10340_v53 = vand.u32 4294901760, %v10339_v49  ;;  %v10841_v54 = vsub.f32 %v64779_v45, %v10749_v50 }
 0x208   :  { %v10333_v55 = vand.u32 4294901760, %v10332_v51  ;;  %v74375_v56 = vpack.c.bf16 %v10749_v50, %v10746_v52  ;;  %v10834_v57 = vsub.f32 %v5195_v46, %v10746_v52  ;;  %69881 = vmatprep.subr.bf16.mxu0 %v74371_v48  ;;  %v69888_v58 = vpack.c.bf16 %v10339_v49, %v10332_v51 }
 0x209   :  { %v10341_v59 = vsub.f32 %v10339_v49, %v10340_v53  ;;  %v10842_v60 = vand.u32 4294901760, %v10841_v54 }
 0x20a   :  { %v10334_v61 = vsub.f32 %v10332_v51, %v10333_v55  ;;  %v10835_v62 = vand.u32 4294901760, %v10834_v57  ;;  %69905 = vmatprep.subr.bf16.mxu1 %v74375_v56  ;;  %v69912_v63 = vpack.c.bf16 %v10841_v54, %v10834_v57  ;;  %v69896_v0 = vpack.c.bf16 %v10340_v53, %v10333_v55  ;;  %v98_v55 = vld [vmem:[#allocation4 + $0x10] sm:$0xff] }
 0x20b   :  { %v10843_v1 = vsub.f32 %v10841_v54, %v10842_v60  ;;  %65156 = vmatmul.mubr.f32.vlgmr.msra.gmra.mrb[18].mxu0 %v74182_v6  ;;  %v10342_v2 = vand.u32 4294901760, %v10341_v59  ;;  %v96_v54 = vld [vmem:[#allocation4] sm:$0xff]  ;;  %v12760_v59 = vsel %vm124_vm0, %v98_v55, 0 }
 0x20c   :  { %v10836_v4 = vsub.f32 %v10834_v57, %v10835_v62  ;;  %69883 = vmatpush3.bf16.msra.mxu0 %v74371_v48  ;;  %65204 = vmatprep.mubr.f32.mxu0 %v74209_v25  ;;  %v10335_v9 = vand.u32 4294901760, %v10334_v61  ;;  %v69920_v11 = vpack.c.bf16 %v10842_v60, %v10835_v62  ;;  %v12252_v57 = vsel %vm124_vm0, %v96_v54, 0 }
 0x20d   :  { %65198 = vmatmul.mubr.f32.vlgmr.msra.gmra.mrb[18].mxu1 %v74182_v6  ;;  %v10844_v12 = vand.u32 4294901760, %v10843_v1  ;;  %v74443_v60 = vand.u32 4294901760, %v12252_v57  ;;  %v74446_v62 = vand.u32 4294901760, %v12760_v59 }
 0x20e   :  { %69907 = vmatpush3.bf16.msra.mxu1 %v74375_v56  ;;  %65246 = vmatprep.mubr.f32.mxu1 %v74209_v25  ;;  %v69884_v13 = vpack.c.bf16 %v10342_v2, %v10335_v9  ;;  %v10837_v15 = vand.u32 4294901760, %v10836_v4 }
 0x20f   :  { %65205 = vmatmul.mubr.f32.vlgmr.msra.gmra.mrb[20].mxu0 %v74218_v40  ;;  %v12325_v1 = vsub.f32 %v12252_v57, %v74443_v60  ;;  %v12833_v4 = vsub.f32 %v12760_v59, %v74446_v62 }
 0x210   :  { %69885 = vmatprep.subr.bf16.mxu0 %v69884_v13  ;;  %v69908_v16 = vpack.c.bf16 %v10844_v12, %v10837_v15  ;;  %65211 = vmatprep.mubr.f32.mxu0 %v74176_v3 }
 0x211   :  { %65247 = vmatmul.mubr.f32.vlgmr.msra.gmra.mrb[20].mxu1 %v74218_v40  ;;  %69887 = vmatpush3.bf16.msra.mxu0 %v69884_v13  ;;  %v12834_v15 = vand.u32 4294901760, %v12833_v4 }
 0x212   :  { %69909 = vmatprep.subr.bf16.mxu1 %v69908_v16  ;;  %69889 = vmatprep.subr.bf16.mxu0 %v69888_v58 }
 0x213   :  { %69911 = vmatpush3.bf16.msra.mxu1 %v69908_v16  ;;  %65253 = vmatprep.mubr.f32.mxu1 %v74176_v3 }
 0x214   :  { %69913 = vmatprep.subr.bf16.mxu1 %v69912_v63 }
 0x217   :  { %65212 = vmatmul.mubr.f32.vlgmr.msra.gmra.mrb[20].mxu0 %v74182_v6 }
 0x218   :  { %69891 = vmatpush3.bf16.msra.mxu0 %v69888_v58  ;;  %65218 = vmatprep.mubr.f32.mxu0 %v74180_v5  ;;  %v99_v58 = vld [vmem:[#allocation4 + $0x18] sm:$0xff] }
 0x219   :  { %65254 = vmatmul.mubr.f32.vlgmr.msra.gmra.mrb[20].mxu1 %v74182_v6  ;;  %69893 = vmatprep.subr.bf16.mxu0 %v74371_v48 }
 0x21a   :  { %69915 = vmatpush3.bf16.msra.mxu1 %v69912_v63  ;;  %65260 = vmatprep.mubr.f32.mxu1 %v74180_v5  ;;  %v12763_v63 = vsel %vm124_vm0, %v99_v58, 0 }
 0x21b   :  { %69917 = vmatprep.subr.bf16.mxu1 %v74375_v56  ;;  %v74456_v2 = vand.u32 4294901760, %v12763_v63 }
 0x21d   :  { %v74465_v12 = vsub.f32 %v12763_v63, %v74456_v2 }
 0x21f   :  { %65219 = vmatmul.mubr.f32.vlgmr.msra.gmra.mrb[20].mxu0 %v74194_v8 }
 0x220   :  { %69895 = vmatpush3.bf16.msra.mxu0 %v74371_v48  ;;  %65225 = vmatprep.mubr.f32.mxu0 %v74191_v7 }
 0x221   :  { %65261 = vmatmul.mubr.f32.vlgmr.msra.gmra.mrb[20].mxu1 %v74194_v8  ;;  %69897 = vmatprep.subr.bf16.mxu0 %v69896_v0 }
 0x222   :  { %69919 = vmatpush3.bf16.msra.mxu1 %v74375_v56  ;;  %65267 = vmatprep.mubr.f32.mxu1 %v74191_v7 }
 0x223   :  { %69921 = vmatprep.subr.bf16.mxu1 %v69920_v11 }
 0x227   :  { %65226 = vmatmul.mubr.f32.vlgmr.msra.gmra.mrb[20].mxu0 %v74200_v14 }
 0x228   :  { %69899 = vmatpush3.bf16.msra.mxu0 %v69896_v0  ;;  %65232 = vmatprep.mubr.f32.mxu0 %v74176_v3 }
 0x229   :  { %65268 = vmatmul.mubr.f32.vlgmr.msra.gmra.mrb[20].mxu1 %v74200_v14  ;;  %69901 = vmatprep.subr.bf16.mxu0 %v74371_v48 }
 0x22a   :  { %69923 = vmatpush3.bf16.msra.mxu1 %v69920_v11  ;;  %65274 = vmatprep.mubr.f32.mxu1 %v74176_v3  ;;  %v12326_v11 = vand.u32 4294901760, %v12325_v1 }
 0x22b   :  { %69925 = vmatprep.subr.bf16.mxu1 %v74375_v56 }
 0x22e   :  { %v64821_v17 = vpop.f32.mrb[10].mxu0 }
 0x22f   :  { %v11251_v18 = vand.u32 4294901760, %v64821_v17  ;;  %v5703_v19 = vpop.f32.mrb[11].mxu0  ;;  %65233 = vmatmul.mubr.f32.vlgmr.msra.gmra.mrb[20].mxu0 %v74182_v6 }
 0x230   :  { %v64863_v20 = vpop.f32.mrb[10].mxu1  ;;  %v11248_v21 = vand.u32 4294901760, %v5703_v19  ;;  %69903 = vmatpush3.bf16.msra.mxu0 %v74371_v48  ;;  %65239 = vmatprep.mubr.f32.mxu0 %v74176_v3 }
 0x231   :  { %v11343_v22 = vsub.f32 %v64821_v17, %v11251_v18  ;;  %v11753_v23 = vand.u32 4294901760, %v64863_v20  ;;  %v6211_v24 = vpop.f32.mrb[11].mxu1  ;;  %65275 = vmatmul.mubr.f32.vlgmr.msra.gmra.mrb[20].mxu1 %v74182_v6 }
 0x232   :  { %v74411_v26 = vpack.c.bf16 %v11251_v18, %v11248_v21  ;;  %v11336_v27 = vsub.f32 %v5703_v19, %v11248_v21  ;;  %v11750_v28 = vand.u32 4294901760, %v6211_v24  ;;  %69927 = vmatpush3.bf16.msra.mxu1 %v74375_v56  ;;  %65281 = vmatprep.mubr.f32.mxu1 %v74176_v3  ;;  %v97_v56 = vld [vmem:[#allocation4 + $0x8] sm:$0xff]  ;;  %v12327_v19 = vsub.f32 %v12325_v1, %v12326_v11 }
 0x233   :  { %v11344_v29 = vand.u32 4294901760, %v11343_v22  ;;  %v11845_v30 = vsub.f32 %v64863_v20, %v11753_v23  ;;  %v12255_v61 = vsel %vm124_vm0, %v97_v56, 0  ;;  %v12844_v21 = vand.u32 4294901760, %v74465_v12 }
 0x234   :  { %v11337_v31 = vand.u32 4294901760, %v11336_v27  ;;  %v74415_v32 = vpack.c.bf16 %v11753_v23, %v11750_v28  ;;  %v11838_v33 = vsub.f32 %v6211_v24, %v11750_v28  ;;  %69929 = vmatprep.subr.bf16.mxu0 %v74411_v26  ;;  %v69936_v34 = vpack.c.bf16 %v11343_v22, %v11336_v27 }
 0x235   :  { %v11345_v36 = vsub.f32 %v11343_v22, %v11344_v29  ;;  %v11846_v37 = vand.u32 4294901760, %v11845_v30  ;;  %v74450_v0 = vand.u32 4294901760, %v12255_v61  ;;  %v12835_v22 = vsub.f32 %v12833_v4, %v12834_v15 }
 0x236   :  { %v11338_v38 = vsub.f32 %v11336_v27, %v11337_v31  ;;  %v11839_v41 = vand.u32 4294901760, %v11838_v33  ;;  %69953 = vmatprep.subr.bf16.mxu1 %v74415_v32  ;;  %v69960_v42 = vpack.c.bf16 %v11845_v30, %v11838_v33  ;;  %v69944_v44 = vpack.c.bf16 %v11344_v29, %v11337_v31  ;;  %v102_v31 = vld [vmem:[#allocation4 + $0x30] sm:$0xff] }
 0x237   :  { %v11847_v45 = vsub.f32 %v11845_v30, %v11846_v37  ;;  %65240 = vmatmul.mubr.f32.vlgmr.msra.gmra.mrb[20].mxu0 %v74182_v6  ;;  %v11346_v47 = vand.u32 4294901760, %v11345_v36  ;;  %v74462_v9 = vsub.f32 %v12255_v61, %v74450_v0  ;;  %v12328_v24 = vand.u32 4294901760, %v12327_v19  ;;  %v100_v30 = vld [vmem:[#allocation4 + $0x20] sm:$0xff]  ;;  %v103_v36 = vld [vmem:[#allocation4 + $0x38] sm:$0xff] }
 0x238   :  { %v11840_v49 = vsub.f32 %v11838_v33, %v11839_v41  ;;  %69931 = vmatpush3.bf16.msra.mxu0 %v74411_v26  ;;  %65288 = vmatprep.mubr.f32.mxu0 %v74209_v25  ;;  %v11339_v50 = vand.u32 4294901760, %v11338_v38  ;;  %v69968_v46 = vpack.c.bf16 %v11846_v37, %v11839_v41  ;;  %v12836_v27 = vand.u32 4294901760, %v12835_v22  ;;  %v101_v33 = vld [vmem:[#allocation4 + $0x28] sm:$0xff] }
 0x239   :  { %65282 = vmatmul.mubr.f32.vlgmr.msra.gmra.mrb[20].mxu1 %v74182_v6  ;;  %v11848_v48 = vand.u32 4294901760, %v11847_v45  ;;  %v12336_v17 = vand.u32 4294901760, %v74462_v9  ;;  %v13271_v38 = vsel %vm124_vm0, %v101_v33, 0 }
 0x23a   :  { %69955 = vmatpush3.bf16.msra.mxu1 %v74415_v32  ;;  %65330 = vmatprep.mubr.f32.mxu1 %v74209_v25  ;;  %v69932_v51 = vpack.c.bf16 %v11346_v47, %v11339_v50  ;;  %v11841_v52 = vand.u32 4294901760, %v11840_v49 }
 0x23b   :  { %65289 = vmatmul.mubr.f32.vlgmr.msra.gmra.mrb[22].mxu0 %v74218_v40  ;;  %v12337_v23 = vsub.f32 %v74462_v9, %v12336_v17 }
 0x23c   :  { %69933 = vmatprep.subr.bf16.mxu0 %v69932_v51  ;;  %v69956_v53 = vpack.c.bf16 %v11848_v48, %v11841_v52  ;;  %65295 = vmatprep.mubr.f32.mxu0 %v74176_v3 }
 0x23d   :  { %65331 = vmatmul.mubr.f32.vlgmr.msra.gmra.mrb[22].mxu1 %v74218_v40  ;;  %69935 = vmatpush3.bf16.msra.mxu0 %v69932_v51  ;;  %v12338_v28 = vand.u32 4294901760, %v12337_v23 }
 0x23e   :  { %69957 = vmatprep.subr.bf16.mxu1 %v69956_v53  ;;  %69937 = vmatprep.subr.bf16.mxu0 %v69936_v34 }
 0x23f   :  { %69959 = vmatpush3.bf16.msra.mxu1 %v69956_v53  ;;  %65337 = vmatprep.mubr.f32.mxu1 %v74176_v3 }
 0x240   :  { %69961 = vmatprep.subr.bf16.mxu1 %v69960_v42 }
 0x243   :  { %65296 = vmatmul.mubr.f32.vlgmr.msra.gmra.mrb[22].mxu0 %v74182_v6 }
 0x244   :  { %69939 = vmatpush3.bf16.msra.mxu0 %v69936_v34  ;;  %65302 = vmatprep.mubr.f32.mxu0 %v74180_v5  ;;  %v13776_v34 = vsel %vm124_vm0, %v102_v31, 0 }
 0x245   :  { %65338 = vmatmul.mubr.f32.vlgmr.msra.gmra.mrb[22].mxu1 %v74182_v6  ;;  %69941 = vmatprep.subr.bf16.mxu0 %v74411_v26  ;;  %v74516_v41 = vand.u32 4294901760, %v13776_v34 }
 0x246   :  { %69963 = vmatpush3.bf16.msra.mxu1 %v69960_v42  ;;  %65344 = vmatprep.mubr.f32.mxu1 %v74180_v5  ;;  %v13779_v42 = vsel %vm124_vm0, %v103_v36, 0 }
 0x247   :  { %69965 = vmatprep.subr.bf16.mxu1 %v74415_v32  ;;  %v74525_v47 = vand.u32 4294901760, %v13779_v42  ;;  %v13849_v49 = vsub.f32 %v13776_v34, %v74516_v41 }
 0x249   :  { %v74535_v48 = vsub.f32 %v13779_v42, %v74525_v47  ;;  %v13850_v52 = vand.u32 4294901760, %v13849_v49 }
 0x24b   :  { %65303 = vmatmul.mubr.f32.vlgmr.msra.gmra.mrb[22].mxu0 %v74194_v8  ;;  %v13860_v58 = vand.u32 4294901760, %v74535_v48  ;;  %v13851_v59 = vsub.f32 %v13849_v49, %v13850_v52 }
 0x24c   :  { %69943 = vmatpush3.bf16.msra.mxu0 %v74411_v26  ;;  %65309 = vmatprep.mubr.f32.mxu0 %v74191_v7 }
 0x24d   :  { %65345 = vmatmul.mubr.f32.vlgmr.msra.gmra.mrb[22].mxu1 %v74194_v8  ;;  %69945 = vmatprep.subr.bf16.mxu0 %v69944_v44 }
 0x24e   :  { %69967 = vmatpush3.bf16.msra.mxu1 %v74415_v32  ;;  %65351 = vmatprep.mubr.f32.mxu1 %v74191_v7 }
 0x24f   :  { %69969 = vmatprep.subr.bf16.mxu1 %v69968_v46 }
 0x253   :  { %65310 = vmatmul.mubr.f32.vlgmr.msra.gmra.mrb[22].mxu0 %v74200_v14 }
 0x254   :  { %69947 = vmatpush3.bf16.msra.mxu0 %v69944_v44  ;;  %65316 = vmatprep.mubr.f32.mxu0 %v74176_v3  ;;  %v74519_v44 = vand.u32 4294901760, %v13271_v38 }
 0x255   :  { %65352 = vmatmul.mubr.f32.vlgmr.msra.gmra.mrb[22].mxu1 %v74200_v14  ;;  %69949 = vmatprep.subr.bf16.mxu0 %v74411_v26 }
 0x256   :  { %69971 = vmatpush3.bf16.msra.mxu1 %v69968_v46  ;;  %65358 = vmatprep.mubr.f32.mxu1 %v74176_v3  ;;  %v74532_v50 = vsub.f32 %v13271_v38, %v74519_v44 }
 0x257   :  { %69973 = vmatprep.subr.bf16.mxu1 %v74415_v32 }
 0x258   :  { %v13352_v54 = vand.u32 4294901760, %v74532_v50 }
 0x25a   :  { %v74467_v13 = vpop.f32.mrb[12].mxu0  ;;  %v13353_v61 = vsub.f32 %v74532_v50, %v13352_v54 }
 0x25b   :  { %v74469_v16 = vpop.f32.mrb[13].mxu0  ;;  %65317 = vmatmul.mubr.f32.vlgmr.msra.gmra.mrb[22].mxu0 %v74182_v6 }
 0x25c   :  { %v74473_v18 = vpop.f32.mrb[12].mxu1  ;;  %69951 = vmatpush3.bf16.msra.mxu0 %v74411_v26  ;;  %65323 = vmatprep.mubr.f32.mxu0 %v74176_v3  ;;  %v12845_v26 = vsub.f32 %v74465_v12, %v12844_v21 }
 0x25d   :  { %v74477_v20 = vpop.f32.mrb[13].mxu1  ;;  %65359 = vmatmul.mubr.f32.vlgmr.msra.gmra.mrb[22].mxu1 %v74182_v6  ;;  %69977 = vmatprep.subr.bf16.mxu0 %v73833_v10 }
 0x25e   :  { %69975 = vmatpush3.bf16.msra.mxu1 %v74415_v32  ;;  %65365 = vmatprep.mubr.f32.mxu1 %v74176_v3  ;;  %v12846_v29 = vand.u32 4294901760, %v12845_v26  ;;  %v13268_v32 = vsel %vm124_vm0, %v100_v30, 0 }
 0x25f   :  { %70001 = vmatprep.subr.bf16.mxu1 %v73833_v10  ;;  %v74513_v37 = vand.u32 4294901760, %v13268_v32 }
 0x261   :  { %v13341_v45 = vsub.f32 %v13268_v32, %v74513_v37 }
 0x263   :  { %65324 = vmatmul.mubr.f32.vlgmr.msra.gmra.mrb[22].mxu0 %v74182_v6  ;;  %v13342_v46 = vand.u32 4294901760, %v13341_v45 }
 0x264   :  { %69979 = vmatpush3.bf16.msra.mxu0 %v73833_v10  ;;  %65372 = vmatprep.mubr.f32.mxu0 %v12328_v24 }
 0x265   :  { %65366 = vmatmul.mubr.f32.vlgmr.msra.gmra.mrb[22].mxu1 %v74182_v6  ;;  %69981 = vmatprep.subr.bf16.mxu0 %v73851_v35  ;;  %v13343_v56 = vsub.f32 %v13341_v45, %v13342_v46 }
 0x266   :  { %70003 = vmatpush3.bf16.msra.mxu1 %v73833_v10  ;;  %65414 = vmatprep.mubr.f32.mxu1 %v12836_v27 }
 0x267   :  { %65373 = vmatmul.mubr.f32.vlgmr.msra.gmra.mrb[24].mxu0 %v12338_v28  ;;  %70005 = vmatprep.subr.bf16.mxu1 %v73851_v35  ;;  %v13344_v63 = vand.u32 4294901760, %v13343_v56  ;;  %v109_v56 = vld [vmem:[#allocation4 + $0x68] sm:$0xff] }
 0x268   :  { %69983 = vmatpush3.bf16.msra.mxu0 %v73851_v35  ;;  %65379 = vmatprep.mubr.f32.mxu0 %v74443_v60 }
 0x269   :  { %65415 = vmatmul.mubr.f32.vlgmr.msra.gmra.mrb[24].mxu1 %v12846_v29  ;;  %69985 = vmatprep.subr.bf16.mxu0 %v73854_v39 }
 0x26a   :  { %70007 = vmatpush3.bf16.msra.mxu1 %v73851_v35  ;;  %65421 = vmatprep.mubr.f32.mxu1 %v74446_v62 }
 0x26b   :  { %70009 = vmatprep.subr.bf16.mxu1 %v73854_v39 }
 0x26f   :  { %65380 = vmatmul.mubr.f32.vlgmr.msra.gmra.mrb[24].mxu0 %v74450_v0 }
 0x270   :  { %69987 = vmatpush3.bf16.msra.mxu0 %v73854_v39  ;;  %65386 = vmatprep.mubr.f32.mxu0 %v12325_v1  ;;  %v13852_v1 = vand.u32 4294901760, %v13851_v59  ;;  %v111_v59 = vld [vmem:[#allocation4 + $0x78] sm:$0xff] }
 0x271   :  { %65422 = vmatmul.mubr.f32.vlgmr.msra.gmra.mrb[24].mxu1 %v74456_v2  ;;  %69989 = vmatprep.subr.bf16.mxu0 %v73833_v10 }
 0x272   :  { %70011 = vmatpush3.bf16.msra.mxu1 %v73854_v39  ;;  %65428 = vmatprep.mubr.f32.mxu1 %v12833_v4  ;;  %v13354_v4 = vand.u32 4294901760, %v13353_v61 }
 0x273   :  { %70013 = vmatprep.subr.bf16.mxu1 %v73833_v10 }
 0x277   :  { %65387 = vmatmul.mubr.f32.vlgmr.msra.gmra.mrb[24].mxu0 %v74462_v9 }
 0x278   :  { %69991 = vmatpush3.bf16.msra.mxu0 %v73833_v10  ;;  %65393 = vmatprep.mubr.f32.mxu0 %v12326_v11  ;;  %v105_v11 = vld [vmem:[#allocation4 + $0x48] sm:$0xff] }
 0x279   :  { %65429 = vmatmul.mubr.f32.vlgmr.msra.gmra.mrb[24].mxu1 %v74465_v12  ;;  %69993 = vmatprep.subr.bf16.mxu0 %v73869_v43  ;;  %v14287_v19 = vsel %vm124_vm0, %v105_v11, 0 }
 0x27a   :  { %70015 = vmatpush3.bf16.msra.mxu1 %v73833_v10  ;;  %65435 = vmatprep.mubr.f32.mxu1 %v12834_v15  ;;  %v107_v15 = vld [vmem:[#allocation4 + $0x58] sm:$0xff]  ;;  %v74589_v23 = vand.u32 4294901760, %v14287_v19 }
 0x27b   :  { %70017 = vmatprep.subr.bf16.mxu1 %v73869_v43  ;;  %v14795_v22 = vsel %vm124_vm0, %v107_v15, 0 }
 0x27c   :  { %v74595_v26 = vand.u32 4294901760, %v14795_v22  ;;  %v74602_v28 = vsub.f32 %v14287_v19, %v74589_v23 }
 0x27e   :  { %v74605_v30 = vsub.f32 %v14795_v22, %v74595_v26  ;;  %v14368_v34 = vand.u32 4294901760, %v74602_v28 }
 0x27f   :  { %65394 = vmatmul.mubr.f32.vlgmr.msra.gmra.mrb[24].mxu0 %v12336_v17 }
 0x280   :  { %69995 = vmatpush3.bf16.msra.mxu0 %v73869_v43  ;;  %65400 = vmatprep.mubr.f32.mxu0 %v74443_v60 }
 0x281   :  { %65436 = vmatmul.mubr.f32.vlgmr.msra.gmra.mrb[24].mxu1 %v12844_v21  ;;  %69997 = vmatprep.subr.bf16.mxu0 %v73833_v10 }
 0x282   :  { %70019 = vmatpush3.bf16.msra.mxu1 %v73869_v43  ;;  %65442 = vmatprep.mubr.f32.mxu1 %v74446_v62 }
 0x283   :  { %70021 = vmatprep.subr.bf16.mxu1 %v73833_v10 }
 0x286   :  { %v74537_v51 = vpop.f32.mrb[14].mxu0 }
 0x287   :  { %v74539_v53 = vpop.f32.mrb[15].mxu0  ;;  %65401 = vmatmul.mubr.f32.vlgmr.msra.gmra.mrb[24].mxu0 %v74450_v0 }
 0x288   :  { %v74543_v55 = vpop.f32.mrb[14].mxu1  ;;  %69999 = vmatpush3.bf16.msra.mxu0 %v73833_v10  ;;  %65407 = vmatprep.mubr.f32.mxu0 %v74443_v60  ;;  %v13861_v60 = vsub.f32 %v74535_v48, %v13860_v58 }
 0x289   :  { %v74547_v57 = vpop.f32.mrb[15].mxu1  ;;  %65443 = vmatmul.mubr.f32.vlgmr.msra.gmra.mrb[24].mxu1 %v74456_v2  ;;  %70025 = vmatprep.subr.bf16.mxu0 %v73833_v10 }
 0x28a   :  { %70023 = vmatpush3.bf16.msra.mxu1 %v73833_v10  ;;  %65449 = vmatprep.mubr.f32.mxu1 %v74446_v62  ;;  %v13862_v9 = vand.u32 4294901760, %v13861_v60  ;;  %v104_v62 = vld [vmem:[#allocation4 + $0x40] sm:$0xff] }
 0x28b   :  { %70049 = vmatprep.subr.bf16.mxu1 %v73833_v10 }
 0x28f   :  { %65408 = vmatmul.mubr.f32.vlgmr.msra.gmra.mrb[24].mxu0 %v74450_v0  ;;  %v106_v0 = vld [vmem:[#allocation4 + $0x50] sm:$0xff] }
 0x290   :  { %70027 = vmatpush3.bf16.msra.mxu0 %v73833_v10  ;;  %65456 = vmatprep.mubr.f32.mxu0 %v13344_v63  ;;  %v14792_v12 = vsel %vm124_vm0, %v106_v0, 0  ;;  %v15303_v63 = vsel %vm124_vm0, %v109_v56, 0 }
 0x291   :  { %65450 = vmatmul.mubr.f32.vlgmr.msra.gmra.mrb[24].mxu1 %v74456_v2  ;;  %70029 = vmatprep.subr.bf16.mxu0 %v73851_v35  ;;  %v14284_v2 = vsel %vm124_vm0, %v104_v62, 0  ;;  %v74586_v21 = vand.u32 4294901760, %v14792_v12 }
 0x292   :  { %70051 = vmatpush3.bf16.msra.mxu1 %v73833_v10  ;;  %65498 = vmatprep.mubr.f32.mxu1 %v13852_v1  ;;  %v74583_v17 = vand.u32 4294901760, %v14284_v2  ;;  %v15811_v1 = vsel %vm124_vm0, %v111_v59, 0 }
 0x293   :  { %65457 = vmatmul.mubr.f32.vlgmr.msra.gmra.mrb[26].mxu0 %v13354_v4  ;;  %70053 = vmatprep.subr.bf16.mxu1 %v73851_v35  ;;  %v14865_v27 = vsub.f32 %v14792_v12, %v74586_v21  ;;  %v74659_v4 = vand.u32 4294901760, %v15303_v63  ;;  %v74665_v62 = vand.u32 4294901760, %v15811_v1 }
 0x294   :  { %70031 = vmatpush3.bf16.msra.mxu0 %v73851_v35  ;;  %65463 = vmatprep.mubr.f32.mxu0 %v74513_v37  ;;  %v14357_v24 = vsub.f32 %v14284_v2, %v74583_v17 }
 0x295   :  { %65499 = vmatmul.mubr.f32.vlgmr.msra.gmra.mrb[26].mxu1 %v13862_v9  ;;  %70033 = vmatprep.subr.bf16.mxu0 %v73854_v39  ;;  %v14866_v32 = vand.u32 4294901760, %v14865_v27  ;;  %v74672_v2 = vsub.f32 %v15303_v63, %v74659_v4  ;;  %v74675_v12 = vsub.f32 %v15811_v1, %v74665_v62 }
 0x296   :  { %70055 = vmatpush3.bf16.msra.mxu1 %v73851_v35  ;;  %65505 = vmatprep.mubr.f32.mxu1 %v74516_v41  ;;  %v14358_v29 = vand.u32 4294901760, %v14357_v24 }
 0x297   :  { %70057 = vmatprep.subr.bf16.mxu1 %v73854_v39 }
 0x298   :  { %v14359_v38 = vsub.f32 %v14357_v24, %v14358_v29 }
 0x29b   :  { %65464 = vmatmul.mubr.f32.vlgmr.msra.gmra.mrb[26].mxu0 %v74519_v44 }
 0x29c   :  { %70035 = vmatpush3.bf16.msra.mxu0 %v73854_v39  ;;  %65470 = vmatprep.mubr.f32.mxu0 %v13341_v45  ;;  %v14876_v45 = vand.u32 4294901760, %v74605_v30 }
 0x29d   :  { %65506 = vmatmul.mubr.f32.vlgmr.msra.gmra.mrb[26].mxu1 %v74525_v47  ;;  %70037 = vmatprep.subr.bf16.mxu0 %v73833_v10 }
 0x29e   :  { %70059 = vmatpush3.bf16.msra.mxu1 %v73854_v39  ;;  %65512 = vmatprep.mubr.f32.mxu1 %v13849_v49  ;;  %v14867_v49 = vsub.f32 %v14865_v27, %v14866_v32 }
 0x29f   :  { %70061 = vmatprep.subr.bf16.mxu1 %v73833_v10 }
 0x2a3   :  { %65471 = vmatmul.mubr.f32.vlgmr.msra.gmra.mrb[26].mxu0 %v74532_v50  ;;  %v14369_v50 = vsub.f32 %v74602_v28, %v14368_v34 }
 0x2a4   :  { %70039 = vmatpush3.bf16.msra.mxu0 %v73833_v10  ;;  %65477 = vmatprep.mubr.f32.mxu0 %v13342_v46  ;;  %v14360_v46 = vand.u32 4294901760, %v14359_v38 }
 0x2a5   :  { %65513 = vmatmul.mubr.f32.vlgmr.msra.gmra.mrb[26].mxu1 %v74535_v48  ;;  %70041 = vmatprep.subr.bf16.mxu0 %v73869_v43  ;;  %v14868_v48 = vand.u32 4294901760, %v14867_v49 }
 0x2a6   :  { %70063 = vmatpush3.bf16.msra.mxu1 %v73833_v10  ;;  %65519 = vmatprep.mubr.f32.mxu1 %v13850_v52  ;;  %v14370_v52 = vand.u32 4294901760, %v14369_v50 }
 0x2a7   :  { %70065 = vmatprep.subr.bf16.mxu1 %v73869_v43 }
 0x2ab   :  { %65478 = vmatmul.mubr.f32.vlgmr.msra.gmra.mrb[26].mxu0 %v13352_v54 }
 0x2ac   :  { %70043 = vmatpush3.bf16.msra.mxu0 %v73869_v43  ;;  %65484 = vmatprep.mubr.f32.mxu0 %v74513_v37 }
 0x2ad   :  { %65520 = vmatmul.mubr.f32.vlgmr.msra.gmra.mrb[26].mxu1 %v13860_v58  ;;  %70045 = vmatprep.subr.bf16.mxu0 %v73833_v10 }
 0x2ae   :  { %70067 = vmatpush3.bf16.msra.mxu1 %v73869_v43  ;;  %65526 = vmatprep.mubr.f32.mxu1 %v74516_v41 }
 0x2af   :  { %70069 = vmatprep.subr.bf16.mxu1 %v73833_v10 }
 0x2b2   :  { %v74607_v31 = vpop.f32.mrb[16].mxu0 }
 0x2b3   :  { %v74609_v33 = vpop.f32.mrb[17].mxu0  ;;  %65485 = vmatmul.mubr.f32.vlgmr.msra.gmra.mrb[26].mxu0 %v74519_v44 }
 0x2b4   :  { %v74613_v36 = vpop.f32.mrb[16].mxu1  ;;  %70047 = vmatpush3.bf16.msra.mxu0 %v73833_v10  ;;  %65491 = vmatprep.mubr.f32.mxu0 %v74513_v37  ;;  %v14877_v37 = vsub.f32 %v74605_v30, %v14876_v45 }
 0x2b5   :  { %v74617_v42 = vpop.f32.mrb[17].mxu1  ;;  %65527 = vmatmul.mubr.f32.vlgmr.msra.gmra.mrb[26].mxu1 %v74525_v47  ;;  %70073 = vmatprep.subr.bf16.mxu0 %v73833_v10 }
 0x2b6   :  { %70071 = vmatpush3.bf16.msra.mxu1 %v73833_v10  ;;  %65533 = vmatprep.mubr.f32.mxu1 %v74516_v41  ;;  %v14878_v54 = vand.u32 4294901760, %v14877_v37  ;;  %v108_v41 = vld [vmem:[#allocation4 + $0x60] sm:$0xff] }
 0x2b7   :  { %70097 = vmatprep.subr.bf16.mxu1 %v73833_v10 }
 0x2bb   :  { %65492 = vmatmul.mubr.f32.vlgmr.msra.gmra.mrb[26].mxu0 %v74519_v44  ;;  %v110_v44 = vld [vmem:[#allocation4 + $0x70] sm:$0xff] }
 0x2bc   :  { %70075 = vmatpush3.bf16.msra.mxu0 %v73833_v10  ;;  %65540 = vmatprep.mubr.f32.mxu0 %v14360_v46  ;;  %v15808_v58 = vsel %vm124_vm0, %v110_v44, 0  ;;  %v113_v46 = vld [vmem:[#allocation4 + $0x88] sm:$0xff] }
 0x2bd   :  { %65534 = vmatmul.mubr.f32.vlgmr.msra.gmra.mrb[26].mxu1 %v74525_v47  ;;  %70077 = vmatprep.subr.bf16.mxu0 %v73851_v35  ;;  %v15300_v47 = vsel %vm124_vm0, %v108_v41, 0  ;;  %v74656_v60 = vand.u32 4294901760, %v15808_v58 }
 0x2be   :  { %70099 = vmatpush3.bf16.msra.mxu1 %v73833_v10  ;;  %65582 = vmatprep.mubr.f32.mxu1 %v14868_v48  ;;  %v74653_v61 = vand.u32 4294901760, %v15300_v47  ;;  %v115_v48 = vld [vmem:[#allocation4 + $0x98] sm:$0xff] }
 0x2bf   :  { %65541 = vmatmul.mubr.f32.vlgmr.msra.gmra.mrb[28].mxu0 %v14370_v52  ;;  %70101 = vmatprep.subr.bf16.mxu1 %v73851_v35  ;;  %v15881_v0 = vsub.f32 %v15808_v58, %v74656_v60  ;;  %v16827_v44 = vsel %vm124_vm0, %v115_v48, 0 }
 0x2c0   :  { %70079 = vmatpush3.bf16.msra.mxu0 %v73851_v35  ;;  %65547 = vmatprep.mubr.f32.mxu0 %v74583_v17  ;;  %v15373_v9 = vsub.f32 %v15300_v47, %v74653_v61  ;;  %v74735_v58 = vand.u32 4294901760, %v16827_v44 }
 0x2c1   :  { %65583 = vmatmul.mubr.f32.vlgmr.msra.gmra.mrb[28].mxu1 %v14878_v54  ;;  %70081 = vmatprep.subr.bf16.mxu0 %v73854_v39  ;;  %v15882_v19 = vand.u32 4294901760, %v15881_v0  ;;  %v16319_v54 = vsel %vm124_vm0, %v113_v46, 0 }
 0x2c2   :  { %70103 = vmatpush3.bf16.msra.mxu1 %v73851_v35  ;;  %65589 = vmatprep.mubr.f32.mxu1 %v74586_v21  ;;  %v15374_v11 = vand.u32 4294901760, %v15373_v9  ;;  %v74729_v47 = vand.u32 4294901760, %v16319_v54 }
 0x2c3   :  { %70105 = vmatprep.subr.bf16.mxu1 %v73854_v39 }
 0x2c4   :  { %v74742_v63 = vsub.f32 %v16319_v54, %v74729_v47 }
 0x2c7   :  { %65548 = vmatmul.mubr.f32.vlgmr.msra.gmra.mrb[28].mxu0 %v74589_v23 }
 0x2c8   :  { %70083 = vmatpush3.bf16.msra.mxu0 %v73854_v39  ;;  %65554 = vmatprep.mubr.f32.mxu0 %v14357_v24  ;;  %v15384_v24 = vand.u32 4294901760, %v74672_v2 }
 0x2c9   :  { %65590 = vmatmul.mubr.f32.vlgmr.msra.gmra.mrb[28].mxu1 %v74595_v26  ;;  %70085 = vmatprep.subr.bf16.mxu0 %v73833_v10 }
 0x2ca   :  { %70107 = vmatpush3.bf16.msra.mxu1 %v73854_v39  ;;  %65596 = vmatprep.mubr.f32.mxu1 %v14865_v27 }
 0x2cb   :  { %70109 = vmatprep.subr.bf16.mxu1 %v73833_v10 }
 0x2cf   :  { %65555 = vmatmul.mubr.f32.vlgmr.msra.gmra.mrb[28].mxu0 %v74602_v28  ;;  %v15375_v28 = vsub.f32 %v15373_v9, %v15374_v11 }
 0x2d0   :  { %70087 = vmatpush3.bf16.msra.mxu0 %v73833_v10  ;;  %65561 = vmatprep.mubr.f32.mxu0 %v14358_v29 }
 0x2d1   :  { %65597 = vmatmul.mubr.f32.vlgmr.msra.gmra.mrb[28].mxu1 %v74605_v30  ;;  %70089 = vmatprep.subr.bf16.mxu0 %v73869_v43  ;;  %v15892_v30 = vand.u32 4294901760, %v74675_v12  ;;  %v15376_v38 = vand.u32 4294901760, %v15375_v28 }
 0x2d2   :  { %70111 = vmatpush3.bf16.msra.mxu1 %v73833_v10  ;;  %65603 = vmatprep.mubr.f32.mxu1 %v14866_v32  ;;  %v15883_v32 = vsub.f32 %v15881_v0, %v15882_v19 }
 0x2d3   :  { %70113 = vmatprep.subr.bf16.mxu1 %v73869_v43 }
 0x2d7   :  { %65562 = vmatmul.mubr.f32.vlgmr.msra.gmra.mrb[28].mxu0 %v14368_v34  ;;  %v15385_v34 = vsub.f32 %v74672_v2, %v15384_v24 }
 0x2d8   :  { %70091 = vmatpush3.bf16.msra.mxu0 %v73869_v43  ;;  %65568 = vmatprep.mubr.f32.mxu0 %v74583_v17 }
 0x2d9   :  { %65604 = vmatmul.mubr.f32.vlgmr.msra.gmra.mrb[28].mxu1 %v14876_v45  ;;  %70093 = vmatprep.subr.bf16.mxu0 %v73833_v10  ;;  %v15884_v45 = vand.u32 4294901760, %v15883_v32  ;;  %v15386_v49 = vand.u32 4294901760, %v15385_v34 }
 0x2da   :  { %70115 = vmatpush3.bf16.msra.mxu1 %v73869_v43  ;;  %65610 = vmatprep.mubr.f32.mxu1 %v74586_v21 }
 0x2db   :  { %70117 = vmatprep.subr.bf16.mxu1 %v73833_v10 }
 0x2de   :  { %v74677_v15 = vpop.f32.mrb[18].mxu0 }
 0x2df   :  { %v74679_v22 = vpop.f32.mrb[19].mxu0  ;;  %65569 = vmatmul.mubr.f32.vlgmr.msra.gmra.mrb[28].mxu0 %v74589_v23 }
 0x2e0   :  { %v74683_v27 = vpop.f32.mrb[18].mxu1  ;;  %70095 = vmatpush3.bf16.msra.mxu0 %v73833_v10  ;;  %65575 = vmatprep.mubr.f32.mxu0 %v74583_v17  ;;  %v15893_v17 = vsub.f32 %v74675_v12, %v15892_v30 }
 0x2e1   :  { %v74687_v29 = vpop.f32.mrb[19].mxu1  ;;  %65611 = vmatmul.mubr.f32.vlgmr.msra.gmra.mrb[28].mxu1 %v74595_v26  ;;  %70121 = vmatprep.subr.bf16.mxu0 %v73833_v10 }
 0x2e2   :  { %70119 = vmatpush3.bf16.msra.mxu1 %v73833_v10  ;;  %65617 = vmatprep.mubr.f32.mxu1 %v74586_v21  ;;  %v15894_v50 = vand.u32 4294901760, %v15893_v17  ;;  %v112_v21 = vld [vmem:[#allocation4 + $0x80] sm:$0xff] }
 0x2e3   :  { %70145 = vmatprep.subr.bf16.mxu1 %v73833_v10 }
 0x2e7   :  { %65576 = vmatmul.mubr.f32.vlgmr.msra.gmra.mrb[28].mxu0 %v74589_v23  ;;  %v114_v23 = vld [vmem:[#allocation4 + $0x90] sm:$0xff] }
 0x2e8   :  { %70123 = vmatpush3.bf16.msra.mxu0 %v73833_v10  ;;  %65624 = vmatprep.mubr.f32.mxu0 %v15376_v38  ;;  %v16824_v37 = vsel %vm124_vm0, %v114_v23, 0  ;;  %v119_v23 = vld [vmem:[#allocation4 + $0xb8] sm:$0xff] }
 0x2e9   :  { %65618 = vmatmul.mubr.f32.vlgmr.msra.gmra.mrb[28].mxu1 %v74595_v26  ;;  %70125 = vmatprep.subr.bf16.mxu0 %v73851_v35  ;;  %v16316_v26 = vsel %vm124_vm0, %v112_v21, 0  ;;  %v74726_v41 = vand.u32 4294901760, %v16824_v37  ;;  %v17843_v48 = vsel %vm124_vm0, %v119_v23, 0 }
 0x2ea   :  { %70147 = vmatpush3.bf16.msra.mxu1 %v73833_v10  ;;  %65666 = vmatprep.mubr.f32.mxu1 %v15884_v45  ;;  %v74723_v52 = vand.u32 4294901760, %v16316_v26 }
 0x2eb   :  { %65625 = vmatmul.mubr.f32.vlgmr.msra.gmra.mrb[30].mxu0 %v15386_v49  ;;  %70149 = vmatprep.subr.bf16.mxu1 %v73851_v35  ;;  %v16897_v59 = vsub.f32 %v16824_v37, %v74726_v41 }
 0x2ec   :  { %70127 = vmatpush3.bf16.msra.mxu0 %v73851_v35  ;;  %65631 = vmatprep.mubr.f32.mxu0 %v74653_v61  ;;  %v16389_v56 = vsub.f32 %v16316_v26, %v74723_v52 }
 0x2ed   :  { %65667 = vmatmul.mubr.f32.vlgmr.msra.gmra.mrb[30].mxu1 %v15894_v50  ;;  %70129 = vmatprep.subr.bf16.mxu0 %v73854_v39  ;;  %v117_v50 = vld [vmem:[#allocation4 + $0xa8] sm:$0xff] }
 0x2ee   :  { %70151 = vmatpush3.bf16.msra.mxu1 %v73851_v35  ;;  %65673 = vmatprep.mubr.f32.mxu1 %v74656_v60  ;;  %v16390_v1 = vand.u32 4294901760, %v16389_v56  ;;  %v17335_v46 = vsel %vm124_vm0, %v117_v50, 0 }
 0x2ef   :  { %70153 = vmatprep.subr.bf16.mxu1 %v73854_v39  ;;  %v74799_v54 = vand.u32 4294901760, %v17335_v46 }
 0x2f3   :  { %65632 = vmatmul.mubr.f32.vlgmr.msra.gmra.mrb[30].mxu0 %v74659_v4 }
 0x2f4   :  { %70131 = vmatpush3.bf16.msra.mxu0 %v73854_v39  ;;  %65638 = vmatprep.mubr.f32.mxu0 %v15373_v9  ;;  %v74745_v9 = vsub.f32 %v16827_v44, %v74735_v58 }
 0x2f5   :  { %65674 = vmatmul.mubr.f32.vlgmr.msra.gmra.mrb[30].mxu1 %v74665_v62  ;;  %70133 = vmatprep.subr.bf16.mxu0 %v73833_v10 }
 0x2f6   :  { %70155 = vmatpush3.bf16.msra.mxu1 %v73854_v39  ;;  %65680 = vmatprep.mubr.f32.mxu1 %v15881_v0 }
 0x2f7   :  { %70157 = vmatprep.subr.bf16.mxu1 %v73833_v10 }
 0x2fb   :  { %65639 = vmatmul.mubr.f32.vlgmr.msra.gmra.mrb[30].mxu0 %v74672_v2  ;;  %v16898_v2 = vand.u32 4294901760, %v16897_v59 }
 0x2fc   :  { %70135 = vmatpush3.bf16.msra.mxu0 %v73833_v10  ;;  %65645 = vmatprep.mubr.f32.mxu0 %v15374_v11 }
 0x2fd   :  { %65681 = vmatmul.mubr.f32.vlgmr.msra.gmra.mrb[30].mxu1 %v74675_v12  ;;  %70137 = vmatprep.subr.bf16.mxu0 %v73869_v43  ;;  %v16400_v12 = vand.u32 4294901760, %v74742_v63  ;;  %v16899_v32 = vsub.f32 %v16897_v59, %v16898_v2 }
 0x2fe   :  { %70159 = vmatpush3.bf16.msra.mxu1 %v73833_v10  ;;  %65687 = vmatprep.mubr.f32.mxu1 %v15882_v19 }
 0x2ff   :  { %70161 = vmatprep.subr.bf16.mxu1 %v73869_v43  ;;  %v16401_v34 = vsub.f32 %v74742_v63, %v16400_v12  ;;  %v16900_v17 = vand.u32 4294901760, %v16899_v32 }
 0x301   :  { %v16402_v45 = vand.u32 4294901760, %v16401_v34 }
 0x303   :  { %65646 = vmatmul.mubr.f32.vlgmr.msra.gmra.mrb[30].mxu0 %v15384_v24  ;;  %v16391_v24 = vsub.f32 %v16389_v56, %v16390_v1 }
 0x304   :  { %70139 = vmatpush3.bf16.msra.mxu0 %v73869_v43  ;;  %65652 = vmatprep.mubr.f32.mxu0 %v74653_v61 }
 0x305   :  { %65688 = vmatmul.mubr.f32.vlgmr.msra.gmra.mrb[30].mxu1 %v15892_v30  ;;  %70141 = vmatprep.subr.bf16.mxu0 %v73833_v10  ;;  %v16908_v30 = vand.u32 4294901760, %v74745_v9  ;;  %v16392_v38 = vand.u32 4294901760, %v16391_v24 }
 0x306   :  { %70163 = vmatpush3.bf16.msra.mxu1 %v73869_v43  ;;  %65694 = vmatprep.mubr.f32.mxu1 %v74656_v60 }
 0x307   :  { %70165 = vmatprep.subr.bf16.mxu1 %v73833_v10 }
 0x30a   :  { %v74747_v0 = vpop.f32.mrb[20].mxu0 }
 0x30b   :  { %v74749_v11 = vpop.f32.mrb[21].mxu0  ;;  %65653 = vmatmul.mubr.f32.vlgmr.msra.gmra.mrb[30].mxu0 %v74659_v4 }
 0x30c   :  { %v74753_v19 = vpop.f32.mrb[20].mxu1  ;;  %70143 = vmatpush3.bf16.msra.mxu0 %v73833_v10  ;;  %65659 = vmatprep.mubr.f32.mxu0 %v74653_v61  ;;  %v16909_v61 = vsub.f32 %v74745_v9, %v16908_v30 }
 0x30d   :  { %v74757_v28 = vpop.f32.mrb[21].mxu1  ;;  %65695 = vmatmul.mubr.f32.vlgmr.msra.gmra.mrb[30].mxu1 %v74665_v62  ;;  %70169 = vmatprep.subr.bf16.mxu0 %v73833_v10 }
 0x30e   :  { %70167 = vmatpush3.bf16.msra.mxu1 %v73833_v10  ;;  %65701 = vmatprep.mubr.f32.mxu1 %v74656_v60  ;;  %v16910_v49 = vand.u32 4294901760, %v16909_v61  ;;  %v116_v60 = vld [vmem:[#allocation4 + $0xa0] sm:$0xff] }
 0x30f   :  { %70193 = vmatprep.subr.bf16.mxu1 %v73833_v10 }
 0x313   :  { %65660 = vmatmul.mubr.f32.vlgmr.msra.gmra.mrb[30].mxu0 %v74659_v4  ;;  %v118_v4 = vld [vmem:[#allocation4 + $0xb0] sm:$0xff] }
 0x314   :  { %70171 = vmatpush3.bf16.msra.mxu0 %v73833_v10  ;;  %65708 = vmatprep.mubr.f32.mxu0 %v16392_v38  ;;  %v17840_v21 = vsel %vm124_vm0, %v118_v4, 0 }
 0x315   :  { %65702 = vmatmul.mubr.f32.vlgmr.msra.gmra.mrb[30].mxu1 %v74665_v62  ;;  %70173 = vmatprep.subr.bf16.mxu0 %v73851_v35  ;;  %v17332_v62 = vsel %vm124_vm0, %v116_v60, 0  ;;  %v74796_v37 = vand.u32 4294901760, %v17840_v21 }
 0x316   :  { %70195 = vmatpush3.bf16.msra.mxu1 %v73833_v10  ;;  %65750 = vmatprep.mubr.f32.mxu1 %v16900_v17  ;;  %v74793_v26 = vand.u32 4294901760, %v17332_v62 }
 0x317   :  { %65709 = vmatmul.mubr.f32.vlgmr.msra.gmra.mrb[32].mxu0 %v16402_v45  ;;  %70197 = vmatprep.subr.bf16.mxu1 %v73851_v35 }
 0x318   :  { %70175 = vmatpush3.bf16.msra.mxu0 %v73851_v35  ;;  %65715 = vmatprep.mubr.f32.mxu0 %v74723_v52  ;;  %v17405_v44 = vsub.f32 %v17332_v62, %v74793_v26 }
 0x319   :  { %65751 = vmatmul.mubr.f32.vlgmr.msra.gmra.mrb[32].mxu1 %v16910_v49  ;;  %70177 = vmatprep.subr.bf16.mxu0 %v73854_v39 }
 0x31a   :  { %70199 = vmatpush3.bf16.msra.mxu1 %v73851_v35  ;;  %65757 = vmatprep.mubr.f32.mxu1 %v74726_v41 }
 0x31b   :  { %70201 = vmatprep.subr.bf16.mxu1 %v73854_v39 }
 0x31f   :  { %65716 = vmatmul.mubr.f32.vlgmr.msra.gmra.mrb[32].mxu0 %v74729_v47 }
 0x320   :  { %70179 = vmatpush3.bf16.msra.mxu0 %v73854_v39  ;;  %65722 = vmatprep.mubr.f32.mxu0 %v16389_v56  ;;  %v74805_v56 = vand.u32 4294901760, %v17843_v48 }
 0x321   :  { %65758 = vmatmul.mubr.f32.vlgmr.msra.gmra.mrb[32].mxu1 %v74735_v58  ;;  %70181 = vmatprep.subr.bf16.mxu0 %v73833_v10 }
 0x322   :  { %70203 = vmatpush3.bf16.msra.mxu1 %v73854_v39  ;;  %65764 = vmatprep.mubr.f32.mxu1 %v16897_v59  ;;  %v17913_v59 = vsub.f32 %v17840_v21, %v74796_v37 }
 0x323   :  { %70205 = vmatprep.subr.bf16.mxu1 %v73833_v10 }
 0x327   :  { %65723 = vmatmul.mubr.f32.vlgmr.msra.gmra.mrb[32].mxu0 %v74742_v63  ;;  %v17415_v63 = vsub.f32 %v17335_v46, %v74799_v54 }
 0x328   :  { %70183 = vmatpush3.bf16.msra.mxu0 %v73833_v10  ;;  %65729 = vmatprep.mubr.f32.mxu0 %v16390_v1  ;;  %v17406_v1 = vand.u32 4294901760, %v17405_v44 }
 0x329   :  { %65765 = vmatmul.mubr.f32.vlgmr.msra.gmra.mrb[32].mxu1 %v74745_v9  ;;  %70185 = vmatprep.subr.bf16.mxu0 %v73869_v43  ;;  %v17923_v9 = vsub.f32 %v17843_v48, %v74805_v56 }
 0x32a   :  { %70207 = vmatpush3.bf16.msra.mxu1 %v73833_v10  ;;  %65771 = vmatprep.mubr.f32.mxu1 %v16898_v2  ;;  %v17407_v34 = vsub.f32 %v17405_v44, %v17406_v1 }
 0x32b   :  { %70209 = vmatprep.subr.bf16.mxu1 %v73869_v43  ;;  %v17924_v61 = vand.u32 4294901760, %v17923_v9 }
 0x32c   :  { %v17408_v49 = vand.u32 4294901760, %v17407_v34 }
 0x32d   :  { %v17925_v60 = vsub.f32 %v17923_v9, %v17924_v61 }
 0x32f   :  { %65730 = vmatmul.mubr.f32.vlgmr.msra.gmra.mrb[32].mxu0 %v16400_v12  ;;  %v17914_v12 = vand.u32 4294901760, %v17913_v59  ;;  %v17926_v62 = vand.u32 4294901760, %v17925_v60 }
 0x330   :  { %70187 = vmatpush3.bf16.msra.mxu0 %v73869_v43  ;;  %65736 = vmatprep.mubr.f32.mxu0 %v74723_v52 }
 0x331   :  { %65772 = vmatmul.mubr.f32.vlgmr.msra.gmra.mrb[32].mxu1 %v16908_v30  ;;  %70189 = vmatprep.subr.bf16.mxu0 %v73833_v10  ;;  %v17416_v30 = vand.u32 4294901760, %v17415_v63  ;;  %v17915_v17 = vsub.f32 %v17913_v59, %v17914_v12 }
 0x332   :  { %70211 = vmatpush3.bf16.msra.mxu1 %v73869_v43  ;;  %65778 = vmatprep.mubr.f32.mxu1 %v74726_v41 }
 0x333   :  { %70213 = vmatprep.subr.bf16.mxu1 %v73833_v10  ;;  %v17417_v45 = vsub.f32 %v17415_v63, %v17416_v30  ;;  %v17916_v4 = vand.u32 4294901760, %v17915_v17 }
 0x336   :  { %v74813_v2 = vpop.f32.mrb[22].mxu0 }
 0x337   :  { %v74815_v24 = vpop.f32.mrb[23].mxu0  ;;  %65737 = vmatmul.mubr.f32.vlgmr.msra.gmra.mrb[32].mxu0 %v74729_v47 }
 0x338   :  { %v74818_v32 = vpop.f32.mrb[22].mxu1  ;;  %70191 = vmatpush3.bf16.msra.mxu0 %v73833_v10  ;;  %65743 = vmatprep.mubr.f32.mxu0 %v74723_v52  ;;  %v17418_v52 = vand.u32 4294901760, %v17417_v45 }
 0x339   :  { %v74822_v38 = vpop.f32.mrb[23].mxu1  ;;  %65779 = vmatmul.mubr.f32.vlgmr.msra.gmra.mrb[32].mxu1 %v74735_v58  ;;  %70217 = vmatprep.subr.bf16.mxu0 %v73833_v10 }
 0x33a   :  { %70215 = vmatpush3.bf16.msra.mxu1 %v73833_v10  ;;  %65785 = vmatprep.mubr.f32.mxu1 %v74726_v41 }
 0x33b   :  { %70241 = vmatprep.subr.bf16.mxu1 %v73833_v10 }
 0x33f   :  { %65744 = vmatmul.mubr.f32.vlgmr.msra.gmra.mrb[32].mxu0 %v74729_v47 }
 0x340   :  { %70219 = vmatpush3.bf16.msra.mxu0 %v73833_v10  ;;  %65792 = vmatprep.mubr.f32.mxu0 %v17408_v49 }
 0x341   :  { %65786 = vmatmul.mubr.f32.vlgmr.msra.gmra.mrb[32].mxu1 %v74735_v58  ;;  %70221 = vmatprep.subr.bf16.mxu0 %v73851_v35 }
 0x342   :  { %70243 = vmatpush3.bf16.msra.mxu1 %v73833_v10  ;;  %65834 = vmatprep.mubr.f32.mxu1 %v17916_v4 }
 0x343   :  { %65793 = vmatmul.mubr.f32.vlgmr.msra.gmra.mrb[34].mxu0 %v17418_v52  ;;  %70245 = vmatprep.subr.bf16.mxu1 %v73851_v35 }
 0x344   :  { %70223 = vmatpush3.bf16.msra.mxu0 %v73851_v35  ;;  %65799 = vmatprep.mubr.f32.mxu0 %v74793_v26 }
 0x345   :  { %65835 = vmatmul.mubr.f32.vlgmr.msra.gmra.mrb[34].mxu1 %v17926_v62  ;;  %70225 = vmatprep.subr.bf16.mxu0 %v73854_v39 }
 0x346   :  { %70247 = vmatpush3.bf16.msra.mxu1 %v73851_v35  ;;  %65841 = vmatprep.mubr.f32.mxu1 %v74796_v37 }
 0x347   :  { %70249 = vmatprep.subr.bf16.mxu1 %v73854_v39 }
 0x34b   :  { %65800 = vmatmul.mubr.f32.vlgmr.msra.gmra.mrb[34].mxu0 %v74799_v54 }
 0x34c   :  { %70227 = vmatpush3.bf16.msra.mxu0 %v73854_v39  ;;  %65806 = vmatprep.mubr.f32.mxu0 %v17405_v44 }
 0x34d   :  { %65842 = vmatmul.mubr.f32.vlgmr.msra.gmra.mrb[34].mxu1 %v74805_v56  ;;  %70229 = vmatprep.subr.bf16.mxu0 %v73833_v10 }
 0x34e   :  { %70251 = vmatpush3.bf16.msra.mxu1 %v73854_v39  ;;  %65848 = vmatprep.mubr.f32.mxu1 %v17913_v59 }
 0x34f   :  { %70253 = vmatprep.subr.bf16.mxu1 %v73833_v10 }
 0x353   :  { %65807 = vmatmul.mubr.f32.vlgmr.msra.gmra.mrb[34].mxu0 %v17415_v63 }
 0x354   :  { %70231 = vmatpush3.bf16.msra.mxu0 %v73833_v10  ;;  %65813 = vmatprep.mubr.f32.mxu0 %v17406_v1 }
 0x355   :  { %65849 = vmatmul.mubr.f32.vlgmr.msra.gmra.mrb[34].mxu1 %v17923_v9  ;;  %70233 = vmatprep.subr.bf16.mxu0 %v73869_v43 }
 0x356   :  { %70255 = vmatpush3.bf16.msra.mxu1 %v73833_v10  ;;  %65855 = vmatprep.mubr.f32.mxu1 %v17914_v12 }
 0x357   :  { %70257 = vmatprep.subr.bf16.mxu1 %v73869_v43 }
 0x35b   :  { %65814 = vmatmul.mubr.f32.vlgmr.msra.gmra.mrb[34].mxu0 %v17416_v30 }
 0x35c   :  { %70235 = vmatpush3.bf16.msra.mxu0 %v73869_v43  ;;  %65820 = vmatprep.mubr.f32.mxu0 %v74793_v26 }
 0x35d   :  { %65856 = vmatmul.mubr.f32.vlgmr.msra.gmra.mrb[34].mxu1 %v17924_v61  ;;  %70237 = vmatprep.subr.bf16.mxu0 %v73833_v10 }
 0x35e   :  { %70259 = vmatpush3.bf16.msra.mxu1 %v73869_v43  ;;  %65862 = vmatprep.mubr.f32.mxu1 %v74796_v37 }
 0x35f   :  { %70261 = vmatprep.subr.bf16.mxu1 %v73833_v10 }
 0x362   :  { %v65409_v41 = vpop.f32.mrb[24].mxu0 }
 0x363   :  { %v18351_v47 = vand.u32 4294901760, %v65409_v41  ;;  %v12749_v58 = vpop.f32.mrb[25].mxu0  ;;  %65821 = vmatmul.mubr.f32.vlgmr.msra.gmra.mrb[34].mxu0 %v74799_v54 }
 0x364   :  { %v65451_v50 = vpop.f32.mrb[24].mxu1  ;;  %v18348_v21 = vand.u32 4294901760, %v12749_v58  ;;  %70239 = vmatpush3.bf16.msra.mxu0 %v73833_v10  ;;  %65827 = vmatprep.mubr.f32.mxu0 %v74793_v26 }
 0x365   :  { %v18443_v23 = vsub.f32 %v65409_v41, %v18351_v47  ;;  %v18853_v46 = vand.u32 4294901760, %v65451_v50  ;;  %v13257_v48 = vpop.f32.mrb[25].mxu1  ;;  %65863 = vmatmul.mubr.f32.vlgmr.msra.gmra.mrb[34].mxu1 %v74805_v56 }
 0x366   :  { %v74861_v44 = vpack.c.bf16 %v18351_v47, %v18348_v21  ;;  %v18436_v59 = vsub.f32 %v12749_v58, %v18348_v21  ;;  %v18850_v63 = vand.u32 4294901760, %v13257_v48  ;;  %70263 = vmatpush3.bf16.msra.mxu1 %v73833_v10  ;;  %65869 = vmatprep.mubr.f32.mxu1 %v74796_v37 }
 0x367   :  { %v18444_v1 = vand.u32 4294901760, %v18443_v23  ;;  %v18945_v9 = vsub.f32 %v65451_v50, %v18853_v46 }
 0x368   :  { %v18437_v12 = vand.u32 4294901760, %v18436_v59  ;;  %v74865_v30 = vpack.c.bf16 %v18853_v46, %v18850_v63  ;;  %v18938_v34 = vsub.f32 %v13257_v48, %v18850_v63  ;;  %70265 = vmatprep.subr.bf16.mxu0 %v74861_v44  ;;  %v70272_v26 = vpack.c.bf16 %v18443_v23, %v18436_v59 }
 0x369   :  { %v18445_v61 = vsub.f32 %v18443_v23, %v18444_v1  ;;  %v18946_v17 = vand.u32 4294901760, %v18945_v9 }
 0x36a   :  { %v18438_v45 = vsub.f32 %v18436_v59, %v18437_v12  ;;  %v18939_v49 = vand.u32 4294901760, %v18938_v34  ;;  %70289 = vmatprep.subr.bf16.mxu1 %v74865_v30  ;;  %v70296_v60 = vpack.c.bf16 %v18945_v9, %v18938_v34  ;;  %v70280_v4 = vpack.c.bf16 %v18444_v1, %v18437_v12 }
 0x36b   :  { %v18947_v52 = vsub.f32 %v18945_v9, %v18946_v17  ;;  %65828 = vmatmul.mubr.f32.vlgmr.msra.gmra.mrb[34].mxu0 %v74799_v54  ;;  %v18446_v37 = vand.u32 4294901760, %v18445_v61 }
 0x36c   :  { %v18940_v62 = vsub.f32 %v18938_v34, %v18939_v49  ;;  %70267 = vmatpush3.bf16.msra.mxu0 %v74861_v44  ;;  %65876 = vmatprep.mubr.f32.mxu0 %v74209_v25  ;;  %v18439_v41 = vand.u32 4294901760, %v18438_v45  ;;  %v70304_v47 = vpack.c.bf16 %v18946_v17, %v18939_v49 }
 0x36d   :  { %65870 = vmatmul.mubr.f32.vlgmr.msra.gmra.mrb[34].mxu1 %v74805_v56  ;;  %v18948_v58 = vand.u32 4294901760, %v18947_v52 }
 0x36e   :  { %70291 = vmatpush3.bf16.msra.mxu1 %v74865_v30  ;;  %65918 = vmatprep.mubr.f32.mxu1 %v74209_v25  ;;  %v70268_v50 = vpack.c.bf16 %v18446_v37, %v18439_v41  ;;  %v18941_v21 = vand.u32 4294901760, %v18940_v62 }
 0x36f   :  { %65877 = vmatmul.mubr.f32.vlgmr.msra.gmra.mrb[36].mxu0 %v74218_v40 }
 0x370   :  { %70269 = vmatprep.subr.bf16.mxu0 %v70268_v50  ;;  %v70292_v54 = vpack.c.bf16 %v18948_v58, %v18941_v21  ;;  %65883 = vmatprep.mubr.f32.mxu0 %v74176_v3 }
 0x371   :  { %65919 = vmatmul.mubr.f32.vlgmr.msra.gmra.mrb[36].mxu1 %v74218_v40  ;;  %70271 = vmatpush3.bf16.msra.mxu0 %v70268_v50 }
 0x372   :  { %70293 = vmatprep.subr.bf16.mxu1 %v70292_v54  ;;  %70273 = vmatprep.subr.bf16.mxu0 %v70272_v26 }
 0x373   :  { %70295 = vmatpush3.bf16.msra.mxu1 %v70292_v54  ;;  %65925 = vmatprep.mubr.f32.mxu1 %v74176_v3 }
 0x374   :  { %70297 = vmatprep.subr.bf16.mxu1 %v70296_v60 }
 0x377   :  { %65884 = vmatmul.mubr.f32.vlgmr.msra.gmra.mrb[36].mxu0 %v74182_v6 }
 0x378   :  { %70275 = vmatpush3.bf16.msra.mxu0 %v70272_v26  ;;  %65890 = vmatprep.mubr.f32.mxu0 %v74180_v5 }
 0x379   :  { %65926 = vmatmul.mubr.f32.vlgmr.msra.gmra.mrb[36].mxu1 %v74182_v6  ;;  %70277 = vmatprep.subr.bf16.mxu0 %v74861_v44 }
 0x37a   :  { %70299 = vmatpush3.bf16.msra.mxu1 %v70296_v60  ;;  %65932 = vmatprep.mubr.f32.mxu1 %v74180_v5 }
 0x37b   :  { %70301 = vmatprep.subr.bf16.mxu1 %v74865_v30 }
 0x37f   :  { %65891 = vmatmul.mubr.f32.vlgmr.msra.gmra.mrb[36].mxu0 %v74194_v8 }
 0x380   :  { %70279 = vmatpush3.bf16.msra.mxu0 %v74861_v44  ;;  %65897 = vmatprep.mubr.f32.mxu0 %v74191_v7 }
 0x381   :  { %65933 = vmatmul.mubr.f32.vlgmr.msra.gmra.mrb[36].mxu1 %v74194_v8  ;;  %70281 = vmatprep.subr.bf16.mxu0 %v70280_v4 }
 0x382   :  { %70303 = vmatpush3.bf16.msra.mxu1 %v74865_v30  ;;  %65939 = vmatprep.mubr.f32.mxu1 %v74191_v7 }
 0x383   :  { %70305 = vmatprep.subr.bf16.mxu1 %v70304_v47 }
 0x387   :  { %65898 = vmatmul.mubr.f32.vlgmr.msra.gmra.mrb[36].mxu0 %v74200_v14 }
 0x388   :  { %70283 = vmatpush3.bf16.msra.mxu0 %v70280_v4  ;;  %65904 = vmatprep.mubr.f32.mxu0 %v74176_v3 }
 0x389   :  { %65940 = vmatmul.mubr.f32.vlgmr.msra.gmra.mrb[36].mxu1 %v74200_v14  ;;  %70285 = vmatprep.subr.bf16.mxu0 %v74861_v44 }
 0x38a   :  { %70307 = vmatpush3.bf16.msra.mxu1 %v70304_v47  ;;  %65946 = vmatprep.mubr.f32.mxu1 %v74176_v3 }
 0x38b   :  { %70309 = vmatprep.subr.bf16.mxu1 %v74865_v30 }
 0x38e   :  { %v65493_v56 = vpop.f32.mrb[26].mxu0 }
 0x38f   :  { %v19355_v23 = vand.u32 4294901760, %v65493_v56  ;;  %v13765_v46 = vpop.f32.mrb[27].mxu0  ;;  %65905 = vmatmul.mubr.f32.vlgmr.msra.gmra.mrb[36].mxu0 %v74182_v6 }
 0x390   :  { %v65535_v48 = vpop.f32.mrb[26].mxu1  ;;  %v19352_v59 = vand.u32 4294901760, %v13765_v46  ;;  %70287 = vmatpush3.bf16.msra.mxu0 %v74861_v44  ;;  %65911 = vmatprep.mubr.f32.mxu0 %v74176_v3 }
 0x391   :  { %v19447_v63 = vsub.f32 %v65493_v56, %v19355_v23  ;;  %v19857_v1 = vand.u32 4294901760, %v65535_v48  ;;  %v14273_v9 = vpop.f32.mrb[27].mxu1  ;;  %65947 = vmatmul.mubr.f32.vlgmr.msra.gmra.mrb[36].mxu1 %v74182_v6 }
 0x392   :  { %v74901_v12 = vpack.c.bf16 %v19355_v23, %v19352_v59  ;;  %v19440_v34 = vsub.f32 %v13765_v46, %v19352_v59  ;;  %v19854_v26 = vand.u32 4294901760, %v14273_v9  ;;  %70311 = vmatpush3.bf16.msra.mxu1 %v74865_v30  ;;  %65953 = vmatprep.mubr.f32.mxu1 %v74176_v3 }
 0x393   :  { %v19448_v61 = vand.u32 4294901760, %v19447_v63  ;;  %v19949_v17 = vsub.f32 %v65535_v48, %v19857_v1 }
 0x394   :  { %v19441_v45 = vand.u32 4294901760, %v19440_v34  ;;  %v74905_v49 = vpack.c.bf16 %v19857_v1, %v19854_v26  ;;  %v19942_v44 = vsub.f32 %v14273_v9, %v19854_v26  ;;  %70313 = vmatprep.subr.bf16.mxu0 %v74901_v12  ;;  %v70320_v60 = vpack.c.bf16 %v19447_v63, %v19440_v34 }
 0x395   :  { %v19449_v4 = vsub.f32 %v19447_v63, %v19448_v61  ;;  %v19950_v52 = vand.u32 4294901760, %v19949_v17 }
 0x396   :  { %v19442_v37 = vsub.f32 %v19440_v34, %v19441_v45  ;;  %v19943_v62 = vand.u32 4294901760, %v19942_v44  ;;  %70337 = vmatprep.subr.bf16.mxu1 %v74905_v49  ;;  %v70344_v41 = vpack.c.bf16 %v19949_v17, %v19942_v44  ;;  %v70328_v47 = vpack.c.bf16 %v19448_v61, %v19441_v45 }
 0x397   :  { %v19951_v30 = vsub.f32 %v19949_v17, %v19950_v52  ;;  %65912 = vmatmul.mubr.f32.vlgmr.msra.gmra.mrb[36].mxu0 %v74182_v6  ;;  %v19450_v58 = vand.u32 4294901760, %v19449_v4 }
 0x398   :  { %v19944_v50 = vsub.f32 %v19942_v44, %v19943_v62  ;;  %70315 = vmatpush3.bf16.msra.mxu0 %v74901_v12  ;;  %65960 = vmatprep.mubr.f32.mxu0 %v74209_v25  ;;  %v19443_v21 = vand.u32 4294901760, %v19442_v37  ;;  %v70352_v54 = vpack.c.bf16 %v19950_v52, %v19943_v62 }
 0x399   :  { %65954 = vmatmul.mubr.f32.vlgmr.msra.gmra.mrb[36].mxu1 %v74182_v6  ;;  %v19952_v56 = vand.u32 4294901760, %v19951_v30 }
 0x39a   :  { %70339 = vmatpush3.bf16.msra.mxu1 %v74905_v49  ;;  %66002 = vmatprep.mubr.f32.mxu1 %v74209_v25  ;;  %v70316_v23 = vpack.c.bf16 %v19450_v58, %v19443_v21  ;;  %v19945_v46 = vand.u32 4294901760, %v19944_v50 }
 0x39b   :  { %65961 = vmatmul.mubr.f32.vlgmr.msra.gmra.mrb[38].mxu0 %v74218_v40 }
 0x39c   :  { %70317 = vmatprep.subr.bf16.mxu0 %v70316_v23  ;;  %v70340_v48 = vpack.c.bf16 %v19952_v56, %v19945_v46  ;;  %65967 = vmatprep.mubr.f32.mxu0 %v74176_v3 }
 0x39d   :  { %66003 = vmatmul.mubr.f32.vlgmr.msra.gmra.mrb[38].mxu1 %v74218_v40  ;;  %70319 = vmatpush3.bf16.msra.mxu0 %v70316_v23 }
 0x39e   :  { %70341 = vmatprep.subr.bf16.mxu1 %v70340_v48  ;;  %70321 = vmatprep.subr.bf16.mxu0 %v70320_v60 }
 0x39f   :  { %70343 = vmatpush3.bf16.msra.mxu1 %v70340_v48  ;;  %66009 = vmatprep.mubr.f32.mxu1 %v74176_v3 }
 0x3a0   :  { %70345 = vmatprep.subr.bf16.mxu1 %v70344_v41 }
 0x3a3   :  { %65968 = vmatmul.mubr.f32.vlgmr.msra.gmra.mrb[38].mxu0 %v74182_v6 }
 0x3a4   :  { %70323 = vmatpush3.bf16.msra.mxu0 %v70320_v60  ;;  %65974 = vmatprep.mubr.f32.mxu0 %v74180_v5 }
 0x3a5   :  { %66010 = vmatmul.mubr.f32.vlgmr.msra.gmra.mrb[38].mxu1 %v74182_v6  ;;  %70325 = vmatprep.subr.bf16.mxu0 %v74901_v12 }
 0x3a6   :  { %70347 = vmatpush3.bf16.msra.mxu1 %v70344_v41  ;;  %66016 = vmatprep.mubr.f32.mxu1 %v74180_v5 }
 0x3a7   :  { %70349 = vmatprep.subr.bf16.mxu1 %v74905_v49 }
 0x3ab   :  { %65975 = vmatmul.mubr.f32.vlgmr.msra.gmra.mrb[38].mxu0 %v74194_v8 }
 0x3ac   :  { %70327 = vmatpush3.bf16.msra.mxu0 %v74901_v12  ;;  %65981 = vmatprep.mubr.f32.mxu0 %v74191_v7 }
 0x3ad   :  { %66017 = vmatmul.mubr.f32.vlgmr.msra.gmra.mrb[38].mxu1 %v74194_v8  ;;  %70329 = vmatprep.subr.bf16.mxu0 %v70328_v47 }
 0x3ae   :  { %70351 = vmatpush3.bf16.msra.mxu1 %v74905_v49  ;;  %66023 = vmatprep.mubr.f32.mxu1 %v74191_v7 }
 0x3af   :  { %70353 = vmatprep.subr.bf16.mxu1 %v70352_v54 }
 0x3b3   :  { %65982 = vmatmul.mubr.f32.vlgmr.msra.gmra.mrb[38].mxu0 %v74200_v14 }
 0x3b4   :  { %70331 = vmatpush3.bf16.msra.mxu0 %v70328_v47  ;;  %65988 = vmatprep.mubr.f32.mxu0 %v74176_v3 }
 0x3b5   :  { %66024 = vmatmul.mubr.f32.vlgmr.msra.gmra.mrb[38].mxu1 %v74200_v14  ;;  %70333 = vmatprep.subr.bf16.mxu0 %v74901_v12 }
 0x3b6   :  { %70355 = vmatpush3.bf16.msra.mxu1 %v70352_v54  ;;  %66030 = vmatprep.mubr.f32.mxu1 %v74176_v3 }
 0x3b7   :  { %70357 = vmatprep.subr.bf16.mxu1 %v74905_v49 }
 0x3ba   :  { %v65577_v59 = vpop.f32.mrb[28].mxu0 }
 0x3bb   :  { %v20359_v63 = vand.u32 4294901760, %v65577_v59  ;;  %v14781_v1 = vpop.f32.mrb[29].mxu0  ;;  %65989 = vmatmul.mubr.f32.vlgmr.msra.gmra.mrb[38].mxu0 %v74182_v6 }
 0x3bc   :  { %v65619_v9 = vpop.f32.mrb[28].mxu1  ;;  %v20356_v34 = vand.u32 4294901760, %v14781_v1  ;;  %70335 = vmatpush3.bf16.msra.mxu0 %v74901_v12  ;;  %65995 = vmatprep.mubr.f32.mxu0 %v74176_v3 }
 0x3bd   :  { %v20451_v26 = vsub.f32 %v65577_v59, %v20359_v63  ;;  %v20861_v61 = vand.u32 4294901760, %v65619_v9  ;;  %v15289_v17 = vpop.f32.mrb[29].mxu1  ;;  %66031 = vmatmul.mubr.f32.vlgmr.msra.gmra.mrb[38].mxu1 %v74182_v6 }
 0x3be   :  { %v74941_v45 = vpack.c.bf16 %v20359_v63, %v20356_v34  ;;  %v20444_v44 = vsub.f32 %v14781_v1, %v20356_v34  ;;  %v20858_v60 = vand.u32 4294901760, %v15289_v17  ;;  %70359 = vmatpush3.bf16.msra.mxu1 %v74905_v49  ;;  %66037 = vmatprep.mubr.f32.mxu1 %v74176_v3 }
 0x3bf   :  { %v20452_v4 = vand.u32 4294901760, %v20451_v26  ;;  %v20953_v52 = vsub.f32 %v65619_v9, %v20861_v61 }
 0x3c0   :  { %v20445_v37 = vand.u32 4294901760, %v20444_v44  ;;  %v74945_v62 = vpack.c.bf16 %v20861_v61, %v20858_v60  ;;  %v20946_v12 = vsub.f32 %v15289_v17, %v20858_v60  ;;  %70361 = vmatprep.subr.bf16.mxu0 %v74941_v45  ;;  %v70368_v41 = vpack.c.bf16 %v20451_v26, %v20444_v44 }
 0x3c1   :  { %v20453_v47 = vsub.f32 %v20451_v26, %v20452_v4  ;;  %v20954_v30 = vand.u32 4294901760, %v20953_v52 }
 0x3c2   :  { %v20446_v58 = vsub.f32 %v20444_v44, %v20445_v37  ;;  %v20947_v50 = vand.u32 4294901760, %v20946_v12  ;;  %70385 = vmatprep.subr.bf16.mxu1 %v74945_v62  ;;  %v70392_v21 = vpack.c.bf16 %v20953_v52, %v20946_v12  ;;  %v70376_v54 = vpack.c.bf16 %v20452_v4, %v20445_v37 }
 0x3c3   :  { %v20955_v49 = vsub.f32 %v20953_v52, %v20954_v30  ;;  %65996 = vmatmul.mubr.f32.vlgmr.msra.gmra.mrb[38].mxu0 %v74182_v6  ;;  %v20454_v56 = vand.u32 4294901760, %v20453_v47 }
 0x3c4   :  { %v20948_v23 = vsub.f32 %v20946_v12, %v20947_v50  ;;  %70363 = vmatpush3.bf16.msra.mxu0 %v74941_v45  ;;  %66044 = vmatprep.mubr.f32.mxu0 %v74209_v25  ;;  %v20447_v46 = vand.u32 4294901760, %v20446_v58  ;;  %v70400_v48 = vpack.c.bf16 %v20954_v30, %v20947_v50 }
 0x3c5   :  { %66038 = vmatmul.mubr.f32.vlgmr.msra.gmra.mrb[38].mxu1 %v74182_v6  ;;  %v20956_v59 = vand.u32 4294901760, %v20955_v49 }
 0x3c6   :  { %70387 = vmatpush3.bf16.msra.mxu1 %v74945_v62  ;;  %66086 = vmatprep.mubr.f32.mxu1 %v74209_v25  ;;  %v70364_v63 = vpack.c.bf16 %v20454_v56, %v20447_v46  ;;  %v20949_v1 = vand.u32 4294901760, %v20948_v23 }
 0x3c7   :  { %66045 = vmatmul.mubr.f32.vlgmr.msra.gmra.mrb[40].mxu0 %v74218_v40 }
 0x3c8   :  { %70365 = vmatprep.subr.bf16.mxu0 %v70364_v63  ;;  %v70388_v9 = vpack.c.bf16 %v20956_v59, %v20949_v1  ;;  %66051 = vmatprep.mubr.f32.mxu0 %v74176_v3 }
 0x3c9   :  { %66087 = vmatmul.mubr.f32.vlgmr.msra.gmra.mrb[40].mxu1 %v74218_v40  ;;  %70367 = vmatpush3.bf16.msra.mxu0 %v70364_v63 }
 0x3ca   :  { %70389 = vmatprep.subr.bf16.mxu1 %v70388_v9  ;;  %70369 = vmatprep.subr.bf16.mxu0 %v70368_v41 }
 0x3cb   :  { %70391 = vmatpush3.bf16.msra.mxu1 %v70388_v9  ;;  %66093 = vmatprep.mubr.f32.mxu1 %v74176_v3 }
 0x3cc   :  { %70393 = vmatprep.subr.bf16.mxu1 %v70392_v21 }
 0x3cf   :  { %66052 = vmatmul.mubr.f32.vlgmr.msra.gmra.mrb[40].mxu0 %v74182_v6 }
 0x3d0   :  { %70371 = vmatpush3.bf16.msra.mxu0 %v70368_v41  ;;  %66058 = vmatprep.mubr.f32.mxu0 %v74180_v5 }
 0x3d1   :  { %66094 = vmatmul.mubr.f32.vlgmr.msra.gmra.mrb[40].mxu1 %v74182_v6  ;;  %70373 = vmatprep.subr.bf16.mxu0 %v74941_v45 }
 0x3d2   :  { %70395 = vmatpush3.bf16.msra.mxu1 %v70392_v21  ;;  %66100 = vmatprep.mubr.f32.mxu1 %v74180_v5 }
 0x3d3   :  { %70397 = vmatprep.subr.bf16.mxu1 %v74945_v62 }
 0x3d7   :  { %66059 = vmatmul.mubr.f32.vlgmr.msra.gmra.mrb[40].mxu0 %v74194_v8 }
 0x3d8   :  { %70375 = vmatpush3.bf16.msra.mxu0 %v74941_v45  ;;  %66065 = vmatprep.mubr.f32.mxu0 %v74191_v7 }
 0x3d9   :  { %66101 = vmatmul.mubr.f32.vlgmr.msra.gmra.mrb[40].mxu1 %v74194_v8  ;;  %70377 = vmatprep.subr.bf16.mxu0 %v70376_v54 }
 0x3da   :  { %70399 = vmatpush3.bf16.msra.mxu1 %v74945_v62  ;;  %66107 = vmatprep.mubr.f32.mxu1 %v74191_v7 }
 0x3db   :  { %70401 = vmatprep.subr.bf16.mxu1 %v70400_v48 }
 0x3df   :  { %66066 = vmatmul.mubr.f32.vlgmr.msra.gmra.mrb[40].mxu0 %v74200_v14 }
 0x3e0   :  { %70379 = vmatpush3.bf16.msra.mxu0 %v70376_v54  ;;  %66072 = vmatprep.mubr.f32.mxu0 %v74176_v3 }
 0x3e1   :  { %66108 = vmatmul.mubr.f32.vlgmr.msra.gmra.mrb[40].mxu1 %v74200_v14  ;;  %70381 = vmatprep.subr.bf16.mxu0 %v74941_v45 }
 0x3e2   :  { %70403 = vmatpush3.bf16.msra.mxu1 %v70400_v48  ;;  %66114 = vmatprep.mubr.f32.mxu1 %v74176_v3 }
 0x3e3   :  { %70405 = vmatprep.subr.bf16.mxu1 %v74945_v62 }
 0x3e6   :  { %v65661_v34 = vpop.f32.mrb[30].mxu0 }
 0x3e7   :  { %v21363_v26 = vand.u32 4294901760, %v65661_v34  ;;  %v15797_v61 = vpop.f32.mrb[31].mxu0  ;;  %66073 = vmatmul.mubr.f32.vlgmr.msra.gmra.mrb[40].mxu0 %v74182_v6 }
 0x3e8   :  { %v65703_v17 = vpop.f32.mrb[30].mxu1  ;;  %v21360_v44 = vand.u32 4294901760, %v15797_v61  ;;  %70383 = vmatpush3.bf16.msra.mxu0 %v74941_v45  ;;  %66079 = vmatprep.mubr.f32.mxu0 %v74176_v3 }
 0x3e9   :  { %v21455_v60 = vsub.f32 %v65661_v34, %v21363_v26  ;;  %v21865_v4 = vand.u32 4294901760, %v65703_v17  ;;  %v16305_v52 = vpop.f32.mrb[31].mxu1  ;;  %66115 = vmatmul.mubr.f32.vlgmr.msra.gmra.mrb[40].mxu1 %v74182_v6 }
 0x3ea   :  { %v74981_v37 = vpack.c.bf16 %v21363_v26, %v21360_v44  ;;  %v21448_v12 = vsub.f32 %v15797_v61, %v21360_v44  ;;  %v21862_v41 = vand.u32 4294901760, %v16305_v52  ;;  %70407 = vmatpush3.bf16.msra.mxu1 %v74945_v62  ;;  %66121 = vmatprep.mubr.f32.mxu1 %v74176_v3 }
 0x3eb   :  { %v21456_v47 = vand.u32 4294901760, %v21455_v60  ;;  %v21957_v30 = vsub.f32 %v65703_v17, %v21865_v4 }
 0x3ec   :  { %v21449_v58 = vand.u32 4294901760, %v21448_v12  ;;  %v74985_v50 = vpack.c.bf16 %v21865_v4, %v21862_v41  ;;  %v21950_v45 = vsub.f32 %v16305_v52, %v21862_v41  ;;  %70409 = vmatprep.subr.bf16.mxu0 %v74981_v37  ;;  %v70416_v21 = vpack.c.bf16 %v21455_v60, %v21448_v12 }
 0x3ed   :  { %v21457_v54 = vsub.f32 %v21455_v60, %v21456_v47  ;;  %v21958_v49 = vand.u32 4294901760, %v21957_v30 }
 0x3ee   :  { %v21450_v56 = vsub.f32 %v21448_v12, %v21449_v58  ;;  %v21951_v23 = vand.u32 4294901760, %v21950_v45  ;;  %70433 = vmatprep.subr.bf16.mxu1 %v74985_v50  ;;  %v70440_v46 = vpack.c.bf16 %v21957_v30, %v21950_v45  ;;  %v70424_v48 = vpack.c.bf16 %v21456_v47, %v21449_v58 }
 0x3ef   :  { %v21959_v62 = vsub.f32 %v21957_v30, %v21958_v49  ;;  %66080 = vmatmul.mubr.f32.vlgmr.msra.gmra.mrb[40].mxu0 %v74182_v6  ;;  %v21458_v59 = vand.u32 4294901760, %v21457_v54 }
 0x3f0   :  { %v21952_v63 = vsub.f32 %v21950_v45, %v21951_v23  ;;  %70411 = vmatpush3.bf16.msra.mxu0 %v74981_v37  ;;  %66128 = vmatprep.mubr.f32.mxu0 %v74209_v25  ;;  %v21451_v1 = vand.u32 4294901760, %v21450_v56  ;;  %v70448_v9 = vpack.c.bf16 %v21958_v49, %v21951_v23 }
 0x3f1   :  { %66122 = vmatmul.mubr.f32.vlgmr.msra.gmra.mrb[40].mxu1 %v74182_v6  ;;  %v21960_v34 = vand.u32 4294901760, %v21959_v62 }
 0x3f2   :  { %70435 = vmatpush3.bf16.msra.mxu1 %v74985_v50  ;;  %66170 = vmatprep.mubr.f32.mxu1 %v74209_v25  ;;  %v70412_v26 = vpack.c.bf16 %v21458_v59, %v21451_v1  ;;  %v21953_v61 = vand.u32 4294901760, %v21952_v63 }
 0x3f3   :  { %66129 = vmatmul.mubr.f32.vlgmr.msra.gmra.mrb[42].mxu0 %v74218_v40 }
 0x3f4   :  { %70413 = vmatprep.subr.bf16.mxu0 %v70412_v26  ;;  %v70436_v17 = vpack.c.bf16 %v21960_v34, %v21953_v61  ;;  %66135 = vmatprep.mubr.f32.mxu0 %v74176_v3 }
 0x3f5   :  { %66171 = vmatmul.mubr.f32.vlgmr.msra.gmra.mrb[42].mxu1 %v74218_v40  ;;  %70415 = vmatpush3.bf16.msra.mxu0 %v70412_v26 }
 0x3f6   :  { %70437 = vmatprep.subr.bf16.mxu1 %v70436_v17  ;;  %70417 = vmatprep.subr.bf16.mxu0 %v70416_v21 }
 0x3f7   :  { %70439 = vmatpush3.bf16.msra.mxu1 %v70436_v17  ;;  %66177 = vmatprep.mubr.f32.mxu1 %v74176_v3 }
 0x3f8   :  { %70441 = vmatprep.subr.bf16.mxu1 %v70440_v46 }
 0x3fb   :  { %66136 = vmatmul.mubr.f32.vlgmr.msra.gmra.mrb[42].mxu0 %v74182_v6 }
 0x3fc   :  { %70419 = vmatpush3.bf16.msra.mxu0 %v70416_v21  ;;  %66142 = vmatprep.mubr.f32.mxu0 %v74180_v5 }
 0x3fd   :  { %66178 = vmatmul.mubr.f32.vlgmr.msra.gmra.mrb[42].mxu1 %v74182_v6  ;;  %70421 = vmatprep.subr.bf16.mxu0 %v74981_v37 }
 0x3fe   :  { %70443 = vmatpush3.bf16.msra.mxu1 %v70440_v46  ;;  %66184 = vmatprep.mubr.f32.mxu1 %v74180_v5 }
 0x3ff   :  { %70445 = vmatprep.subr.bf16.mxu1 %v74985_v50 }
 0x403   :  { %66143 = vmatmul.mubr.f32.vlgmr.msra.gmra.mrb[42].mxu0 %v74194_v8 }
 0x404   :  { %70423 = vmatpush3.bf16.msra.mxu0 %v74981_v37  ;;  %66149 = vmatprep.mubr.f32.mxu0 %v74191_v7 }
 0x405   :  { %66185 = vmatmul.mubr.f32.vlgmr.msra.gmra.mrb[42].mxu1 %v74194_v8  ;;  %70425 = vmatprep.subr.bf16.mxu0 %v70424_v48 }
 0x406   :  { %70447 = vmatpush3.bf16.msra.mxu1 %v74985_v50  ;;  %66191 = vmatprep.mubr.f32.mxu1 %v74191_v7 }
 0x407   :  { %70449 = vmatprep.subr.bf16.mxu1 %v70448_v9 }
 0x40b   :  { %66150 = vmatmul.mubr.f32.vlgmr.msra.gmra.mrb[42].mxu0 %v74200_v14 }
 0x40c   :  { %70427 = vmatpush3.bf16.msra.mxu0 %v70424_v48  ;;  %66156 = vmatprep.mubr.f32.mxu0 %v74176_v3 }
 0x40d   :  { %66192 = vmatmul.mubr.f32.vlgmr.msra.gmra.mrb[42].mxu1 %v74200_v14  ;;  %70429 = vmatprep.subr.bf16.mxu0 %v74981_v37 }
 0x40e   :  { %70451 = vmatpush3.bf16.msra.mxu1 %v70448_v9  ;;  %66198 = vmatprep.mubr.f32.mxu1 %v74176_v3 }
 0x40f   :  { %70453 = vmatprep.subr.bf16.mxu1 %v74985_v50 }
 0x412   :  { %v65745_v44 = vpop.f32.mrb[32].mxu0 }
 0x413   :  { %v22367_v60 = vand.u32 4294901760, %v65745_v44  ;;  %v16813_v4 = vpop.f32.mrb[33].mxu0  ;;  %66157 = vmatmul.mubr.f32.vlgmr.msra.gmra.mrb[42].mxu0 %v74182_v6 }
 0x414   :  { %v65787_v52 = vpop.f32.mrb[32].mxu1  ;;  %v22364_v12 = vand.u32 4294901760, %v16813_v4  ;;  %70431 = vmatpush3.bf16.msra.mxu0 %v74981_v37  ;;  %66163 = vmatprep.mubr.f32.mxu0 %v74176_v3 }
 0x415   :  { %v22459_v41 = vsub.f32 %v65745_v44, %v22367_v60  ;;  %v22869_v47 = vand.u32 4294901760, %v65787_v52  ;;  %v17321_v30 = vpop.f32.mrb[33].mxu1  ;;  %66199 = vmatmul.mubr.f32.vlgmr.msra.gmra.mrb[42].mxu1 %v74182_v6 }
 0x416   :  { %v75021_v58 = vpack.c.bf16 %v22367_v60, %v22364_v12  ;;  %v22452_v45 = vsub.f32 %v16813_v4, %v22364_v12  ;;  %v22866_v21 = vand.u32 4294901760, %v17321_v30  ;;  %70455 = vmatpush3.bf16.msra.mxu1 %v74985_v50  ;;  %66205 = vmatprep.mubr.f32.mxu1 %v74176_v3 }
 0x417   :  { %v22460_v54 = vand.u32 4294901760, %v22459_v41  ;;  %v22961_v49 = vsub.f32 %v65787_v52, %v22869_v47 }
 0x418   :  { %v22453_v56 = vand.u32 4294901760, %v22452_v45  ;;  %v75025_v23 = vpack.c.bf16 %v22869_v47, %v22866_v21  ;;  %v22954_v37 = vsub.f32 %v17321_v30, %v22866_v21  ;;  %70457 = vmatprep.subr.bf16.mxu0 %v75021_v58  ;;  %v70464_v46 = vpack.c.bf16 %v22459_v41, %v22452_v45 }
 0x419   :  { %v22461_v48 = vsub.f32 %v22459_v41, %v22460_v54  ;;  %v22962_v62 = vand.u32 4294901760, %v22961_v49 }
 0x41a   :  { %v22454_v59 = vsub.f32 %v22452_v45, %v22453_v56  ;;  %v22955_v63 = vand.u32 4294901760, %v22954_v37  ;;  %70481 = vmatprep.subr.bf16.mxu1 %v75025_v23  ;;  %v70488_v1 = vpack.c.bf16 %v22961_v49, %v22954_v37  ;;  %v70472_v9 = vpack.c.bf16 %v22460_v54, %v22453_v56 }
 0x41b   :  { %v22963_v50 = vsub.f32 %v22961_v49, %v22962_v62  ;;  %66164 = vmatmul.mubr.f32.vlgmr.msra.gmra.mrb[42].mxu0 %v74182_v6  ;;  %v22462_v34 = vand.u32 4294901760, %v22461_v48 }
 0x41c   :  { %v22956_v26 = vsub.f32 %v22954_v37, %v22955_v63  ;;  %70459 = vmatpush3.bf16.msra.mxu0 %v75021_v58  ;;  %66212 = vmatprep.mubr.f32.mxu0 %v74209_v25  ;;  %v22455_v61 = vand.u32 4294901760, %v22454_v59  ;;  %v70496_v17 = vpack.c.bf16 %v22962_v62, %v22955_v63 }
 0x41d   :  { %66206 = vmatmul.mubr.f32.vlgmr.msra.gmra.mrb[42].mxu1 %v74182_v6  ;;  %v22964_v44 = vand.u32 4294901760, %v22963_v50 }
 0x41e   :  { %70483 = vmatpush3.bf16.msra.mxu1 %v75025_v23  ;;  %66254 = vmatprep.mubr.f32.mxu1 %v74209_v25  ;;  %v70460_v60 = vpack.c.bf16 %v22462_v34, %v22455_v61  ;;  %v22957_v4 = vand.u32 4294901760, %v22956_v26 }
 0x41f   :  { %66213 = vmatmul.mubr.f32.vlgmr.msra.gmra.mrb[44].mxu0 %v74218_v40 }
 0x420   :  { %70461 = vmatprep.subr.bf16.mxu0 %v70460_v60  ;;  %v70484_v52 = vpack.c.bf16 %v22964_v44, %v22957_v4  ;;  %66219 = vmatprep.mubr.f32.mxu0 %v74176_v3 }
 0x421   :  { %66255 = vmatmul.mubr.f32.vlgmr.msra.gmra.mrb[44].mxu1 %v74218_v40  ;;  %70463 = vmatpush3.bf16.msra.mxu0 %v70460_v60 }
 0x422   :  { %70485 = vmatprep.subr.bf16.mxu1 %v70484_v52  ;;  %70465 = vmatprep.subr.bf16.mxu0 %v70464_v46 }
 0x423   :  { %70487 = vmatpush3.bf16.msra.mxu1 %v70484_v52  ;;  %66261 = vmatprep.mubr.f32.mxu1 %v74176_v3 }
 0x424   :  { %70489 = vmatprep.subr.bf16.mxu1 %v70488_v1 }
 0x427   :  { %66220 = vmatmul.mubr.f32.vlgmr.msra.gmra.mrb[44].mxu0 %v74182_v6 }
 0x428   :  { %70467 = vmatpush3.bf16.msra.mxu0 %v70464_v46  ;;  %66226 = vmatprep.mubr.f32.mxu0 %v74180_v5 }
 0x429   :  { %66262 = vmatmul.mubr.f32.vlgmr.msra.gmra.mrb[44].mxu1 %v74182_v6  ;;  %70469 = vmatprep.subr.bf16.mxu0 %v75021_v58 }
 0x42a   :  { %70491 = vmatpush3.bf16.msra.mxu1 %v70488_v1  ;;  %66268 = vmatprep.mubr.f32.mxu1 %v74180_v5 }
 0x42b   :  { %70493 = vmatprep.subr.bf16.mxu1 %v75025_v23 }
 0x42f   :  { %66227 = vmatmul.mubr.f32.vlgmr.msra.gmra.mrb[44].mxu0 %v74194_v8 }
 0x430   :  { %70471 = vmatpush3.bf16.msra.mxu0 %v75021_v58  ;;  %66233 = vmatprep.mubr.f32.mxu0 %v74191_v7 }
 0x431   :  { %66269 = vmatmul.mubr.f32.vlgmr.msra.gmra.mrb[44].mxu1 %v74194_v8  ;;  %70473 = vmatprep.subr.bf16.mxu0 %v70472_v9 }
 0x432   :  { %70495 = vmatpush3.bf16.msra.mxu1 %v75025_v23  ;;  %66275 = vmatprep.mubr.f32.mxu1 %v74191_v7 }
 0x433   :  { %70497 = vmatprep.subr.bf16.mxu1 %v70496_v17 }
 0x437   :  { %66234 = vmatmul.mubr.f32.vlgmr.msra.gmra.mrb[44].mxu0 %v74200_v14 }
 0x438   :  { %70475 = vmatpush3.bf16.msra.mxu0 %v70472_v9  ;;  %66240 = vmatprep.mubr.f32.mxu0 %v74176_v3 }
 0x439   :  { %66276 = vmatmul.mubr.f32.vlgmr.msra.gmra.mrb[44].mxu1 %v74200_v14  ;;  %70477 = vmatprep.subr.bf16.mxu0 %v75021_v58 }
 0x43a   :  { %70499 = vmatpush3.bf16.msra.mxu1 %v70496_v17  ;;  %66282 = vmatprep.mubr.f32.mxu1 %v74176_v3 }
 0x43b   :  { %70501 = vmatprep.subr.bf16.mxu1 %v75025_v23 }
 0x43e   :  { %v65829_v12 = vpop.f32.mrb[34].mxu0 }
 0x43f   :  { %v23371_v41 = vand.u32 4294901760, %v65829_v12  ;;  %v17829_v47 = vpop.f32.mrb[35].mxu0  ;;  %66241 = vmatmul.mubr.f32.vlgmr.msra.gmra.mrb[44].mxu0 %v74182_v6 }
 0x440   :  { %v65871_v30 = vpop.f32.mrb[34].mxu1  ;;  %v23368_v45 = vand.u32 4294901760, %v17829_v47  ;;  %70479 = vmatpush3.bf16.msra.mxu0 %v75021_v58  ;;  %66247 = vmatprep.mubr.f32.mxu0 %v74176_v3 }
 0x441   :  { %v23463_v21 = vsub.f32 %v65829_v12, %v23371_v41  ;;  %v23873_v54 = vand.u32 4294901760, %v65871_v30  ;;  %v18337_v49 = vpop.f32.mrb[35].mxu1  ;;  %66283 = vmatmul.mubr.f32.vlgmr.msra.gmra.mrb[44].mxu1 %v74182_v6 }
 0x442   :  { %v75061_v56 = vpack.c.bf16 %v23371_v41, %v23368_v45  ;;  %v23456_v37 = vsub.f32 %v17829_v47, %v23368_v45  ;;  %v23870_v46 = vand.u32 4294901760, %v18337_v49  ;;  %70503 = vmatpush3.bf16.msra.mxu1 %v75025_v23  ;;  %66289 = vmatprep.mubr.f32.mxu1 %v74176_v3  ;;  %v73534_v45 = vld [vmem:[#allocation2] sm:$0xff] }
 0x443   :  { %v23464_v48 = vand.u32 4294901760, %v23463_v21  ;;  %v23965_v62 = vsub.f32 %v65871_v30, %v23873_v54 }
 0x444   :  { %v23457_v59 = vand.u32 4294901760, %v23456_v37  ;;  %v75065_v63 = vpack.c.bf16 %v23873_v54, %v23870_v46  ;;  %v23958_v58 = vsub.f32 %v18337_v49, %v23870_v46  ;;  %70505 = vmatprep.subr.bf16.mxu0 %v75061_v56  ;;  %v70512_v1 = vpack.c.bf16 %v23463_v21, %v23456_v37  ;;  %v73535_v54 = vld [vmem:[#allocation2 + $0x10] sm:$0xff] }
 0x445   :  { %v23465_v9 = vsub.f32 %v23463_v21, %v23464_v48  ;;  %v23966_v50 = vand.u32 4294901760, %v23965_v62  ;;  %v24371_v21 = vmul.f32 %v73534_v45, %v73534_v45  ;;  %v24373_v49 = vmul.f32 %v73535_v54, %v73535_v54 }
 0x446   :  { %v23458_v34 = vsub.f32 %v23456_v37, %v23457_v59  ;;  %v23959_v26 = vand.u32 4294901760, %v23958_v58  ;;  %70529 = vmatprep.subr.bf16.mxu1 %v75065_v63  ;;  %v70536_v61 = vpack.c.bf16 %v23965_v62, %v23958_v58  ;;  %v70520_v17 = vpack.c.bf16 %v23464_v48, %v23457_v59  ;;  %v73536_v37 = vld [vmem:[#allocation2 + $0x8] sm:$0xff]  ;;  %v73537_v59 = vld [vmem:[#allocation2 + $0x18] sm:$0xff] }
 0x447   :  { %v23967_v23 = vsub.f32 %v23965_v62, %v23966_v50  ;;  %66248 = vmatmul.mubr.f32.vlgmr.msra.gmra.mrb[44].mxu0 %v74182_v6  ;;  %v23466_v44 = vand.u32 4294901760, %v23465_v9  ;;  %v24372_v46 = vmul.f32 %v73536_v37, %v73536_v37  ;;  %v24396_v48 = vsel %vm124_vm0, %v24371_v21, 0 }
 0x448   :  { %v23960_v60 = vsub.f32 %v23958_v58, %v23959_v26  ;;  %70507 = vmatpush3.bf16.msra.mxu0 %v75061_v56  ;;  %66296 = vmatprep.mubr.f32.mxu0 %v74209_v25  ;;  %v23459_v4 = vand.u32 4294901760, %v23458_v34  ;;  %v70544_v52 = vpack.c.bf16 %v23966_v50, %v23959_v26  ;;  %v24904_v62 = vsel %vm124_vm0, %v24373_v49, 0 }
 0x449   :  { %66290 = vmatmul.mubr.f32.vlgmr.msra.gmra.mrb[44].mxu1 %v74182_v6  ;;  %v23968_v12 = vand.u32 4294901760, %v23967_v23  ;;  %v24374_v58 = vmul.f32 %v73537_v59, %v73537_v59  ;;  %v75095_v9 = vand.u32 4294901760, %v24904_v62  ;;  %v24399_v50 = vsel %vm124_vm0, %v24372_v46, 0 }
 0x44a   :  { %70531 = vmatpush3.bf16.msra.mxu1 %v75065_v63  ;;  %66338 = vmatprep.mubr.f32.mxu1 %v74209_v25  ;;  %v70508_v41 = vpack.c.bf16 %v23466_v44, %v23459_v4  ;;  %v23961_v47 = vand.u32 4294901760, %v23960_v60 }
 0x44b   :  { %66297 = vmatmul.mubr.f32.vlgmr.msra.gmra.mrb[46].mxu0 %v74218_v40  ;;  %v24907_v34 = vsel %vm124_vm0, %v24374_v58, 0  ;;  %v75107_v23 = vsub.f32 %v24904_v62, %v75095_v9 }
 0x44c   :  { %70509 = vmatprep.subr.bf16.mxu0 %v70508_v41  ;;  %v70532_v30 = vpack.c.bf16 %v23968_v12, %v23961_v47  ;;  %66303 = vmatprep.mubr.f32.mxu0 %v74176_v3  ;;  %v75111_v44 = vand.u32 4294901760, %v24907_v34  ;;  %v75133_v47 = vmul.f32 %v74469_v16, %v74469_v16 }
 0x44d   :  { %66339 = vmatmul.mubr.f32.vlgmr.msra.gmra.mrb[46].mxu1 %v74218_v40  ;;  %70511 = vmatpush3.bf16.msra.mxu0 %v70508_v41  ;;  %v78061_v4 = vand.u32 4294901760, %v75107_v23  ;;  %v75125_v41 = vmul.f32 %v74467_v13, %v74467_v13 }
 0x44e   :  { %70533 = vmatprep.subr.bf16.mxu1 %v70532_v30  ;;  %70513 = vmatprep.subr.bf16.mxu0 %v70512_v1  ;;  %v75121_v12 = vsub.f32 %v24907_v34, %v75111_v44 }
 0x44f   :  { %70535 = vmatpush3.bf16.msra.mxu1 %v70532_v30  ;;  %66345 = vmatprep.mubr.f32.mxu1 %v74176_v3  ;;  %v75137_v30 = vmul.f32 %v74477_v20, %v74477_v20 }
 0x450   :  { %70537 = vmatprep.subr.bf16.mxu1 %v70536_v61 }
 0x453   :  { %66304 = vmatmul.mubr.f32.vlgmr.msra.gmra.mrb[46].mxu0 %v74182_v6 }
 0x454   :  { %70515 = vmatpush3.bf16.msra.mxu0 %v70512_v1  ;;  %66310 = vmatprep.mubr.f32.mxu0 %v74180_v5  ;;  %v75093_v1 = vand.u32 4294901760, %v24396_v48 }
 0x455   :  { %66346 = vmatmul.mubr.f32.vlgmr.msra.gmra.mrb[46].mxu1 %v74182_v6  ;;  %70517 = vmatprep.subr.bf16.mxu0 %v75061_v56 }
 0x456   :  { %70539 = vmatpush3.bf16.msra.mxu1 %v70536_v61  ;;  %66352 = vmatprep.mubr.f32.mxu1 %v74180_v5  ;;  %v75101_v26 = vsub.f32 %v24396_v48, %v75093_v1  ;;  %v75103_v61 = vand.u32 4294901760, %v24399_v50 }
 0x457   :  { %70541 = vmatprep.subr.bf16.mxu1 %v75065_v63 }
 0x458   :  { %v78062_v60 = vand.u32 4294901760, %v75101_v26 }
 0x45a   :  { %v24471_v37 = vsub.f32 %v75101_v26, %v78062_v60 }
 0x45b   :  { %66311 = vmatmul.mubr.f32.vlgmr.msra.gmra.mrb[46].mxu0 %v74194_v8 }
 0x45c   :  { %70519 = vmatpush3.bf16.msra.mxu0 %v75061_v56  ;;  %66317 = vmatprep.mubr.f32.mxu0 %v74191_v7 }
 0x45d   :  { %66353 = vmatmul.mubr.f32.vlgmr.msra.gmra.mrb[46].mxu1 %v74194_v8  ;;  %70521 = vmatprep.subr.bf16.mxu0 %v70520_v17 }
 0x45e   :  { %70543 = vmatpush3.bf16.msra.mxu1 %v75065_v63  ;;  %66359 = vmatprep.mubr.f32.mxu1 %v74191_v7 }
 0x45f   :  { %70545 = vmatprep.subr.bf16.mxu1 %v70544_v52 }
 0x463   :  { %66318 = vmatmul.mubr.f32.vlgmr.msra.gmra.mrb[46].mxu0 %v74200_v14 }
 0x464   :  { %70523 = vmatpush3.bf16.msra.mxu0 %v70520_v17  ;;  %66324 = vmatprep.mubr.f32.mxu0 %v74176_v3  ;;  %v75117_v17 = vsub.f32 %v24399_v50, %v75103_v61 }
 0x465   :  { %66360 = vmatmul.mubr.f32.vlgmr.msra.gmra.mrb[46].mxu1 %v74200_v14  ;;  %70525 = vmatprep.subr.bf16.mxu0 %v75061_v56 }
 0x466   :  { %70547 = vmatpush3.bf16.msra.mxu1 %v70544_v52  ;;  %66366 = vmatprep.mubr.f32.mxu1 %v74176_v3  ;;  %v75129_v52 = vmul.f32 %v74473_v18, %v74473_v18  ;;  %v78066_v46 = vand.u32 4294901760, %v75117_v17 }
 0x467   :  { %70549 = vmatprep.subr.bf16.mxu1 %v75065_v63 }
 0x46a   :  { %v65913_v45 = vpop.f32.mrb[36].mxu0 }
 0x46b   :  { %v75139_v21 = vmul.f32 %v65913_v45, %v65913_v45  ;;  %v75142_v54 = vmul.f32 %v65913_v45, %v74467_v13  ;;  %v18839_v49 = vpop.f32.mrb[37].mxu0  ;;  %66325 = vmatmul.mubr.f32.vlgmr.msra.gmra.mrb[46].mxu0 %v74182_v6  ;;  %v24979_v13 = vsub.f32 %v75107_v23, %v78061_v4 }
 0x46c   :  { %v65955_v48 = vpop.f32.mrb[36].mxu1  ;;  %v75149_v62 = vmul.f32 %v18839_v49, %v18839_v49  ;;  %v75152_v59 = vmul.f32 %v18839_v49, %v74469_v16  ;;  %70527 = vmatpush3.bf16.msra.mxu0 %v75061_v56  ;;  %66331 = vmatprep.mubr.f32.mxu0 %v74176_v3  ;;  %v78065_v16 = vand.u32 4294901760, %v75121_v12 }
 0x46d   :  { %78157 = vst [vmem:[#allocation15_spill] sm:$0xff] %v75139_v21  ;;  %78158 = vst [vmem:[#allocation16_spill] sm:$0xff] %v75142_v54  ;;  %v75161_v58 = vadd.f32 %v75139_v21, %v75125_v41  ;;  %v75163_v50 = vmul.f32 %v65955_v48, %v65955_v48  ;;  %v75166_v34 = vmul.f32 %v65955_v48, %v74473_v18  ;;  %v19341_v45 = vpop.f32.mrb[37].mxu1  ;;  %66367 = vmatmul.mubr.f32.vlgmr.msra.gmra.mrb[46].mxu1 %v74182_v6 }
 0x46e   :  { %78159 = vst [vmem:[#allocation17_spill] sm:$0xff] %v75149_v62  ;;  %78160 = vst [vmem:[#allocation18_spill] sm:$0xff] %v75152_v59  ;;  %70553 = vmatprep.subr.bf16.mxu0 %v73833_v10  ;;  %v75173_v56 = vadd.f32 %v75149_v62, %v75133_v47  ;;  %v75175_v49 = vmul.f32 %v19341_v45, %v19341_v45  ;;  %v75178_v4 = vmul.f32 %v19341_v45, %v74477_v20 }
 0x46f   :  { %78161 = vst [vmem:[#allocation19_spill] sm:$0xff] %v75161_v58  ;;  %78162 = vst [vmem:[#allocation20_spill] sm:$0xff] %v75163_v50  ;;  %70551 = vmatpush3.bf16.msra.mxu1 %v75065_v63  ;;  %66373 = vmatprep.mubr.f32.mxu1 %v74176_v3  ;;  %v75184_v18 = vadd.f32 %v75163_v50, %v75129_v52  ;;  %v24481_v48 = vsub.f32 %v75117_v17, %v78066_v46  ;;  %v24472_v20 = vand.u32 4294901760, %v24471_v37 }
 0x470   :  { %78163 = vst [vmem:[#allocation21_spill] sm:$0xff] %v75166_v34  ;;  %78164 = vst [vmem:[#allocation22_spill] sm:$0xff] %v75173_v56  ;;  %70577 = vmatprep.subr.bf16.mxu1 %v73833_v10  ;;  %v75192_v60 = vadd.f32 %v75175_v49, %v75137_v30  ;;  %v24989_v63 = vsub.f32 %v75121_v12, %v78065_v16  ;;  %v24980_v45 = vand.u32 4294901760, %v24979_v13  ;;  %v73539_v13 = vld [vmem:[#allocation2 + $0x30] sm:$0xff]  ;;  %v78171_v59 = vand.u32 4294901760, %v75117_v17 }
 0x471   :  { %78165 = vst [vmem:[#allocation23_spill] sm:$0xff] %v75175_v49  ;;  %78166 = vst [vmem:[#allocation24_spill] sm:$0xff] %v75178_v4  ;;  %v24482_v4 = vand.u32 4294901760, %v24481_v48  ;;  %v78169_v48 = vand.u32 4294901760, %v75101_v26 }
 0x472   :  { %78167 = vst [vmem:[#allocation25_spill] sm:$0xff] %v75184_v18  ;;  %78168 = vst [vmem:[#allocation26_spill] sm:$0xff] %v75192_v60  ;;  %v24990_v34 = vand.u32 4294901760, %v24989_v63  ;;  %v73540_v63 = vld [vmem:[#allocation2 + $0x28] sm:$0xff] }
 0x473   :  { %66332 = vmatmul.mubr.f32.vlgmr.msra.gmra.mrb[46].mxu0 %v74182_v6 }
 0x474   :  { %70555 = vmatpush3.bf16.msra.mxu0 %v73833_v10  ;;  %66380 = vmatprep.mubr.f32.mxu0 %v24472_v20 }
 0x475   :  { %66374 = vmatmul.mubr.f32.vlgmr.msra.gmra.mrb[46].mxu1 %v74182_v6  ;;  %70557 = vmatprep.subr.bf16.mxu0 %v73851_v35 }
 0x476   :  { %70579 = vmatpush3.bf16.msra.mxu1 %v73833_v10  ;;  %66422 = vmatprep.mubr.f32.mxu1 %v24980_v45  ;;  %v24376_v45 = vmul.f32 %v73540_v63, %v73540_v63 }
 0x477   :  { %66381 = vmatmul.mubr.f32.vlgmr.msra.gmra.mrb[48].mxu0 %v24482_v4  ;;  %70581 = vmatprep.subr.bf16.mxu1 %v73851_v35  ;;  %v73538_v4 = vld [vmem:[#allocation2 + $0x20] sm:$0xff] }
 0x478   :  { %70559 = vmatpush3.bf16.msra.mxu0 %v73851_v35  ;;  %66387 = vmatprep.mubr.f32.mxu0 %v75093_v1  ;;  %v24375_v37 = vmul.f32 %v73538_v4, %v73538_v4  ;;  %v78170_v4 = vand.u32 4294901760, %v75107_v23 }
 0x479   :  { %66423 = vmatmul.mubr.f32.vlgmr.msra.gmra.mrb[48].mxu1 %v24990_v34  ;;  %70561 = vmatprep.subr.bf16.mxu0 %v73854_v39  ;;  %v24377_v34 = vmul.f32 %v73539_v13, %v73539_v13  ;;  %v73541_v13 = vld [vmem:[#allocation2 + $0x38] sm:$0xff] }
 0x47a   :  { %70583 = vmatpush3.bf16.msra.mxu1 %v73851_v35  ;;  %66429 = vmatprep.mubr.f32.mxu1 %v75095_v9  ;;  %v25412_v20 = vsel %vm124_vm0, %v24375_v37, 0  ;;  %v24378_v46 = vmul.f32 %v73541_v13, %v73541_v13  ;;  %v78172_v13 = vand.u32 4294901760, %v75121_v12 }
 0x47b   :  { %70585 = vmatprep.subr.bf16.mxu1 %v73854_v39  ;;  %v25920_v16 = vsel %vm124_vm0, %v24377_v34, 0 }
 0x47c   :  { %v75231_v37 = vand.u32 4294901760, %v25920_v16  ;;  %v25923_v63 = vsel %vm124_vm0, %v24378_v46, 0 }
 0x47d   :  { %v75250_v46 = vand.u32 4294901760, %v25923_v63 }
 0x47f   :  { %66388 = vmatmul.mubr.f32.vlgmr.msra.gmra.mrb[48].mxu0 %v75103_v61 }
 0x480   :  { %70563 = vmatpush3.bf16.msra.mxu0 %v73854_v39  ;;  %66394 = vmatprep.mubr.f32.mxu0 %v75101_v26  ;;  %v75229_v26 = vand.u32 4294901760, %v25412_v20 }
 0x481   :  { %66430 = vmatmul.mubr.f32.vlgmr.msra.gmra.mrb[48].mxu1 %v75111_v44  ;;  %70565 = vmatprep.subr.bf16.mxu0 %v73833_v10 }
 0x482   :  { %70587 = vmatpush3.bf16.msra.mxu1 %v73854_v39  ;;  %66436 = vmatprep.mubr.f32.mxu1 %v75107_v23  ;;  %v75238_v34 = vsub.f32 %v25412_v20, %v75229_v26  ;;  %v75265_v20 = vmul.f32 %v74537_v51, %v74537_v51 }
 0x483   :  { %70589 = vmatprep.subr.bf16.mxu1 %v73833_v10 }
 0x484   :  { %v78176_v60 = vand.u32 4294901760, %v75238_v34 }
 0x486   :  { %v25487_v18 = vsub.f32 %v75238_v34, %v78176_v60 }
 0x487   :  { %66395 = vmatmul.mubr.f32.vlgmr.msra.gmra.mrb[48].mxu0 %v75117_v17 }
 0x488   :  { %70567 = vmatpush3.bf16.msra.mxu0 %v73833_v10  ;;  %66401 = vmatprep.mubr.f32.mxu0 %v78169_v48  ;;  %v25415_v48 = vsel %vm124_vm0, %v24376_v45, 0  ;;  %v75269_v45 = vmul.f32 %v74543_v55, %v74543_v55 }
 0x489   :  { %66437 = vmatmul.mubr.f32.vlgmr.msra.gmra.mrb[48].mxu1 %v75121_v12  ;;  %70569 = vmatprep.subr.bf16.mxu0 %v73869_v43  ;;  %v75240_v23 = vand.u32 4294901760, %v25415_v48  ;;  %v75261_v12 = vsub.f32 %v25923_v63, %v75250_v46 }
 0x48a   :  { %70591 = vmatpush3.bf16.msra.mxu1 %v73833_v10  ;;  %66443 = vmatprep.mubr.f32.mxu1 %v78170_v4  ;;  %v75245_v4 = vsub.f32 %v25920_v16, %v75231_v37  ;;  %78173 = vst [vmem:[#allocation27_spill] sm:$0xff] %v75269_v45 }
 0x48b   :  { %70593 = vmatprep.subr.bf16.mxu1 %v73869_v43 }
 0x48f   :  { %66402 = vmatmul.mubr.f32.vlgmr.msra.gmra.mrb[48].mxu0 %v78171_v59  ;;  %v75257_v59 = vsub.f32 %v25415_v48, %v75240_v23  ;;  %v75277_v48 = vmul.f32 %v74547_v57, %v74547_v57 }
 0x490   :  { %70571 = vmatpush3.bf16.msra.mxu0 %v73869_v43  ;;  %66408 = vmatprep.mubr.f32.mxu0 %v75093_v1 }
 0x491   :  { %66444 = vmatmul.mubr.f32.vlgmr.msra.gmra.mrb[48].mxu1 %v78172_v13  ;;  %70573 = vmatprep.subr.bf16.mxu0 %v73833_v10  ;;  %v75273_v13 = vmul.f32 %v74539_v53, %v74539_v53 }
 0x492   :  { %70595 = vmatpush3.bf16.msra.mxu1 %v73869_v43  ;;  %66450 = vmatprep.mubr.f32.mxu1 %v75095_v9 }
 0x493   :  { %70597 = vmatprep.subr.bf16.mxu1 %v73833_v10 }
 0x496   :  { %v65997_v16 = vpop.f32.mrb[38].mxu0 }
 0x497   :  { %v75279_v17 = vmul.f32 %v65997_v16, %v65997_v16  ;;  %v75282_v63 = vmul.f32 %v65997_v16, %v74537_v51  ;;  %v19843_v54 = vpop.f32.mrb[39].mxu0  ;;  %66409 = vmatmul.mubr.f32.vlgmr.msra.gmra.mrb[48].mxu0 %v75103_v61  ;;  %v78179_v51 = vand.u32 4294901760, %v75245_v4 }
 0x498   :  { %v66039_v58 = vpop.f32.mrb[38].mxu1  ;;  %v75289_v49 = vmul.f32 %v19843_v54, %v19843_v54  ;;  %v75292_v50 = vmul.f32 %v19843_v54, %v74539_v53  ;;  %70575 = vmatpush3.bf16.msra.mxu0 %v73833_v10  ;;  %66415 = vmatprep.mubr.f32.mxu0 %v75093_v1 }
 0x499   :  { %78174 = vst [vmem:[#allocation28_spill] sm:$0xff] %v75279_v17  ;;  %78175 = vst [vmem:[#allocation29_spill] sm:$0xff] %v75282_v63  ;;  %v25995_v16 = vsub.f32 %v75245_v4, %v78179_v51  ;;  %v75301_v63 = vadd.f32 %v75279_v17, %v75265_v20  ;;  %v75303_v60 = vmul.f32 %v66039_v58, %v66039_v58  ;;  %v20345_v62 = vpop.f32.mrb[39].mxu1  ;;  %66451 = vmatmul.mubr.f32.vlgmr.msra.gmra.mrb[48].mxu1 %v75111_v44 }
 0x49a   :  { %78177 = vst [vmem:[#allocation30_spill] sm:$0xff] %v75289_v49  ;;  %78178 = vst [vmem:[#allocation31_spill] sm:$0xff] %v75292_v50  ;;  %v75306_v56 = vmul.f32 %v66039_v58, %v74543_v55  ;;  %70601 = vmatprep.subr.bf16.mxu0 %v73833_v10  ;;  %v75313_v1 = vadd.f32 %v75289_v49, %v75273_v13  ;;  %v75315_v54 = vmul.f32 %v20345_v62, %v20345_v62 }
 0x49b   :  { %78180 = vst [vmem:[#allocation32_spill] sm:$0xff] %v75301_v63  ;;  %78181 = vst [vmem:[#allocation33_spill] sm:$0xff] %v75303_v60  ;;  %v75318_v51 = vmul.f32 %v20345_v62, %v74547_v57  ;;  %70599 = vmatpush3.bf16.msra.mxu1 %v73833_v10  ;;  %66457 = vmatprep.mubr.f32.mxu1 %v75095_v9  ;;  %v75324_v55 = vadd.f32 %v75303_v60, %v75269_v45  ;;  %v78187_v58 = vand.u32 4294901760, %v75257_v59 }
 0x49c   :  { %78182 = vst [vmem:[#allocation34_spill] sm:$0xff] %v75306_v56  ;;  %78183 = vst [vmem:[#allocation35_spill] sm:$0xff] %v75313_v1  ;;  %70625 = vmatprep.subr.bf16.mxu1 %v73833_v10  ;;  %v75332_v56 = vadd.f32 %v75315_v54, %v75277_v48  ;;  %v25488_v57 = vand.u32 4294901760, %v25487_v18  ;;  %v78189_v62 = vand.u32 4294901760, %v75261_v12  ;;  %v25996_v9 = vand.u32 4294901760, %v25995_v16 }
 0x49d   :  { %78184 = vst [vmem:[#allocation36_spill] sm:$0xff] %v75315_v54  ;;  %78185 = vst [vmem:[#allocation37_spill] sm:$0xff] %v75318_v51  ;;  %v25497_v53 = vsub.f32 %v75257_v59, %v78187_v58  ;;  %v78190_v16 = vand.u32 4294901760, %v75238_v34 }
 0x49e   :  { %78186 = vst [vmem:[#allocation38_spill] sm:$0xff] %v75324_v55  ;;  %78188 = vst [vmem:[#allocation39_spill] sm:$0xff] %v75332_v56  ;;  %v26005_v51 = vsub.f32 %v75261_v12, %v78189_v62  ;;  %v73545_v62 = vld [vmem:[#allocation2 + $0x58] sm:$0xff] }
 0x49f   :  { %66416 = vmatmul.mubr.f32.vlgmr.msra.gmra.mrb[48].mxu0 %v75103_v61  ;;  %v25498_v50 = vand.u32 4294901760, %v25497_v53  ;;  %v73542_v61 = vld [vmem:[#allocation2 + $0x40] sm:$0xff] }
 0x4a0   :  { %70603 = vmatpush3.bf16.msra.mxu0 %v73833_v10  ;;  %66464 = vmatprep.mubr.f32.mxu0 %v25488_v57  ;;  %v26006_v55 = vand.u32 4294901760, %v26005_v51  ;;  %v73544_v51 = vld [vmem:[#allocation2 + $0x48] sm:$0xff]  ;;  %v78191_v57 = vand.u32 4294901760, %v75245_v4 }
 0x4a1   :  { %66458 = vmatmul.mubr.f32.vlgmr.msra.gmra.mrb[48].mxu1 %v75111_v44  ;;  %70605 = vmatprep.subr.bf16.mxu0 %v73851_v35  ;;  %v24379_v44 = vmul.f32 %v73542_v61, %v73542_v61 }
 0x4a2   :  { %70627 = vmatpush3.bf16.msra.mxu1 %v73833_v10  ;;  %66506 = vmatprep.mubr.f32.mxu1 %v25996_v9  ;;  %v24382_v9 = vmul.f32 %v73545_v62, %v73545_v62  ;;  %v75405_v62 = vmul.f32 %v74607_v31, %v74607_v31 }
 0x4a3   :  { %66465 = vmatmul.mubr.f32.vlgmr.msra.gmra.mrb[50].mxu0 %v25498_v50  ;;  %70629 = vmatprep.subr.bf16.mxu1 %v73851_v35  ;;  %v73543_v50 = vld [vmem:[#allocation2 + $0x50] sm:$0xff]  ;;  %v26428_v53 = vsel %vm124_vm0, %v24379_v44, 0 }
 0x4a4   :  { %70607 = vmatpush3.bf16.msra.mxu0 %v73851_v35  ;;  %66471 = vmatprep.mubr.f32.mxu0 %v75229_v26  ;;  %v24381_v18 = vmul.f32 %v73543_v50, %v73543_v50  ;;  %v26939_v50 = vsel %vm124_vm0, %v24382_v9, 0  ;;  %v75409_v9 = vmul.f32 %v74613_v36, %v74613_v36 }
 0x4a5   :  { %66507 = vmatmul.mubr.f32.vlgmr.msra.gmra.mrb[50].mxu1 %v26006_v55  ;;  %70609 = vmatprep.subr.bf16.mxu0 %v73854_v39  ;;  %v24380_v55 = vmul.f32 %v73544_v51, %v73544_v51 }
 0x4a6   :  { %70631 = vmatpush3.bf16.msra.mxu1 %v73851_v35  ;;  %66513 = vmatprep.mubr.f32.mxu1 %v75231_v37  ;;  %v26936_v58 = vsel %vm124_vm0, %v24381_v18, 0  ;;  %78194 = vst [vmem:[#allocation40_spill] sm:$0xff] %v75409_v9 }
 0x4a7   :  { %70633 = vmatprep.subr.bf16.mxu1 %v73854_v39  ;;  %v75371_v61 = vand.u32 4294901760, %v26936_v58  ;;  %v26431_v44 = vsel %vm124_vm0, %v24380_v55, 0  ;;  %v75390_v55 = vand.u32 4294901760, %v26939_v50 }
 0x4a9   :  { %v75385_v51 = vsub.f32 %v26936_v58, %v75371_v61 }
 0x4ab   :  { %66472 = vmatmul.mubr.f32.vlgmr.msra.gmra.mrb[50].mxu0 %v75240_v23 }
 0x4ac   :  { %70611 = vmatpush3.bf16.msra.mxu0 %v73854_v39  ;;  %66478 = vmatprep.mubr.f32.mxu0 %v75238_v34  ;;  %v75369_v34 = vand.u32 4294901760, %v26428_v53 }
 0x4ad   :  { %66514 = vmatmul.mubr.f32.vlgmr.msra.gmra.mrb[50].mxu1 %v75250_v46  ;;  %70613 = vmatprep.subr.bf16.mxu0 %v73833_v10 }
 0x4ae   :  { %70635 = vmatpush3.bf16.msra.mxu1 %v73854_v39  ;;  %66520 = vmatprep.mubr.f32.mxu1 %v75245_v4  ;;  %v75378_v18 = vsub.f32 %v26428_v53, %v75369_v34  ;;  %v75380_v4 = vand.u32 4294901760, %v26431_v44 }
 0x4af   :  { %70637 = vmatprep.subr.bf16.mxu1 %v73833_v10 }
 0x4b0   :  { %v75397_v53 = vsub.f32 %v26431_v44, %v75380_v4  ;;  %v75417_v44 = vmul.f32 %v74617_v42, %v74617_v42  ;;  %v78198_v56 = vand.u32 4294901760, %v75378_v18 }
 0x4b2   :  { %v26503_v1 = vsub.f32 %v75378_v18, %v78198_v56 }
 0x4b3   :  { %66479 = vmatmul.mubr.f32.vlgmr.msra.gmra.mrb[50].mxu0 %v75257_v59 }
 0x4b4   :  { %70615 = vmatpush3.bf16.msra.mxu0 %v73833_v10  ;;  %66485 = vmatprep.mubr.f32.mxu0 %v78190_v16  ;;  %v78192_v16 = vand.u32 4294901760, %v75257_v59 }
 0x4b5   :  { %66521 = vmatmul.mubr.f32.vlgmr.msra.gmra.mrb[50].mxu1 %v75261_v12  ;;  %70617 = vmatprep.subr.bf16.mxu0 %v73869_v43 }
 0x4b6   :  { %70639 = vmatpush3.bf16.msra.mxu1 %v73833_v10  ;;  %66527 = vmatprep.mubr.f32.mxu1 %v78191_v57  ;;  %v78193_v57 = vand.u32 4294901760, %v75261_v12  ;;  %v75401_v12 = vsub.f32 %v26939_v50, %v75390_v55 }
 0x4b7   :  { %70641 = vmatprep.subr.bf16.mxu1 %v73869_v43 }
 0x4bb   :  { %66486 = vmatmul.mubr.f32.vlgmr.msra.gmra.mrb[50].mxu0 %v78192_v16  ;;  %v75413_v16 = vmul.f32 %v74609_v33, %v74609_v33 }
 0x4bc   :  { %70619 = vmatpush3.bf16.msra.mxu0 %v73869_v43  ;;  %66492 = vmatprep.mubr.f32.mxu0 %v75229_v26 }
 0x4bd   :  { %66528 = vmatmul.mubr.f32.vlgmr.msra.gmra.mrb[50].mxu1 %v78193_v57  ;;  %70621 = vmatprep.subr.bf16.mxu0 %v73833_v10  ;;  %78195 = vst [vmem:[#allocation41_spill] sm:$0xff] %v75413_v16 }
 0x4be   :  { %70643 = vmatpush3.bf16.msra.mxu1 %v73869_v43  ;;  %66534 = vmatprep.mubr.f32.mxu1 %v75231_v37 }
 0x4bf   :  { %70645 = vmatprep.subr.bf16.mxu1 %v73833_v10 }
 0x4c2   :  { %v66081_v57 = vpop.f32.mrb[40].mxu0 }
 0x4c3   :  { %v75419_v58 = vmul.f32 %v66081_v57, %v66081_v57  ;;  %v75422_v50 = vmul.f32 %v66081_v57, %v74607_v31  ;;  %v20847_v59 = vpop.f32.mrb[41].mxu0  ;;  %66493 = vmatmul.mubr.f32.vlgmr.msra.gmra.mrb[50].mxu0 %v75240_v23  ;;  %v78201_v31 = vand.u32 4294901760, %v75385_v51 }
 0x4c4   :  { %v66123_v54 = vpop.f32.mrb[40].mxu1  ;;  %v75429_v60 = vmul.f32 %v20847_v59, %v20847_v59  ;;  %v75432_v49 = vmul.f32 %v20847_v59, %v74609_v33  ;;  %70623 = vmatpush3.bf16.msra.mxu0 %v73833_v10  ;;  %66499 = vmatprep.mubr.f32.mxu0 %v75229_v26 }
 0x4c5   :  { %78196 = vst [vmem:[#allocation42_spill] sm:$0xff] %v75419_v58  ;;  %78197 = vst [vmem:[#allocation43_spill] sm:$0xff] %v75422_v50  ;;  %v27011_v57 = vsub.f32 %v75385_v51, %v78201_v31  ;;  %v75441_v50 = vadd.f32 %v75419_v58, %v75405_v62  ;;  %v75443_v56 = vmul.f32 %v66123_v54, %v66123_v54  ;;  %v21349_v17 = vpop.f32.mrb[41].mxu1  ;;  %66535 = vmatmul.mubr.f32.vlgmr.msra.gmra.mrb[50].mxu1 %v75250_v46 }
 0x4c6   :  { %78199 = vst [vmem:[#allocation44_spill] sm:$0xff] %v75429_v60  ;;  %78200 = vst [vmem:[#allocation45_spill] sm:$0xff] %v75432_v49  ;;  %v75446_v63 = vmul.f32 %v66123_v54, %v74613_v36  ;;  %70649 = vmatprep.subr.bf16.mxu0 %v73833_v10  ;;  %v75453_v26 = vadd.f32 %v75429_v60, %v75413_v16  ;;  %v75455_v59 = vmul.f32 %v21349_v17, %v21349_v17 }
 0x4c7   :  { %78202 = vst [vmem:[#allocation46_spill] sm:$0xff] %v75441_v50  ;;  %78203 = vst [vmem:[#allocation47_spill] sm:$0xff] %v75443_v56  ;;  %v75458_v31 = vmul.f32 %v21349_v17, %v74617_v42  ;;  %70647 = vmatpush3.bf16.msra.mxu1 %v73833_v10  ;;  %66541 = vmatprep.mubr.f32.mxu1 %v75231_v37  ;;  %v75464_v36 = vadd.f32 %v75443_v56, %v75409_v9  ;;  %v78209_v54 = vand.u32 4294901760, %v75397_v53 }
 0x4c8   :  { %78204 = vst [vmem:[#allocation48_spill] sm:$0xff] %v75446_v63  ;;  %78205 = vst [vmem:[#allocation49_spill] sm:$0xff] %v75453_v26  ;;  %70673 = vmatprep.subr.bf16.mxu1 %v73833_v10  ;;  %v75472_v63 = vadd.f32 %v75455_v59, %v75417_v44  ;;  %v26504_v42 = vand.u32 4294901760, %v26503_v1  ;;  %v78211_v17 = vand.u32 4294901760, %v75401_v12  ;;  %v27012_v37 = vand.u32 4294901760, %v27011_v57 }
 0x4c9   :  { %78206 = vst [vmem:[#allocation50_spill] sm:$0xff] %v75455_v59  ;;  %78207 = vst [vmem:[#allocation51_spill] sm:$0xff] %v75458_v31  ;;  %v26513_v33 = vsub.f32 %v75397_v53, %v78209_v54  ;;  %v78212_v57 = vand.u32 4294901760, %v75378_v18 }
 0x4ca   :  { %78208 = vst [vmem:[#allocation52_spill] sm:$0xff] %v75464_v36  ;;  %78210 = vst [vmem:[#allocation53_spill] sm:$0xff] %v75472_v63  ;;  %v27021_v31 = vsub.f32 %v75401_v12, %v78211_v17  ;;  %v73549_v17 = vld [vmem:[#allocation2 + $0x78] sm:$0xff] }
 0x4cb   :  { %66500 = vmatmul.mubr.f32.vlgmr.msra.gmra.mrb[50].mxu0 %v75240_v23  ;;  %v26514_v49 = vand.u32 4294901760, %v26513_v33 }
 0x4cc   :  { %70651 = vmatpush3.bf16.msra.mxu0 %v73833_v10  ;;  %66548 = vmatprep.mubr.f32.mxu0 %v26504_v42  ;;  %v27022_v36 = vand.u32 4294901760, %v27021_v31  ;;  %v73548_v31 = vld [vmem:[#allocation2 + $0x68] sm:$0xff]  ;;  %v78213_v42 = vand.u32 4294901760, %v75385_v51 }
 0x4cd   :  { %66542 = vmatmul.mubr.f32.vlgmr.msra.gmra.mrb[50].mxu1 %v75250_v46  ;;  %70653 = vmatprep.subr.bf16.mxu0 %v73851_v35  ;;  %v73547_v46 = vld [vmem:[#allocation2 + $0x70] sm:$0xff] }
 0x4ce   :  { %70675 = vmatpush3.bf16.msra.mxu1 %v73833_v10  ;;  %66590 = vmatprep.mubr.f32.mxu1 %v27012_v37  ;;  %v24385_v1 = vmul.f32 %v73547_v46, %v73547_v46  ;;  %v24386_v37 = vmul.f32 %v73549_v17, %v73549_v17  ;;  %v75545_v17 = vmul.f32 %v74677_v15, %v74677_v15 }
 0x4cf   :  { %66549 = vmatmul.mubr.f32.vlgmr.msra.gmra.mrb[52].mxu0 %v26514_v49  ;;  %70677 = vmatprep.subr.bf16.mxu1 %v73851_v35  ;;  %v73546_v49 = vld [vmem:[#allocation2 + $0x60] sm:$0xff] }
 0x4d0   :  { %70655 = vmatpush3.bf16.msra.mxu0 %v73851_v35  ;;  %66555 = vmatprep.mubr.f32.mxu0 %v75369_v34  ;;  %v24383_v23 = vmul.f32 %v73546_v49, %v73546_v49  ;;  %v27952_v54 = vsel %vm124_vm0, %v24385_v1, 0  ;;  %v27955_v46 = vsel %vm124_vm0, %v24386_v37, 0  ;;  %v75549_v37 = vmul.f32 %v74683_v27, %v74683_v27 }
 0x4d1   :  { %66591 = vmatmul.mubr.f32.vlgmr.msra.gmra.mrb[52].mxu1 %v27022_v36  ;;  %70657 = vmatprep.subr.bf16.mxu0 %v73854_v39  ;;  %v24384_v36 = vmul.f32 %v73548_v31, %v73548_v31  ;;  %v75511_v49 = vand.u32 4294901760, %v27952_v54 }
 0x4d2   :  { %70679 = vmatpush3.bf16.msra.mxu1 %v73851_v35  ;;  %66597 = vmatprep.mubr.f32.mxu1 %v75371_v61  ;;  %v27444_v33 = vsel %vm124_vm0, %v24383_v23, 0  ;;  %78216 = vst [vmem:[#allocation54_spill] sm:$0xff] %v75549_v37 }
 0x4d3   :  { %70681 = vmatprep.subr.bf16.mxu1 %v73854_v39  ;;  %v27447_v23 = vsel %vm124_vm0, %v24384_v36, 0  ;;  %v75525_v31 = vsub.f32 %v27952_v54, %v75511_v49  ;;  %v75530_v36 = vand.u32 4294901760, %v27955_v46 }
 0x4d7   :  { %66556 = vmatmul.mubr.f32.vlgmr.msra.gmra.mrb[52].mxu0 %v75380_v4 }
 0x4d8   :  { %70659 = vmatpush3.bf16.msra.mxu0 %v73854_v39  ;;  %66562 = vmatprep.mubr.f32.mxu0 %v75378_v18  ;;  %v75509_v18 = vand.u32 4294901760, %v27444_v33 }
 0x4d9   :  { %66598 = vmatmul.mubr.f32.vlgmr.msra.gmra.mrb[52].mxu1 %v75390_v55  ;;  %70661 = vmatprep.subr.bf16.mxu0 %v73833_v10 }
 0x4da   :  { %70683 = vmatpush3.bf16.msra.mxu1 %v73854_v39  ;;  %66604 = vmatprep.mubr.f32.mxu1 %v75385_v51  ;;  %v75518_v1 = vsub.f32 %v27444_v33, %v75509_v18  ;;  %v75520_v51 = vand.u32 4294901760, %v27447_v23 }
 0x4db   :  { %70685 = vmatprep.subr.bf16.mxu1 %v73833_v10 }
 0x4dc   :  { %v75537_v33 = vsub.f32 %v27447_v23, %v75520_v51  ;;  %v75557_v23 = vmul.f32 %v74687_v29, %v74687_v29  ;;  %v78220_v63 = vand.u32 4294901760, %v75518_v1 }
 0x4de   :  { %v27519_v26 = vsub.f32 %v75518_v1, %v78220_v63 }
 0x4df   :  { %66563 = vmatmul.mubr.f32.vlgmr.msra.gmra.mrb[52].mxu0 %v75397_v53 }
 0x4e0   :  { %70663 = vmatpush3.bf16.msra.mxu0 %v73833_v10  ;;  %66569 = vmatprep.mubr.f32.mxu0 %v78212_v57  ;;  %v78214_v57 = vand.u32 4294901760, %v75397_v53 }
 0x4e1   :  { %66605 = vmatmul.mubr.f32.vlgmr.msra.gmra.mrb[52].mxu1 %v75401_v12  ;;  %70665 = vmatprep.subr.bf16.mxu0 %v73869_v43 }
 0x4e2   :  { %70687 = vmatpush3.bf16.msra.mxu1 %v73833_v10  ;;  %66611 = vmatprep.mubr.f32.mxu1 %v78213_v42  ;;  %v78215_v42 = vand.u32 4294901760, %v75401_v12  ;;  %v75541_v12 = vsub.f32 %v27955_v46, %v75530_v36 }
 0x4e3   :  { %70689 = vmatprep.subr.bf16.mxu1 %v73869_v43 }
 0x4e7   :  { %66570 = vmatmul.mubr.f32.vlgmr.msra.gmra.mrb[52].mxu0 %v78214_v57  ;;  %v75553_v57 = vmul.f32 %v74679_v22, %v74679_v22 }
 0x4e8   :  { %70667 = vmatpush3.bf16.msra.mxu0 %v73869_v43  ;;  %66576 = vmatprep.mubr.f32.mxu0 %v75369_v34 }
 0x4e9   :  { %66612 = vmatmul.mubr.f32.vlgmr.msra.gmra.mrb[52].mxu1 %v78215_v42  ;;  %70669 = vmatprep.subr.bf16.mxu0 %v73833_v10  ;;  %78217 = vst [vmem:[#allocation55_spill] sm:$0xff] %v75553_v57 }
 0x4ea   :  { %70691 = vmatpush3.bf16.msra.mxu1 %v73869_v43  ;;  %66618 = vmatprep.mubr.f32.mxu1 %v75371_v61 }
 0x4eb   :  { %70693 = vmatprep.subr.bf16.mxu1 %v73833_v10 }
 0x4ee   :  { %v66165_v42 = vpop.f32.mrb[42].mxu0 }
 0x4ef   :  { %v75559_v54 = vmul.f32 %v66165_v42, %v66165_v42  ;;  %v75562_v46 = vmul.f32 %v66165_v42, %v74677_v15  ;;  %v21851_v53 = vpop.f32.mrb[43].mxu0  ;;  %66577 = vmatmul.mubr.f32.vlgmr.msra.gmra.mrb[52].mxu0 %v75380_v4  ;;  %v78223_v15 = vand.u32 4294901760, %v75525_v31 }
 0x4f0   :  { %v66207_v59 = vpop.f32.mrb[42].mxu1  ;;  %v75569_v56 = vmul.f32 %v21851_v53, %v21851_v53  ;;  %v75572_v60 = vmul.f32 %v21851_v53, %v74679_v22  ;;  %70671 = vmatpush3.bf16.msra.mxu0 %v73833_v10  ;;  %66583 = vmatprep.mubr.f32.mxu0 %v75369_v34 }
 0x4f1   :  { %78218 = vst [vmem:[#allocation56_spill] sm:$0xff] %v75559_v54  ;;  %78219 = vst [vmem:[#allocation57_spill] sm:$0xff] %v75562_v46  ;;  %v28027_v42 = vsub.f32 %v75525_v31, %v78223_v15  ;;  %v75581_v46 = vadd.f32 %v75559_v54, %v75545_v17  ;;  %v75583_v63 = vmul.f32 %v66207_v59, %v66207_v59  ;;  %v22353_v58 = vpop.f32.mrb[43].mxu1  ;;  %66619 = vmatmul.mubr.f32.vlgmr.msra.gmra.mrb[52].mxu1 %v75390_v55 }
 0x4f2   :  { %78221 = vst [vmem:[#allocation58_spill] sm:$0xff] %v75569_v56  ;;  %78222 = vst [vmem:[#allocation59_spill] sm:$0xff] %v75572_v60  ;;  %v75586_v50 = vmul.f32 %v66207_v59, %v74683_v27  ;;  %70697 = vmatprep.subr.bf16.mxu0 %v73833_v10  ;;  %v75593_v34 = vadd.f32 %v75569_v56, %v75553_v57  ;;  %v75595_v53 = vmul.f32 %v22353_v58, %v22353_v58 }
 0x4f3   :  { %78224 = vst [vmem:[#allocation60_spill] sm:$0xff] %v75581_v46  ;;  %78225 = vst [vmem:[#allocation61_spill] sm:$0xff] %v75583_v63  ;;  %v75598_v15 = vmul.f32 %v22353_v58, %v74687_v29  ;;  %70695 = vmatpush3.bf16.msra.mxu1 %v73833_v10  ;;  %66625 = vmatprep.mubr.f32.mxu1 %v75371_v61  ;;  %v75604_v27 = vadd.f32 %v75583_v63, %v75549_v37  ;;  %v78231_v59 = vand.u32 4294901760, %v75537_v33 }
 0x4f4   :  { %78226 = vst [vmem:[#allocation62_spill] sm:$0xff] %v75586_v50  ;;  %78227 = vst [vmem:[#allocation63_spill] sm:$0xff] %v75593_v34  ;;  %70721 = vmatprep.subr.bf16.mxu1 %v73833_v10  ;;  %v75612_v50 = vadd.f32 %v75595_v53, %v75557_v23  ;;  %v27520_v29 = vand.u32 4294901760, %v27519_v26  ;;  %v78233_v58 = vand.u32 4294901760, %v75541_v12  ;;  %v28028_v61 = vand.u32 4294901760, %v28027_v42 }
 0x4f5   :  { %78228 = vst [vmem:[#allocation64_spill] sm:$0xff] %v75595_v53  ;;  %78229 = vst [vmem:[#allocation65_spill] sm:$0xff] %v75598_v15  ;;  %v27529_v22 = vsub.f32 %v75537_v33, %v78231_v59  ;;  %v78234_v42 = vand.u32 4294901760, %v75518_v1 }
 0x4f6   :  { %78230 = vst [vmem:[#allocation66_spill] sm:$0xff] %v75604_v27  ;;  %78232 = vst [vmem:[#allocation67_spill] sm:$0xff] %v75612_v50  ;;  %v28037_v15 = vsub.f32 %v75541_v12, %v78233_v58  ;;  %v73553_v58 = vld [vmem:[#allocation2 + $0x98] sm:$0xff] }
 0x4f7   :  { %66584 = vmatmul.mubr.f32.vlgmr.msra.gmra.mrb[52].mxu0 %v75380_v4  ;;  %v27530_v60 = vand.u32 4294901760, %v27529_v22 }
 0x4f8   :  { %70699 = vmatpush3.bf16.msra.mxu0 %v73833_v10  ;;  %66632 = vmatprep.mubr.f32.mxu0 %v27520_v29  ;;  %v28038_v27 = vand.u32 4294901760, %v28037_v15  ;;  %v73552_v15 = vld [vmem:[#allocation2 + $0x88] sm:$0xff]  ;;  %v78235_v29 = vand.u32 4294901760, %v75525_v31 }
 0x4f9   :  { %66626 = vmatmul.mubr.f32.vlgmr.msra.gmra.mrb[52].mxu1 %v75390_v55  ;;  %70701 = vmatprep.subr.bf16.mxu0 %v73851_v35  ;;  %v73551_v55 = vld [vmem:[#allocation2 + $0x90] sm:$0xff] }
 0x4fa   :  { %70723 = vmatpush3.bf16.msra.mxu1 %v73833_v10  ;;  %66674 = vmatprep.mubr.f32.mxu1 %v28028_v61  ;;  %v24389_v26 = vmul.f32 %v73551_v55, %v73551_v55  ;;  %v24390_v61 = vmul.f32 %v73553_v58, %v73553_v58  ;;  %v75685_v58 = vmul.f32 %v74747_v0, %v74747_v0 }
 0x4fb   :  { %66633 = vmatmul.mubr.f32.vlgmr.msra.gmra.mrb[54].mxu0 %v27530_v60  ;;  %70725 = vmatprep.subr.bf16.mxu1 %v73851_v35  ;;  %v73550_v60 = vld [vmem:[#allocation2 + $0x80] sm:$0xff] }
 0x4fc   :  { %70703 = vmatpush3.bf16.msra.mxu0 %v73851_v35  ;;  %66639 = vmatprep.mubr.f32.mxu0 %v75509_v18  ;;  %v24387_v4 = vmul.f32 %v73550_v60, %v73550_v60  ;;  %v28968_v59 = vsel %vm124_vm0, %v24389_v26, 0  ;;  %v28971_v55 = vsel %vm124_vm0, %v24390_v61, 0  ;;  %v75689_v61 = vmul.f32 %v74753_v19, %v74753_v19 }
 0x4fd   :  { %66675 = vmatmul.mubr.f32.vlgmr.msra.gmra.mrb[54].mxu1 %v28038_v27  ;;  %70705 = vmatprep.subr.bf16.mxu0 %v73854_v39  ;;  %v24388_v27 = vmul.f32 %v73552_v15, %v73552_v15  ;;  %v75651_v60 = vand.u32 4294901760, %v28968_v59 }
 0x4fe   :  { %70727 = vmatpush3.bf16.msra.mxu1 %v73851_v35  ;;  %66681 = vmatprep.mubr.f32.mxu1 %v75511_v49  ;;  %v28460_v22 = vsel %vm124_vm0, %v24387_v4, 0  ;;  %78238 = vst [vmem:[#allocation68_spill] sm:$0xff] %v75689_v61 }
 0x4ff   :  { %70729 = vmatprep.subr.bf16.mxu1 %v73854_v39  ;;  %v28463_v4 = vsel %vm124_vm0, %v24388_v27, 0  ;;  %v75665_v15 = vsub.f32 %v28968_v59, %v75651_v60  ;;  %v75670_v27 = vand.u32 4294901760, %v28971_v55 }
 0x503   :  { %66640 = vmatmul.mubr.f32.vlgmr.msra.gmra.mrb[54].mxu0 %v75520_v51 }
 0x504   :  { %70707 = vmatpush3.bf16.msra.mxu0 %v73854_v39  ;;  %66646 = vmatprep.mubr.f32.mxu0 %v75518_v1  ;;  %v75649_v1 = vand.u32 4294901760, %v28460_v22 }
 0x505   :  { %66682 = vmatmul.mubr.f32.vlgmr.msra.gmra.mrb[54].mxu1 %v75530_v36  ;;  %70709 = vmatprep.subr.bf16.mxu0 %v73833_v10 }
 0x506   :  { %70731 = vmatpush3.bf16.msra.mxu1 %v73854_v39  ;;  %66688 = vmatprep.mubr.f32.mxu1 %v75525_v31  ;;  %v75658_v26 = vsub.f32 %v28460_v22, %v75649_v1  ;;  %v75660_v31 = vand.u32 4294901760, %v28463_v4 }
 0x507   :  { %70733 = vmatprep.subr.bf16.mxu1 %v73833_v10 }
 0x508   :  { %v75677_v22 = vsub.f32 %v28463_v4, %v75660_v31  ;;  %v75697_v4 = vmul.f32 %v74757_v28, %v74757_v28  ;;  %v78242_v50 = vand.u32 4294901760, %v75658_v26 }
 0x50a   :  { %v28535_v34 = vsub.f32 %v75658_v26, %v78242_v50 }
 0x50b   :  { %66647 = vmatmul.mubr.f32.vlgmr.msra.gmra.mrb[54].mxu0 %v75537_v33 }
 0x50c   :  { %70711 = vmatpush3.bf16.msra.mxu0 %v73833_v10  ;;  %66653 = vmatprep.mubr.f32.mxu0 %v78234_v42  ;;  %v78236_v42 = vand.u32 4294901760, %v75537_v33 }
 0x50d   :  { %66689 = vmatmul.mubr.f32.vlgmr.msra.gmra.mrb[54].mxu1 %v75541_v12  ;;  %70713 = vmatprep.subr.bf16.mxu0 %v73869_v43 }
 0x50e   :  { %70735 = vmatpush3.bf16.msra.mxu1 %v73833_v10  ;;  %66695 = vmatprep.mubr.f32.mxu1 %v78235_v29  ;;  %v78237_v29 = vand.u32 4294901760, %v75541_v12  ;;  %v75681_v12 = vsub.f32 %v28971_v55, %v75670_v27 }
 0x50f   :  { %70737 = vmatprep.subr.bf16.mxu1 %v73869_v43 }
 0x513   :  { %66654 = vmatmul.mubr.f32.vlgmr.msra.gmra.mrb[54].mxu0 %v78236_v42  ;;  %v75693_v42 = vmul.f32 %v74749_v11, %v74749_v11 }
 0x514   :  { %70715 = vmatpush3.bf16.msra.mxu0 %v73869_v43  ;;  %66660 = vmatprep.mubr.f32.mxu0 %v75509_v18 }
 0x515   :  { %66696 = vmatmul.mubr.f32.vlgmr.msra.gmra.mrb[54].mxu1 %v78237_v29  ;;  %70717 = vmatprep.subr.bf16.mxu0 %v73833_v10  ;;  %78239 = vst [vmem:[#allocation69_spill] sm:$0xff] %v75693_v42 }
 0x516   :  { %70739 = vmatpush3.bf16.msra.mxu1 %v73869_v43  ;;  %66702 = vmatprep.mubr.f32.mxu1 %v75511_v49 }
 0x517   :  { %70741 = vmatprep.subr.bf16.mxu1 %v73833_v10 }
 0x51a   :  { %v66249_v29 = vpop.f32.mrb[44].mxu0 }
 0x51b   :  { %v75699_v59 = vmul.f32 %v66249_v29, %v66249_v29  ;;  %v75702_v55 = vmul.f32 %v66249_v29, %v74747_v0  ;;  %v22855_v33 = vpop.f32.mrb[45].mxu0  ;;  %66661 = vmatmul.mubr.f32.vlgmr.msra.gmra.mrb[54].mxu0 %v75520_v51  ;;  %v78245_v0 = vand.u32 4294901760, %v75665_v15 }
 0x51c   :  { %v66291_v53 = vpop.f32.mrb[44].mxu1  ;;  %v75709_v63 = vmul.f32 %v22855_v33, %v22855_v33  ;;  %v75712_v56 = vmul.f32 %v22855_v33, %v74749_v11  ;;  %70719 = vmatpush3.bf16.msra.mxu0 %v73833_v10  ;;  %66667 = vmatprep.mubr.f32.mxu0 %v75509_v18 }
 0x51d   :  { %78240 = vst [vmem:[#allocation70_spill] sm:$0xff] %v75699_v59  ;;  %78241 = vst [vmem:[#allocation71_spill] sm:$0xff] %v75702_v55  ;;  %v29043_v29 = vsub.f32 %v75665_v15, %v78245_v0  ;;  %v75721_v55 = vadd.f32 %v75699_v59, %v75685_v58  ;;  %v75723_v50 = vmul.f32 %v66291_v53, %v66291_v53  ;;  %v23357_v54 = vpop.f32.mrb[45].mxu1  ;;  %66703 = vmatmul.mubr.f32.vlgmr.msra.gmra.mrb[54].mxu1 %v75530_v36 }
 0x51e   :  { %78243 = vst [vmem:[#allocation72_spill] sm:$0xff] %v75709_v63  ;;  %78244 = vst [vmem:[#allocation73_spill] sm:$0xff] %v75712_v56  ;;  %v75726_v46 = vmul.f32 %v66291_v53, %v74753_v19  ;;  %70745 = vmatprep.subr.bf16.mxu0 %v73833_v10  ;;  %v75733_v18 = vadd.f32 %v75709_v63, %v75693_v42  ;;  %v75735_v33 = vmul.f32 %v23357_v54, %v23357_v54 }
 0x51f   :  { %78246 = vst [vmem:[#allocation74_spill] sm:$0xff] %v75721_v55  ;;  %78247 = vst [vmem:[#allocation75_spill] sm:$0xff] %v75723_v50  ;;  %v75738_v0 = vmul.f32 %v23357_v54, %v74757_v28  ;;  %70743 = vmatpush3.bf16.msra.mxu1 %v73833_v10  ;;  %66709 = vmatprep.mubr.f32.mxu1 %v75511_v49  ;;  %v75744_v19 = vadd.f32 %v75723_v50, %v75689_v61  ;;  %v78253_v53 = vand.u32 4294901760, %v75677_v22 }
 0x520   :  { %78248 = vst [vmem:[#allocation76_spill] sm:$0xff] %v75726_v46  ;;  %78249 = vst [vmem:[#allocation77_spill] sm:$0xff] %v75733_v18  ;;  %70769 = vmatprep.subr.bf16.mxu1 %v73833_v10  ;;  %v75752_v46 = vadd.f32 %v75735_v33, %v75697_v4  ;;  %v28536_v28 = vand.u32 4294901760, %v28535_v34  ;;  %v78255_v54 = vand.u32 4294901760, %v75681_v12  ;;  %v29044_v49 = vand.u32 4294901760, %v29043_v29 }
 0x521   :  { %78250 = vst [vmem:[#allocation78_spill] sm:$0xff] %v75735_v33  ;;  %78251 = vst [vmem:[#allocation79_spill] sm:$0xff] %v75738_v0  ;;  %v28545_v11 = vsub.f32 %v75677_v22, %v78253_v53  ;;  %v78256_v29 = vand.u32 4294901760, %v75658_v26 }
 0x522   :  { %78252 = vst [vmem:[#allocation80_spill] sm:$0xff] %v75744_v19  ;;  %78254 = vst [vmem:[#allocation81_spill] sm:$0xff] %v75752_v46  ;;  %v29053_v0 = vsub.f32 %v75681_v12, %v78255_v54  ;;  %v73557_v54 = vld [vmem:[#allocation2 + $0xb8] sm:$0xff] }
 0x523   :  { %66668 = vmatmul.mubr.f32.vlgmr.msra.gmra.mrb[54].mxu0 %v75520_v51  ;;  %v28546_v56 = vand.u32 4294901760, %v28545_v11 }
 0x524   :  { %70747 = vmatpush3.bf16.msra.mxu0 %v73833_v10  ;;  %66716 = vmatprep.mubr.f32.mxu0 %v28536_v28  ;;  %v29054_v19 = vand.u32 4294901760, %v29053_v0  ;;  %v73556_v0 = vld [vmem:[#allocation2 + $0xa8] sm:$0xff]  ;;  %v78257_v28 = vand.u32 4294901760, %v75665_v15 }
 0x525   :  { %66710 = vmatmul.mubr.f32.vlgmr.msra.gmra.mrb[54].mxu1 %v75530_v36  ;;  %70749 = vmatprep.subr.bf16.mxu0 %v73851_v35  ;;  %v73555_v36 = vld [vmem:[#allocation2 + $0xb0] sm:$0xff] }
 0x526   :  { %70771 = vmatpush3.bf16.msra.mxu1 %v73833_v10  ;;  %66758 = vmatprep.mubr.f32.mxu1 %v29044_v49  ;;  %v24393_v34 = vmul.f32 %v73555_v36, %v73555_v36  ;;  %v24394_v49 = vmul.f32 %v73557_v54, %v73557_v54  ;;  %v75825_v54 = vmul.f32 %v74813_v2, %v74813_v2 }
 0x527   :  { %66717 = vmatmul.mubr.f32.vlgmr.msra.gmra.mrb[56].mxu0 %v28546_v56  ;;  %70773 = vmatprep.subr.bf16.mxu1 %v73851_v35  ;;  %v73554_v56 = vld [vmem:[#allocation2 + $0xa0] sm:$0xff] }
 0x528   :  { %70751 = vmatpush3.bf16.msra.mxu0 %v73851_v35  ;;  %66723 = vmatprep.mubr.f32.mxu0 %v75649_v1  ;;  %v24391_v51 = vmul.f32 %v73554_v56, %v73554_v56  ;;  %v29984_v53 = vsel %vm124_vm0, %v24393_v34, 0  ;;  %v29987_v36 = vsel %vm124_vm0, %v24394_v49, 0  ;;  %78260 = vst [vmem:[#allocation82_spill] sm:$0xff] %v75825_v54  ;;  %v75829_v49 = vmul.f32 %v74818_v32, %v74818_v32 }
 0x529   :  { %66759 = vmatmul.mubr.f32.vlgmr.msra.gmra.mrb[56].mxu1 %v29054_v19  ;;  %70753 = vmatprep.subr.bf16.mxu0 %v73854_v39  ;;  %v24392_v19 = vmul.f32 %v73556_v0, %v73556_v0  ;;  %v75791_v56 = vand.u32 4294901760, %v29984_v53 }
 0x52a   :  { %70775 = vmatpush3.bf16.msra.mxu1 %v73851_v35  ;;  %66765 = vmatprep.mubr.f32.mxu1 %v75651_v60  ;;  %v29476_v11 = vsel %vm124_vm0, %v24391_v51, 0  ;;  %78261 = vst [vmem:[#allocation83_spill] sm:$0xff] %v75829_v49 }
 0x52b   :  { %70777 = vmatprep.subr.bf16.mxu1 %v73854_v39  ;;  %v29479_v51 = vsel %vm124_vm0, %v24392_v19, 0  ;;  %v75805_v0 = vsub.f32 %v29984_v53, %v75791_v56  ;;  %v75810_v19 = vand.u32 4294901760, %v29987_v36 }
 0x52f   :  { %66724 = vmatmul.mubr.f32.vlgmr.msra.gmra.mrb[56].mxu0 %v75660_v31 }
 0x530   :  { %70755 = vmatpush3.bf16.msra.mxu0 %v73854_v39  ;;  %66730 = vmatprep.mubr.f32.mxu0 %v75658_v26  ;;  %v75789_v26 = vand.u32 4294901760, %v29476_v11 }
 0x531   :  { %66766 = vmatmul.mubr.f32.vlgmr.msra.gmra.mrb[56].mxu1 %v75670_v27  ;;  %70757 = vmatprep.subr.bf16.mxu0 %v73833_v10 }
 0x532   :  { %70779 = vmatpush3.bf16.msra.mxu1 %v73854_v39  ;;  %66772 = vmatprep.mubr.f32.mxu1 %v75665_v15  ;;  %v75798_v34 = vsub.f32 %v29476_v11, %v75789_v26  ;;  %v75800_v15 = vand.u32 4294901760, %v29479_v51 }
 0x533   :  { %70781 = vmatprep.subr.bf16.mxu1 %v73833_v10 }
 0x534   :  { %v75817_v11 = vsub.f32 %v29479_v51, %v75800_v15  ;;  %v75837_v51 = vmul.f32 %v74822_v38, %v74822_v38  ;;  %v78265_v46 = vand.u32 4294901760, %v75798_v34 }
 0x536   :  { %v29551_v18 = vsub.f32 %v75798_v34, %v78265_v46  ;;  %v29560_v55 = vand.u32 4294901760, %v75817_v11 }
 0x537   :  { %66731 = vmatmul.mubr.f32.vlgmr.msra.gmra.mrb[56].mxu0 %v75677_v22 }
 0x538   :  { %70759 = vmatpush3.bf16.msra.mxu0 %v73833_v10  ;;  %66737 = vmatprep.mubr.f32.mxu0 %v78256_v29  ;;  %v78258_v29 = vand.u32 4294901760, %v75677_v22 }
 0x539   :  { %66773 = vmatmul.mubr.f32.vlgmr.msra.gmra.mrb[56].mxu1 %v75681_v12  ;;  %70761 = vmatprep.subr.bf16.mxu0 %v73869_v43 }
 0x53a   :  { %70783 = vmatpush3.bf16.msra.mxu1 %v73833_v10  ;;  %66779 = vmatprep.mubr.f32.mxu1 %v78257_v28  ;;  %v78259_v28 = vand.u32 4294901760, %v75681_v12  ;;  %v75821_v12 = vsub.f32 %v29987_v36, %v75810_v19 }
 0x53b   :  { %70785 = vmatprep.subr.bf16.mxu1 %v73869_v43 }
 0x53f   :  { %66738 = vmatmul.mubr.f32.vlgmr.msra.gmra.mrb[56].mxu0 %v78258_v29  ;;  %v75833_v29 = vmul.f32 %v74815_v24, %v74815_v24 }
 0x540   :  { %70763 = vmatpush3.bf16.msra.mxu0 %v73869_v43  ;;  %66744 = vmatprep.mubr.f32.mxu0 %v75649_v1 }
 0x541   :  { %66780 = vmatmul.mubr.f32.vlgmr.msra.gmra.mrb[56].mxu1 %v78259_v28  ;;  %70765 = vmatprep.subr.bf16.mxu0 %v73833_v10  ;;  %78262 = vst [vmem:[#allocation84_spill] sm:$0xff] %v75833_v29 }
 0x542   :  { %70787 = vmatpush3.bf16.msra.mxu1 %v73869_v43  ;;  %66786 = vmatprep.mubr.f32.mxu1 %v75651_v60 }
 0x543   :  { %70789 = vmatprep.subr.bf16.mxu1 %v73833_v10 }
 0x546   :  { %v66333_v28 = vpop.f32.mrb[46].mxu0 }
 0x547   :  { %v75839_v53 = vmul.f32 %v66333_v28, %v66333_v28  ;;  %v75842_v36 = vmul.f32 %v66333_v28, %v74813_v2  ;;  %v23859_v22 = vpop.f32.mrb[47].mxu0  ;;  %66745 = vmatmul.mubr.f32.vlgmr.msra.gmra.mrb[56].mxu0 %v75660_v31  ;;  %v78268_v2 = vand.u32 4294901760, %v75805_v0 }
 0x548   :  { %v66375_v33 = vpop.f32.mrb[46].mxu1  ;;  %v75849_v50 = vmul.f32 %v23859_v22, %v23859_v22  ;;  %v75852_v63 = vmul.f32 %v23859_v22, %v74815_v24  ;;  %70767 = vmatpush3.bf16.msra.mxu0 %v73833_v10  ;;  %66751 = vmatprep.mubr.f32.mxu0 %v75649_v1  ;;  %v30068_v24 = vand.u32 4294901760, %v75821_v12 }
 0x549   :  { %78263 = vst [vmem:[#allocation85_spill] sm:$0xff] %v75839_v53  ;;  %78264 = vst [vmem:[#allocation86_spill] sm:$0xff] %v75842_v36  ;;  %v30059_v28 = vsub.f32 %v75805_v0, %v78268_v2  ;;  %v75861_v36 = vadd.f32 %v75839_v53, %v75825_v54  ;;  %v75863_v46 = vmul.f32 %v66375_v33, %v66375_v33  ;;  %v24361_v21 = vpop.f32.mrb[47].mxu1  ;;  %66787 = vmatmul.mubr.f32.vlgmr.msra.gmra.mrb[56].mxu1 %v75670_v27 }
 0x54a   :  { %78266 = vst [vmem:[#allocation87_spill] sm:$0xff] %v75849_v50  ;;  %78267 = vst [vmem:[#allocation88_spill] sm:$0xff] %v75852_v63  ;;  %v75866_v59 = vmul.f32 %v66375_v33, %v74818_v32  ;;  %70793 = vmatprep.subr.bf16.mxu0 %v73833_v10  ;;  %v75873_v1 = vadd.f32 %v75849_v50, %v75833_v29  ;;  %v75875_v22 = vmul.f32 %v24361_v21, %v24361_v21 }
 0x54b   :  { %78269 = vst [vmem:[#allocation89_spill] sm:$0xff] %v75861_v36  ;;  %78270 = vst [vmem:[#allocation90_spill] sm:$0xff] %v75863_v46  ;;  %v75878_v2 = vmul.f32 %v24361_v21, %v74822_v38  ;;  %70791 = vmatpush3.bf16.msra.mxu1 %v73833_v10  ;;  %66793 = vmatprep.mubr.f32.mxu1 %v75651_v60  ;;  %v75884_v32 = vadd.f32 %v75863_v46, %v75829_v49  ;;  %v29552_v63 = vand.u32 4294901760, %v29551_v18 }
 0x54c   :  { %78271 = vst [vmem:[#allocation91_spill] sm:$0xff] %v75866_v59  ;;  %78272 = vst [vmem:[#allocation92_spill] sm:$0xff] %v75873_v1  ;;  %70817 = vmatprep.subr.bf16.mxu1 %v73833_v10  ;;  %v29561_v33 = vsub.f32 %v75817_v11, %v29560_v55  ;;  %v75890_v59 = vadd.f32 %v75875_v22, %v75837_v51  ;;  %v30069_v38 = vsub.f32 %v75821_v12, %v30068_v24 }
 0x54d   :  { %78273 = vst [vmem:[#allocation93_spill] sm:$0xff] %v75875_v22  ;;  %78274 = vst [vmem:[#allocation94_spill] sm:$0xff] %v75878_v2  ;;  %v30060_v21 = vand.u32 4294901760, %v30059_v28 }
 0x54e   :  { %78275 = vst [vmem:[#allocation95_spill] sm:$0xff] %v75884_v32  ;;  %78276 = vst [vmem:[#allocation96_spill] sm:$0xff] %v75890_v59  ;;  %v29562_v2 = vand.u32 4294901760, %v29561_v33  ;;  %v30070_v60 = vand.u32 4294901760, %v30069_v38 }
 0x54f   :  { %66752 = vmatmul.mubr.f32.vlgmr.msra.gmra.mrb[56].mxu0 %v75660_v31  ;;  %v78278_v31 = vand.u32 4294901760, %v75805_v0 }
 0x550   :  { %70795 = vmatpush3.bf16.msra.mxu0 %v73833_v10  ;;  %66800 = vmatprep.mubr.f32.mxu0 %v29552_v63  ;;  %v78277_v63 = vand.u32 4294901760, %v75798_v34 }
 0x551   :  { %66794 = vmatmul.mubr.f32.vlgmr.msra.gmra.mrb[56].mxu1 %v75670_v27  ;;  %70797 = vmatprep.subr.bf16.mxu0 %v73851_v35 }
 0x552   :  { %70819 = vmatpush3.bf16.msra.mxu1 %v73833_v10  ;;  %66842 = vmatprep.mubr.f32.mxu1 %v30060_v21 }
 0x553   :  { %66801 = vmatmul.mubr.f32.vlgmr.msra.gmra.mrb[58].mxu0 %v29562_v2  ;;  %70821 = vmatprep.subr.bf16.mxu1 %v73851_v35 }
 0x554   :  { %70799 = vmatpush3.bf16.msra.mxu0 %v73851_v35  ;;  %66807 = vmatprep.mubr.f32.mxu0 %v75789_v26 }
 0x555   :  { %66843 = vmatmul.mubr.f32.vlgmr.msra.gmra.mrb[58].mxu1 %v30070_v60  ;;  %70801 = vmatprep.subr.bf16.mxu0 %v73854_v39 }
 0x556   :  { %70823 = vmatpush3.bf16.msra.mxu1 %v73851_v35  ;;  %66849 = vmatprep.mubr.f32.mxu1 %v75791_v56 }
 0x557   :  { %70825 = vmatprep.subr.bf16.mxu1 %v73854_v39 }
 0x55b   :  { %66808 = vmatmul.mubr.f32.vlgmr.msra.gmra.mrb[58].mxu0 %v75800_v15 }
 0x55c   :  { %70803 = vmatpush3.bf16.msra.mxu0 %v73854_v39  ;;  %66814 = vmatprep.mubr.f32.mxu0 %v75798_v34 }
 0x55d   :  { %66850 = vmatmul.mubr.f32.vlgmr.msra.gmra.mrb[58].mxu1 %v75810_v19  ;;  %70805 = vmatprep.subr.bf16.mxu0 %v73833_v10 }
 0x55e   :  { %70827 = vmatpush3.bf16.msra.mxu1 %v73854_v39  ;;  %66856 = vmatprep.mubr.f32.mxu1 %v75805_v0 }
 0x55f   :  { %70829 = vmatprep.subr.bf16.mxu1 %v73833_v10 }
 0x563   :  { %66815 = vmatmul.mubr.f32.vlgmr.msra.gmra.mrb[58].mxu0 %v75817_v11 }
 0x564   :  { %70807 = vmatpush3.bf16.msra.mxu0 %v73833_v10  ;;  %66821 = vmatprep.mubr.f32.mxu0 %v78277_v63 }
 0x565   :  { %66857 = vmatmul.mubr.f32.vlgmr.msra.gmra.mrb[58].mxu1 %v75821_v12  ;;  %70809 = vmatprep.subr.bf16.mxu0 %v73869_v43 }
 0x566   :  { %70831 = vmatpush3.bf16.msra.mxu1 %v73833_v10  ;;  %66863 = vmatprep.mubr.f32.mxu1 %v78278_v31 }
 0x567   :  { %70833 = vmatprep.subr.bf16.mxu1 %v73869_v43 }
 0x56b   :  { %66822 = vmatmul.mubr.f32.vlgmr.msra.gmra.mrb[58].mxu0 %v29560_v55 }
 0x56c   :  { %70811 = vmatpush3.bf16.msra.mxu0 %v73869_v43  ;;  %66828 = vmatprep.mubr.f32.mxu0 %v75789_v26 }
 0x56d   :  { %66864 = vmatmul.mubr.f32.vlgmr.msra.gmra.mrb[58].mxu1 %v30068_v24  ;;  %70813 = vmatprep.subr.bf16.mxu0 %v73833_v10 }
 0x56e   :  { %70835 = vmatpush3.bf16.msra.mxu1 %v73869_v43  ;;  %66870 = vmatprep.mubr.f32.mxu1 %v75791_v56 }
 0x56f   :  { %70837 = vmatprep.subr.bf16.mxu1 %v73833_v10 }
 0x572   :  { %v66417_v27 = vpop.f32.mrb[48].mxu0 }
 0x573   :  { %v30495_v18 = vand.u32 4294901760, %v66417_v27  ;;  %v24893_v34 = vpop.f32.mrb[49].mxu0  ;;  %66829 = vmatmul.mubr.f32.vlgmr.msra.gmra.mrb[58].mxu0 %v75800_v15 }
 0x574   :  { %v66459_v0 = vpop.f32.mrb[48].mxu1  ;;  %v30492_v55 = vand.u32 4294901760, %v24893_v34  ;;  %70815 = vmatpush3.bf16.msra.mxu0 %v73833_v10  ;;  %66835 = vmatprep.mubr.f32.mxu0 %v75789_v26 }
 0x575   :  { %v30587_v11 = vsub.f32 %v66417_v27, %v30495_v18  ;;  %v30997_v12 = vand.u32 4294901760, %v66459_v0  ;;  %v25401_v28 = vpop.f32.mrb[49].mxu1  ;;  %66871 = vmatmul.mubr.f32.vlgmr.msra.gmra.mrb[58].mxu1 %v75810_v19 }
 0x576   :  { %v75933_v24 = vpack.c.bf16 %v30495_v18, %v30492_v55  ;;  %v30580_v2 = vsub.f32 %v24893_v34, %v30492_v55  ;;  %v30994_v33 = vand.u32 4294901760, %v25401_v28  ;;  %70839 = vmatpush3.bf16.msra.mxu1 %v73833_v10  ;;  %66877 = vmatprep.mubr.f32.mxu1 %v75791_v56 }
 0x577   :  { %v30588_v38 = vand.u32 4294901760, %v30587_v11  ;;  %v31089_v21 = vsub.f32 %v66459_v0, %v30997_v12 }
 0x578   :  { %v30581_v60 = vand.u32 4294901760, %v30580_v2  ;;  %v75937_v63 = vpack.c.bf16 %v30997_v12, %v30994_v33  ;;  %v31082_v31 = vsub.f32 %v25401_v28, %v30994_v33  ;;  %70841 = vmatprep.subr.bf16.mxu0 %v75933_v24  ;;  %v70848_v26 = vpack.c.bf16 %v30587_v11, %v30580_v2 }
 0x579   :  { %v30589_v27 = vsub.f32 %v30587_v11, %v30588_v38  ;;  %v31090_v59 = vand.u32 4294901760, %v31089_v21 }
 0x57a   :  { %v30582_v32 = vsub.f32 %v30580_v2, %v30581_v60  ;;  %v31083_v18 = vand.u32 4294901760, %v31082_v31  ;;  %70865 = vmatprep.subr.bf16.mxu1 %v75937_v63  ;;  %v70872_v34 = vpack.c.bf16 %v31089_v21, %v31082_v31  ;;  %v70856_v55 = vpack.c.bf16 %v30588_v38, %v30581_v60 }
 0x57b   :  { %v31091_v1 = vsub.f32 %v31089_v21, %v31090_v59  ;;  %66836 = vmatmul.mubr.f32.vlgmr.msra.gmra.mrb[58].mxu0 %v75800_v15  ;;  %v30590_v56 = vand.u32 4294901760, %v30589_v27 }
 0x57c   :  { %v31084_v0 = vsub.f32 %v31082_v31, %v31083_v18  ;;  %70843 = vmatpush3.bf16.msra.mxu0 %v75933_v24  ;;  %66884 = vmatprep.mubr.f32.mxu0 %v74209_v25  ;;  %v30583_v12 = vand.u32 4294901760, %v30582_v32  ;;  %v70880_v28 = vpack.c.bf16 %v31090_v59, %v31083_v18 }
 0x57d   :  { %66878 = vmatmul.mubr.f32.vlgmr.msra.gmra.mrb[58].mxu1 %v75810_v19  ;;  %v31092_v11 = vand.u32 4294901760, %v31091_v1 }
 0x57e   :  { %70867 = vmatpush3.bf16.msra.mxu1 %v75937_v63  ;;  %66926 = vmatprep.mubr.f32.mxu1 %v74209_v25  ;;  %v70844_v2 = vpack.c.bf16 %v30590_v56, %v30583_v12  ;;  %v31085_v33 = vand.u32 4294901760, %v31084_v0 }
 0x57f   :  { %66885 = vmatmul.mubr.f32.vlgmr.msra.gmra.mrb[60].mxu0 %v74218_v40 }
 0x580   :  { %70845 = vmatprep.subr.bf16.mxu0 %v70844_v2  ;;  %v70868_v15 = vpack.c.bf16 %v31092_v11, %v31085_v33  ;;  %66891 = vmatprep.mubr.f32.mxu0 %v74176_v3 }
 0x581   :  { %66927 = vmatmul.mubr.f32.vlgmr.msra.gmra.mrb[60].mxu1 %v74218_v40  ;;  %70847 = vmatpush3.bf16.msra.mxu0 %v70844_v2 }
 0x582   :  { %70869 = vmatprep.subr.bf16.mxu1 %v70868_v15  ;;  %70849 = vmatprep.subr.bf16.mxu0 %v70848_v26 }
 0x583   :  { %70871 = vmatpush3.bf16.msra.mxu1 %v70868_v15  ;;  %66933 = vmatprep.mubr.f32.mxu1 %v74176_v3 }
 0x584   :  { %70873 = vmatprep.subr.bf16.mxu1 %v70872_v34 }
 0x587   :  { %66892 = vmatmul.mubr.f32.vlgmr.msra.gmra.mrb[60].mxu0 %v74182_v6 }
 0x588   :  { %70851 = vmatpush3.bf16.msra.mxu0 %v70848_v26  ;;  %66898 = vmatprep.mubr.f32.mxu0 %v74180_v5 }
 0x589   :  { %66934 = vmatmul.mubr.f32.vlgmr.msra.gmra.mrb[60].mxu1 %v74182_v6  ;;  %70853 = vmatprep.subr.bf16.mxu0 %v75933_v24 }
 0x58a   :  { %70875 = vmatpush3.bf16.msra.mxu1 %v70872_v34  ;;  %66940 = vmatprep.mubr.f32.mxu1 %v74180_v5 }
 0x58b   :  { %70877 = vmatprep.subr.bf16.mxu1 %v75937_v63 }
 0x58f   :  { %66899 = vmatmul.mubr.f32.vlgmr.msra.gmra.mrb[60].mxu0 %v74194_v8 }
 0x590   :  { %70855 = vmatpush3.bf16.msra.mxu0 %v75933_v24  ;;  %66905 = vmatprep.mubr.f32.mxu0 %v74191_v7 }
 0x591   :  { %66941 = vmatmul.mubr.f32.vlgmr.msra.gmra.mrb[60].mxu1 %v74194_v8  ;;  %70857 = vmatprep.subr.bf16.mxu0 %v70856_v55 }
 0x592   :  { %70879 = vmatpush3.bf16.msra.mxu1 %v75937_v63  ;;  %66947 = vmatprep.mubr.f32.mxu1 %v74191_v7 }
 0x593   :  { %70881 = vmatprep.subr.bf16.mxu1 %v70880_v28 }
 0x597   :  { %66906 = vmatmul.mubr.f32.vlgmr.msra.gmra.mrb[60].mxu0 %v74200_v14 }
 0x598   :  { %70859 = vmatpush3.bf16.msra.mxu0 %v70856_v55  ;;  %66912 = vmatprep.mubr.f32.mxu0 %v74176_v3 }
 0x599   :  { %66948 = vmatmul.mubr.f32.vlgmr.msra.gmra.mrb[60].mxu1 %v74200_v14  ;;  %70861 = vmatprep.subr.bf16.mxu0 %v75933_v24 }
 0x59a   :  { %70883 = vmatpush3.bf16.msra.mxu1 %v70880_v28  ;;  %66954 = vmatprep.mubr.f32.mxu1 %v74176_v3 }
 0x59b   :  { %70885 = vmatprep.subr.bf16.mxu1 %v75937_v63 }
 0x59e   :  { %v66501_v59 = vpop.f32.mrb[50].mxu0 }
 0x59f   :  { %v31499_v19 = vand.u32 4294901760, %v66501_v59  ;;  %v25909_v1 = vpop.f32.mrb[51].mxu0  ;;  %66913 = vmatmul.mubr.f32.vlgmr.msra.gmra.mrb[60].mxu0 %v74182_v6 }
 0x5a0   :  { %v66543_v32 = vpop.f32.mrb[50].mxu1  ;;  %v31496_v38 = vand.u32 4294901760, %v25909_v1  ;;  %70863 = vmatpush3.bf16.msra.mxu0 %v75933_v24  ;;  %66919 = vmatprep.mubr.f32.mxu0 %v74176_v3 }
 0x5a1   :  { %v31591_v21 = vsub.f32 %v66501_v59, %v31499_v19  ;;  %v32001_v60 = vand.u32 4294901760, %v66543_v32  ;;  %v26417_v31 = vpop.f32.mrb[51].mxu1  ;;  %66955 = vmatmul.mubr.f32.vlgmr.msra.gmra.mrb[60].mxu1 %v74182_v6 }
 0x5a2   :  { %v75973_v26 = vpack.c.bf16 %v31499_v19, %v31496_v38  ;;  %v31584_v27 = vsub.f32 %v25909_v1, %v31496_v38  ;;  %v31998_v18 = vand.u32 4294901760, %v26417_v31  ;;  %70887 = vmatpush3.bf16.msra.mxu1 %v75937_v63  ;;  %66961 = vmatprep.mubr.f32.mxu1 %v74176_v3 }
 0x5a3   :  { %v31592_v34 = vand.u32 4294901760, %v31591_v21  ;;  %v32093_v55 = vsub.f32 %v66543_v32, %v32001_v60 }
 0x5a4   :  { %v31585_v56 = vand.u32 4294901760, %v31584_v27  ;;  %v75977_v0 = vpack.c.bf16 %v32001_v60, %v31998_v18  ;;  %v32086_v24 = vsub.f32 %v26417_v31, %v31998_v18  ;;  %70889 = vmatprep.subr.bf16.mxu0 %v75973_v26  ;;  %v70896_v12 = vpack.c.bf16 %v31591_v21, %v31584_v27 }
 0x5a5   :  { %v31593_v28 = vsub.f32 %v31591_v21, %v31592_v34  ;;  %v32094_v11 = vand.u32 4294901760, %v32093_v55 }
 0x5a6   :  { %v31586_v2 = vsub.f32 %v31584_v27, %v31585_v56  ;;  %v32087_v33 = vand.u32 4294901760, %v32086_v24  ;;  %70913 = vmatprep.subr.bf16.mxu1 %v75977_v0  ;;  %v70920_v15 = vpack.c.bf16 %v32093_v55, %v32086_v24  ;;  %v70904_v59 = vpack.c.bf16 %v31592_v34, %v31585_v56 }
 0x5a7   :  { %v32095_v63 = vsub.f32 %v32093_v55, %v32094_v11  ;;  %66920 = vmatmul.mubr.f32.vlgmr.msra.gmra.mrb[60].mxu0 %v74182_v6  ;;  %v31594_v19 = vand.u32 4294901760, %v31593_v28 }
 0x5a8   :  { %v32088_v1 = vsub.f32 %v32086_v24, %v32087_v33  ;;  %70891 = vmatpush3.bf16.msra.mxu0 %v75973_v26  ;;  %66968 = vmatprep.mubr.f32.mxu0 %v74209_v25  ;;  %v31587_v32 = vand.u32 4294901760, %v31586_v2  ;;  %v70928_v38 = vpack.c.bf16 %v32094_v11, %v32087_v33 }
 0x5a9   :  { %66962 = vmatmul.mubr.f32.vlgmr.msra.gmra.mrb[60].mxu1 %v74182_v6  ;;  %v32096_v21 = vand.u32 4294901760, %v32095_v63 }
 0x5aa   :  { %70915 = vmatpush3.bf16.msra.mxu1 %v75977_v0  ;;  %67010 = vmatprep.mubr.f32.mxu1 %v74209_v25  ;;  %v70892_v60 = vpack.c.bf16 %v31594_v19, %v31587_v32  ;;  %v32089_v31 = vand.u32 4294901760, %v32088_v1 }
 0x5ab   :  { %66969 = vmatmul.mubr.f32.vlgmr.msra.gmra.mrb[62].mxu0 %v74218_v40 }
 0x5ac   :  { %70893 = vmatprep.subr.bf16.mxu0 %v70892_v60  ;;  %v70916_v27 = vpack.c.bf16 %v32096_v21, %v32089_v31  ;;  %66975 = vmatprep.mubr.f32.mxu0 %v74176_v3 }
 0x5ad   :  { %67011 = vmatmul.mubr.f32.vlgmr.msra.gmra.mrb[62].mxu1 %v74218_v40  ;;  %70895 = vmatpush3.bf16.msra.mxu0 %v70892_v60 }
 0x5ae   :  { %70917 = vmatprep.subr.bf16.mxu1 %v70916_v27  ;;  %70897 = vmatprep.subr.bf16.mxu0 %v70896_v12 }
 0x5af   :  { %70919 = vmatpush3.bf16.msra.mxu1 %v70916_v27  ;;  %67017 = vmatprep.mubr.f32.mxu1 %v74176_v3 }
 0x5b0   :  { %70921 = vmatprep.subr.bf16.mxu1 %v70920_v15 }
 0x5b3   :  { %66976 = vmatmul.mubr.f32.vlgmr.msra.gmra.mrb[62].mxu0 %v74182_v6 }
 0x5b4   :  { %70899 = vmatpush3.bf16.msra.mxu0 %v70896_v12  ;;  %66982 = vmatprep.mubr.f32.mxu0 %v74180_v5 }
 0x5b5   :  { %67018 = vmatmul.mubr.f32.vlgmr.msra.gmra.mrb[62].mxu1 %v74182_v6  ;;  %70901 = vmatprep.subr.bf16.mxu0 %v75973_v26 }
 0x5b6   :  { %70923 = vmatpush3.bf16.msra.mxu1 %v70920_v15  ;;  %67024 = vmatprep.mubr.f32.mxu1 %v74180_v5 }
 0x5b7   :  { %70925 = vmatprep.subr.bf16.mxu1 %v75977_v0 }
 0x5bb   :  { %66983 = vmatmul.mubr.f32.vlgmr.msra.gmra.mrb[62].mxu0 %v74194_v8 }
 0x5bc   :  { %70903 = vmatpush3.bf16.msra.mxu0 %v75973_v26  ;;  %66989 = vmatprep.mubr.f32.mxu0 %v74191_v7 }
 0x5bd   :  { %67025 = vmatmul.mubr.f32.vlgmr.msra.gmra.mrb[62].mxu1 %v74194_v8  ;;  %70905 = vmatprep.subr.bf16.mxu0 %v70904_v59 }
 0x5be   :  { %70927 = vmatpush3.bf16.msra.mxu1 %v75977_v0  ;;  %67031 = vmatprep.mubr.f32.mxu1 %v74191_v7 }
 0x5bf   :  { %70929 = vmatprep.subr.bf16.mxu1 %v70928_v38 }
 0x5c3   :  { %66990 = vmatmul.mubr.f32.vlgmr.msra.gmra.mrb[62].mxu0 %v74200_v14 }
 0x5c4   :  { %70907 = vmatpush3.bf16.msra.mxu0 %v70904_v59  ;;  %66996 = vmatprep.mubr.f32.mxu0 %v74176_v3 }
 0x5c5   :  { %67032 = vmatmul.mubr.f32.vlgmr.msra.gmra.mrb[62].mxu1 %v74200_v14  ;;  %70909 = vmatprep.subr.bf16.mxu0 %v75973_v26 }
 0x5c6   :  { %70931 = vmatpush3.bf16.msra.mxu1 %v70928_v38  ;;  %67038 = vmatprep.mubr.f32.mxu1 %v74176_v3 }
 0x5c7   :  { %70933 = vmatprep.subr.bf16.mxu1 %v75977_v0 }
 0x5ca   :  { %v66585_v18 = vpop.f32.mrb[52].mxu0 }
 0x5cb   :  { %v32503_v34 = vand.u32 4294901760, %v66585_v18  ;;  %v26925_v55 = vpop.f32.mrb[53].mxu0  ;;  %66997 = vmatmul.mubr.f32.vlgmr.msra.gmra.mrb[62].mxu0 %v74182_v6 }
 0x5cc   :  { %v66627_v56 = vpop.f32.mrb[52].mxu1  ;;  %v32500_v24 = vand.u32 4294901760, %v26925_v55  ;;  %70911 = vmatpush3.bf16.msra.mxu0 %v75973_v26  ;;  %67003 = vmatprep.mubr.f32.mxu0 %v74176_v3 }
 0x5cd   :  { %v32595_v12 = vsub.f32 %v66585_v18, %v32503_v34  ;;  %v33005_v28 = vand.u32 4294901760, %v66627_v56  ;;  %v27433_v11 = vpop.f32.mrb[53].mxu1  ;;  %67039 = vmatmul.mubr.f32.vlgmr.msra.gmra.mrb[62].mxu1 %v74182_v6 }
 0x5ce   :  { %v76013_v2 = vpack.c.bf16 %v32503_v34, %v32500_v24  ;;  %v32588_v33 = vsub.f32 %v26925_v55, %v32500_v24  ;;  %v33002_v15 = vand.u32 4294901760, %v27433_v11  ;;  %70935 = vmatpush3.bf16.msra.mxu1 %v75977_v0  ;;  %67045 = vmatprep.mubr.f32.mxu1 %v74176_v3 }
 0x5cf   :  { %v32596_v59 = vand.u32 4294901760, %v32595_v12  ;;  %v33097_v63 = vsub.f32 %v66627_v56, %v33005_v28 }
 0x5d0   :  { %v32589_v19 = vand.u32 4294901760, %v32588_v33  ;;  %v76017_v1 = vpack.c.bf16 %v33005_v28, %v33002_v15  ;;  %v33090_v26 = vsub.f32 %v27433_v11, %v33002_v15  ;;  %70937 = vmatprep.subr.bf16.mxu0 %v76013_v2  ;;  %v70944_v32 = vpack.c.bf16 %v32595_v12, %v32588_v33 }
 0x5d1   :  { %v32597_v38 = vsub.f32 %v32595_v12, %v32596_v59  ;;  %v33098_v21 = vand.u32 4294901760, %v33097_v63 }
 0x5d2   :  { %v32590_v60 = vsub.f32 %v32588_v33, %v32589_v19  ;;  %v33091_v31 = vand.u32 4294901760, %v33090_v26  ;;  %70961 = vmatprep.subr.bf16.mxu1 %v76017_v1  ;;  %v70968_v27 = vpack.c.bf16 %v33097_v63, %v33090_v26  ;;  %v70952_v18 = vpack.c.bf16 %v32596_v59, %v32589_v19 }
 0x5d3   :  { %v33099_v0 = vsub.f32 %v33097_v63, %v33098_v21  ;;  %67004 = vmatmul.mubr.f32.vlgmr.msra.gmra.mrb[62].mxu0 %v74182_v6  ;;  %v32598_v34 = vand.u32 4294901760, %v32597_v38 }
 0x5d4   :  { %v33092_v55 = vsub.f32 %v33090_v26, %v33091_v31  ;;  %70939 = vmatpush3.bf16.msra.mxu0 %v76013_v2  ;;  %67052 = vmatprep.mubr.f32.mxu0 %v74209_v25  ;;  %v32591_v56 = vand.u32 4294901760, %v32590_v60  ;;  %v70976_v24 = vpack.c.bf16 %v33098_v21, %v33091_v31 }
 0x5d5   :  { %67046 = vmatmul.mubr.f32.vlgmr.msra.gmra.mrb[62].mxu1 %v74182_v6  ;;  %v33100_v12 = vand.u32 4294901760, %v33099_v0 }
 0x5d6   :  { %70963 = vmatpush3.bf16.msra.mxu1 %v76017_v1  ;;  %67094 = vmatprep.mubr.f32.mxu1 %v74209_v25  ;;  %v70940_v28 = vpack.c.bf16 %v32598_v34, %v32591_v56  ;;  %v33093_v11 = vand.u32 4294901760, %v33092_v55 }
 0x5d7   :  { %67053 = vmatmul.mubr.f32.vlgmr.msra.gmra.mrb[64].mxu0 %v74218_v40 }
 0x5d8   :  { %70941 = vmatprep.subr.bf16.mxu0 %v70940_v28  ;;  %v70964_v33 = vpack.c.bf16 %v33100_v12, %v33093_v11  ;;  %67059 = vmatprep.mubr.f32.mxu0 %v74176_v3 }
 0x5d9   :  { %67095 = vmatmul.mubr.f32.vlgmr.msra.gmra.mrb[64].mxu1 %v74218_v40  ;;  %70943 = vmatpush3.bf16.msra.mxu0 %v70940_v28 }
 0x5da   :  { %70965 = vmatprep.subr.bf16.mxu1 %v70964_v33  ;;  %70945 = vmatprep.subr.bf16.mxu0 %v70944_v32 }
 0x5db   :  { %70967 = vmatpush3.bf16.msra.mxu1 %v70964_v33  ;;  %67101 = vmatprep.mubr.f32.mxu1 %v74176_v3 }
 0x5dc   :  { %70969 = vmatprep.subr.bf16.mxu1 %v70968_v27 }
 0x5df   :  { %67060 = vmatmul.mubr.f32.vlgmr.msra.gmra.mrb[64].mxu0 %v74182_v6 }
 0x5e0   :  { %70947 = vmatpush3.bf16.msra.mxu0 %v70944_v32  ;;  %67066 = vmatprep.mubr.f32.mxu0 %v74180_v5 }
 0x5e1   :  { %67102 = vmatmul.mubr.f32.vlgmr.msra.gmra.mrb[64].mxu1 %v74182_v6  ;;  %70949 = vmatprep.subr.bf16.mxu0 %v76013_v2 }
 0x5e2   :  { %70971 = vmatpush3.bf16.msra.mxu1 %v70968_v27  ;;  %67108 = vmatprep.mubr.f32.mxu1 %v74180_v5 }
 0x5e3   :  { %70973 = vmatprep.subr.bf16.mxu1 %v76017_v1 }
 0x5e7   :  { %67067 = vmatmul.mubr.f32.vlgmr.msra.gmra.mrb[64].mxu0 %v74194_v8 }
 0x5e8   :  { %70951 = vmatpush3.bf16.msra.mxu0 %v76013_v2  ;;  %67073 = vmatprep.mubr.f32.mxu0 %v74191_v7 }
 0x5e9   :  { %67109 = vmatmul.mubr.f32.vlgmr.msra.gmra.mrb[64].mxu1 %v74194_v8  ;;  %70953 = vmatprep.subr.bf16.mxu0 %v70952_v18 }
 0x5ea   :  { %70975 = vmatpush3.bf16.msra.mxu1 %v76017_v1  ;;  %67115 = vmatprep.mubr.f32.mxu1 %v74191_v7 }
 0x5eb   :  { %70977 = vmatprep.subr.bf16.mxu1 %v70976_v24 }
 0x5ef   :  { %67074 = vmatmul.mubr.f32.vlgmr.msra.gmra.mrb[64].mxu0 %v74200_v14 }
 0x5f0   :  { %70955 = vmatpush3.bf16.msra.mxu0 %v70952_v18  ;;  %67080 = vmatprep.mubr.f32.mxu0 %v74176_v3 }
 0x5f1   :  { %67116 = vmatmul.mubr.f32.vlgmr.msra.gmra.mrb[64].mxu1 %v74200_v14  ;;  %70957 = vmatprep.subr.bf16.mxu0 %v76013_v2 }
 0x5f2   :  { %70979 = vmatpush3.bf16.msra.mxu1 %v70976_v24  ;;  %67122 = vmatprep.mubr.f32.mxu1 %v74176_v3 }
 0x5f3   :  { %70981 = vmatprep.subr.bf16.mxu1 %v76017_v1 }
 0x5f6   :  { %v66669_v15 = vpop.f32.mrb[54].mxu0 }
 0x5f7   :  { %v33507_v59 = vand.u32 4294901760, %v66669_v15  ;;  %v27941_v63 = vpop.f32.mrb[55].mxu0  ;;  %67081 = vmatmul.mubr.f32.vlgmr.msra.gmra.mrb[64].mxu0 %v74182_v6 }
 0x5f8   :  { %v66711_v19 = vpop.f32.mrb[54].mxu1  ;;  %v33504_v26 = vand.u32 4294901760, %v27941_v63  ;;  %70959 = vmatpush3.bf16.msra.mxu0 %v76013_v2  ;;  %67087 = vmatprep.mubr.f32.mxu0 %v74176_v3 }
 0x5f9   :  { %v33599_v32 = vsub.f32 %v66669_v15, %v33507_v59  ;;  %v34009_v38 = vand.u32 4294901760, %v66711_v19  ;;  %v28449_v21 = vpop.f32.mrb[55].mxu1  ;;  %67123 = vmatmul.mubr.f32.vlgmr.msra.gmra.mrb[64].mxu1 %v74182_v6 }
 0x5fa   :  { %v76053_v60 = vpack.c.bf16 %v33507_v59, %v33504_v26  ;;  %v33592_v31 = vsub.f32 %v27941_v63, %v33504_v26  ;;  %v34006_v27 = vand.u32 4294901760, %v28449_v21  ;;  %70983 = vmatpush3.bf16.msra.mxu1 %v76017_v1  ;;  %67129 = vmatprep.mubr.f32.mxu1 %v74176_v3 }
 0x5fb   :  { %v33600_v18 = vand.u32 4294901760, %v33599_v32  ;;  %v34101_v0 = vsub.f32 %v66711_v19, %v34009_v38 }
 0x5fc   :  { %v33593_v34 = vand.u32 4294901760, %v33592_v31  ;;  %v76057_v55 = vpack.c.bf16 %v34009_v38, %v34006_v27  ;;  %v34094_v2 = vsub.f32 %v28449_v21, %v34006_v27  ;;  %70985 = vmatprep.subr.bf16.mxu0 %v76053_v60  ;;  %v70992_v56 = vpack.c.bf16 %v33599_v32, %v33592_v31 }
 0x5fd   :  { %v33601_v24 = vsub.f32 %v33599_v32, %v33600_v18  ;;  %v34102_v12 = vand.u32 4294901760, %v34101_v0 }
 0x5fe   :  { %v33594_v28 = vsub.f32 %v33592_v31, %v33593_v34  ;;  %v34095_v11 = vand.u32 4294901760, %v34094_v2  ;;  %71009 = vmatprep.subr.bf16.mxu1 %v76057_v55  ;;  %v71016_v33 = vpack.c.bf16 %v34101_v0, %v34094_v2  ;;  %v71000_v15 = vpack.c.bf16 %v33600_v18, %v33593_v34 }
 0x5ff   :  { %v34103_v1 = vsub.f32 %v34101_v0, %v34102_v12  ;;  %67088 = vmatmul.mubr.f32.vlgmr.msra.gmra.mrb[64].mxu0 %v74182_v6  ;;  %v33602_v59 = vand.u32 4294901760, %v33601_v24 }
 0x600   :  { %v34096_v63 = vsub.f32 %v34094_v2, %v34095_v11  ;;  %70987 = vmatpush3.bf16.msra.mxu0 %v76053_v60  ;;  %67136 = vmatprep.mubr.f32.mxu0 %v74209_v25  ;;  %v33595_v19 = vand.u32 4294901760, %v33594_v28  ;;  %v71024_v26 = vpack.c.bf16 %v34102_v12, %v34095_v11 }
 0x601   :  { %67130 = vmatmul.mubr.f32.vlgmr.msra.gmra.mrb[64].mxu1 %v74182_v6  ;;  %v34104_v32 = vand.u32 4294901760, %v34103_v1 }
 0x602   :  { %71011 = vmatpush3.bf16.msra.mxu1 %v76057_v55  ;;  %67178 = vmatprep.mubr.f32.mxu1 %v74209_v25  ;;  %v70988_v38 = vpack.c.bf16 %v33602_v59, %v33595_v19  ;;  %v34097_v21 = vand.u32 4294901760, %v34096_v63 }
 0x603   :  { %67137 = vmatmul.mubr.f32.vlgmr.msra.gmra.mrb[66].mxu0 %v74218_v40 }
 0x604   :  { %70989 = vmatprep.subr.bf16.mxu0 %v70988_v38  ;;  %v71012_v31 = vpack.c.bf16 %v34104_v32, %v34097_v21  ;;  %67143 = vmatprep.mubr.f32.mxu0 %v74176_v3 }
 0x605   :  { %67179 = vmatmul.mubr.f32.vlgmr.msra.gmra.mrb[66].mxu1 %v74218_v40  ;;  %70991 = vmatpush3.bf16.msra.mxu0 %v70988_v38 }
 0x606   :  { %71013 = vmatprep.subr.bf16.mxu1 %v71012_v31  ;;  %70993 = vmatprep.subr.bf16.mxu0 %v70992_v56 }
 0x607   :  { %71015 = vmatpush3.bf16.msra.mxu1 %v71012_v31  ;;  %67185 = vmatprep.mubr.f32.mxu1 %v74176_v3 }
 0x608   :  { %71017 = vmatprep.subr.bf16.mxu1 %v71016_v33 }
 0x60b   :  { %67144 = vmatmul.mubr.f32.vlgmr.msra.gmra.mrb[66].mxu0 %v74182_v6 }
 0x60c   :  { %70995 = vmatpush3.bf16.msra.mxu0 %v70992_v56  ;;  %67150 = vmatprep.mubr.f32.mxu0 %v74180_v5 }
 0x60d   :  { %67186 = vmatmul.mubr.f32.vlgmr.msra.gmra.mrb[66].mxu1 %v74182_v6  ;;  %70997 = vmatprep.subr.bf16.mxu0 %v76053_v60 }
 0x60e   :  { %71019 = vmatpush3.bf16.msra.mxu1 %v71016_v33  ;;  %67192 = vmatprep.mubr.f32.mxu1 %v74180_v5 }
 0x60f   :  { %71021 = vmatprep.subr.bf16.mxu1 %v76057_v55 }
 0x613   :  { %67151 = vmatmul.mubr.f32.vlgmr.msra.gmra.mrb[66].mxu0 %v74194_v8 }
 0x614   :  { %70999 = vmatpush3.bf16.msra.mxu0 %v76053_v60  ;;  %67157 = vmatprep.mubr.f32.mxu0 %v74191_v7 }
 0x615   :  { %67193 = vmatmul.mubr.f32.vlgmr.msra.gmra.mrb[66].mxu1 %v74194_v8  ;;  %71001 = vmatprep.subr.bf16.mxu0 %v71000_v15 }
 0x616   :  { %71023 = vmatpush3.bf16.msra.mxu1 %v76057_v55  ;;  %67199 = vmatprep.mubr.f32.mxu1 %v74191_v7 }
 0x617   :  { %71025 = vmatprep.subr.bf16.mxu1 %v71024_v26 }
 0x61b   :  { %67158 = vmatmul.mubr.f32.vlgmr.msra.gmra.mrb[66].mxu0 %v74200_v14 }
 0x61c   :  { %71003 = vmatpush3.bf16.msra.mxu0 %v71000_v15  ;;  %67164 = vmatprep.mubr.f32.mxu0 %v74176_v3 }
 0x61d   :  { %67200 = vmatmul.mubr.f32.vlgmr.msra.gmra.mrb[66].mxu1 %v74200_v14  ;;  %71005 = vmatprep.subr.bf16.mxu0 %v76053_v60 }
 0x61e   :  { %71027 = vmatpush3.bf16.msra.mxu1 %v71024_v26  ;;  %67206 = vmatprep.mubr.f32.mxu1 %v74176_v3 }
 0x61f   :  { %71029 = vmatprep.subr.bf16.mxu1 %v76057_v55 }
 0x622   :  { %v66753_v27 = vpop.f32.mrb[56].mxu0 }
 0x623   :  { %v34511_v18 = vand.u32 4294901760, %v66753_v27  ;;  %v28957_v0 = vpop.f32.mrb[57].mxu0  ;;  %67165 = vmatmul.mubr.f32.vlgmr.msra.gmra.mrb[66].mxu0 %v74182_v6 }
 0x624   :  { %v66795_v34 = vpop.f32.mrb[56].mxu1  ;;  %v34508_v2 = vand.u32 4294901760, %v28957_v0  ;;  %71007 = vmatpush3.bf16.msra.mxu0 %v76053_v60  ;;  %67171 = vmatprep.mubr.f32.mxu0 %v74176_v3 }
 0x625   :  { %v34603_v56 = vsub.f32 %v66753_v27, %v34511_v18  ;;  %v35013_v24 = vand.u32 4294901760, %v66795_v34  ;;  %v29465_v12 = vpop.f32.mrb[57].mxu1  ;;  %67207 = vmatmul.mubr.f32.vlgmr.msra.gmra.mrb[66].mxu1 %v74182_v6 }
 0x626   :  { %v76093_v28 = vpack.c.bf16 %v34511_v18, %v34508_v2  ;;  %v34596_v11 = vsub.f32 %v28957_v0, %v34508_v2  ;;  %v35010_v33 = vand.u32 4294901760, %v29465_v12  ;;  %71031 = vmatpush3.bf16.msra.mxu1 %v76057_v55  ;;  %67213 = vmatprep.mubr.f32.mxu1 %v74176_v3 }
 0x627   :  { %v34604_v15 = vand.u32 4294901760, %v34603_v56  ;;  %v35105_v1 = vsub.f32 %v66795_v34, %v35013_v24 }
 0x628   :  { %v34597_v59 = vand.u32 4294901760, %v34596_v11  ;;  %v76097_v63 = vpack.c.bf16 %v35013_v24, %v35010_v33  ;;  %v35098_v60 = vsub.f32 %v29465_v12, %v35010_v33  ;;  %71033 = vmatprep.subr.bf16.mxu0 %v76093_v28  ;;  %v71040_v19 = vpack.c.bf16 %v34603_v56, %v34596_v11 }
 0x629   :  { %v34605_v26 = vsub.f32 %v34603_v56, %v34604_v15  ;;  %v35106_v32 = vand.u32 4294901760, %v35105_v1 }
 0x62a   :  { %v34598_v38 = vsub.f32 %v34596_v11, %v34597_v59  ;;  %v35099_v21 = vand.u32 4294901760, %v35098_v60  ;;  %71057 = vmatprep.subr.bf16.mxu1 %v76097_v63  ;;  %v71064_v31 = vpack.c.bf16 %v35105_v1, %v35098_v60  ;;  %v71048_v27 = vpack.c.bf16 %v34604_v15, %v34597_v59 }
 0x62b   :  { %v35107_v55 = vsub.f32 %v35105_v1, %v35106_v32  ;;  %67172 = vmatmul.mubr.f32.vlgmr.msra.gmra.mrb[66].mxu0 %v74182_v6  ;;  %v34606_v18 = vand.u32 4294901760, %v34605_v26 }
 0x62c   :  { %v35100_v0 = vsub.f32 %v35098_v60, %v35099_v21  ;;  %71035 = vmatpush3.bf16.msra.mxu0 %v76093_v28  ;;  %67220 = vmatprep.mubr.f32.mxu0 %v74209_v25  ;;  %v34599_v34 = vand.u32 4294901760, %v34598_v38  ;;  %v71072_v2 = vpack.c.bf16 %v35106_v32, %v35099_v21 }
 0x62d   :  { %67214 = vmatmul.mubr.f32.vlgmr.msra.gmra.mrb[66].mxu1 %v74182_v6  ;;  %v35108_v56 = vand.u32 4294901760, %v35107_v55 }
 0x62e   :  { %71059 = vmatpush3.bf16.msra.mxu1 %v76097_v63  ;;  %67262 = vmatprep.mubr.f32.mxu1 %v74209_v25  ;;  %v71036_v24 = vpack.c.bf16 %v34606_v18, %v34599_v34  ;;  %v35101_v12 = vand.u32 4294901760, %v35100_v0 }
 0x62f   :  { %67221 = vmatmul.mubr.f32.vlgmr.msra.gmra.mrb[68].mxu0 %v74218_v40 }
 0x630   :  { %71037 = vmatprep.subr.bf16.mxu0 %v71036_v24  ;;  %v71060_v11 = vpack.c.bf16 %v35108_v56, %v35101_v12  ;;  %67227 = vmatprep.mubr.f32.mxu0 %v74176_v3 }
 0x631   :  { %67263 = vmatmul.mubr.f32.vlgmr.msra.gmra.mrb[68].mxu1 %v74218_v40  ;;  %71039 = vmatpush3.bf16.msra.mxu0 %v71036_v24 }
 0x632   :  { %71061 = vmatprep.subr.bf16.mxu1 %v71060_v11  ;;  %71041 = vmatprep.subr.bf16.mxu0 %v71040_v19 }
 0x633   :  { %71063 = vmatpush3.bf16.msra.mxu1 %v71060_v11  ;;  %67269 = vmatprep.mubr.f32.mxu1 %v74176_v3 }
 0x634   :  { %71065 = vmatprep.subr.bf16.mxu1 %v71064_v31 }
 0x637   :  { %67228 = vmatmul.mubr.f32.vlgmr.msra.gmra.mrb[68].mxu0 %v74182_v6 }
 0x638   :  { %71043 = vmatpush3.bf16.msra.mxu0 %v71040_v19  ;;  %67234 = vmatprep.mubr.f32.mxu0 %v74180_v5 }
 0x639   :  { %67270 = vmatmul.mubr.f32.vlgmr.msra.gmra.mrb[68].mxu1 %v74182_v6  ;;  %71045 = vmatprep.subr.bf16.mxu0 %v76093_v28 }
 0x63a   :  { %71067 = vmatpush3.bf16.msra.mxu1 %v71064_v31  ;;  %67276 = vmatprep.mubr.f32.mxu1 %v74180_v5 }
 0x63b   :  { %71069 = vmatprep.subr.bf16.mxu1 %v76097_v63 }
 0x63f   :  { %67235 = vmatmul.mubr.f32.vlgmr.msra.gmra.mrb[68].mxu0 %v74194_v8 }
 0x640   :  { %71047 = vmatpush3.bf16.msra.mxu0 %v76093_v28  ;;  %67241 = vmatprep.mubr.f32.mxu0 %v74191_v7 }
 0x641   :  { %67277 = vmatmul.mubr.f32.vlgmr.msra.gmra.mrb[68].mxu1 %v74194_v8  ;;  %71049 = vmatprep.subr.bf16.mxu0 %v71048_v27 }
 0x642   :  { %71071 = vmatpush3.bf16.msra.mxu1 %v76097_v63  ;;  %67283 = vmatprep.mubr.f32.mxu1 %v74191_v7 }
 0x643   :  { %71073 = vmatprep.subr.bf16.mxu1 %v71072_v2 }
 0x647   :  { %67242 = vmatmul.mubr.f32.vlgmr.msra.gmra.mrb[68].mxu0 %v74200_v14 }
 0x648   :  { %71051 = vmatpush3.bf16.msra.mxu0 %v71048_v27  ;;  %67248 = vmatprep.mubr.f32.mxu0 %v74176_v3 }
 0x649   :  { %67284 = vmatmul.mubr.f32.vlgmr.msra.gmra.mrb[68].mxu1 %v74200_v14  ;;  %71053 = vmatprep.subr.bf16.mxu0 %v76093_v28 }
 0x64a   :  { %71075 = vmatpush3.bf16.msra.mxu1 %v71072_v2  ;;  %67290 = vmatprep.mubr.f32.mxu1 %v74176_v3 }
 0x64b   :  { %71077 = vmatprep.subr.bf16.mxu1 %v76097_v63 }
 0x64e   :  { %v66837_v33 = vpop.f32.mrb[58].mxu0 }
 0x64f   :  { %v35515_v15 = vand.u32 4294901760, %v66837_v33  ;;  %v29973_v1 = vpop.f32.mrb[59].mxu0  ;;  %67249 = vmatmul.mubr.f32.vlgmr.msra.gmra.mrb[68].mxu0 %v74182_v6 }
 0x650   :  { %v66879_v59 = vpop.f32.mrb[58].mxu1  ;;  %v35512_v60 = vand.u32 4294901760, %v29973_v1  ;;  %71055 = vmatpush3.bf16.msra.mxu0 %v76093_v28  ;;  %67255 = vmatprep.mubr.f32.mxu0 %v74176_v3 }
 0x651   :  { %v35607_v19 = vsub.f32 %v66837_v33, %v35515_v15  ;;  %v36017_v26 = vand.u32 4294901760, %v66879_v59  ;;  %v30481_v32 = vpop.f32.mrb[59].mxu1  ;;  %67291 = vmatmul.mubr.f32.vlgmr.msra.gmra.mrb[68].mxu1 %v74182_v6 }
 0x652   :  { %v76133_v38 = vpack.c.bf16 %v35515_v15, %v35512_v60  ;;  %v35600_v21 = vsub.f32 %v29973_v1, %v35512_v60  ;;  %v36014_v31 = vand.u32 4294901760, %v30481_v32  ;;  %71079 = vmatpush3.bf16.msra.mxu1 %v76097_v63  ;;  %67297 = vmatprep.mubr.f32.mxu1 %v74176_v3 }
 0x653   :  { %v35608_v27 = vand.u32 4294901760, %v35607_v19  ;;  %v36109_v55 = vsub.f32 %v66879_v59, %v36017_v26 }
 0x654   :  { %v35601_v18 = vand.u32 4294901760, %v35600_v21  ;;  %v76137_v0 = vpack.c.bf16 %v36017_v26, %v36014_v31  ;;  %v36102_v28 = vsub.f32 %v30481_v32, %v36014_v31  ;;  %71081 = vmatprep.subr.bf16.mxu0 %v76133_v38  ;;  %v71088_v34 = vpack.c.bf16 %v35607_v19, %v35600_v21  ;;  %v73558_v31 = vld [vmem:[#allocation4] sm:$0xff] }
 0x655   :  { %v35609_v2 = vsub.f32 %v35607_v19, %v35608_v27  ;;  %v36110_v56 = vand.u32 4294901760, %v36109_v55 }
 0x656   :  { %v35602_v24 = vsub.f32 %v35600_v21, %v35601_v18  ;;  %v36103_v12 = vand.u32 4294901760, %v36102_v28  ;;  %71105 = vmatprep.subr.bf16.mxu1 %v76137_v0  ;;  %v71112_v11 = vpack.c.bf16 %v36109_v55, %v36102_v28  ;;  %v71096_v33 = vpack.c.bf16 %v35608_v27, %v35601_v18 }
 0x657   :  { %v36111_v63 = vsub.f32 %v36109_v55, %v36110_v56  ;;  %67256 = vmatmul.mubr.f32.vlgmr.msra.gmra.mrb[68].mxu0 %v74182_v6  ;;  %v35610_v15 = vand.u32 4294901760, %v35609_v2  ;;  %v36515_v27 = vmul.f32 %v73558_v31, %v73558_v31  ;;  %v73559_v55 = vld [vmem:[#allocation4 + $0x10] sm:$0xff] }
 0x658   :  { %v36104_v1 = vsub.f32 %v36102_v28, %v36103_v12  ;;  %71083 = vmatpush3.bf16.msra.mxu0 %v76133_v38  ;;  %67304 = vmatprep.mubr.f32.mxu0 %v74209_v25  ;;  %v35603_v59 = vand.u32 4294901760, %v35602_v24  ;;  %v71120_v60 = vpack.c.bf16 %v36110_v56, %v36103_v12  ;;  %v36517_v18 = vmul.f32 %v73559_v55, %v73559_v55  ;;  %v73560_v28 = vld [vmem:[#allocation4 + $0x8] sm:$0xff]  ;;  %v73561_v56 = vld [vmem:[#allocation4 + $0x18] sm:$0xff] }
 0x659   :  { %67298 = vmatmul.mubr.f32.vlgmr.msra.gmra.mrb[68].mxu1 %v74182_v6  ;;  %v36112_v19 = vand.u32 4294901760, %v36111_v63  ;;  %v36540_v2 = vsel %vm124_vm0, %v36515_v27, 0  ;;  %v36518_v24 = vmul.f32 %v73561_v56, %v73561_v56 }
 0x65a   :  { %71107 = vmatpush3.bf16.msra.mxu1 %v76137_v0  ;;  %67346 = vmatprep.mubr.f32.mxu1 %v74209_v25  ;;  %v71084_v26 = vpack.c.bf16 %v35610_v15, %v35603_v59  ;;  %v36105_v32 = vand.u32 4294901760, %v36104_v1  ;;  %v37048_v12 = vsel %vm124_vm0, %v36517_v18, 0 }
 0x65b   :  { %67305 = vmatmul.mubr.f32.vlgmr.msra.gmra.mrb[70].mxu0 %v74218_v40  ;;  %v76168_v15 = vand.u32 4294901760, %v37048_v12  ;;  %v37051_v1 = vsel %vm124_vm0, %v36518_v24, 0 }
 0x65c   :  { %71085 = vmatprep.subr.bf16.mxu0 %v71084_v26  ;;  %v71108_v21 = vpack.c.bf16 %v36112_v19, %v36105_v32  ;;  %67311 = vmatprep.mubr.f32.mxu0 %v74176_v3 }
 0x65d   :  { %67347 = vmatmul.mubr.f32.vlgmr.msra.gmra.mrb[70].mxu1 %v74218_v40  ;;  %71087 = vmatpush3.bf16.msra.mxu0 %v71084_v26  ;;  %v76180_v26 = vand.u32 4294901760, %v37051_v1  ;;  %v76184_v32 = vsub.f32 %v37048_v12, %v76168_v15 }
 0x65e   :  { %71109 = vmatprep.subr.bf16.mxu1 %v71108_v21  ;;  %71089 = vmatprep.subr.bf16.mxu0 %v71088_v34 }
 0x65f   :  { %71111 = vmatpush3.bf16.msra.mxu1 %v71108_v21  ;;  %67353 = vmatprep.mubr.f32.mxu1 %v74176_v3  ;;  %v76192_v31 = vsub.f32 %v37051_v1, %v76180_v26  ;;  %v37122_v55 = vand.u32 4294901760, %v76184_v32 }
 0x660   :  { %71113 = vmatprep.subr.bf16.mxu1 %v71112_v11 }
 0x663   :  { %67312 = vmatmul.mubr.f32.vlgmr.msra.gmra.mrb[70].mxu0 %v74182_v6 }
 0x664   :  { %71091 = vmatpush3.bf16.msra.mxu0 %v71088_v34  ;;  %67318 = vmatprep.mubr.f32.mxu0 %v74180_v5  ;;  %v36516_v34 = vmul.f32 %v73560_v28, %v73560_v28 }
 0x665   :  { %67354 = vmatmul.mubr.f32.vlgmr.msra.gmra.mrb[70].mxu1 %v74182_v6  ;;  %71093 = vmatprep.subr.bf16.mxu0 %v76133_v38 }
 0x666   :  { %71115 = vmatpush3.bf16.msra.mxu1 %v71112_v11  ;;  %67360 = vmatprep.mubr.f32.mxu1 %v74180_v5  ;;  %v76165_v11 = vand.u32 4294901760, %v36540_v2  ;;  %v36543_v63 = vsel %vm124_vm0, %v36516_v34, 0 }
 0x667   :  { %71117 = vmatprep.subr.bf16.mxu1 %v76137_v0  ;;  %v76172_v59 = vand.u32 4294901760, %v36543_v63 }
 0x668   :  { %v76176_v19 = vsub.f32 %v36540_v2, %v76165_v11 }
 0x66a   :  { %v36614_v21 = vand.u32 4294901760, %v76176_v19 }
 0x66b   :  { %67319 = vmatmul.mubr.f32.vlgmr.msra.gmra.mrb[70].mxu0 %v74194_v8 }
 0x66c   :  { %71095 = vmatpush3.bf16.msra.mxu0 %v76133_v38  ;;  %67325 = vmatprep.mubr.f32.mxu0 %v74191_v7  ;;  %v36615_v56 = vsub.f32 %v76176_v19, %v36614_v21 }
 0x66d   :  { %67361 = vmatmul.mubr.f32.vlgmr.msra.gmra.mrb[70].mxu1 %v74194_v8  ;;  %71097 = vmatprep.subr.bf16.mxu0 %v71096_v33 }
 0x66e   :  { %71119 = vmatpush3.bf16.msra.mxu1 %v76137_v0  ;;  %67367 = vmatprep.mubr.f32.mxu1 %v74191_v7  ;;  %v36616_v2 = vand.u32 4294901760, %v36615_v56 }
 0x66f   :  { %71121 = vmatprep.subr.bf16.mxu1 %v71120_v60 }
 0x673   :  { %67326 = vmatmul.mubr.f32.vlgmr.msra.gmra.mrb[70].mxu0 %v74200_v14 }
 0x674   :  { %71099 = vmatpush3.bf16.msra.mxu0 %v71096_v33  ;;  %67332 = vmatprep.mubr.f32.mxu0 %v74176_v3  ;;  %v76188_v33 = vsub.f32 %v36543_v63, %v76172_v59  ;;  %v37132_v63 = vand.u32 4294901760, %v76192_v31 }
 0x675   :  { %67368 = vmatmul.mubr.f32.vlgmr.msra.gmra.mrb[70].mxu1 %v74200_v14  ;;  %71101 = vmatprep.subr.bf16.mxu0 %v76133_v38 }
 0x676   :  { %71123 = vmatpush3.bf16.msra.mxu1 %v71120_v60  ;;  %67374 = vmatprep.mubr.f32.mxu1 %v74176_v3  ;;  %v36624_v28 = vand.u32 4294901760, %v76188_v33  ;;  %v37133_v60 = vsub.f32 %v76192_v31, %v37132_v63 }
 0x677   :  { %71125 = vmatprep.subr.bf16.mxu1 %v76137_v0 }
 0x678   :  { %v36625_v24 = vsub.f32 %v76188_v33, %v36624_v28 }
 0x67a   :  { %v76194_v27 = vpop.f32.mrb[60].mxu0  ;;  %v36626_v1 = vand.u32 4294901760, %v36625_v24 }
 0x67b   :  { %v76199_v18 = vpop.f32.mrb[61].mxu0  ;;  %67333 = vmatmul.mubr.f32.vlgmr.msra.gmra.mrb[70].mxu0 %v74182_v6 }
 0x67c   :  { %v76203_v34 = vpop.f32.mrb[60].mxu1  ;;  %71103 = vmatpush3.bf16.msra.mxu0 %v76133_v38  ;;  %67339 = vmatprep.mubr.f32.mxu0 %v74176_v3  ;;  %v37123_v38 = vsub.f32 %v76184_v32, %v37122_v55 }
 0x67d   :  { %v76212_v12 = vpop.f32.mrb[61].mxu1  ;;  %67375 = vmatmul.mubr.f32.vlgmr.msra.gmra.mrb[70].mxu1 %v74182_v6  ;;  %71129 = vmatprep.subr.bf16.mxu0 %v73833_v10 }
 0x67e   :  { %71127 = vmatpush3.bf16.msra.mxu1 %v76137_v0  ;;  %67381 = vmatprep.mubr.f32.mxu1 %v74176_v3  ;;  %v37124_v36 = vand.u32 4294901760, %v37123_v38  ;;  %v37134_v0 = vand.u32 4294901760, %v37133_v60 }
 0x67f   :  { %71153 = vmatprep.subr.bf16.mxu1 %v73833_v10 }
 0x683   :  { %67340 = vmatmul.mubr.f32.vlgmr.msra.gmra.mrb[70].mxu0 %v74182_v6 }
 0x684   :  { %71131 = vmatpush3.bf16.msra.mxu0 %v73833_v10  ;;  %67388 = vmatprep.mubr.f32.mxu0 %v36616_v2  ;;  %v73563_v2 = vld [vmem:[#allocation4 + $0x30] sm:$0xff] }
 0x685   :  { %67382 = vmatmul.mubr.f32.vlgmr.msra.gmra.mrb[70].mxu1 %v74182_v6  ;;  %71133 = vmatprep.subr.bf16.mxu0 %v73851_v35  ;;  %v36521_v56 = vmul.f32 %v73563_v2, %v73563_v2 }
 0x686   :  { %71155 = vmatpush3.bf16.msra.mxu1 %v73833_v10  ;;  %67430 = vmatprep.mubr.f32.mxu1 %v37124_v36  ;;  %v73562_v36 = vld [vmem:[#allocation4 + $0x20] sm:$0xff] }
 0x687   :  { %67389 = vmatmul.mubr.f32.vlgmr.msra.gmra.mrb[72].mxu0 %v36626_v1  ;;  %71157 = vmatprep.subr.bf16.mxu1 %v73851_v35  ;;  %v36519_v60 = vmul.f32 %v73562_v36, %v73562_v36 }
 0x688   :  { %71135 = vmatpush3.bf16.msra.mxu0 %v73851_v35  ;;  %67395 = vmatprep.mubr.f32.mxu0 %v76165_v11 }
 0x689   :  { %67431 = vmatmul.mubr.f32.vlgmr.msra.gmra.mrb[72].mxu1 %v37134_v0  ;;  %71137 = vmatprep.subr.bf16.mxu0 %v73854_v39  ;;  %v37556_v1 = vsel %vm124_vm0, %v36519_v60, 0  ;;  %v38064_v0 = vsel %vm124_vm0, %v36521_v56, 0 }
 0x68a   :  { %71159 = vmatpush3.bf16.msra.mxu1 %v73851_v35  ;;  %67437 = vmatprep.mubr.f32.mxu1 %v76168_v15  ;;  %v76257_v36 = vand.u32 4294901760, %v37556_v1  ;;  %v76260_v2 = vand.u32 4294901760, %v38064_v0 }
 0x68b   :  { %71161 = vmatprep.subr.bf16.mxu1 %v73854_v39 }
 0x68f   :  { %67396 = vmatmul.mubr.f32.vlgmr.msra.gmra.mrb[72].mxu0 %v76172_v59 }
 0x690   :  { %71139 = vmatpush3.bf16.msra.mxu0 %v73854_v39  ;;  %67402 = vmatprep.mubr.f32.mxu0 %v76176_v19  ;;  %v73564_v19 = vld [vmem:[#allocation4 + $0x28] sm:$0xff] }
 0x691   :  { %67438 = vmatmul.mubr.f32.vlgmr.msra.gmra.mrb[72].mxu1 %v76180_v26  ;;  %71141 = vmatprep.subr.bf16.mxu0 %v73833_v10  ;;  %v36520_v24 = vmul.f32 %v73564_v19, %v73564_v19 }
 0x692   :  { %71163 = vmatpush3.bf16.msra.mxu1 %v73854_v39  ;;  %67444 = vmatprep.mubr.f32.mxu1 %v76184_v32  ;;  %v73565_v32 = vld [vmem:[#allocation4 + $0x38] sm:$0xff] }
 0x693   :  { %71165 = vmatprep.subr.bf16.mxu1 %v73833_v10  ;;  %v36522_v38 = vmul.f32 %v73565_v32, %v73565_v32 }
 0x695   :  { %v38067_v19 = vsel %vm124_vm0, %v36522_v38, 0 }
 0x696   :  { %v76275_v56 = vand.u32 4294901760, %v38067_v19 }
 0x697   :  { %67403 = vmatmul.mubr.f32.vlgmr.msra.gmra.mrb[72].mxu0 %v76188_v33  ;;  %v76280_v33 = vsub.f32 %v38064_v0, %v76260_v2 }
 0x698   :  { %71143 = vmatpush3.bf16.msra.mxu0 %v73833_v10  ;;  %67409 = vmatprep.mubr.f32.mxu0 %v36614_v21  ;;  %v37559_v21 = vsel %vm124_vm0, %v36520_v24, 0 }
 0x699   :  { %67445 = vmatmul.mubr.f32.vlgmr.msra.gmra.mrb[72].mxu1 %v76192_v31  ;;  %71145 = vmatprep.subr.bf16.mxu0 %v73869_v43  ;;  %v76265_v60 = vand.u32 4294901760, %v37559_v21  ;;  %v76288_v31 = vsub.f32 %v38067_v19, %v76275_v56 }
 0x69a   :  { %71167 = vmatpush3.bf16.msra.mxu1 %v73833_v10  ;;  %67451 = vmatprep.mubr.f32.mxu1 %v37122_v55  ;;  %v76270_v55 = vsub.f32 %v37556_v1, %v76257_v36  ;;  %v38138_v1 = vand.u32 4294901760, %v76280_v33 }
 0x69b   :  { %71169 = vmatprep.subr.bf16.mxu1 %v73869_v43  ;;  %v38148_v0 = vand.u32 4294901760, %v76288_v31 }
 0x69c   :  { %v37630_v24 = vand.u32 4294901760, %v76270_v55 }
 0x69d   :  { %v38149_v45 = vsub.f32 %v76288_v31, %v38148_v0 }
 0x69e   :  { %v37631_v19 = vsub.f32 %v76270_v55, %v37630_v24 }
 0x69f   :  { %67410 = vmatmul.mubr.f32.vlgmr.msra.gmra.mrb[72].mxu0 %v36624_v28  ;;  %v76284_v28 = vsub.f32 %v37559_v21, %v76265_v60 }
 0x6a0   :  { %71147 = vmatpush3.bf16.msra.mxu0 %v73869_v43  ;;  %67416 = vmatprep.mubr.f32.mxu0 %v76165_v11  ;;  %v37632_v53 = vand.u32 4294901760, %v37631_v19 }
 0x6a1   :  { %67452 = vmatmul.mubr.f32.vlgmr.msra.gmra.mrb[72].mxu1 %v37132_v63  ;;  %71149 = vmatprep.subr.bf16.mxu0 %v73833_v10  ;;  %v78280_v32 = vand.u32 4294901760, %v76284_v28 }
 0x6a2   :  { %71171 = vmatpush3.bf16.msra.mxu1 %v73869_v43  ;;  %67458 = vmatprep.mubr.f32.mxu1 %v76168_v15 }
 0x6a3   :  { %71173 = vmatprep.subr.bf16.mxu1 %v73833_v10  ;;  %v37641_v50 = vsub.f32 %v76284_v28, %v78280_v32 }
 0x6a5   :  { %v37642_v22 = vand.u32 4294901760, %v37641_v50 }
 0x6a6   :  { %v76290_v63 = vpop.f32.mrb[62].mxu0 }
 0x6a7   :  { %v76295_v38 = vpop.f32.mrb[63].mxu0  ;;  %67417 = vmatmul.mubr.f32.vlgmr.msra.gmra.mrb[72].mxu0 %v76172_v59 }
 0x6a8   :  { %v76299_v21 = vpop.f32.mrb[62].mxu1  ;;  %71151 = vmatpush3.bf16.msra.mxu0 %v73833_v10  ;;  %67423 = vmatprep.mubr.f32.mxu0 %v76165_v11  ;;  %v38139_v11 = vsub.f32 %v76280_v33, %v38138_v1 }
 0x6a9   :  { %78279 = vst [vmem:[#allocation97_spill] sm:$0xff] %v76299_v21  ;;  %v76308_v46 = vpop.f32.mrb[63].mxu1  ;;  %67459 = vmatmul.mubr.f32.vlgmr.msra.gmra.mrb[72].mxu1 %v76180_v26  ;;  %71177 = vmatprep.subr.bf16.mxu0 %v73833_v10 }
 0x6aa   :  { %71175 = vmatpush3.bf16.msra.mxu1 %v73833_v10  ;;  %67465 = vmatprep.mubr.f32.mxu1 %v76168_v15  ;;  %v38140_v21 = vand.u32 4294901760, %v38139_v11  ;;  %v38150_v15 = vand.u32 4294901760, %v38149_v45  ;;  %v73566_v45 = vld [vmem:[#allocation4 + $0x40] sm:$0xff] }
 0x6ab   :  { %71201 = vmatprep.subr.bf16.mxu1 %v73833_v10  ;;  %v36523_v50 = vmul.f32 %v73566_v45, %v73566_v45  ;;  %v78281_v45 = vand.u32 4294901760, %v76284_v28 }
 0x6af   :  { %67424 = vmatmul.mubr.f32.vlgmr.msra.gmra.mrb[72].mxu0 %v76172_v59  ;;  %v73568_v59 = vld [vmem:[#allocation4 + $0x48] sm:$0xff] }
 0x6b0   :  { %71179 = vmatpush3.bf16.msra.mxu0 %v73833_v10  ;;  %67472 = vmatprep.mubr.f32.mxu0 %v37632_v53  ;;  %v73567_v53 = vld [vmem:[#allocation4 + $0x50] sm:$0xff] }
 0x6b1   :  { %67466 = vmatmul.mubr.f32.vlgmr.msra.gmra.mrb[72].mxu1 %v76180_v26  ;;  %71181 = vmatprep.subr.bf16.mxu0 %v73851_v35  ;;  %v36524_v26 = vmul.f32 %v73568_v59, %v73568_v59 }
 0x6b2   :  { %71203 = vmatpush3.bf16.msra.mxu1 %v73833_v10  ;;  %67514 = vmatprep.mubr.f32.mxu1 %v38140_v21 }
 0x6b3   :  { %67473 = vmatmul.mubr.f32.vlgmr.msra.gmra.mrb[74].mxu0 %v37642_v22  ;;  %71205 = vmatprep.subr.bf16.mxu1 %v73851_v35  ;;  %v36525_v22 = vmul.f32 %v73567_v53, %v73567_v53 }
 0x6b4   :  { %71183 = vmatpush3.bf16.msra.mxu0 %v73851_v35  ;;  %67479 = vmatprep.mubr.f32.mxu0 %v76257_v36 }
 0x6b5   :  { %67515 = vmatmul.mubr.f32.vlgmr.msra.gmra.mrb[74].mxu1 %v38150_v15  ;;  %71185 = vmatprep.subr.bf16.mxu0 %v73854_v39  ;;  %v39080_v21 = vsel %vm124_vm0, %v36525_v22, 0 }
 0x6b6   :  { %71207 = vmatpush3.bf16.msra.mxu1 %v73851_v35  ;;  %67521 = vmatprep.mubr.f32.mxu1 %v76260_v2  ;;  %v76356_v11 = vand.u32 4294901760, %v39080_v21 }
 0x6b7   :  { %71209 = vmatprep.subr.bf16.mxu1 %v73854_v39 }
 0x6bb   :  { %67480 = vmatmul.mubr.f32.vlgmr.msra.gmra.mrb[74].mxu0 %v76265_v60 }
 0x6bc   :  { %71187 = vmatpush3.bf16.msra.mxu0 %v73854_v39  ;;  %67486 = vmatprep.mubr.f32.mxu0 %v76270_v55  ;;  %v38572_v55 = vsel %vm124_vm0, %v36523_v50, 0 }
 0x6bd   :  { %67522 = vmatmul.mubr.f32.vlgmr.msra.gmra.mrb[74].mxu1 %v76275_v56  ;;  %71189 = vmatprep.subr.bf16.mxu0 %v73833_v10  ;;  %v76353_v19 = vand.u32 4294901760, %v38572_v55 }
 0x6be   :  { %71211 = vmatpush3.bf16.msra.mxu1 %v73854_v39  ;;  %67528 = vmatprep.mubr.f32.mxu1 %v76280_v33  ;;  %v73569_v33 = vld [vmem:[#allocation4 + $0x58] sm:$0xff] }
 0x6bf   :  { %71213 = vmatprep.subr.bf16.mxu1 %v73833_v10  ;;  %v36526_v32 = vmul.f32 %v73569_v33, %v73569_v33 }
 0x6c1   :  { %v39083_v15 = vsel %vm124_vm0, %v36526_v32, 0 }
 0x6c2   :  { %v76371_v53 = vand.u32 4294901760, %v39083_v15 }
 0x6c3   :  { %67487 = vmatmul.mubr.f32.vlgmr.msra.gmra.mrb[74].mxu0 %v76284_v28  ;;  %v76376_v28 = vsub.f32 %v39080_v21, %v76356_v11 }
 0x6c4   :  { %71191 = vmatpush3.bf16.msra.mxu0 %v73833_v10  ;;  %67493 = vmatprep.mubr.f32.mxu0 %v37630_v24  ;;  %v38575_v24 = vsel %vm124_vm0, %v36524_v26, 0 }
 0x6c5   :  { %67529 = vmatmul.mubr.f32.vlgmr.msra.gmra.mrb[74].mxu1 %v76288_v31  ;;  %71193 = vmatprep.subr.bf16.mxu0 %v73869_v43  ;;  %v76361_v50 = vand.u32 4294901760, %v38575_v24  ;;  %v76384_v31 = vsub.f32 %v39083_v15, %v76371_v53  ;;  %v39154_v26 = vand.u32 4294901760, %v76376_v28 }
 0x6c6   :  { %71215 = vmatpush3.bf16.msra.mxu1 %v73833_v10  ;;  %67535 = vmatprep.mubr.f32.mxu1 %v38138_v1  ;;  %v76366_v1 = vsub.f32 %v38572_v55, %v76353_v19 }
 0x6c7   :  { %71217 = vmatprep.subr.bf16.mxu1 %v73869_v43  ;;  %v76380_v22 = vsub.f32 %v38575_v24, %v76361_v50  ;;  %v39164_v32 = vand.u32 4294901760, %v76384_v31 }
 0x6c8   :  { %v38646_v59 = vand.u32 4294901760, %v76366_v1 }
 0x6c9   :  { %v39165_v16 = vsub.f32 %v76384_v31, %v39164_v32 }
 0x6ca   :  { %v38647_v15 = vsub.f32 %v76366_v1, %v38646_v59 }
 0x6cb   :  { %67494 = vmatmul.mubr.f32.vlgmr.msra.gmra.mrb[74].mxu0 %v78281_v45  ;;  %v78284_v45 = vand.u32 4294901760, %v76380_v22 }
 0x6cc   :  { %71195 = vmatpush3.bf16.msra.mxu0 %v73869_v43  ;;  %67500 = vmatprep.mubr.f32.mxu0 %v76257_v36 }
 0x6cd   :  { %67536 = vmatmul.mubr.f32.vlgmr.msra.gmra.mrb[74].mxu1 %v38148_v0  ;;  %71197 = vmatprep.subr.bf16.mxu0 %v73833_v10  ;;  %v38657_v9 = vsub.f32 %v76380_v22, %v78284_v45 }
 0x6ce   :  { %71219 = vmatpush3.bf16.msra.mxu1 %v73869_v43  ;;  %67542 = vmatprep.mubr.f32.mxu1 %v76260_v2 }
 0x6cf   :  { %71221 = vmatprep.subr.bf16.mxu1 %v73833_v10  ;;  %v38658_v24 = vand.u32 4294901760, %v38657_v9  ;;  %v73570_v9 = vld [vmem:[#allocation4 + $0x60] sm:$0xff] }
 0x6d2   :  { %v76386_v0 = vpop.f32.mrb[64].mxu0 }
 0x6d3   :  { %v76391_v33 = vpop.f32.mrb[65].mxu0  ;;  %67501 = vmatmul.mubr.f32.vlgmr.msra.gmra.mrb[74].mxu0 %v76265_v60 }
 0x6d4   :  { %78282 = vst [vmem:[#allocation98_spill] sm:$0xff] %v76391_v33  ;;  %v76395_v21 = vpop.f32.mrb[64].mxu1  ;;  %71199 = vmatpush3.bf16.msra.mxu0 %v73833_v10  ;;  %67507 = vmatprep.mubr.f32.mxu0 %v76257_v36  ;;  %v39155_v36 = vsub.f32 %v76376_v28, %v39154_v26 }
 0x6d5   :  { %78283 = vst [vmem:[#allocation99_spill] sm:$0xff] %v76395_v21  ;;  %v76404_v55 = vpop.f32.mrb[65].mxu1  ;;  %67543 = vmatmul.mubr.f32.vlgmr.msra.gmra.mrb[74].mxu1 %v76275_v56  ;;  %71225 = vmatprep.subr.bf16.mxu0 %v73833_v10  ;;  %v38648_v21 = vand.u32 4294901760, %v38647_v15 }
 0x6d6   :  { %71223 = vmatpush3.bf16.msra.mxu1 %v73833_v10  ;;  %67549 = vmatprep.mubr.f32.mxu1 %v76260_v2  ;;  %v39156_v33 = vand.u32 4294901760, %v39155_v36  ;;  %v39166_v2 = vand.u32 4294901760, %v39165_v16  ;;  %v36527_v16 = vmul.f32 %v73570_v9, %v73570_v9  ;;  %v78285_v9 = vand.u32 4294901760, %v76380_v22 }
 0x6d7   :  { %71249 = vmatprep.subr.bf16.mxu1 %v73833_v10 }
 0x6db   :  { %67508 = vmatmul.mubr.f32.vlgmr.msra.gmra.mrb[74].mxu0 %v76265_v60  ;;  %v73571_v60 = vld [vmem:[#allocation4 + $0x70] sm:$0xff] }
 0x6dc   :  { %71227 = vmatpush3.bf16.msra.mxu0 %v73833_v10  ;;  %67556 = vmatprep.mubr.f32.mxu0 %v38648_v21  ;;  %v39588_v21 = vsel %vm124_vm0, %v36527_v16, 0 }
 0x6dd   :  { %67550 = vmatmul.mubr.f32.vlgmr.msra.gmra.mrb[74].mxu1 %v76275_v56  ;;  %71229 = vmatprep.subr.bf16.mxu0 %v73851_v35  ;;  %v36529_v56 = vmul.f32 %v73571_v60, %v73571_v60  ;;  %v76449_v45 = vand.u32 4294901760, %v39588_v21 }
 0x6de   :  { %71251 = vmatpush3.bf16.msra.mxu1 %v73833_v10  ;;  %67598 = vmatprep.mubr.f32.mxu1 %v39156_v33 }
 0x6df   :  { %67557 = vmatmul.mubr.f32.vlgmr.msra.gmra.mrb[76].mxu0 %v38658_v24  ;;  %71253 = vmatprep.subr.bf16.mxu1 %v73851_v35  ;;  %v40096_v15 = vsel %vm124_vm0, %v36529_v56, 0 }
 0x6e0   :  { %71231 = vmatpush3.bf16.msra.mxu0 %v73851_v35  ;;  %67563 = vmatprep.mubr.f32.mxu0 %v76353_v19  ;;  %v76452_v36 = vand.u32 4294901760, %v40096_v15 }
 0x6e1   :  { %67599 = vmatmul.mubr.f32.vlgmr.msra.gmra.mrb[76].mxu1 %v39166_v2  ;;  %71233 = vmatprep.subr.bf16.mxu0 %v73854_v39 }
 0x6e2   :  { %71255 = vmatpush3.bf16.msra.mxu1 %v73851_v35  ;;  %67605 = vmatprep.mubr.f32.mxu1 %v76356_v11 }
 0x6e3   :  { %71257 = vmatprep.subr.bf16.mxu1 %v73854_v39 }
 0x6e7   :  { %67564 = vmatmul.mubr.f32.vlgmr.msra.gmra.mrb[76].mxu0 %v76361_v50 }
 0x6e8   :  { %71235 = vmatpush3.bf16.msra.mxu0 %v73854_v39  ;;  %67570 = vmatprep.mubr.f32.mxu0 %v76366_v1  ;;  %v73572_v1 = vld [vmem:[#allocation4 + $0x68] sm:$0xff] }
 0x6e9   :  { %67606 = vmatmul.mubr.f32.vlgmr.msra.gmra.mrb[76].mxu1 %v76371_v53  ;;  %71237 = vmatprep.subr.bf16.mxu0 %v73833_v10  ;;  %v36528_v33 = vmul.f32 %v73572_v1, %v73572_v1 }
 0x6ea   :  { %71259 = vmatpush3.bf16.msra.mxu1 %v73854_v39  ;;  %67612 = vmatprep.mubr.f32.mxu1 %v76376_v28  ;;  %v73573_v28 = vld [vmem:[#allocation4 + $0x78] sm:$0xff] }
 0x6eb   :  { %71261 = vmatprep.subr.bf16.mxu1 %v73833_v10  ;;  %v36530_v24 = vmul.f32 %v73573_v28, %v73573_v28 }
 0x6ed   :  { %v40099_v2 = vsel %vm124_vm0, %v36530_v24, 0 }
 0x6ee   :  { %v76467_v60 = vand.u32 4294901760, %v40099_v2 }
 0x6ef   :  { %67571 = vmatmul.mubr.f32.vlgmr.msra.gmra.mrb[76].mxu0 %v76380_v22  ;;  %v76472_v22 = vsub.f32 %v40096_v15, %v76452_v36 }
 0x6f0   :  { %71239 = vmatpush3.bf16.msra.mxu0 %v73833_v10  ;;  %67577 = vmatprep.mubr.f32.mxu0 %v38646_v59  ;;  %v39591_v59 = vsel %vm124_vm0, %v36528_v33, 0 }
 0x6f1   :  { %67613 = vmatmul.mubr.f32.vlgmr.msra.gmra.mrb[76].mxu1 %v76384_v31  ;;  %71241 = vmatprep.subr.bf16.mxu0 %v73869_v43  ;;  %v76457_v16 = vand.u32 4294901760, %v39591_v59  ;;  %v76480_v31 = vsub.f32 %v40099_v2, %v76467_v60  ;;  %v40170_v33 = vand.u32 4294901760, %v76472_v22 }
 0x6f2   :  { %71263 = vmatpush3.bf16.msra.mxu1 %v73833_v10  ;;  %67619 = vmatprep.mubr.f32.mxu1 %v39154_v26  ;;  %v76462_v26 = vsub.f32 %v39588_v21, %v76449_v45 }
 0x6f3   :  { %71265 = vmatprep.subr.bf16.mxu1 %v73869_v43  ;;  %v76476_v56 = vsub.f32 %v39591_v59, %v76457_v16  ;;  %v40180_v24 = vand.u32 4294901760, %v76480_v31 }
 0x6f4   :  { %v39662_v1 = vand.u32 4294901760, %v76462_v26 }
 0x6f5   :  { %v40181_v57 = vsub.f32 %v76480_v31, %v40180_v24 }
 0x6f6   :  { %v39663_v2 = vsub.f32 %v76462_v26, %v39662_v1 }
 0x6f7   :  { %67578 = vmatmul.mubr.f32.vlgmr.msra.gmra.mrb[76].mxu0 %v78285_v9  ;;  %v78288_v9 = vand.u32 4294901760, %v76476_v56 }
 0x6f8   :  { %71243 = vmatpush3.bf16.msra.mxu0 %v73869_v43  ;;  %67584 = vmatprep.mubr.f32.mxu0 %v76353_v19 }
 0x6f9   :  { %67620 = vmatmul.mubr.f32.vlgmr.msra.gmra.mrb[76].mxu1 %v39164_v32  ;;  %71245 = vmatprep.subr.bf16.mxu0 %v73833_v10  ;;  %v39673_v37 = vsub.f32 %v76476_v56, %v78288_v9 }
 0x6fa   :  { %71267 = vmatpush3.bf16.msra.mxu1 %v73869_v43  ;;  %67626 = vmatprep.mubr.f32.mxu1 %v76356_v11 }
 0x6fb   :  { %71269 = vmatprep.subr.bf16.mxu1 %v73833_v10  ;;  %v39674_v59 = vand.u32 4294901760, %v39673_v37  ;;  %v73574_v37 = vld [vmem:[#allocation4 + $0x80] sm:$0xff] }
 0x6fe   :  { %v76482_v32 = vpop.f32.mrb[66].mxu0 }
 0x6ff   :  { %v76487_v28 = vpop.f32.mrb[67].mxu0  ;;  %67585 = vmatmul.mubr.f32.vlgmr.msra.gmra.mrb[76].mxu0 %v76361_v50 }
 0x700   :  { %78286 = vst [vmem:[#allocation100_spill] sm:$0xff] %v76487_v28  ;;  %v76491_v15 = vpop.f32.mrb[66].mxu1  ;;  %71247 = vmatpush3.bf16.msra.mxu0 %v73833_v10  ;;  %67591 = vmatprep.mubr.f32.mxu0 %v76353_v19  ;;  %v40171_v19 = vsub.f32 %v76472_v22, %v40170_v33 }
 0x701   :  { %78287 = vst [vmem:[#allocation101_spill] sm:$0xff] %v76491_v15  ;;  %v76500_v21 = vpop.f32.mrb[67].mxu1  ;;  %67627 = vmatmul.mubr.f32.vlgmr.msra.gmra.mrb[76].mxu1 %v76371_v53  ;;  %71273 = vmatprep.subr.bf16.mxu0 %v73833_v10  ;;  %v39664_v15 = vand.u32 4294901760, %v39663_v2 }
 0x702   :  { %71271 = vmatpush3.bf16.msra.mxu1 %v73833_v10  ;;  %67633 = vmatprep.mubr.f32.mxu1 %v76356_v11  ;;  %v40172_v28 = vand.u32 4294901760, %v40171_v19  ;;  %v40182_v11 = vand.u32 4294901760, %v40181_v57  ;;  %v36531_v57 = vmul.f32 %v73574_v37, %v73574_v37  ;;  %v78289_v37 = vand.u32 4294901760, %v76476_v56 }
 0x703   :  { %71297 = vmatprep.subr.bf16.mxu1 %v73833_v10 }
 0x707   :  { %67592 = vmatmul.mubr.f32.vlgmr.msra.gmra.mrb[76].mxu0 %v76361_v50  ;;  %v73575_v50 = vld [vmem:[#allocation4 + $0x90] sm:$0xff] }
 0x708   :  { %71275 = vmatpush3.bf16.msra.mxu0 %v73833_v10  ;;  %67640 = vmatprep.mubr.f32.mxu0 %v39664_v15  ;;  %v40604_v15 = vsel %vm124_vm0, %v36531_v57, 0 }
 0x709   :  { %67634 = vmatmul.mubr.f32.vlgmr.msra.gmra.mrb[76].mxu1 %v76371_v53  ;;  %71277 = vmatprep.subr.bf16.mxu0 %v73851_v35  ;;  %v36533_v53 = vmul.f32 %v73575_v50, %v73575_v50  ;;  %v76545_v9 = vand.u32 4294901760, %v40604_v15 }
 0x70a   :  { %71299 = vmatpush3.bf16.msra.mxu1 %v73833_v10  ;;  %67682 = vmatprep.mubr.f32.mxu1 %v40172_v28 }
 0x70b   :  { %67641 = vmatmul.mubr.f32.vlgmr.msra.gmra.mrb[78].mxu0 %v39674_v59  ;;  %71301 = vmatprep.subr.bf16.mxu1 %v73851_v35  ;;  %v41112_v2 = vsel %vm124_vm0, %v36533_v53, 0 }
 0x70c   :  { %71279 = vmatpush3.bf16.msra.mxu0 %v73851_v35  ;;  %67647 = vmatprep.mubr.f32.mxu0 %v76449_v45  ;;  %v76548_v19 = vand.u32 4294901760, %v41112_v2 }
 0x70d   :  { %67683 = vmatmul.mubr.f32.vlgmr.msra.gmra.mrb[78].mxu1 %v40182_v11  ;;  %71281 = vmatprep.subr.bf16.mxu0 %v73854_v39 }
 0x70e   :  { %71303 = vmatpush3.bf16.msra.mxu1 %v73851_v35  ;;  %67689 = vmatprep.mubr.f32.mxu1 %v76452_v36 }
 0x70f   :  { %71305 = vmatprep.subr.bf16.mxu1 %v73854_v39 }
 0x713   :  { %67648 = vmatmul.mubr.f32.vlgmr.msra.gmra.mrb[78].mxu0 %v76457_v16 }
 0x714   :  { %71283 = vmatpush3.bf16.msra.mxu0 %v73854_v39  ;;  %67654 = vmatprep.mubr.f32.mxu0 %v76462_v26  ;;  %v73576_v26 = vld [vmem:[#allocation4 + $0x88] sm:$0xff] }
 0x715   :  { %67690 = vmatmul.mubr.f32.vlgmr.msra.gmra.mrb[78].mxu1 %v76467_v60  ;;  %71285 = vmatprep.subr.bf16.mxu0 %v73833_v10  ;;  %v36532_v28 = vmul.f32 %v73576_v26, %v73576_v26 }
 0x716   :  { %71307 = vmatpush3.bf16.msra.mxu1 %v73854_v39  ;;  %67696 = vmatprep.mubr.f32.mxu1 %v76472_v22  ;;  %v73577_v22 = vld [vmem:[#allocation4 + $0x98] sm:$0xff] }
 0x717   :  { %71309 = vmatprep.subr.bf16.mxu1 %v73833_v10  ;;  %v36534_v59 = vmul.f32 %v73577_v22, %v73577_v22 }
 0x719   :  { %v41115_v11 = vsel %vm124_vm0, %v36534_v59, 0 }
 0x71a   :  { %v76563_v50 = vand.u32 4294901760, %v41115_v11 }
 0x71b   :  { %67655 = vmatmul.mubr.f32.vlgmr.msra.gmra.mrb[78].mxu0 %v76476_v56  ;;  %v76568_v56 = vsub.f32 %v41112_v2, %v76548_v19 }
 0x71c   :  { %71287 = vmatpush3.bf16.msra.mxu0 %v73833_v10  ;;  %67661 = vmatprep.mubr.f32.mxu0 %v39662_v1  ;;  %v40607_v1 = vsel %vm124_vm0, %v36532_v28, 0 }
 0x71d   :  { %67697 = vmatmul.mubr.f32.vlgmr.msra.gmra.mrb[78].mxu1 %v76480_v31  ;;  %71289 = vmatprep.subr.bf16.mxu0 %v73869_v43  ;;  %v76553_v57 = vand.u32 4294901760, %v40607_v1  ;;  %v76576_v31 = vsub.f32 %v41115_v11, %v76563_v50  ;;  %v41186_v28 = vand.u32 4294901760, %v76568_v56 }
 0x71e   :  { %71311 = vmatpush3.bf16.msra.mxu1 %v73833_v10  ;;  %67703 = vmatprep.mubr.f32.mxu1 %v40170_v33  ;;  %v76558_v33 = vsub.f32 %v40604_v15, %v76545_v9 }
 0x71f   :  { %71313 = vmatprep.subr.bf16.mxu1 %v73869_v43  ;;  %v76572_v53 = vsub.f32 %v40607_v1, %v76553_v57  ;;  %v41196_v59 = vand.u32 4294901760, %v76576_v31 }
 0x720   :  { %v40678_v26 = vand.u32 4294901760, %v76558_v33 }
 0x721   :  { %v41197_v42 = vsub.f32 %v76576_v31, %v41196_v59 }
 0x722   :  { %v40679_v11 = vsub.f32 %v76558_v33, %v40678_v26 }
 0x723   :  { %67662 = vmatmul.mubr.f32.vlgmr.msra.gmra.mrb[78].mxu0 %v78289_v37  ;;  %v78292_v37 = vand.u32 4294901760, %v76572_v53 }
 0x724   :  { %71291 = vmatpush3.bf16.msra.mxu0 %v73869_v43  ;;  %67668 = vmatprep.mubr.f32.mxu0 %v76449_v45 }
 0x725   :  { %67704 = vmatmul.mubr.f32.vlgmr.msra.gmra.mrb[78].mxu1 %v40180_v24  ;;  %71293 = vmatprep.subr.bf16.mxu0 %v73833_v10  ;;  %v40689_v61 = vsub.f32 %v76572_v53, %v78292_v37 }
 0x726   :  { %71315 = vmatpush3.bf16.msra.mxu1 %v73869_v43  ;;  %67710 = vmatprep.mubr.f32.mxu1 %v76452_v36 }
 0x727   :  { %71317 = vmatprep.subr.bf16.mxu1 %v73833_v10  ;;  %v40690_v1 = vand.u32 4294901760, %v40689_v61  ;;  %v73578_v61 = vld [vmem:[#allocation4 + $0xa0] sm:$0xff] }
 0x72a   :  { %v76578_v24 = vpop.f32.mrb[68].mxu0 }
 0x72b   :  { %v76583_v22 = vpop.f32.mrb[69].mxu0  ;;  %67669 = vmatmul.mubr.f32.vlgmr.msra.gmra.mrb[78].mxu0 %v76457_v16 }
 0x72c   :  { %78290 = vst [vmem:[#allocation102_spill] sm:$0xff] %v76583_v22  ;;  %v76587_v2 = vpop.f32.mrb[68].mxu1  ;;  %71295 = vmatpush3.bf16.msra.mxu0 %v73833_v10  ;;  %67675 = vmatprep.mubr.f32.mxu0 %v76449_v45  ;;  %v41187_v45 = vsub.f32 %v76568_v56, %v41186_v28 }
 0x72d   :  { %78291 = vst [vmem:[#allocation103_spill] sm:$0xff] %v76587_v2  ;;  %v76596_v15 = vpop.f32.mrb[69].mxu1  ;;  %67711 = vmatmul.mubr.f32.vlgmr.msra.gmra.mrb[78].mxu1 %v76467_v60  ;;  %71321 = vmatprep.subr.bf16.mxu0 %v73833_v10  ;;  %v40680_v2 = vand.u32 4294901760, %v40679_v11 }
 0x72e   :  { %71319 = vmatpush3.bf16.msra.mxu1 %v73833_v10  ;;  %67717 = vmatprep.mubr.f32.mxu1 %v76452_v36  ;;  %v41188_v22 = vand.u32 4294901760, %v41187_v45  ;;  %v41198_v36 = vand.u32 4294901760, %v41197_v42  ;;  %v36535_v42 = vmul.f32 %v73578_v61, %v73578_v61  ;;  %v78293_v61 = vand.u32 4294901760, %v76572_v53 }
 0x72f   :  { %71345 = vmatprep.subr.bf16.mxu1 %v73833_v10 }
 0x733   :  { %67676 = vmatmul.mubr.f32.vlgmr.msra.gmra.mrb[78].mxu0 %v76457_v16  ;;  %v73579_v16 = vld [vmem:[#allocation4 + $0xb0] sm:$0xff] }
 0x734   :  { %71323 = vmatpush3.bf16.msra.mxu0 %v73833_v10  ;;  %67724 = vmatprep.mubr.f32.mxu0 %v40680_v2  ;;  %v41620_v2 = vsel %vm124_vm0, %v36535_v42, 0 }
 0x735   :  { %67718 = vmatmul.mubr.f32.vlgmr.msra.gmra.mrb[78].mxu1 %v76467_v60  ;;  %71325 = vmatprep.subr.bf16.mxu0 %v73851_v35  ;;  %v36537_v60 = vmul.f32 %v73579_v16, %v73579_v16  ;;  %v76641_v37 = vand.u32 4294901760, %v41620_v2 }
 0x736   :  { %71347 = vmatpush3.bf16.msra.mxu1 %v73833_v10  ;;  %67766 = vmatprep.mubr.f32.mxu1 %v41188_v22 }
 0x737   :  { %67725 = vmatmul.mubr.f32.vlgmr.msra.gmra.mrb[80].mxu0 %v40690_v1  ;;  %71349 = vmatprep.subr.bf16.mxu1 %v73851_v35  ;;  %v42128_v11 = vsel %vm124_vm0, %v36537_v60, 0 }
 0x738   :  { %71327 = vmatpush3.bf16.msra.mxu0 %v73851_v35  ;;  %67731 = vmatprep.mubr.f32.mxu0 %v76545_v9  ;;  %v76644_v45 = vand.u32 4294901760, %v42128_v11 }
 0x739   :  { %67767 = vmatmul.mubr.f32.vlgmr.msra.gmra.mrb[80].mxu1 %v41198_v36  ;;  %71329 = vmatprep.subr.bf16.mxu0 %v73854_v39 }
 0x73a   :  { %71351 = vmatpush3.bf16.msra.mxu1 %v73851_v35  ;;  %67773 = vmatprep.mubr.f32.mxu1 %v76548_v19 }
 0x73b   :  { %71353 = vmatprep.subr.bf16.mxu1 %v73854_v39 }
 0x73f   :  { %67732 = vmatmul.mubr.f32.vlgmr.msra.gmra.mrb[80].mxu0 %v76553_v57 }
 0x740   :  { %71331 = vmatpush3.bf16.msra.mxu0 %v73854_v39  ;;  %67738 = vmatprep.mubr.f32.mxu0 %v76558_v33  ;;  %v73580_v33 = vld [vmem:[#allocation4 + $0xa8] sm:$0xff] }
 0x741   :  { %67774 = vmatmul.mubr.f32.vlgmr.msra.gmra.mrb[80].mxu1 %v76563_v50  ;;  %71333 = vmatprep.subr.bf16.mxu0 %v73833_v10  ;;  %v36536_v22 = vmul.f32 %v73580_v33, %v73580_v33 }
 0x742   :  { %71355 = vmatpush3.bf16.msra.mxu1 %v73854_v39  ;;  %67780 = vmatprep.mubr.f32.mxu1 %v76568_v56  ;;  %v73581_v56 = vld [vmem:[#allocation4 + $0xb8] sm:$0xff] }
 0x743   :  { %71357 = vmatprep.subr.bf16.mxu1 %v73833_v10  ;;  %v36538_v1 = vmul.f32 %v73581_v56, %v73581_v56 }
 0x745   :  { %v42131_v36 = vsel %vm124_vm0, %v36538_v1, 0 }
 0x746   :  { %v76659_v16 = vand.u32 4294901760, %v42131_v36 }
 0x747   :  { %67739 = vmatmul.mubr.f32.vlgmr.msra.gmra.mrb[80].mxu0 %v76572_v53  ;;  %v42201_v53 = vsub.f32 %v42128_v11, %v76644_v45 }
 0x748   :  { %71335 = vmatpush3.bf16.msra.mxu0 %v73833_v10  ;;  %67745 = vmatprep.mubr.f32.mxu0 %v40678_v26  ;;  %v41623_v26 = vsel %vm124_vm0, %v36536_v22, 0  ;;  %v76668_v22 = vsub.f32 %v42131_v36, %v76659_v16 }
 0x749   :  { %67781 = vmatmul.mubr.f32.vlgmr.msra.gmra.mrb[80].mxu1 %v76576_v31  ;;  %71337 = vmatprep.subr.bf16.mxu0 %v73869_v43  ;;  %v76649_v42 = vand.u32 4294901760, %v41623_v26 }
 0x74a   :  { %71359 = vmatpush3.bf16.msra.mxu1 %v73833_v10  ;;  %67787 = vmatprep.mubr.f32.mxu1 %v41186_v28  ;;  %v76654_v28 = vsub.f32 %v41620_v2, %v76641_v37  ;;  %v42212_v54 = vand.u32 4294901760, %v76668_v22 }
 0x74b   :  { %71361 = vmatprep.subr.bf16.mxu1 %v73869_v43  ;;  %v41703_v60 = vsub.f32 %v41623_v26, %v76649_v42 }
 0x74c   :  { %v41694_v33 = vand.u32 4294901760, %v76654_v28  ;;  %v42213_v49 = vsub.f32 %v76668_v22, %v42212_v54 }
 0x74d   :  { %v41704_v1 = vand.u32 4294901760, %v41703_v60 }
 0x74e   :  { %v41695_v36 = vsub.f32 %v76654_v28, %v41694_v33  ;;  %v42214_v26 = vand.u32 4294901760, %v42213_v49 }
 0x74f   :  { %67746 = vmatmul.mubr.f32.vlgmr.msra.gmra.mrb[80].mxu0 %v78293_v61  ;;  %v41705_v29 = vsub.f32 %v41703_v60, %v41704_v1 }
 0x750   :  { %71339 = vmatpush3.bf16.msra.mxu0 %v73869_v43  ;;  %67752 = vmatprep.mubr.f32.mxu0 %v76545_v9  ;;  %v41696_v61 = vand.u32 4294901760, %v41695_v36 }
 0x751   :  { %67788 = vmatmul.mubr.f32.vlgmr.msra.gmra.mrb[80].mxu1 %v41196_v59  ;;  %71341 = vmatprep.subr.bf16.mxu0 %v73833_v10  ;;  %v42202_v59 = vand.u32 4294901760, %v42201_v53 }
 0x752   :  { %71363 = vmatpush3.bf16.msra.mxu1 %v73869_v43  ;;  %67794 = vmatprep.mubr.f32.mxu1 %v76548_v19 }
 0x753   :  { %71365 = vmatprep.subr.bf16.mxu1 %v73833_v10 }
 0x756   :  { %v76670_v31 = vpop.f32.mrb[70].mxu0 }
 0x757   :  { %v76674_v56 = vpop.f32.mrb[71].mxu0  ;;  %67753 = vmatmul.mubr.f32.vlgmr.msra.gmra.mrb[80].mxu0 %v76553_v57 }
 0x758   :  { %78294 = vst [vmem:[#allocation104_spill] sm:$0xff] %v76674_v56  ;;  %v76677_v11 = vpop.f32.mrb[70].mxu1  ;;  %71343 = vmatpush3.bf16.msra.mxu0 %v73833_v10  ;;  %67759 = vmatprep.mubr.f32.mxu0 %v76545_v9  ;;  %v42203_v9 = vsub.f32 %v42201_v53, %v42202_v59  ;;  %v41706_v56 = vand.u32 4294901760, %v41705_v29 }
 0x759   :  { %78295 = vst [vmem:[#allocation105_spill] sm:$0xff] %v76677_v11  ;;  %v76686_v2 = vpop.f32.mrb[71].mxu1  ;;  %67795 = vmatmul.mubr.f32.vlgmr.msra.gmra.mrb[80].mxu1 %v76563_v50  ;;  %71369 = vmatprep.subr.bf16.mxu0 %v73833_v10 }
 0x75a   :  { %71367 = vmatpush3.bf16.msra.mxu1 %v73833_v10  ;;  %67801 = vmatprep.mubr.f32.mxu1 %v76548_v19  ;;  %v42204_v11 = vand.u32 4294901760, %v42203_v9 }
 0x75b   :  { %71393 = vmatprep.subr.bf16.mxu1 %v73833_v10 }
 0x75f   :  { %67760 = vmatmul.mubr.f32.vlgmr.msra.gmra.mrb[80].mxu0 %v76553_v57 }
 0x760   :  { %71371 = vmatpush3.bf16.msra.mxu0 %v73833_v10  ;;  %67808 = vmatprep.mubr.f32.mxu0 %v41696_v61 }
 0x761   :  { %67802 = vmatmul.mubr.f32.vlgmr.msra.gmra.mrb[80].mxu1 %v76563_v50  ;;  %71373 = vmatprep.subr.bf16.mxu0 %v73851_v35 }
 0x762   :  { %71395 = vmatpush3.bf16.msra.mxu1 %v73833_v10  ;;  %67850 = vmatprep.mubr.f32.mxu1 %v42204_v11 }
 0x763   :  { %67809 = vmatmul.mubr.f32.vlgmr.msra.gmra.mrb[82].mxu0 %v41706_v56  ;;  %71397 = vmatprep.subr.bf16.mxu1 %v73851_v35 }
 0x764   :  { %71375 = vmatpush3.bf16.msra.mxu0 %v73851_v35  ;;  %67815 = vmatprep.mubr.f32.mxu0 %v76641_v37 }
 0x765   :  { %67851 = vmatmul.mubr.f32.vlgmr.msra.gmra.mrb[82].mxu1 %v42214_v26  ;;  %71377 = vmatprep.subr.bf16.mxu0 %v73854_v39 }
 0x766   :  { %71399 = vmatpush3.bf16.msra.mxu1 %v73851_v35  ;;  %67857 = vmatprep.mubr.f32.mxu1 %v76644_v45 }
 0x767   :  { %71401 = vmatprep.subr.bf16.mxu1 %v73854_v39 }
 0x76b   :  { %67816 = vmatmul.mubr.f32.vlgmr.msra.gmra.mrb[82].mxu0 %v76649_v42 }
 0x76c   :  { %71379 = vmatpush3.bf16.msra.mxu0 %v73854_v39  ;;  %67822 = vmatprep.mubr.f32.mxu0 %v76654_v28 }
 0x76d   :  { %67858 = vmatmul.mubr.f32.vlgmr.msra.gmra.mrb[82].mxu1 %v76659_v16  ;;  %71381 = vmatprep.subr.bf16.mxu0 %v73833_v10 }
 0x76e   :  { %71403 = vmatpush3.bf16.msra.mxu1 %v73854_v39  ;;  %67864 = vmatprep.mubr.f32.mxu1 %v42201_v53 }
 0x76f   :  { %71405 = vmatprep.subr.bf16.mxu1 %v73833_v10 }
 0x773   :  { %67823 = vmatmul.mubr.f32.vlgmr.msra.gmra.mrb[82].mxu0 %v41703_v60 }
 0x774   :  { %71383 = vmatpush3.bf16.msra.mxu0 %v73833_v10  ;;  %67829 = vmatprep.mubr.f32.mxu0 %v41694_v33 }
 0x775   :  { %67865 = vmatmul.mubr.f32.vlgmr.msra.gmra.mrb[82].mxu1 %v76668_v22  ;;  %71385 = vmatprep.subr.bf16.mxu0 %v73869_v43 }
 0x776   :  { %71407 = vmatpush3.bf16.msra.mxu1 %v73833_v10  ;;  %67871 = vmatprep.mubr.f32.mxu1 %v42202_v59 }
 0x777   :  { %71409 = vmatprep.subr.bf16.mxu1 %v73869_v43 }
 0x77b   :  { %67830 = vmatmul.mubr.f32.vlgmr.msra.gmra.mrb[82].mxu0 %v41704_v1 }
 0x77c   :  { %71387 = vmatpush3.bf16.msra.mxu0 %v73869_v43  ;;  %67836 = vmatprep.mubr.f32.mxu0 %v76641_v37 }
 0x77d   :  { %67872 = vmatmul.mubr.f32.vlgmr.msra.gmra.mrb[82].mxu1 %v42212_v54  ;;  %71389 = vmatprep.subr.bf16.mxu0 %v73833_v10 }
 0x77e   :  { %71411 = vmatpush3.bf16.msra.mxu1 %v73869_v43  ;;  %67878 = vmatprep.mubr.f32.mxu1 %v76644_v45 }
 0x77f   :  { %71413 = vmatprep.subr.bf16.mxu1 %v73833_v10 }
 0x782   :  { %v67425_v49 = vpop.f32.mrb[72].mxu0 }
 0x783   :  { %v42639_v29 = vand.u32 4294901760, %v67425_v49  ;;  %v37037_v19 = vpop.f32.mrb[73].mxu0  ;;  %67837 = vmatmul.mubr.f32.vlgmr.msra.gmra.mrb[82].mxu0 %v76649_v42 }
 0x784   :  { %v67467_v57 = vpop.f32.mrb[72].mxu1  ;;  %v42636_v50 = vand.u32 4294901760, %v37037_v19  ;;  %71391 = vmatpush3.bf16.msra.mxu0 %v73833_v10  ;;  %67843 = vmatprep.mubr.f32.mxu0 %v76641_v37 }
 0x785   :  { %v42731_v54 = vsub.f32 %v67425_v49, %v42639_v29  ;;  %v43141_v28 = vand.u32 4294901760, %v67467_v57  ;;  %v37545_v53 = vpop.f32.mrb[73].mxu1  ;;  %67879 = vmatmul.mubr.f32.vlgmr.msra.gmra.mrb[82].mxu1 %v76659_v16 }
 0x786   :  { %v76731_v60 = vpack.c.bf16 %v42639_v29, %v42636_v50  ;;  %v42724_v33 = vsub.f32 %v37037_v19, %v42636_v50  ;;  %v43138_v22 = vand.u32 4294901760, %v37545_v53  ;;  %71415 = vmatpush3.bf16.msra.mxu1 %v73833_v10  ;;  %67885 = vmatprep.mubr.f32.mxu1 %v76644_v45 }
 0x787   :  { %v42732_v59 = vand.u32 4294901760, %v42731_v54  ;;  %v43233_v56 = vsub.f32 %v67467_v57, %v43141_v28 }
 0x788   :  { %v42725_v1 = vand.u32 4294901760, %v42724_v33  ;;  %v76735_v11 = vpack.c.bf16 %v43141_v28, %v43138_v22  ;;  %v43226_v26 = vsub.f32 %v37545_v53, %v43138_v22  ;;  %71417 = vmatprep.subr.bf16.mxu0 %v76731_v60  ;;  %v71424_v37 = vpack.c.bf16 %v42731_v54, %v42724_v33 }
 0x789   :  { %v42733_v36 = vsub.f32 %v42731_v54, %v42732_v59  ;;  %v43234_v61 = vand.u32 4294901760, %v43233_v56 }
 0x78a   :  { %v42726_v9 = vsub.f32 %v42724_v33, %v42725_v1  ;;  %v43227_v49 = vand.u32 4294901760, %v43226_v26  ;;  %71441 = vmatprep.subr.bf16.mxu1 %v76735_v11  ;;  %v71448_v29 = vpack.c.bf16 %v43233_v56, %v43226_v26  ;;  %v71432_v19 = vpack.c.bf16 %v42732_v59, %v42725_v1 }
 0x78b   :  { %v43235_v50 = vsub.f32 %v43233_v56, %v43234_v61  ;;  %67844 = vmatmul.mubr.f32.vlgmr.msra.gmra.mrb[82].mxu0 %v76649_v42  ;;  %v42734_v45 = vand.u32 4294901760, %v42733_v36 }
 0x78c   :  { %v43228_v57 = vsub.f32 %v43226_v26, %v43227_v49  ;;  %71419 = vmatpush3.bf16.msra.mxu0 %v76731_v60  ;;  %67892 = vmatprep.mubr.f32.mxu0 %v74209_v25  ;;  %v42727_v28 = vand.u32 4294901760, %v42726_v9  ;;  %v71456_v53 = vpack.c.bf16 %v43234_v61, %v43227_v49 }
 0x78d   :  { %67886 = vmatmul.mubr.f32.vlgmr.msra.gmra.mrb[82].mxu1 %v76659_v16  ;;  %v43236_v54 = vand.u32 4294901760, %v43235_v50 }
 0x78e   :  { %71443 = vmatpush3.bf16.msra.mxu1 %v76735_v11  ;;  %67934 = vmatprep.mubr.f32.mxu1 %v74209_v25  ;;  %v71420_v33 = vpack.c.bf16 %v42734_v45, %v42727_v28  ;;  %v43229_v22 = vand.u32 4294901760, %v43228_v57 }
 0x78f   :  { %67893 = vmatmul.mubr.f32.vlgmr.msra.gmra.mrb[84].mxu0 %v74218_v40 }
 0x790   :  { %71421 = vmatprep.subr.bf16.mxu0 %v71420_v33  ;;  %v71444_v42 = vpack.c.bf16 %v43236_v54, %v43229_v22  ;;  %67899 = vmatprep.mubr.f32.mxu0 %v74176_v3 }
 0x791   :  { %67935 = vmatmul.mubr.f32.vlgmr.msra.gmra.mrb[84].mxu1 %v74218_v40  ;;  %71423 = vmatpush3.bf16.msra.mxu0 %v71420_v33 }
 0x792   :  { %71445 = vmatprep.subr.bf16.mxu1 %v71444_v42  ;;  %71425 = vmatprep.subr.bf16.mxu0 %v71424_v37 }
 0x793   :  { %71447 = vmatpush3.bf16.msra.mxu1 %v71444_v42  ;;  %67941 = vmatprep.mubr.f32.mxu1 %v74176_v3 }
 0x794   :  { %71449 = vmatprep.subr.bf16.mxu1 %v71448_v29 }
 0x797   :  { %67900 = vmatmul.mubr.f32.vlgmr.msra.gmra.mrb[84].mxu0 %v74182_v6 }
 0x798   :  { %71427 = vmatpush3.bf16.msra.mxu0 %v71424_v37  ;;  %67906 = vmatprep.mubr.f32.mxu0 %v74180_v5 }
 0x799   :  { %67942 = vmatmul.mubr.f32.vlgmr.msra.gmra.mrb[84].mxu1 %v74182_v6  ;;  %71429 = vmatprep.subr.bf16.mxu0 %v76731_v60 }
 0x79a   :  { %71451 = vmatpush3.bf16.msra.mxu1 %v71448_v29  ;;  %67948 = vmatprep.mubr.f32.mxu1 %v74180_v5 }
 0x79b   :  { %71453 = vmatprep.subr.bf16.mxu1 %v76735_v11 }
 0x79f   :  { %67907 = vmatmul.mubr.f32.vlgmr.msra.gmra.mrb[84].mxu0 %v74194_v8 }
 0x7a0   :  { %71431 = vmatpush3.bf16.msra.mxu0 %v76731_v60  ;;  %67913 = vmatprep.mubr.f32.mxu0 %v74191_v7 }
 0x7a1   :  { %67949 = vmatmul.mubr.f32.vlgmr.msra.gmra.mrb[84].mxu1 %v74194_v8  ;;  %71433 = vmatprep.subr.bf16.mxu0 %v71432_v19 }
 0x7a2   :  { %71455 = vmatpush3.bf16.msra.mxu1 %v76735_v11  ;;  %67955 = vmatprep.mubr.f32.mxu1 %v74191_v7 }
 0x7a3   :  { %71457 = vmatprep.subr.bf16.mxu1 %v71456_v53 }
 0x7a7   :  { %67914 = vmatmul.mubr.f32.vlgmr.msra.gmra.mrb[84].mxu0 %v74200_v14 }
 0x7a8   :  { %71435 = vmatpush3.bf16.msra.mxu0 %v71432_v19  ;;  %67920 = vmatprep.mubr.f32.mxu0 %v74176_v3 }
 0x7a9   :  { %67956 = vmatmul.mubr.f32.vlgmr.msra.gmra.mrb[84].mxu1 %v74200_v14  ;;  %71437 = vmatprep.subr.bf16.mxu0 %v76731_v60 }
 0x7aa   :  { %71459 = vmatpush3.bf16.msra.mxu1 %v71456_v53  ;;  %67962 = vmatprep.mubr.f32.mxu1 %v74176_v3 }
 0x7ab   :  { %71461 = vmatprep.subr.bf16.mxu1 %v76735_v11 }
 0x7ae   :  { %v67509_v16 = vpop.f32.mrb[74].mxu0 }
 0x7af   :  { %v43643_v59 = vand.u32 4294901760, %v67509_v16  ;;  %v38053_v56 = vpop.f32.mrb[75].mxu0  ;;  %67921 = vmatmul.mubr.f32.vlgmr.msra.gmra.mrb[84].mxu0 %v74182_v6 }
 0x7b0   :  { %v67551_v1 = vpop.f32.mrb[74].mxu1  ;;  %v43640_v26 = vand.u32 4294901760, %v38053_v56  ;;  %71439 = vmatpush3.bf16.msra.mxu0 %v76731_v60  ;;  %67927 = vmatprep.mubr.f32.mxu0 %v74176_v3 }
 0x7b1   :  { %v43735_v37 = vsub.f32 %v67509_v16, %v43643_v59  ;;  %v44145_v36 = vand.u32 4294901760, %v67551_v1  ;;  %v38561_v61 = vpop.f32.mrb[75].mxu1  ;;  %67963 = vmatmul.mubr.f32.vlgmr.msra.gmra.mrb[84].mxu1 %v74182_v6 }
 0x7b2   :  { %v76771_v9 = vpack.c.bf16 %v43643_v59, %v43640_v26  ;;  %v43728_v49 = vsub.f32 %v38053_v56, %v43640_v26  ;;  %v44142_v29 = vand.u32 4294901760, %v38561_v61  ;;  %71463 = vmatpush3.bf16.msra.mxu1 %v76735_v11  ;;  %67969 = vmatprep.mubr.f32.mxu1 %v74176_v3 }
 0x7b3   :  { %v43736_v19 = vand.u32 4294901760, %v43735_v37  ;;  %v44237_v50 = vsub.f32 %v67551_v1, %v44145_v36 }
 0x7b4   :  { %v43729_v45 = vand.u32 4294901760, %v43728_v49  ;;  %v76775_v57 = vpack.c.bf16 %v44145_v36, %v44142_v29  ;;  %v44230_v60 = vsub.f32 %v38561_v61, %v44142_v29  ;;  %71465 = vmatprep.subr.bf16.mxu0 %v76771_v9  ;;  %v71472_v28 = vpack.c.bf16 %v43735_v37, %v43728_v49 }
 0x7b5   :  { %v43737_v53 = vsub.f32 %v43735_v37, %v43736_v19  ;;  %v44238_v54 = vand.u32 4294901760, %v44237_v50 }
 0x7b6   :  { %v43730_v33 = vsub.f32 %v43728_v49, %v43729_v45  ;;  %v44231_v22 = vand.u32 4294901760, %v44230_v60  ;;  %71489 = vmatprep.subr.bf16.mxu1 %v76775_v57  ;;  %v71496_v42 = vpack.c.bf16 %v44237_v50, %v44230_v60  ;;  %v71480_v16 = vpack.c.bf16 %v43736_v19, %v43729_v45 }
 0x7b7   :  { %v44239_v11 = vsub.f32 %v44237_v50, %v44238_v54  ;;  %67928 = vmatmul.mubr.f32.vlgmr.msra.gmra.mrb[84].mxu0 %v74182_v6  ;;  %v43738_v59 = vand.u32 4294901760, %v43737_v53 }
 0x7b8   :  { %v44232_v56 = vsub.f32 %v44230_v60, %v44231_v22  ;;  %71467 = vmatpush3.bf16.msra.mxu0 %v76771_v9  ;;  %67976 = vmatprep.mubr.f32.mxu0 %v74209_v25  ;;  %v43731_v1 = vand.u32 4294901760, %v43730_v33  ;;  %v71504_v26 = vpack.c.bf16 %v44238_v54, %v44231_v22 }
 0x7b9   :  { %67970 = vmatmul.mubr.f32.vlgmr.msra.gmra.mrb[84].mxu1 %v74182_v6  ;;  %v44240_v37 = vand.u32 4294901760, %v44239_v11 }
 0x7ba   :  { %71491 = vmatpush3.bf16.msra.mxu1 %v76775_v57  ;;  %68018 = vmatprep.mubr.f32.mxu1 %v74209_v25  ;;  %v71468_v36 = vpack.c.bf16 %v43738_v59, %v43731_v1  ;;  %v44233_v61 = vand.u32 4294901760, %v44232_v56 }
 0x7bb   :  { %67977 = vmatmul.mubr.f32.vlgmr.msra.gmra.mrb[86].mxu0 %v74218_v40 }
 0x7bc   :  { %71469 = vmatprep.subr.bf16.mxu0 %v71468_v36  ;;  %v71492_v49 = vpack.c.bf16 %v44240_v37, %v44233_v61  ;;  %67983 = vmatprep.mubr.f32.mxu0 %v74176_v3 }
 0x7bd   :  { %68019 = vmatmul.mubr.f32.vlgmr.msra.gmra.mrb[86].mxu1 %v74218_v40  ;;  %71471 = vmatpush3.bf16.msra.mxu0 %v71468_v36 }
 0x7be   :  { %71493 = vmatprep.subr.bf16.mxu1 %v71492_v49  ;;  %71473 = vmatprep.subr.bf16.mxu0 %v71472_v28 }
 0x7bf   :  { %71495 = vmatpush3.bf16.msra.mxu1 %v71492_v49  ;;  %68025 = vmatprep.mubr.f32.mxu1 %v74176_v3 }
 0x7c0   :  { %71497 = vmatprep.subr.bf16.mxu1 %v71496_v42 }
 0x7c3   :  { %67984 = vmatmul.mubr.f32.vlgmr.msra.gmra.mrb[86].mxu0 %v74182_v6 }
 0x7c4   :  { %71475 = vmatpush3.bf16.msra.mxu0 %v71472_v28  ;;  %67990 = vmatprep.mubr.f32.mxu0 %v74180_v5 }
 0x7c5   :  { %68026 = vmatmul.mubr.f32.vlgmr.msra.gmra.mrb[86].mxu1 %v74182_v6  ;;  %71477 = vmatprep.subr.bf16.mxu0 %v76771_v9 }
 0x7c6   :  { %71499 = vmatpush3.bf16.msra.mxu1 %v71496_v42  ;;  %68032 = vmatprep.mubr.f32.mxu1 %v74180_v5 }
 0x7c7   :  { %71501 = vmatprep.subr.bf16.mxu1 %v76775_v57 }
 0x7cb   :  { %67991 = vmatmul.mubr.f32.vlgmr.msra.gmra.mrb[86].mxu0 %v74194_v8 }
 0x7cc   :  { %71479 = vmatpush3.bf16.msra.mxu0 %v76771_v9  ;;  %67997 = vmatprep.mubr.f32.mxu0 %v74191_v7 }
 0x7cd   :  { %68033 = vmatmul.mubr.f32.vlgmr.msra.gmra.mrb[86].mxu1 %v74194_v8  ;;  %71481 = vmatprep.subr.bf16.mxu0 %v71480_v16 }
 0x7ce   :  { %71503 = vmatpush3.bf16.msra.mxu1 %v76775_v57  ;;  %68039 = vmatprep.mubr.f32.mxu1 %v74191_v7 }
 0x7cf   :  { %71505 = vmatprep.subr.bf16.mxu1 %v71504_v26 }
 0x7d3   :  { %67998 = vmatmul.mubr.f32.vlgmr.msra.gmra.mrb[86].mxu0 %v74200_v14 }
 0x7d4   :  { %71483 = vmatpush3.bf16.msra.mxu0 %v71480_v16  ;;  %68004 = vmatprep.mubr.f32.mxu0 %v74176_v3 }
 0x7d5   :  { %68040 = vmatmul.mubr.f32.vlgmr.msra.gmra.mrb[86].mxu1 %v74200_v14  ;;  %71485 = vmatprep.subr.bf16.mxu0 %v76771_v9 }
 0x7d6   :  { %71507 = vmatpush3.bf16.msra.mxu1 %v71504_v26  ;;  %68046 = vmatprep.mubr.f32.mxu1 %v74176_v3 }
 0x7d7   :  { %71509 = vmatprep.subr.bf16.mxu1 %v76775_v57 }
 0x7da   :  { %v67593_v29 = vpop.f32.mrb[76].mxu0 }
 0x7db   :  { %v44647_v19 = vand.u32 4294901760, %v67593_v29  ;;  %v39069_v50 = vpop.f32.mrb[77].mxu0  ;;  %68005 = vmatmul.mubr.f32.vlgmr.msra.gmra.mrb[86].mxu0 %v74182_v6 }
 0x7dc   :  { %v67635_v45 = vpop.f32.mrb[76].mxu1  ;;  %v44644_v60 = vand.u32 4294901760, %v39069_v50  ;;  %71487 = vmatpush3.bf16.msra.mxu0 %v76771_v9  ;;  %68011 = vmatprep.mubr.f32.mxu0 %v74176_v3 }
 0x7dd   :  { %v44739_v28 = vsub.f32 %v67593_v29, %v44647_v19  ;;  %v45149_v53 = vand.u32 4294901760, %v67635_v45  ;;  %v39577_v54 = vpop.f32.mrb[77].mxu1  ;;  %68047 = vmatmul.mubr.f32.vlgmr.msra.gmra.mrb[86].mxu1 %v74182_v6 }
 0x7de   :  { %v76811_v33 = vpack.c.bf16 %v44647_v19, %v44644_v60  ;;  %v44732_v22 = vsub.f32 %v39069_v50, %v44644_v60  ;;  %v45146_v42 = vand.u32 4294901760, %v39577_v54  ;;  %71511 = vmatpush3.bf16.msra.mxu1 %v76775_v57  ;;  %68053 = vmatprep.mubr.f32.mxu1 %v74176_v3 }
 0x7df   :  { %v44740_v16 = vand.u32 4294901760, %v44739_v28  ;;  %v45241_v11 = vsub.f32 %v67635_v45, %v45149_v53 }
 0x7e0   :  { %v44733_v59 = vand.u32 4294901760, %v44732_v22  ;;  %v76815_v56 = vpack.c.bf16 %v45149_v53, %v45146_v42  ;;  %v45234_v9 = vsub.f32 %v39577_v54, %v45146_v42  ;;  %71513 = vmatprep.subr.bf16.mxu0 %v76811_v33  ;;  %v71520_v1 = vpack.c.bf16 %v44739_v28, %v44732_v22 }
 0x7e1   :  { %v44741_v26 = vsub.f32 %v44739_v28, %v44740_v16  ;;  %v45242_v37 = vand.u32 4294901760, %v45241_v11 }
 0x7e2   :  { %v44734_v36 = vsub.f32 %v44732_v22, %v44733_v59  ;;  %v45235_v61 = vand.u32 4294901760, %v45234_v9  ;;  %71537 = vmatprep.subr.bf16.mxu1 %v76815_v56  ;;  %v71544_v49 = vpack.c.bf16 %v45241_v11, %v45234_v9  ;;  %v71528_v29 = vpack.c.bf16 %v44740_v16, %v44733_v59 }
 0x7e3   :  { %v45243_v57 = vsub.f32 %v45241_v11, %v45242_v37  ;;  %68012 = vmatmul.mubr.f32.vlgmr.msra.gmra.mrb[86].mxu0 %v74182_v6  ;;  %v44742_v19 = vand.u32 4294901760, %v44741_v26 }
 0x7e4   :  { %v45236_v50 = vsub.f32 %v45234_v9, %v45235_v61  ;;  %71515 = vmatpush3.bf16.msra.mxu0 %v76811_v33  ;;  %68060 = vmatprep.mubr.f32.mxu0 %v74209_v25  ;;  %v44735_v45 = vand.u32 4294901760, %v44734_v36  ;;  %v71552_v60 = vpack.c.bf16 %v45242_v37, %v45235_v61 }
 0x7e5   :  { %68054 = vmatmul.mubr.f32.vlgmr.msra.gmra.mrb[86].mxu1 %v74182_v6  ;;  %v45244_v28 = vand.u32 4294901760, %v45243_v57 }
 0x7e6   :  { %71539 = vmatpush3.bf16.msra.mxu1 %v76815_v56  ;;  %68102 = vmatprep.mubr.f32.mxu1 %v74209_v25  ;;  %v71516_v53 = vpack.c.bf16 %v44742_v19, %v44735_v45  ;;  %v45237_v54 = vand.u32 4294901760, %v45236_v50 }
 0x7e7   :  { %68061 = vmatmul.mubr.f32.vlgmr.msra.gmra.mrb[88].mxu0 %v74218_v40 }
 0x7e8   :  { %71517 = vmatprep.subr.bf16.mxu0 %v71516_v53  ;;  %v71540_v22 = vpack.c.bf16 %v45244_v28, %v45237_v54  ;;  %68067 = vmatprep.mubr.f32.mxu0 %v74176_v3 }
 0x7e9   :  { %68103 = vmatmul.mubr.f32.vlgmr.msra.gmra.mrb[88].mxu1 %v74218_v40  ;;  %71519 = vmatpush3.bf16.msra.mxu0 %v71516_v53 }
 0x7ea   :  { %71541 = vmatprep.subr.bf16.mxu1 %v71540_v22  ;;  %71521 = vmatprep.subr.bf16.mxu0 %v71520_v1 }
 0x7eb   :  { %71543 = vmatpush3.bf16.msra.mxu1 %v71540_v22  ;;  %68109 = vmatprep.mubr.f32.mxu1 %v74176_v3 }
 0x7ec   :  { %71545 = vmatprep.subr.bf16.mxu1 %v71544_v49 }
 0x7ef   :  { %68068 = vmatmul.mubr.f32.vlgmr.msra.gmra.mrb[88].mxu0 %v74182_v6 }
 0x7f0   :  { %71523 = vmatpush3.bf16.msra.mxu0 %v71520_v1  ;;  %68074 = vmatprep.mubr.f32.mxu0 %v74180_v5 }
 0x7f1   :  { %68110 = vmatmul.mubr.f32.vlgmr.msra.gmra.mrb[88].mxu1 %v74182_v6  ;;  %71525 = vmatprep.subr.bf16.mxu0 %v76811_v33 }
 0x7f2   :  { %71547 = vmatpush3.bf16.msra.mxu1 %v71544_v49  ;;  %68116 = vmatprep.mubr.f32.mxu1 %v74180_v5 }
 0x7f3   :  { %71549 = vmatprep.subr.bf16.mxu1 %v76815_v56 }
 0x7f7   :  { %68075 = vmatmul.mubr.f32.vlgmr.msra.gmra.mrb[88].mxu0 %v74194_v8 }
 0x7f8   :  { %71527 = vmatpush3.bf16.msra.mxu0 %v76811_v33  ;;  %68081 = vmatprep.mubr.f32.mxu0 %v74191_v7 }
 0x7f9   :  { %68117 = vmatmul.mubr.f32.vlgmr.msra.gmra.mrb[88].mxu1 %v74194_v8  ;;  %71529 = vmatprep.subr.bf16.mxu0 %v71528_v29 }
 0x7fa   :  { %71551 = vmatpush3.bf16.msra.mxu1 %v76815_v56  ;;  %68123 = vmatprep.mubr.f32.mxu1 %v74191_v7 }
 0x7fb   :  { %71553 = vmatprep.subr.bf16.mxu1 %v71552_v60 }
 0x7ff   :  { %68082 = vmatmul.mubr.f32.vlgmr.msra.gmra.mrb[88].mxu0 %v74200_v14 }
 0x800   :  { %71531 = vmatpush3.bf16.msra.mxu0 %v71528_v29  ;;  %68088 = vmatprep.mubr.f32.mxu0 %v74176_v3 }
 0x801   :  { %68124 = vmatmul.mubr.f32.vlgmr.msra.gmra.mrb[88].mxu1 %v74200_v14  ;;  %71533 = vmatprep.subr.bf16.mxu0 %v76811_v33 }
 0x802   :  { %71555 = vmatpush3.bf16.msra.mxu1 %v71552_v60  ;;  %68130 = vmatprep.mubr.f32.mxu1 %v74176_v3 }
 0x803   :  { %71557 = vmatprep.subr.bf16.mxu1 %v76815_v56 }
 0x806   :  { %v67677_v42 = vpop.f32.mrb[78].mxu0 }
 0x807   :  { %v45651_v16 = vand.u32 4294901760, %v67677_v42  ;;  %v40085_v11 = vpop.f32.mrb[79].mxu0  ;;  %68089 = vmatmul.mubr.f32.vlgmr.msra.gmra.mrb[88].mxu0 %v74182_v6 }
 0x808   :  { %v67719_v59 = vpop.f32.mrb[78].mxu1  ;;  %v45648_v9 = vand.u32 4294901760, %v40085_v11  ;;  %71535 = vmatpush3.bf16.msra.mxu0 %v76811_v33  ;;  %68095 = vmatprep.mubr.f32.mxu0 %v74176_v3 }
 0x809   :  { %v45743_v1 = vsub.f32 %v67677_v42, %v45651_v16  ;;  %v46153_v26 = vand.u32 4294901760, %v67719_v59  ;;  %v40593_v37 = vpop.f32.mrb[79].mxu1  ;;  %68131 = vmatmul.mubr.f32.vlgmr.msra.gmra.mrb[88].mxu1 %v74182_v6 }
 0x80a   :  { %v76851_v36 = vpack.c.bf16 %v45651_v16, %v45648_v9  ;;  %v45736_v61 = vsub.f32 %v40085_v11, %v45648_v9  ;;  %v46150_v49 = vand.u32 4294901760, %v40593_v37  ;;  %71559 = vmatpush3.bf16.msra.mxu1 %v76815_v56  ;;  %68137 = vmatprep.mubr.f32.mxu1 %v74176_v3 }
 0x80b   :  { %v45744_v29 = vand.u32 4294901760, %v45743_v1  ;;  %v46245_v57 = vsub.f32 %v67719_v59, %v46153_v26 }
 0x80c   :  { %v45737_v19 = vand.u32 4294901760, %v45736_v61  ;;  %v76855_v50 = vpack.c.bf16 %v46153_v26, %v46150_v49  ;;  %v46238_v33 = vsub.f32 %v40593_v37, %v46150_v49  ;;  %71561 = vmatprep.subr.bf16.mxu0 %v76851_v36  ;;  %v71568_v45 = vpack.c.bf16 %v45743_v1, %v45736_v61 }
 0x80d   :  { %v45745_v60 = vsub.f32 %v45743_v1, %v45744_v29  ;;  %v46246_v28 = vand.u32 4294901760, %v46245_v57 }
 0x80e   :  { %v45738_v53 = vsub.f32 %v45736_v61, %v45737_v19  ;;  %v46239_v54 = vand.u32 4294901760, %v46238_v33  ;;  %71585 = vmatprep.subr.bf16.mxu1 %v76855_v50  ;;  %v71592_v22 = vpack.c.bf16 %v46245_v57, %v46238_v33  ;;  %v71576_v42 = vpack.c.bf16 %v45744_v29, %v45737_v19 }
 0x80f   :  { %v46247_v56 = vsub.f32 %v46245_v57, %v46246_v28  ;;  %68096 = vmatmul.mubr.f32.vlgmr.msra.gmra.mrb[88].mxu0 %v74182_v6  ;;  %v45746_v16 = vand.u32 4294901760, %v45745_v60 }
 0x810   :  { %v46240_v11 = vsub.f32 %v46238_v33, %v46239_v54  ;;  %71563 = vmatpush3.bf16.msra.mxu0 %v76851_v36  ;;  %68144 = vmatprep.mubr.f32.mxu0 %v74209_v25  ;;  %v45739_v59 = vand.u32 4294901760, %v45738_v53  ;;  %v71600_v9 = vpack.c.bf16 %v46246_v28, %v46239_v54 }
 0x811   :  { %68138 = vmatmul.mubr.f32.vlgmr.msra.gmra.mrb[88].mxu1 %v74182_v6  ;;  %v46248_v1 = vand.u32 4294901760, %v46247_v56 }
 0x812   :  { %71587 = vmatpush3.bf16.msra.mxu1 %v76855_v50  ;;  %68186 = vmatprep.mubr.f32.mxu1 %v74209_v25  ;;  %v71564_v26 = vpack.c.bf16 %v45746_v16, %v45739_v59  ;;  %v46241_v37 = vand.u32 4294901760, %v46240_v11 }
 0x813   :  { %68145 = vmatmul.mubr.f32.vlgmr.msra.gmra.mrb[90].mxu0 %v74218_v40 }
 0x814   :  { %71565 = vmatprep.subr.bf16.mxu0 %v71564_v26  ;;  %v71588_v61 = vpack.c.bf16 %v46248_v1, %v46241_v37  ;;  %68151 = vmatprep.mubr.f32.mxu0 %v74176_v3 }
 0x815   :  { %68187 = vmatmul.mubr.f32.vlgmr.msra.gmra.mrb[90].mxu1 %v74218_v40  ;;  %71567 = vmatpush3.bf16.msra.mxu0 %v71564_v26 }
 0x816   :  { %71589 = vmatprep.subr.bf16.mxu1 %v71588_v61  ;;  %71569 = vmatprep.subr.bf16.mxu0 %v71568_v45 }
 0x817   :  { %71591 = vmatpush3.bf16.msra.mxu1 %v71588_v61  ;;  %68193 = vmatprep.mubr.f32.mxu1 %v74176_v3 }
 0x818   :  { %71593 = vmatprep.subr.bf16.mxu1 %v71592_v22 }
 0x81b   :  { %68152 = vmatmul.mubr.f32.vlgmr.msra.gmra.mrb[90].mxu0 %v74182_v6 }
 0x81c   :  { %71571 = vmatpush3.bf16.msra.mxu0 %v71568_v45  ;;  %68158 = vmatprep.mubr.f32.mxu0 %v74180_v5 }
 0x81d   :  { %68194 = vmatmul.mubr.f32.vlgmr.msra.gmra.mrb[90].mxu1 %v74182_v6  ;;  %71573 = vmatprep.subr.bf16.mxu0 %v76851_v36 }
 0x81e   :  { %71595 = vmatpush3.bf16.msra.mxu1 %v71592_v22  ;;  %68200 = vmatprep.mubr.f32.mxu1 %v74180_v5 }
 0x81f   :  { %71597 = vmatprep.subr.bf16.mxu1 %v76855_v50 }
 0x823   :  { %68159 = vmatmul.mubr.f32.vlgmr.msra.gmra.mrb[90].mxu0 %v74194_v8 }
 0x824   :  { %71575 = vmatpush3.bf16.msra.mxu0 %v76851_v36  ;;  %68165 = vmatprep.mubr.f32.mxu0 %v74191_v7 }
 0x825   :  { %68201 = vmatmul.mubr.f32.vlgmr.msra.gmra.mrb[90].mxu1 %v74194_v8  ;;  %71577 = vmatprep.subr.bf16.mxu0 %v71576_v42 }
 0x826   :  { %71599 = vmatpush3.bf16.msra.mxu1 %v76855_v50  ;;  %68207 = vmatprep.mubr.f32.mxu1 %v74191_v7 }
 0x827   :  { %71601 = vmatprep.subr.bf16.mxu1 %v71600_v9 }
 0x82b   :  { %68166 = vmatmul.mubr.f32.vlgmr.msra.gmra.mrb[90].mxu0 %v74200_v14 }
 0x82c   :  { %71579 = vmatpush3.bf16.msra.mxu0 %v71576_v42  ;;  %68172 = vmatprep.mubr.f32.mxu0 %v74176_v3 }
 0x82d   :  { %68208 = vmatmul.mubr.f32.vlgmr.msra.gmra.mrb[90].mxu1 %v74200_v14  ;;  %71581 = vmatprep.subr.bf16.mxu0 %v76851_v36 }
 0x82e   :  { %71603 = vmatpush3.bf16.msra.mxu1 %v71600_v9  ;;  %68214 = vmatprep.mubr.f32.mxu1 %v74176_v3 }
 0x82f   :  { %71605 = vmatprep.subr.bf16.mxu1 %v76855_v50 }
 0x832   :  { %v67761_v49 = vpop.f32.mrb[80].mxu0 }
 0x833   :  { %v46655_v29 = vand.u32 4294901760, %v67761_v49  ;;  %v41101_v57 = vpop.f32.mrb[81].mxu0  ;;  %68173 = vmatmul.mubr.f32.vlgmr.msra.gmra.mrb[90].mxu0 %v74182_v6 }
 0x834   :  { %v67803_v19 = vpop.f32.mrb[80].mxu1  ;;  %v46652_v33 = vand.u32 4294901760, %v41101_v57  ;;  %71583 = vmatpush3.bf16.msra.mxu0 %v76851_v36  ;;  %68179 = vmatprep.mubr.f32.mxu0 %v74176_v3 }
 0x835   :  { %v46747_v45 = vsub.f32 %v67761_v49, %v46655_v29  ;;  %v47157_v60 = vand.u32 4294901760, %v67803_v19  ;;  %v41609_v28 = vpop.f32.mrb[81].mxu1  ;;  %68215 = vmatmul.mubr.f32.vlgmr.msra.gmra.mrb[90].mxu1 %v74182_v6 }
 0x836   :  { %v76891_v53 = vpack.c.bf16 %v46655_v29, %v46652_v33  ;;  %v46740_v54 = vsub.f32 %v41101_v57, %v46652_v33  ;;  %v47154_v22 = vand.u32 4294901760, %v41609_v28  ;;  %71607 = vmatpush3.bf16.msra.mxu1 %v76855_v50  ;;  %68221 = vmatprep.mubr.f32.mxu1 %v74176_v3 }
 0x837   :  { %v46748_v42 = vand.u32 4294901760, %v46747_v45  ;;  %v47249_v56 = vsub.f32 %v67803_v19, %v47157_v60 }
 0x838   :  { %v46741_v16 = vand.u32 4294901760, %v46740_v54  ;;  %v76895_v11 = vpack.c.bf16 %v47157_v60, %v47154_v22  ;;  %v47242_v36 = vsub.f32 %v41609_v28, %v47154_v22  ;;  %71609 = vmatprep.subr.bf16.mxu0 %v76891_v53  ;;  %v71616_v59 = vpack.c.bf16 %v46747_v45, %v46740_v54 }
 0x839   :  { %v46749_v9 = vsub.f32 %v46747_v45, %v46748_v42  ;;  %v47250_v1 = vand.u32 4294901760, %v47249_v56 }
 0x83a   :  { %v46742_v26 = vsub.f32 %v46740_v54, %v46741_v16  ;;  %v47243_v37 = vand.u32 4294901760, %v47242_v36  ;;  %71633 = vmatprep.subr.bf16.mxu1 %v76895_v11  ;;  %v71640_v61 = vpack.c.bf16 %v47249_v56, %v47242_v36  ;;  %v71624_v49 = vpack.c.bf16 %v46748_v42, %v46741_v16 }
 0x83b   :  { %v47251_v50 = vsub.f32 %v47249_v56, %v47250_v1  ;;  %68180 = vmatmul.mubr.f32.vlgmr.msra.gmra.mrb[90].mxu0 %v74182_v6  ;;  %v46750_v29 = vand.u32 4294901760, %v46749_v9 }
 0x83c   :  { %v47244_v57 = vsub.f32 %v47242_v36, %v47243_v37  ;;  %71611 = vmatpush3.bf16.msra.mxu0 %v76891_v53  ;;  %68228 = vmatprep.mubr.f32.mxu0 %v74209_v25  ;;  %v46743_v19 = vand.u32 4294901760, %v46742_v26  ;;  %v71648_v33 = vpack.c.bf16 %v47250_v1, %v47243_v37 }
 0x83d   :  { %68222 = vmatmul.mubr.f32.vlgmr.msra.gmra.mrb[90].mxu1 %v74182_v6  ;;  %v47252_v45 = vand.u32 4294901760, %v47251_v50 }
 0x83e   :  { %71635 = vmatpush3.bf16.msra.mxu1 %v76895_v11  ;;  %68270 = vmatprep.mubr.f32.mxu1 %v74209_v25  ;;  %v71612_v60 = vpack.c.bf16 %v46750_v29, %v46743_v19  ;;  %v47245_v28 = vand.u32 4294901760, %v47244_v57 }
 0x83f   :  { %68229 = vmatmul.mubr.f32.vlgmr.msra.gmra.mrb[92].mxu0 %v74218_v40 }
 0x840   :  { %71613 = vmatprep.subr.bf16.mxu0 %v71612_v60  ;;  %v71636_v54 = vpack.c.bf16 %v47252_v45, %v47245_v28  ;;  %68235 = vmatprep.mubr.f32.mxu0 %v74176_v3 }
 0x841   :  { %68271 = vmatmul.mubr.f32.vlgmr.msra.gmra.mrb[92].mxu1 %v74218_v40  ;;  %71615 = vmatpush3.bf16.msra.mxu0 %v71612_v60 }
 0x842   :  { %71637 = vmatprep.subr.bf16.mxu1 %v71636_v54  ;;  %71617 = vmatprep.subr.bf16.mxu0 %v71616_v59 }
 0x843   :  { %71639 = vmatpush3.bf16.msra.mxu1 %v71636_v54  ;;  %68277 = vmatprep.mubr.f32.mxu1 %v74176_v3 }
 0x844   :  { %71641 = vmatprep.subr.bf16.mxu1 %v71640_v61 }
 0x847   :  { %68236 = vmatmul.mubr.f32.vlgmr.msra.gmra.mrb[92].mxu0 %v74182_v6 }
 0x848   :  { %71619 = vmatpush3.bf16.msra.mxu0 %v71616_v59  ;;  %68242 = vmatprep.mubr.f32.mxu0 %v74180_v5 }
 0x849   :  { %68278 = vmatmul.mubr.f32.vlgmr.msra.gmra.mrb[92].mxu1 %v74182_v6  ;;  %71621 = vmatprep.subr.bf16.mxu0 %v76891_v53 }
 0x84a   :  { %71643 = vmatpush3.bf16.msra.mxu1 %v71640_v61  ;;  %68284 = vmatprep.mubr.f32.mxu1 %v74180_v5 }
 0x84b   :  { %71645 = vmatprep.subr.bf16.mxu1 %v76895_v11 }
 0x84f   :  { %68243 = vmatmul.mubr.f32.vlgmr.msra.gmra.mrb[92].mxu0 %v74194_v8 }
 0x850   :  { %71623 = vmatpush3.bf16.msra.mxu0 %v76891_v53  ;;  %68249 = vmatprep.mubr.f32.mxu0 %v74191_v7 }
 0x851   :  { %68285 = vmatmul.mubr.f32.vlgmr.msra.gmra.mrb[92].mxu1 %v74194_v8  ;;  %71625 = vmatprep.subr.bf16.mxu0 %v71624_v49 }
 0x852   :  { %71647 = vmatpush3.bf16.msra.mxu1 %v76895_v11  ;;  %68291 = vmatprep.mubr.f32.mxu1 %v74191_v7 }
 0x853   :  { %71649 = vmatprep.subr.bf16.mxu1 %v71648_v33 }
 0x857   :  { %68250 = vmatmul.mubr.f32.vlgmr.msra.gmra.mrb[92].mxu0 %v74200_v14 }
 0x858   :  { %71627 = vmatpush3.bf16.msra.mxu0 %v71624_v49  ;;  %68256 = vmatprep.mubr.f32.mxu0 %v74176_v3 }
 0x859   :  { %68292 = vmatmul.mubr.f32.vlgmr.msra.gmra.mrb[92].mxu1 %v74200_v14  ;;  %71629 = vmatprep.subr.bf16.mxu0 %v76891_v53 }
 0x85a   :  { %71651 = vmatpush3.bf16.msra.mxu1 %v71648_v33  ;;  %68298 = vmatprep.mubr.f32.mxu1 %v74176_v3 }
 0x85b   :  { %71653 = vmatprep.subr.bf16.mxu1 %v76895_v11 }
 0x85e   :  { %v67845_v22 = vpop.f32.mrb[82].mxu0 }
 0x85f   :  { %v47659_v42 = vand.u32 4294901760, %v67845_v22  ;;  %v42117_v56 = vpop.f32.mrb[83].mxu0  ;;  %68257 = vmatmul.mubr.f32.vlgmr.msra.gmra.mrb[92].mxu0 %v74182_v6 }
 0x860   :  { %v67887_v16 = vpop.f32.mrb[82].mxu1  ;;  %v47656_v36 = vand.u32 4294901760, %v42117_v56  ;;  %71631 = vmatpush3.bf16.msra.mxu0 %v76891_v53  ;;  %68263 = vmatprep.mubr.f32.mxu0 %v74176_v3 }
 0x861   :  { %v47751_v59 = vsub.f32 %v67845_v22, %v47659_v42  ;;  %v48161_v9 = vand.u32 4294901760, %v67887_v16  ;;  %v42625_v1 = vpop.f32.mrb[83].mxu1  ;;  %68299 = vmatmul.mubr.f32.vlgmr.msra.gmra.mrb[92].mxu1 %v74182_v6 }
 0x862   :  { %v76931_v26 = vpack.c.bf16 %v47659_v42, %v47656_v36  ;;  %v47744_v37 = vsub.f32 %v42117_v56, %v47656_v36  ;;  %v48158_v61 = vand.u32 4294901760, %v42625_v1  ;;  %71655 = vmatpush3.bf16.msra.mxu1 %v76895_v11  ;;  %68305 = vmatprep.mubr.f32.mxu1 %v74176_v3 }
 0x863   :  { %v47752_v49 = vand.u32 4294901760, %v47751_v59  ;;  %v48253_v50 = vsub.f32 %v67887_v16, %v48161_v9 }
 0x864   :  { %v47745_v29 = vand.u32 4294901760, %v47744_v37  ;;  %v76935_v57 = vpack.c.bf16 %v48161_v9, %v48158_v61  ;;  %v48246_v53 = vsub.f32 %v42625_v1, %v48158_v61  ;;  %71657 = vmatprep.subr.bf16.mxu0 %v76931_v26  ;;  %v71664_v19 = vpack.c.bf16 %v47751_v59, %v47744_v37  ;;  %v73582_v61 = vld [vmem:[#allocation2] sm:$0xff] }
 0x865   :  { %v47753_v33 = vsub.f32 %v47751_v59, %v47752_v49  ;;  %v48254_v45 = vand.u32 4294901760, %v48253_v50 }
 0x866   :  { %v47746_v60 = vsub.f32 %v47744_v37, %v47745_v29  ;;  %v48247_v28 = vand.u32 4294901760, %v48246_v53  ;;  %71681 = vmatprep.subr.bf16.mxu1 %v76935_v57  ;;  %v71688_v54 = vpack.c.bf16 %v48253_v50, %v48246_v53  ;;  %v71672_v22 = vpack.c.bf16 %v47752_v49, %v47745_v29  ;;  %v73583_v49 = vld [vmem:[#allocation4] sm:$0xff]  ;;  %v73584_v29 = vld [vmem:[#allocation2 + $0x10] sm:$0xff] }
 0x867   :  { %v48255_v11 = vsub.f32 %v48253_v50, %v48254_v45  ;;  %68264 = vmatmul.mubr.f32.vlgmr.msra.gmra.mrb[92].mxu0 %v74182_v6  ;;  %v47754_v42 = vand.u32 4294901760, %v47753_v33  ;;  %v48659_v50 = vmul.f32 %v73583_v49, %v73582_v61 }
 0x868   :  { %v48248_v56 = vsub.f32 %v48246_v53, %v48247_v28  ;;  %71659 = vmatpush3.bf16.msra.mxu0 %v76931_v26  ;;  %68312 = vmatprep.mubr.f32.mxu0 %v74209_v25  ;;  %v47747_v16 = vand.u32 4294901760, %v47746_v60  ;;  %v71696_v36 = vpack.c.bf16 %v48254_v45, %v48247_v28  ;;  %v73585_v53 = vld [vmem:[#allocation4 + $0x10] sm:$0xff]  ;;  %v73587_v45 = vld [vmem:[#allocation4 + $0x8] sm:$0xff] }
 0x869   :  { %68306 = vmatmul.mubr.f32.vlgmr.msra.gmra.mrb[92].mxu1 %v74182_v6  ;;  %v48256_v59 = vand.u32 4294901760, %v48255_v11  ;;  %v48661_v33 = vmul.f32 %v73585_v53, %v73584_v29  ;;  %v48684_v28 = vsel %vm124_vm0, %v48659_v50, 0  ;;  %v73589_v11 = vld [vmem:[#allocation4 + $0x18] sm:$0xff] }
 0x86a   :  { %71683 = vmatpush3.bf16.msra.mxu1 %v76935_v57  ;;  %68354 = vmatprep.mubr.f32.mxu1 %v74209_v25  ;;  %v71660_v9 = vpack.c.bf16 %v47754_v42, %v47747_v16  ;;  %v48249_v1 = vand.u32 4294901760, %v48248_v56  ;;  %v76963_v16 = vand.u32 4294901760, %v48684_v28 }
 0x86b   :  { %68313 = vmatmul.mubr.f32.vlgmr.msra.gmra.mrb[94].mxu0 %v74218_v40  ;;  %v49192_v56 = vsel %vm124_vm0, %v48661_v33, 0 }
 0x86c   :  { %71661 = vmatprep.subr.bf16.mxu0 %v71660_v9  ;;  %v71684_v37 = vpack.c.bf16 %v48256_v59, %v48249_v1  ;;  %68319 = vmatprep.mubr.f32.mxu0 %v74176_v3  ;;  %v76974_v61 = vsub.f32 %v48684_v28, %v76963_v16  ;;  %v78301_v28 = vld [vmem:[#allocation23_spill] sm:$0xff] }
 0x86d   :  { %68355 = vmatmul.mubr.f32.vlgmr.msra.gmra.mrb[94].mxu1 %v74218_v40  ;;  %71663 = vmatpush3.bf16.msra.mxu0 %v71660_v9  ;;  %v76966_v9 = vand.u32 4294901760, %v49192_v56 }
 0x86e   :  { %71685 = vmatprep.subr.bf16.mxu1 %v71684_v37  ;;  %71665 = vmatprep.subr.bf16.mxu0 %v71664_v19  ;;  %v78134_v29 = vand.u32 4294901760, %v76974_v61 }
 0x86f   :  { %71687 = vmatpush3.bf16.msra.mxu1 %v71684_v37  ;;  %68361 = vmatprep.mubr.f32.mxu1 %v74176_v3  ;;  %v76982_v50 = vsub.f32 %v49192_v56, %v76966_v9 }
 0x870   :  { %71689 = vmatprep.subr.bf16.mxu1 %v71688_v54  ;;  %v48759_v56 = vsub.f32 %v76974_v61, %v78134_v29 }
 0x873   :  { %68320 = vmatmul.mubr.f32.vlgmr.msra.gmra.mrb[94].mxu0 %v74182_v6 }
 0x874   :  { %71667 = vmatpush3.bf16.msra.mxu0 %v71664_v19  ;;  %68326 = vmatprep.mubr.f32.mxu0 %v74180_v5  ;;  %v73586_v19 = vld [vmem:[#allocation2 + $0x8] sm:$0xff] }
 0x875   :  { %68362 = vmatmul.mubr.f32.vlgmr.msra.gmra.mrb[94].mxu1 %v74182_v6  ;;  %71669 = vmatprep.subr.bf16.mxu0 %v76931_v26  ;;  %v48660_v60 = vmul.f32 %v73587_v45, %v73586_v19  ;;  %v78296_v45 = vld [vmem:[#allocation15_spill] sm:$0xff] }
 0x876   :  { %71691 = vmatpush3.bf16.msra.mxu1 %v71688_v54  ;;  %68368 = vmatprep.mubr.f32.mxu1 %v74180_v5  ;;  %v73588_v54 = vld [vmem:[#allocation2 + $0x18] sm:$0xff] }
 0x877   :  { %71693 = vmatprep.subr.bf16.mxu1 %v76935_v57  ;;  %v48662_v42 = vmul.f32 %v73589_v11, %v73588_v54  ;;  %v48687_v59 = vsel %vm124_vm0, %v48660_v60, 0  ;;  %v78297_v11 = vld [vmem:[#allocation17_spill] sm:$0xff] }
 0x878   :  { %v76970_v37 = vand.u32 4294901760, %v48687_v59 }
 0x879   :  { %v49195_v1 = vsel %vm124_vm0, %v48662_v42, 0 }
 0x87a   :  { %v76978_v49 = vand.u32 4294901760, %v49195_v1 }
 0x87b   :  { %68327 = vmatmul.mubr.f32.vlgmr.msra.gmra.mrb[94].mxu0 %v74194_v8 }
 0x87c   :  { %71671 = vmatpush3.bf16.msra.mxu0 %v76931_v26  ;;  %68333 = vmatprep.mubr.f32.mxu0 %v74191_v7  ;;  %v76990_v53 = vsub.f32 %v49195_v1, %v76978_v49 }
 0x87d   :  { %68369 = vmatmul.mubr.f32.vlgmr.msra.gmra.mrb[94].mxu1 %v74194_v8  ;;  %71673 = vmatprep.subr.bf16.mxu0 %v71672_v22 }
 0x87e   :  { %71695 = vmatpush3.bf16.msra.mxu1 %v76935_v57  ;;  %68375 = vmatprep.mubr.f32.mxu1 %v74191_v7 }
 0x87f   :  { %71697 = vmatprep.subr.bf16.mxu1 %v71696_v36 }
 0x883   :  { %68334 = vmatmul.mubr.f32.vlgmr.msra.gmra.mrb[94].mxu0 %v74200_v14 }
 0x884   :  { %71675 = vmatpush3.bf16.msra.mxu0 %v71672_v22  ;;  %68340 = vmatprep.mubr.f32.mxu0 %v74176_v3  ;;  %v76986_v22 = vsub.f32 %v48687_v59, %v76970_v37  ;;  %v78298_v59 = vsub.f32 %v76194_v27, %v75125_v41  ;;  %v78302_v41 = vand.u32 4294901760, %v76982_v50 }
 0x885   :  { %68376 = vmatmul.mubr.f32.vlgmr.msra.gmra.mrb[94].mxu1 %v74200_v14  ;;  %71677 = vmatprep.subr.bf16.mxu0 %v76931_v26 }
 0x886   :  { %71699 = vmatpush3.bf16.msra.mxu1 %v71696_v36  ;;  %68382 = vmatprep.mubr.f32.mxu1 %v74176_v3  ;;  %v49267_v27 = vsub.f32 %v76982_v50, %v78302_v41  ;;  %v48760_v41 = vand.u32 4294901760, %v48759_v56 }
 0x887   :  { %71701 = vmatprep.subr.bf16.mxu1 %v76935_v57 }
 0x88a   :  { %v67929_v33 = vpop.f32.mrb[84].mxu0 }
 0x88b   :  { %v60900_v36 = vsub.f32 %v67929_v33, %v78296_v45  ;;  %v43127_v60 = vpop.f32.mrb[85].mxu0  ;;  %68341 = vmatmul.mubr.f32.vlgmr.msra.gmra.mrb[94].mxu0 %v74182_v6  ;;  %v78299_v33 = vld [vmem:[#allocation20_spill] sm:$0xff] }
 0x88c   :  { %v67971_v54 = vpop.f32.mrb[84].mxu1  ;;  %v60899_v42 = vsub.f32 %v43127_v60, %v78297_v11  ;;  %71679 = vmatpush3.bf16.msra.mxu0 %v76931_v26  ;;  %68347 = vmatprep.mubr.f32.mxu0 %v74176_v3  ;;  %v78300_v26 = vsub.f32 %v76199_v18, %v75133_v47  ;;  %v78305_v47 = vand.u32 4294901760, %v76986_v22 }
 0x88d   :  { %v61116_v1 = vadd.f32 %v60900_v36, %v78298_v59  ;;  %v60902_v45 = vsub.f32 %v67971_v54, %v78299_v33  ;;  %v43629_v19 = vpop.f32.mrb[85].mxu1  ;;  %68383 = vmatmul.mubr.f32.vlgmr.msra.gmra.mrb[94].mxu1 %v74182_v6  ;;  %71705 = vmatprep.subr.bf16.mxu0 %v73833_v10  ;;  %v78303_v36 = vld [vmem:[#allocation19_spill] sm:$0xff]  ;;  %v78304_v33 = vsub.f32 %v76203_v34, %v75129_v52  ;;  %v78309_v34 = vand.u32 4294901760, %v76990_v53 }
 0x88e   :  { %v61115_v11 = vadd.f32 %v60899_v42, %v78300_v26  ;;  %v60901_v14 = vsub.f32 %v43629_v19, %v78301_v28  ;;  %71703 = vmatpush3.bf16.msra.mxu1 %v76935_v57  ;;  %68389 = vmatprep.mubr.f32.mxu1 %v74176_v3  ;;  %v61092_v54 = vadd.f32 0.0001, %v78303_v36  ;;  %v48769_v18 = vsub.f32 %v76986_v22, %v78305_v47  ;;  %v78306_v57 = vld [vmem:[#allocation22_spill] sm:$0xff]  ;;  %v78308_v36 = vld [vmem:[#allocation25_spill] sm:$0xff] }
 0x88f   :  { %v61140_v59 = vadd.f32 0.0009, %v61116_v1  ;;  %v61118_v29 = vadd.f32 %v60902_v45, %v78304_v33  ;;  %71729 = vmatprep.subr.bf16.mxu1 %v73833_v10  ;;  %v61091_v19 = vadd.f32 0.0001, %v78306_v57  ;;  %v78307_v42 = vsub.f32 %v76212_v12, %v75137_v30  ;;  %v78310_v33 = vld [vmem:[#allocation26_spill] sm:$0xff] }
 0x890   :  { %v61139_v28 = vadd.f32 0.0009, %v61115_v11  ;;  %v61094_v1 = vadd.f32 0.0001, %v78308_v36  ;;  %v49277_v45 = vsub.f32 %v76990_v53, %v78309_v34  ;;  %v61093_v7 = vadd.f32 0.0001, %v78310_v33 }
 0x891   :  { %v61117_v26 = vadd.f32 %v60901_v14, %v78307_v42  ;;  %v77031_v60 = vmul.f32 %v61140_v59, %v61092_v54  ;;  %v61142_v52 = vadd.f32 0.0009, %v61118_v29  ;;  %v49268_v11 = vand.u32 4294901760, %v49267_v27  ;;  %v73591_v29 = vld [vmem:[#allocation4 + $0x20] sm:$0xff]  ;;  %v73592_v27 = vld [vmem:[#allocation2 + $0x30] sm:$0xff]  ;;  %v73596_v36 = vld [vmem:[#allocation2 + $0x38] sm:$0xff] }
 0x892   :  { %v77037_v47 = vmul.f32 %v61139_v28, %v61091_v19  ;;  %v48770_v14 = vand.u32 4294901760, %v48769_v18  ;;  %v49278_v12 = vand.u32 4294901760, %v49277_v45  ;;  %v73593_v54 = vld [vmem:[#allocation4 + $0x30] sm:$0xff]  ;;  %v78311_v18 = vand.u32 4294901760, %v76974_v61  ;;  %v73594_v19 = vld [vmem:[#allocation2 + $0x28] sm:$0xff] }
 0x893   :  { %v61141_v57 = vadd.f32 0.0009, %v61117_v26  ;;  %v77039_v8 = vmul.f32 %v61142_v52, %v61094_v1  ;;  %68348 = vmatmul.mubr.f32.vlgmr.msra.gmra.mrb[94].mxu0 %v74182_v6  ;;  %v48665_v59 = vmul.f32 %v73593_v54, %v73592_v27  ;;  %v73595_v28 = vld [vmem:[#allocation4 + $0x28] sm:$0xff]  ;;  %v73597_v1 = vld [vmem:[#allocation4 + $0x38] sm:$0xff]  ;;  %73486 = vrcp.f32 %v77031_v60 }
 0x894   :  { %71707 = vmatpush3.bf16.msra.mxu0 %v73833_v10  ;;  %68396 = vmatprep.mubr.f32.mxu0 %v48760_v41  ;;  %v48664_v42 = vmul.f32 %v73595_v28, %v73594_v19  ;;  %v78312_v41 = vand.u32 4294901760, %v76982_v50  ;;  %v48666_v52 = vmul.f32 %v73597_v1, %v73596_v36  ;;  %v78317_v1 = vsub.f32 %v76290_v63, %v75265_v20  ;;  %v78321_v63 = vld [vmem:[#allocation32_spill] sm:$0xff] }
 0x895   :  { %v77042_v30 = vmul.f32 %v61141_v57, %v61093_v7  ;;  %68390 = vmatmul.mubr.f32.vlgmr.msra.gmra.mrb[94].mxu1 %v74182_v6  ;;  %71709 = vmatprep.subr.bf16.mxu0 %v73851_v35  ;;  %v73590_v7 = vld [vmem:[#allocation2 + $0x20] sm:$0xff]  ;;  %73488 = vrcp.f32 %v77037_v47 }
 0x896   :  { %71731 = vmatpush3.bf16.msra.mxu1 %v73833_v10  ;;  %68438 = vmatprep.mubr.f32.mxu1 %v49268_v11  ;;  %v48663_v56 = vmul.f32 %v73591_v29, %v73590_v7  ;;  %v49703_v45 = vsel %vm124_vm0, %v48664_v42, 0  ;;  %v50211_v57 = vsel %vm124_vm0, %v48666_v52, 0  ;;  %v78313_v11 = vand.u32 4294901760, %v76986_v22 }
 0x897   :  { %68397 = vmatmul.mubr.f32.vlgmr.msra.gmra.mrb[96].mxu0 %v48770_v14  ;;  %71733 = vmatprep.subr.bf16.mxu1 %v73851_v35  ;;  %v77093_v7 = vand.u32 4294901760, %v50211_v57  ;;  %73490 = vrcp.f32 %v77039_v8  ;;  %v78416_v8 = vld [vmem:[#allocation21_spill] sm:$0xff] }
 0x898   :  { %71711 = vmatpush3.bf16.msra.mxu0 %v73851_v35  ;;  %68403 = vmatprep.mubr.f32.mxu0 %v76963_v16  ;;  %v49700_v26 = vsel %vm124_vm0, %v48663_v56, 0  ;;  %73492 = vrcp.f32 %v77042_v30  ;;  %v60950_v60 = vmul.f32 2.0, %v78416_v8 }
 0x899   :  { %68439 = vmatmul.mubr.f32.vlgmr.msra.gmra.mrb[96].mxu1 %v49278_v12  ;;  %71713 = vmatprep.subr.bf16.mxu0 %v73854_v39  ;;  %v77075_v34 = vand.u32 4294901760, %v49700_v26  ;;  %v78314_v12 = vand.u32 4294901760, %v76990_v53 }
 0x89a   :  { %71735 = vmatpush3.bf16.msra.mxu1 %v73851_v35  ;;  %68445 = vmatprep.mubr.f32.mxu1 %v76966_v9 }
 0x89b   :  { %71737 = vmatprep.subr.bf16.mxu1 %v73854_v39  ;;  %v77088_v14 = vsub.f32 %v49700_v26, %v77075_v34  ;;  %v78316_v26 = vld [vmem:[#allocation30_spill] sm:$0xff] }
 0x89d   :  { %v78141_v56 = vand.u32 4294901760, %v77088_v14 }
 0x89f   :  { %68404 = vmatmul.mubr.f32.vlgmr.msra.gmra.mrb[96].mxu0 %v76970_v37  ;;  %v49775_v36 = vsub.f32 %v77088_v14, %v78141_v56 }
 0x8a0   :  { %71715 = vmatpush3.bf16.msra.mxu0 %v73854_v39  ;;  %68410 = vmatprep.mubr.f32.mxu0 %v76974_v61  ;;  %v50208_v61 = vsel %vm124_vm0, %v48665_v59, 0  ;;  %v78315_v59 = vld [vmem:[#allocation28_spill] sm:$0xff] }
 0x8a1   :  { %68446 = vmatmul.mubr.f32.vlgmr.msra.gmra.mrb[96].mxu1 %v76978_v49  ;;  %71717 = vmatprep.subr.bf16.mxu0 %v73833_v10  ;;  %v77078_v33 = vand.u32 4294901760, %v50208_v61 }
 0x8a2   :  { %71739 = vmatpush3.bf16.msra.mxu1 %v73854_v39  ;;  %68452 = vmatprep.mubr.f32.mxu1 %v76982_v50  ;;  %v77083_v50 = vand.u32 4294901760, %v49703_v45 }
 0x8a3   :  { %71741 = vmatprep.subr.bf16.mxu1 %v73833_v10 }
 0x8a4   :  { %v77102_v29 = vsub.f32 %v49703_v45, %v77083_v50 }
 0x8a6   :  { %v78140_v28 = vand.u32 4294901760, %v77102_v29 }
 0x8a7   :  { %68411 = vmatmul.mubr.f32.vlgmr.msra.gmra.mrb[96].mxu0 %v76986_v22  ;;  %v77098_v22 = vsub.f32 %v50208_v61, %v77078_v33  ;;  %v78318_v61 = vld [vmem:[#allocation33_spill] sm:$0xff] }
 0x8a8   :  { %71719 = vmatpush3.bf16.msra.mxu0 %v73833_v10  ;;  %68417 = vmatprep.mubr.f32.mxu0 %v78311_v18 }
 0x8a9   :  { %68453 = vmatmul.mubr.f32.vlgmr.msra.gmra.mrb[96].mxu1 %v76990_v53  ;;  %71721 = vmatprep.subr.bf16.mxu0 %v73869_v43  ;;  %v77106_v53 = vsub.f32 %v50211_v57, %v77093_v7  ;;  %v78139_v54 = vand.u32 4294901760, %v77098_v22 }
 0x8aa   :  { %71743 = vmatpush3.bf16.msra.mxu1 %v73833_v10  ;;  %68459 = vmatprep.mubr.f32.mxu1 %v78312_v41 }
 0x8ab   :  { %71745 = vmatprep.subr.bf16.mxu1 %v73869_v43  ;;  %v50283_v20 = vsub.f32 %v77098_v22, %v78139_v54 }
 0x8af   :  { %68418 = vmatmul.mubr.f32.vlgmr.msra.gmra.mrb[96].mxu0 %v78313_v11  ;;  %v50292_v11 = vand.u32 4294901760, %v77106_v53 }
 0x8b0   :  { %71723 = vmatpush3.bf16.msra.mxu0 %v73869_v43  ;;  %68424 = vmatprep.mubr.f32.mxu0 %v76963_v16 }
 0x8b1   :  { %68460 = vmatmul.mubr.f32.vlgmr.msra.gmra.mrb[96].mxu1 %v78314_v12  ;;  %71725 = vmatprep.subr.bf16.mxu0 %v73833_v10 }
 0x8b2   :  { %71747 = vmatpush3.bf16.msra.mxu1 %v73869_v43  ;;  %68466 = vmatprep.mubr.f32.mxu1 %v76966_v9 }
 0x8b3   :  { %71749 = vmatprep.subr.bf16.mxu1 %v73833_v10 }
 0x8b6   :  { %v68013_v27 = vpop.f32.mrb[86].mxu0 }
 0x8b7   :  { %v60904_v18 = vsub.f32 %v68013_v27, %v78315_v59  ;;  %v44131_v19 = vpop.f32.mrb[87].mxu0  ;;  %68425 = vmatmul.mubr.f32.vlgmr.msra.gmra.mrb[96].mxu0 %v76970_v37  ;;  %v78320_v27 = vld [vmem:[#allocation36_spill] sm:$0xff] }
 0x8b8   :  { %v68055_v42 = vpop.f32.mrb[86].mxu1  ;;  %v60903_v41 = vsub.f32 %v44131_v19, %v78316_v26  ;;  %71727 = vmatpush3.bf16.msra.mxu0 %v73833_v10  ;;  %68431 = vmatprep.mubr.f32.mxu0 %v76963_v16  ;;  %v78319_v16 = vsub.f32 %v76295_v38, %v75273_v13  ;;  %v78323_v26 = vld [vmem:[#allocation27_spill] sm:$0xff]  ;;  %v49785_v13 = vsub.f32 %v77102_v29, %v78140_v28 }
 0x8b9   :  { %v61120_v52 = vadd.f32 %v60904_v18, %v78317_v1  ;;  %v60906_v45 = vsub.f32 %v68055_v42, %v78318_v61  ;;  %v44633_v57 = vpop.f32.mrb[87].mxu1  ;;  %68467 = vmatmul.mubr.f32.vlgmr.msra.gmra.mrb[96].mxu1 %v76978_v49  ;;  %71753 = vmatprep.subr.bf16.mxu0 %v73833_v10  ;;  %v61096_v18 = vadd.f32 0.0001, %v78321_v63  ;;  %v78322_v42 = vld [vmem:[#allocation97_spill] sm:$0xff]  ;;  %v78325_v38 = vld [vmem:[#allocation35_spill] sm:$0xff]  ;;  %v78327_v63 = vld [vmem:[#allocation38_spill] sm:$0xff] }
 0x8ba   :  { %v61119_v12 = vadd.f32 %v60903_v41, %v78319_v16  ;;  %v60905_v59 = vsub.f32 %v44633_v57, %v78320_v27  ;;  %71751 = vmatpush3.bf16.msra.mxu1 %v73833_v10  ;;  %68473 = vmatprep.mubr.f32.mxu1 %v76966_v9  ;;  %v78324_v1 = vsub.f32 %v78322_v42, %v78323_v26  ;;  %v61095_v41 = vadd.f32 0.0001, %v78325_v38  ;;  %v78328_v26 = vld [vmem:[#allocation39_spill] sm:$0xff] }
 0x8bb   :  { %v61144_v19 = vadd.f32 0.0009, %v61120_v52  ;;  %71777 = vmatprep.subr.bf16.mxu1 %v73833_v10  ;;  %v78326_v57 = vsub.f32 %v76308_v46, %v75277_v48  ;;  %v49776_v27 = vand.u32 4294901760, %v49775_v36  ;;  %v61098_v52 = vadd.f32 0.0001, %v78327_v63  ;;  %v73605_v63 = vld [vmem:[#allocation4 + $0x58] sm:$0xff] }
 0x8bc   :  { %v61122_v61 = vadd.f32 %v60906_v45, %v78324_v1  ;;  %v61143_v9 = vadd.f32 0.0009, %v61119_v12  ;;  %v50293_v45 = vsub.f32 %v77106_v53, %v50292_v11  ;;  %v61097_v1 = vadd.f32 0.0001, %v78328_v26 }
 0x8bd   :  { %v61121_v16 = vadd.f32 %v60905_v59, %v78326_v57  ;;  %v77147_v54 = vmul.f32 %v61144_v19, %v61096_v18  ;;  %v50284_v12 = vand.u32 4294901760, %v50283_v20  ;;  %v49786_v48 = vand.u32 4294901760, %v49785_v13  ;;  %v73600_v20 = vld [vmem:[#allocation2 + $0x50] sm:$0xff]  ;;  %v73602_v13 = vld [vmem:[#allocation2 + $0x48] sm:$0xff] }
 0x8be   :  { %v61146_v42 = vadd.f32 0.0009, %v61122_v61  ;;  %v77153_v28 = vmul.f32 %v61143_v9, %v61095_v41  ;;  %v50294_v36 = vand.u32 4294901760, %v50293_v45  ;;  %v73601_v18 = vld [vmem:[#allocation4 + $0x50] sm:$0xff]  ;;  %v78329_v61 = vand.u32 4294901760, %v77088_v14  ;;  %v73603_v41 = vld [vmem:[#allocation4 + $0x48] sm:$0xff] }
 0x8bf   :  { %v61145_v38 = vadd.f32 0.0009, %v61121_v16  ;;  %68432 = vmatmul.mubr.f32.vlgmr.msra.gmra.mrb[96].mxu0 %v76970_v37  ;;  %v73598_v37 = vld [vmem:[#allocation2 + $0x40] sm:$0xff]  ;;  %v48669_v19 = vmul.f32 %v73601_v18, %v73600_v20  ;;  %v48668_v9 = vmul.f32 %v73603_v41, %v73602_v13  ;;  %v78330_v16 = vand.u32 4294901760, %v77098_v22 }
 0x8c0   :  { %v77155_v56 = vmul.f32 %v61146_v42, %v61098_v52  ;;  %71755 = vmatpush3.bf16.msra.mxu0 %v73833_v10  ;;  %68480 = vmatprep.mubr.f32.mxu0 %v49776_v27  ;;  %v73604_v27 = vld [vmem:[#allocation2 + $0x58] sm:$0xff]  ;;  %v78333_v13 = vld [vmem:[#allocation44_spill] sm:$0xff]  ;;  %73494 = vrcp.f32 %v77147_v54 }
 0x8c1   :  { %v77158_v46 = vmul.f32 %v61145_v38, %v61097_v1  ;;  %68474 = vmatmul.mubr.f32.vlgmr.msra.gmra.mrb[96].mxu1 %v76978_v49  ;;  %71757 = vmatprep.subr.bf16.mxu0 %v73851_v35  ;;  %v73599_v49 = vld [vmem:[#allocation4 + $0x40] sm:$0xff]  ;;  %v48670_v52 = vmul.f32 %v73605_v63, %v73604_v27  ;;  %v50719_v45 = vsel %vm124_vm0, %v48668_v9, 0  ;;  %v78331_v38 = vand.u32 4294901760, %v77102_v29  ;;  %v78335_v27 = vld [vmem:[#allocation47_spill] sm:$0xff] }
 0x8c2   :  { %71779 = vmatpush3.bf16.msra.mxu1 %v73833_v10  ;;  %68522 = vmatprep.mubr.f32.mxu1 %v50284_v12  ;;  %v48667_v59 = vmul.f32 %v73599_v49, %v73598_v37  ;;  %73496 = vrcp.f32 %v77153_v28 }
 0x8c3   :  { %68481 = vmatmul.mubr.f32.vlgmr.msra.gmra.mrb[98].mxu0 %v49786_v48  ;;  %71781 = vmatprep.subr.bf16.mxu1 %v73851_v35  ;;  %v51227_v1 = vsel %vm124_vm0, %v48670_v52, 0  ;;  %73498 = vrcp.f32 %v77155_v56  ;;  %v78421_v56 = vld [vmem:[#allocation37_spill] sm:$0xff] }
 0x8c4   :  { %71759 = vmatpush3.bf16.msra.mxu0 %v73851_v35  ;;  %68487 = vmatprep.mubr.f32.mxu0 %v77075_v34  ;;  %v50716_v57 = vsel %vm124_vm0, %v48667_v59, 0  ;;  %v77209_v48 = vand.u32 4294901760, %v51227_v1  ;;  %v78332_v59 = vld [vmem:[#allocation42_spill] sm:$0xff]  ;;  %73500 = vrcp.f32 %v77158_v46 }
 0x8c5   :  { %68523 = vmatmul.mubr.f32.vlgmr.msra.gmra.mrb[98].mxu1 %v50294_v36  ;;  %71761 = vmatprep.subr.bf16.mxu0 %v73854_v39  ;;  %v77191_v42 = vand.u32 4294901760, %v50716_v57 }
 0x8c6   :  { %71783 = vmatpush3.bf16.msra.mxu1 %v73851_v35  ;;  %68529 = vmatprep.mubr.f32.mxu1 %v77078_v33 }
 0x8c7   :  { %71785 = vmatprep.subr.bf16.mxu1 %v73854_v39  ;;  %v77204_v12 = vsub.f32 %v50716_v57, %v77191_v42  ;;  %v78334_v57 = vsub.f32 %v76386_v0, %v75405_v62  ;;  %v78340_v0 = vld [vmem:[#allocation46_spill] sm:$0xff] }
 0x8c9   :  { %v78144_v37 = vand.u32 4294901760, %v77204_v12 }
 0x8cb   :  { %68488 = vmatmul.mubr.f32.vlgmr.msra.gmra.mrb[98].mxu0 %v77083_v50  ;;  %v50791_v9 = vsub.f32 %v77204_v12, %v78144_v37 }
 0x8cc   :  { %71763 = vmatpush3.bf16.msra.mxu0 %v73854_v39  ;;  %68494 = vmatprep.mubr.f32.mxu0 %v77088_v14  ;;  %v51224_v14 = vsel %vm124_vm0, %v48669_v19, 0 }
 0x8cd   :  { %68530 = vmatmul.mubr.f32.vlgmr.msra.gmra.mrb[98].mxu1 %v77093_v7  ;;  %71765 = vmatprep.subr.bf16.mxu0 %v73833_v10  ;;  %v77194_v26 = vand.u32 4294901760, %v51224_v14 }
 0x8ce   :  { %71787 = vmatpush3.bf16.msra.mxu1 %v73854_v39  ;;  %68536 = vmatprep.mubr.f32.mxu1 %v77098_v22  ;;  %v77199_v22 = vand.u32 4294901760, %v50719_v45 }
 0x8cf   :  { %71789 = vmatprep.subr.bf16.mxu1 %v73833_v10 }
 0x8d0   :  { %v77218_v36 = vsub.f32 %v50719_v45, %v77199_v22  ;;  %v78336_v45 = vld [vmem:[#allocation98_spill] sm:$0xff] }
 0x8d2   :  { %v78143_v19 = vand.u32 4294901760, %v77218_v36 }
 0x8d3   :  { %68495 = vmatmul.mubr.f32.vlgmr.msra.gmra.mrb[98].mxu0 %v77102_v29  ;;  %v77214_v29 = vsub.f32 %v51224_v14, %v77194_v26 }
 0x8d4   :  { %71767 = vmatpush3.bf16.msra.mxu0 %v73833_v10  ;;  %68501 = vmatprep.mubr.f32.mxu0 %v78329_v61 }
 0x8d5   :  { %68537 = vmatmul.mubr.f32.vlgmr.msra.gmra.mrb[98].mxu1 %v77106_v53  ;;  %71769 = vmatprep.subr.bf16.mxu0 %v73869_v43  ;;  %v77222_v53 = vsub.f32 %v51227_v1, %v77209_v48  ;;  %v78142_v49 = vand.u32 4294901760, %v77214_v29  ;;  %v78337_v1 = vld [vmem:[#allocation41_spill] sm:$0xff] }
 0x8d6   :  { %71791 = vmatpush3.bf16.msra.mxu1 %v73833_v10  ;;  %68543 = vmatprep.mubr.f32.mxu1 %v78330_v16 }
 0x8d7   :  { %71793 = vmatprep.subr.bf16.mxu1 %v73869_v43  ;;  %v51308_v14 = vand.u32 4294901760, %v77222_v53  ;;  %v51299_v62 = vsub.f32 %v77214_v29, %v78142_v49 }
 0x8db   :  { %68502 = vmatmul.mubr.f32.vlgmr.msra.gmra.mrb[98].mxu0 %v78331_v38 }
 0x8dc   :  { %71771 = vmatpush3.bf16.msra.mxu0 %v73869_v43  ;;  %68508 = vmatprep.mubr.f32.mxu0 %v77075_v34 }
 0x8dd   :  { %68544 = vmatmul.mubr.f32.vlgmr.msra.gmra.mrb[98].mxu1 %v50292_v11  ;;  %71773 = vmatprep.subr.bf16.mxu0 %v73833_v10 }
 0x8de   :  { %71795 = vmatpush3.bf16.msra.mxu1 %v73869_v43  ;;  %68550 = vmatprep.mubr.f32.mxu1 %v77078_v33 }
 0x8df   :  { %71797 = vmatprep.subr.bf16.mxu1 %v73833_v10 }
 0x8e2   :  { %v68097_v11 = vpop.f32.mrb[88].mxu0 }
 0x8e3   :  { %v60908_v20 = vsub.f32 %v68097_v11, %v78332_v59  ;;  %v45135_v18 = vpop.f32.mrb[89].mxu0  ;;  %68509 = vmatmul.mubr.f32.vlgmr.msra.gmra.mrb[98].mxu0 %v77083_v50  ;;  %v78339_v11 = vld [vmem:[#allocation50_spill] sm:$0xff] }
 0x8e4   :  { %v68139_v61 = vpop.f32.mrb[88].mxu1  ;;  %v60907_v41 = vsub.f32 %v45135_v18, %v78333_v13  ;;  %71775 = vmatpush3.bf16.msra.mxu0 %v73833_v10  ;;  %68515 = vmatprep.mubr.f32.mxu0 %v77075_v34  ;;  %v78338_v34 = vsub.f32 %v78336_v45, %v78337_v1  ;;  %v78342_v13 = vld [vmem:[#allocation40_spill] sm:$0xff]  ;;  %v78345_v1 = vsub.f32 %v76404_v55, %v75417_v44 }
 0x8e5   :  { %v61124_v16 = vadd.f32 %v60908_v20, %v78334_v57  ;;  %v60910_v63 = vsub.f32 %v68139_v61, %v78335_v27  ;;  %v45637_v52 = vpop.f32.mrb[89].mxu1  ;;  %68551 = vmatmul.mubr.f32.vlgmr.msra.gmra.mrb[98].mxu1 %v77093_v7  ;;  %71801 = vmatprep.subr.bf16.mxu0 %v73833_v10  ;;  %v61100_v20 = vadd.f32 0.0001, %v78340_v0  ;;  %v78341_v61 = vld [vmem:[#allocation99_spill] sm:$0xff]  ;;  %v78346_v0 = vld [vmem:[#allocation52_spill] sm:$0xff] }
 0x8e6   :  { %v61123_v38 = vadd.f32 %v60907_v41, %v78338_v34  ;;  %v60909_v59 = vsub.f32 %v45637_v52, %v78339_v11  ;;  %71799 = vmatpush3.bf16.msra.mxu1 %v73833_v10  ;;  %68557 = vmatprep.mubr.f32.mxu1 %v77078_v33  ;;  %v78343_v57 = vsub.f32 %v78341_v61, %v78342_v13  ;;  %v78344_v52 = vld [vmem:[#allocation49_spill] sm:$0xff]  ;;  %v50792_v11 = vand.u32 4294901760, %v50791_v9 }
 0x8e7   :  { %v61148_v18 = vadd.f32 0.0009, %v61124_v16  ;;  %71825 = vmatprep.subr.bf16.mxu1 %v73833_v10  ;;  %v50801_v41 = vsub.f32 %v77218_v36, %v78143_v19  ;;  %v61099_v45 = vadd.f32 0.0001, %v78344_v52  ;;  %v61102_v16 = vadd.f32 0.0001, %v78346_v0 }
 0x8e8   :  { %v61126_v27 = vadd.f32 %v60910_v63, %v78343_v57  ;;  %v61147_v33 = vadd.f32 0.0009, %v61123_v38  ;;  %v61125_v34 = vadd.f32 %v60909_v59, %v78345_v1  ;;  %v51309_v63 = vsub.f32 %v77222_v53, %v51308_v14  ;;  %v78347_v13 = vld [vmem:[#allocation53_spill] sm:$0xff]  ;;  %v73613_v0 = vld [vmem:[#allocation4 + $0x78] sm:$0xff] }
 0x8e9   :  { %v77263_v49 = vmul.f32 %v61148_v18, %v61100_v20  ;;  %v61101_v57 = vadd.f32 0.0001, %v78347_v13  ;;  %v51300_v38 = vand.u32 4294901760, %v51299_v62  ;;  %v50802_v44 = vand.u32 4294901760, %v50801_v41  ;;  %v73608_v62 = vld [vmem:[#allocation2 + $0x70] sm:$0xff]  ;;  %v73610_v41 = vld [vmem:[#allocation2 + $0x68] sm:$0xff] }
 0x8ea   :  { %v61150_v61 = vadd.f32 0.0009, %v61126_v27  ;;  %v77269_v19 = vmul.f32 %v61147_v33, %v61099_v45  ;;  %v61149_v52 = vadd.f32 0.0009, %v61125_v34  ;;  %v51310_v9 = vand.u32 4294901760, %v51309_v63  ;;  %v73609_v20 = vld [vmem:[#allocation4 + $0x70] sm:$0xff] }
 0x8eb   :  { %68516 = vmatmul.mubr.f32.vlgmr.msra.gmra.mrb[98].mxu0 %v77083_v50  ;;  %v73606_v50 = vld [vmem:[#allocation2 + $0x60] sm:$0xff]  ;;  %v48673_v18 = vmul.f32 %v73609_v20, %v73608_v62  ;;  %v78348_v27 = vand.u32 4294901760, %v77204_v12  ;;  %v73611_v45 = vld [vmem:[#allocation4 + $0x68] sm:$0xff]  ;;  %v78349_v34 = vand.u32 4294901760, %v77214_v29  ;;  %73502 = vrcp.f32 %v77263_v49 }
 0x8ec   :  { %v77271_v37 = vmul.f32 %v61150_v61, %v61102_v16  ;;  %v77274_v55 = vmul.f32 %v61149_v52, %v61101_v57  ;;  %71803 = vmatpush3.bf16.msra.mxu0 %v73833_v10  ;;  %68564 = vmatprep.mubr.f32.mxu0 %v50792_v11  ;;  %v48672_v33 = vmul.f32 %v73611_v45, %v73610_v41  ;;  %v73612_v11 = vld [vmem:[#allocation2 + $0x78] sm:$0xff]  ;;  %v78350_v52 = vand.u32 4294901760, %v77218_v36  ;;  %v78352_v41 = vld [vmem:[#allocation58_spill] sm:$0xff] }
 0x8ed   :  { %68558 = vmatmul.mubr.f32.vlgmr.msra.gmra.mrb[98].mxu1 %v77093_v7  ;;  %71805 = vmatprep.subr.bf16.mxu0 %v73851_v35  ;;  %v73607_v7 = vld [vmem:[#allocation4 + $0x60] sm:$0xff]  ;;  %v48674_v16 = vmul.f32 %v73613_v0, %v73612_v11  ;;  %v78354_v11 = vld [vmem:[#allocation61_spill] sm:$0xff]  ;;  %73504 = vrcp.f32 %v77269_v19 }
 0x8ee   :  { %71827 = vmatpush3.bf16.msra.mxu1 %v73833_v10  ;;  %68606 = vmatprep.mubr.f32.mxu1 %v51300_v38  ;;  %v48671_v59 = vmul.f32 %v73607_v7, %v73606_v50  ;;  %v51735_v63 = vsel %vm124_vm0, %v48672_v33, 0  ;;  %73506 = vrcp.f32 %v77271_v37  ;;  %v78425_v37 = vld [vmem:[#allocation51_spill] sm:$0xff] }
 0x8ef   :  { %68565 = vmatmul.mubr.f32.vlgmr.msra.gmra.mrb[100].mxu0 %v50802_v44  ;;  %71829 = vmatprep.subr.bf16.mxu1 %v73851_v35  ;;  %v52243_v57 = vsel %vm124_vm0, %v48674_v16, 0  ;;  %73508 = vrcp.f32 %v77274_v55 }
 0x8f0   :  { %71807 = vmatpush3.bf16.msra.mxu0 %v73851_v35  ;;  %68571 = vmatprep.mubr.f32.mxu0 %v77191_v42  ;;  %v51732_v1 = vsel %vm124_vm0, %v48671_v59, 0  ;;  %v77325_v44 = vand.u32 4294901760, %v52243_v57  ;;  %v78351_v59 = vld [vmem:[#allocation56_spill] sm:$0xff] }
 0x8f1   :  { %68607 = vmatmul.mubr.f32.vlgmr.msra.gmra.mrb[100].mxu1 %v51310_v9  ;;  %71809 = vmatprep.subr.bf16.mxu0 %v73854_v39  ;;  %v77307_v61 = vand.u32 4294901760, %v51732_v1 }
 0x8f2   :  { %71831 = vmatpush3.bf16.msra.mxu1 %v73851_v35  ;;  %68613 = vmatprep.mubr.f32.mxu1 %v77194_v26 }
 0x8f3   :  { %71833 = vmatprep.subr.bf16.mxu1 %v73854_v39  ;;  %v77320_v38 = vsub.f32 %v51732_v1, %v77307_v61  ;;  %v78353_v1 = vsub.f32 %v76482_v32, %v75545_v17  ;;  %v78359_v32 = vld [vmem:[#allocation60_spill] sm:$0xff] }
 0x8f5   :  { %v78147_v50 = vand.u32 4294901760, %v77320_v38 }
 0x8f7   :  { %68572 = vmatmul.mubr.f32.vlgmr.msra.gmra.mrb[100].mxu0 %v77199_v22  ;;  %v51807_v33 = vsub.f32 %v77320_v38, %v78147_v50 }
 0x8f8   :  { %71811 = vmatpush3.bf16.msra.mxu0 %v73854_v39  ;;  %68578 = vmatprep.mubr.f32.mxu0 %v77204_v12  ;;  %v52240_v12 = vsel %vm124_vm0, %v48673_v18, 0 }
 0x8f9   :  { %68614 = vmatmul.mubr.f32.vlgmr.msra.gmra.mrb[100].mxu1 %v77209_v48  ;;  %71813 = vmatprep.subr.bf16.mxu0 %v73833_v10  ;;  %v77310_v13 = vand.u32 4294901760, %v52240_v12 }
 0x8fa   :  { %71835 = vmatpush3.bf16.msra.mxu1 %v73854_v39  ;;  %68620 = vmatprep.mubr.f32.mxu1 %v77214_v29  ;;  %v77315_v29 = vand.u32 4294901760, %v51735_v63 }
 0x8fb   :  { %71837 = vmatprep.subr.bf16.mxu1 %v73833_v10 }
 0x8fc   :  { %v77334_v9 = vsub.f32 %v51735_v63, %v77315_v29  ;;  %v78355_v63 = vld [vmem:[#allocation100_spill] sm:$0xff] }
 0x8fe   :  { %v78146_v18 = vand.u32 4294901760, %v77334_v9 }
 0x8ff   :  { %68579 = vmatmul.mubr.f32.vlgmr.msra.gmra.mrb[100].mxu0 %v77218_v36  ;;  %v77330_v36 = vsub.f32 %v52240_v12, %v77310_v13 }
 0x900   :  { %71815 = vmatpush3.bf16.msra.mxu0 %v73833_v10  ;;  %68585 = vmatprep.mubr.f32.mxu0 %v78348_v27 }
 0x901   :  { %68621 = vmatmul.mubr.f32.vlgmr.msra.gmra.mrb[100].mxu1 %v77222_v53  ;;  %71817 = vmatprep.subr.bf16.mxu0 %v73869_v43  ;;  %v77338_v53 = vsub.f32 %v52243_v57, %v77325_v44  ;;  %v78145_v7 = vand.u32 4294901760, %v77330_v36  ;;  %v78356_v57 = vld [vmem:[#allocation55_spill] sm:$0xff] }
 0x902   :  { %71839 = vmatpush3.bf16.msra.mxu1 %v73833_v10  ;;  %68627 = vmatprep.mubr.f32.mxu1 %v78349_v34 }
 0x903   :  { %71841 = vmatprep.subr.bf16.mxu1 %v73869_v43  ;;  %v52324_v12 = vand.u32 4294901760, %v77338_v53  ;;  %v52315_v17 = vsub.f32 %v77330_v36, %v78145_v7 }
 0x907   :  { %68586 = vmatmul.mubr.f32.vlgmr.msra.gmra.mrb[100].mxu0 %v78350_v52 }
 0x908   :  { %71819 = vmatpush3.bf16.msra.mxu0 %v73869_v43  ;;  %68592 = vmatprep.mubr.f32.mxu0 %v77191_v42 }
 0x909   :  { %68628 = vmatmul.mubr.f32.vlgmr.msra.gmra.mrb[100].mxu1 %v51308_v14  ;;  %71821 = vmatprep.subr.bf16.mxu0 %v73833_v10 }
 0x90a   :  { %71843 = vmatpush3.bf16.msra.mxu1 %v73869_v43  ;;  %68634 = vmatprep.mubr.f32.mxu1 %v77194_v26 }
 0x90b   :  { %71845 = vmatprep.subr.bf16.mxu1 %v73833_v10 }
 0x90e   :  { %v68181_v14 = vpop.f32.mrb[90].mxu0 }
 0x90f   :  { %v60912_v62 = vsub.f32 %v68181_v14, %v78351_v59  ;;  %v46139_v20 = vpop.f32.mrb[91].mxu0  ;;  %68593 = vmatmul.mubr.f32.vlgmr.msra.gmra.mrb[100].mxu0 %v77199_v22  ;;  %v78358_v14 = vld [vmem:[#allocation64_spill] sm:$0xff] }
 0x910   :  { %v68223_v27 = vpop.f32.mrb[90].mxu1  ;;  %v60911_v45 = vsub.f32 %v46139_v20, %v78352_v41  ;;  %71823 = vmatpush3.bf16.msra.mxu0 %v73833_v10  ;;  %68599 = vmatprep.mubr.f32.mxu0 %v77191_v42  ;;  %v78357_v42 = vsub.f32 %v78355_v63, %v78356_v57  ;;  %v78361_v41 = vld [vmem:[#allocation54_spill] sm:$0xff]  ;;  %v78364_v57 = vsub.f32 %v76500_v21, %v75557_v23 }
 0x911   :  { %v61128_v34 = vadd.f32 %v60912_v62, %v78353_v1  ;;  %v60914_v0 = vsub.f32 %v68223_v27, %v78354_v11  ;;  %v46641_v16 = vpop.f32.mrb[91].mxu1  ;;  %68635 = vmatmul.mubr.f32.vlgmr.msra.gmra.mrb[100].mxu1 %v77209_v48  ;;  %71849 = vmatprep.subr.bf16.mxu0 %v73833_v10  ;;  %v61104_v62 = vadd.f32 0.0001, %v78359_v32  ;;  %v78360_v27 = vld [vmem:[#allocation101_spill] sm:$0xff]  ;;  %v78365_v32 = vld [vmem:[#allocation66_spill] sm:$0xff] }
 0x912   :  { %v61127_v52 = vadd.f32 %v60911_v45, %v78357_v42  ;;  %v60913_v59 = vsub.f32 %v46641_v16, %v78358_v14  ;;  %71847 = vmatpush3.bf16.msra.mxu1 %v73833_v10  ;;  %68641 = vmatprep.mubr.f32.mxu1 %v77194_v26  ;;  %v78362_v1 = vsub.f32 %v78360_v27, %v78361_v41  ;;  %v78363_v16 = vld [vmem:[#allocation63_spill] sm:$0xff]  ;;  %v51808_v14 = vand.u32 4294901760, %v51807_v33 }
 0x913   :  { %v61152_v20 = vadd.f32 0.0009, %v61128_v34  ;;  %71873 = vmatprep.subr.bf16.mxu1 %v73833_v10  ;;  %v51817_v45 = vsub.f32 %v77334_v9, %v78146_v18  ;;  %v61103_v63 = vadd.f32 0.0001, %v78363_v16  ;;  %v61106_v34 = vadd.f32 0.0001, %v78365_v32 }
 0x914   :  { %v61130_v11 = vadd.f32 %v60914_v0, %v78362_v1  ;;  %v61151_v26 = vadd.f32 0.0009, %v61127_v52  ;;  %v61129_v42 = vadd.f32 %v60913_v59, %v78364_v57  ;;  %v52325_v0 = vsub.f32 %v77338_v53, %v52324_v12  ;;  %v78366_v41 = vld [vmem:[#allocation67_spill] sm:$0xff] }
 0x915   :  { %v77379_v7 = vmul.f32 %v61152_v20, %v61104_v62  ;;  %v61105_v1 = vadd.f32 0.0001, %v78366_v41  ;;  %v52316_v52 = vand.u32 4294901760, %v52315_v17  ;;  %v51818_v23 = vand.u32 4294901760, %v51817_v45  ;;  %v73616_v17 = vld [vmem:[#allocation2 + $0x90] sm:$0xff]  ;;  %v73618_v45 = vld [vmem:[#allocation2 + $0x88] sm:$0xff] }
 0x916   :  { %v61154_v27 = vadd.f32 0.0009, %v61130_v11  ;;  %v77385_v18 = vmul.f32 %v61151_v26, %v61103_v63  ;;  %v61153_v16 = vadd.f32 0.0009, %v61129_v42  ;;  %v52326_v33 = vand.u32 4294901760, %v52325_v0  ;;  %v73617_v62 = vld [vmem:[#allocation4 + $0x90] sm:$0xff] }
 0x917   :  { %68600 = vmatmul.mubr.f32.vlgmr.msra.gmra.mrb[100].mxu0 %v77199_v22  ;;  %v73614_v22 = vld [vmem:[#allocation2 + $0x80] sm:$0xff]  ;;  %v48677_v20 = vmul.f32 %v73617_v62, %v73616_v17  ;;  %v78367_v11 = vand.u32 4294901760, %v77320_v38  ;;  %v73619_v63 = vld [vmem:[#allocation4 + $0x88] sm:$0xff]  ;;  %v78368_v42 = vand.u32 4294901760, %v77330_v36  ;;  %v73621_v32 = vld [vmem:[#allocation4 + $0x98] sm:$0xff]  ;;  %73510 = vrcp.f32 %v77379_v7 }
 0x918   :  { %v77387_v50 = vmul.f32 %v61154_v27, %v61106_v34  ;;  %v77390_v21 = vmul.f32 %v61153_v16, %v61105_v1  ;;  %71851 = vmatpush3.bf16.msra.mxu0 %v73833_v10  ;;  %68648 = vmatprep.mubr.f32.mxu0 %v51808_v14  ;;  %v48676_v26 = vmul.f32 %v73619_v63, %v73618_v45  ;;  %v73620_v14 = vld [vmem:[#allocation2 + $0x98] sm:$0xff]  ;;  %v78369_v16 = vand.u32 4294901760, %v77334_v9  ;;  %v78371_v45 = vld [vmem:[#allocation72_spill] sm:$0xff] }
 0x919   :  { %68642 = vmatmul.mubr.f32.vlgmr.msra.gmra.mrb[100].mxu1 %v77209_v48  ;;  %71853 = vmatprep.subr.bf16.mxu0 %v73851_v35  ;;  %v73615_v48 = vld [vmem:[#allocation4 + $0x80] sm:$0xff]  ;;  %v48678_v34 = vmul.f32 %v73621_v32, %v73620_v14  ;;  %v78373_v14 = vld [vmem:[#allocation75_spill] sm:$0xff]  ;;  %73512 = vrcp.f32 %v77385_v18 }
 0x91a   :  { %71875 = vmatpush3.bf16.msra.mxu1 %v73833_v10  ;;  %68690 = vmatprep.mubr.f32.mxu1 %v52316_v52  ;;  %v48675_v59 = vmul.f32 %v73615_v48, %v73614_v22  ;;  %v52751_v0 = vsel %vm124_vm0, %v48676_v26, 0  ;;  %73514 = vrcp.f32 %v77387_v50  ;;  %v78429_v50 = vld [vmem:[#allocation65_spill] sm:$0xff] }
 0x91b   :  { %68649 = vmatmul.mubr.f32.vlgmr.msra.gmra.mrb[102].mxu0 %v51818_v23  ;;  %71877 = vmatprep.subr.bf16.mxu1 %v73851_v35  ;;  %v53259_v1 = vsel %vm124_vm0, %v48678_v34, 0  ;;  %73516 = vrcp.f32 %v77390_v21 }
 0x91c   :  { %71855 = vmatpush3.bf16.msra.mxu0 %v73851_v35  ;;  %68655 = vmatprep.mubr.f32.mxu0 %v77307_v61  ;;  %v52748_v57 = vsel %vm124_vm0, %v48675_v59, 0  ;;  %v77441_v23 = vand.u32 4294901760, %v53259_v1  ;;  %v78370_v59 = vld [vmem:[#allocation70_spill] sm:$0xff] }
 0x91d   :  { %68691 = vmatmul.mubr.f32.vlgmr.msra.gmra.mrb[102].mxu1 %v52326_v33  ;;  %71857 = vmatprep.subr.bf16.mxu0 %v73854_v39  ;;  %v77423_v27 = vand.u32 4294901760, %v52748_v57 }
 0x91e   :  { %71879 = vmatpush3.bf16.msra.mxu1 %v73851_v35  ;;  %68697 = vmatprep.mubr.f32.mxu1 %v77310_v13 }
 0x91f   :  { %71881 = vmatprep.subr.bf16.mxu1 %v73854_v39  ;;  %v77436_v52 = vsub.f32 %v52748_v57, %v77423_v27  ;;  %v78372_v57 = vsub.f32 %v76578_v24, %v75685_v58  ;;  %v78378_v24 = vld [vmem:[#allocation74_spill] sm:$0xff] }
 0x921   :  { %v78150_v22 = vand.u32 4294901760, %v77436_v52 }
 0x923   :  { %68656 = vmatmul.mubr.f32.vlgmr.msra.gmra.mrb[102].mxu0 %v77315_v29  ;;  %v52823_v26 = vsub.f32 %v77436_v52, %v78150_v22 }
 0x924   :  { %71859 = vmatpush3.bf16.msra.mxu0 %v73854_v39  ;;  %68662 = vmatprep.mubr.f32.mxu0 %v77320_v38  ;;  %v53256_v38 = vsel %vm124_vm0, %v48677_v20, 0 }
 0x925   :  { %68698 = vmatmul.mubr.f32.vlgmr.msra.gmra.mrb[102].mxu1 %v77325_v44  ;;  %71861 = vmatprep.subr.bf16.mxu0 %v73833_v10  ;;  %v77426_v41 = vand.u32 4294901760, %v53256_v38 }
 0x926   :  { %71883 = vmatpush3.bf16.msra.mxu1 %v73854_v39  ;;  %68704 = vmatprep.mubr.f32.mxu1 %v77330_v36  ;;  %v77431_v36 = vand.u32 4294901760, %v52751_v0 }
 0x927   :  { %71885 = vmatprep.subr.bf16.mxu1 %v73833_v10 }
 0x928   :  { %v77450_v33 = vsub.f32 %v52751_v0, %v77431_v36  ;;  %v78374_v0 = vld [vmem:[#allocation102_spill] sm:$0xff] }
 0x92a   :  { %v78149_v20 = vand.u32 4294901760, %v77450_v33 }
 0x92b   :  { %68663 = vmatmul.mubr.f32.vlgmr.msra.gmra.mrb[102].mxu0 %v77334_v9  ;;  %v77446_v9 = vsub.f32 %v53256_v38, %v77426_v41 }
 0x92c   :  { %71863 = vmatpush3.bf16.msra.mxu0 %v73833_v10  ;;  %68669 = vmatprep.mubr.f32.mxu0 %v78367_v11 }
 0x92d   :  { %68705 = vmatmul.mubr.f32.vlgmr.msra.gmra.mrb[102].mxu1 %v77338_v53  ;;  %71865 = vmatprep.subr.bf16.mxu0 %v73869_v43  ;;  %v77454_v53 = vsub.f32 %v53259_v1, %v77441_v23  ;;  %v78148_v48 = vand.u32 4294901760, %v77446_v9  ;;  %v78375_v1 = vld [vmem:[#allocation69_spill] sm:$0xff] }
 0x92e   :  { %71887 = vmatpush3.bf16.msra.mxu1 %v73833_v10  ;;  %68711 = vmatprep.mubr.f32.mxu1 %v78368_v42 }
 0x92f   :  { %71889 = vmatprep.subr.bf16.mxu1 %v73869_v43  ;;  %v53340_v38 = vand.u32 4294901760, %v77454_v53  ;;  %v53331_v58 = vsub.f32 %v77446_v9, %v78148_v48 }
 0x933   :  { %68670 = vmatmul.mubr.f32.vlgmr.msra.gmra.mrb[102].mxu0 %v78369_v16 }
 0x934   :  { %71867 = vmatpush3.bf16.msra.mxu0 %v73869_v43  ;;  %68676 = vmatprep.mubr.f32.mxu0 %v77307_v61 }
 0x935   :  { %68712 = vmatmul.mubr.f32.vlgmr.msra.gmra.mrb[102].mxu1 %v52324_v12  ;;  %71869 = vmatprep.subr.bf16.mxu0 %v73833_v10 }
 0x936   :  { %71891 = vmatpush3.bf16.msra.mxu1 %v73869_v43  ;;  %68718 = vmatprep.mubr.f32.mxu1 %v77310_v13 }
 0x937   :  { %71893 = vmatprep.subr.bf16.mxu1 %v73833_v10 }
 0x93a   :  { %v68265_v12 = vpop.f32.mrb[92].mxu0 }
 0x93b   :  { %v60916_v17 = vsub.f32 %v68265_v12, %v78370_v59  ;;  %v47143_v62 = vpop.f32.mrb[93].mxu0  ;;  %68677 = vmatmul.mubr.f32.vlgmr.msra.gmra.mrb[102].mxu0 %v77315_v29  ;;  %v78377_v12 = vld [vmem:[#allocation78_spill] sm:$0xff] }
 0x93c   :  { %v68307_v11 = vpop.f32.mrb[92].mxu1  ;;  %v60915_v63 = vsub.f32 %v47143_v62, %v78371_v45  ;;  %71871 = vmatpush3.bf16.msra.mxu0 %v73833_v10  ;;  %68683 = vmatprep.mubr.f32.mxu0 %v77307_v61  ;;  %v78376_v61 = vsub.f32 %v78374_v0, %v78375_v1  ;;  %v78380_v45 = vld [vmem:[#allocation68_spill] sm:$0xff]  ;;  %v78383_v1 = vsub.f32 %v76596_v15, %v75697_v4 }
 0x93d   :  { %v61132_v42 = vadd.f32 %v60916_v17, %v78372_v57  ;;  %v60918_v32 = vsub.f32 %v68307_v11, %v78373_v14  ;;  %v47645_v34 = vpop.f32.mrb[93].mxu1  ;;  %68719 = vmatmul.mubr.f32.vlgmr.msra.gmra.mrb[102].mxu1 %v77325_v44  ;;  %71897 = vmatprep.subr.bf16.mxu0 %v73833_v10  ;;  %v61108_v17 = vadd.f32 0.0001, %v78378_v24  ;;  %v78379_v11 = vld [vmem:[#allocation103_spill] sm:$0xff]  ;;  %v78384_v24 = vld [vmem:[#allocation80_spill] sm:$0xff] }
 0x93e   :  { %v61131_v16 = vadd.f32 %v60915_v63, %v78376_v61  ;;  %v60917_v59 = vsub.f32 %v47645_v34, %v78377_v12  ;;  %71895 = vmatpush3.bf16.msra.mxu1 %v73833_v10  ;;  %68725 = vmatprep.mubr.f32.mxu1 %v77310_v13  ;;  %v78381_v57 = vsub.f32 %v78379_v11, %v78380_v45  ;;  %v78382_v34 = vld [vmem:[#allocation77_spill] sm:$0xff]  ;;  %v52824_v12 = vand.u32 4294901760, %v52823_v26 }
 0x93f   :  { %v61156_v62 = vadd.f32 0.0009, %v61132_v42  ;;  %71921 = vmatprep.subr.bf16.mxu1 %v73833_v10  ;;  %v52833_v63 = vsub.f32 %v77450_v33, %v78149_v20  ;;  %v61107_v0 = vadd.f32 0.0001, %v78382_v34  ;;  %v61110_v42 = vadd.f32 0.0001, %v78384_v24 }
 0x940   :  { %v61134_v14 = vadd.f32 %v60918_v32, %v78381_v57  ;;  %v61155_v13 = vadd.f32 0.0009, %v61131_v16  ;;  %v61133_v61 = vadd.f32 %v60917_v59, %v78383_v1  ;;  %v53341_v32 = vsub.f32 %v77454_v53, %v53340_v38  ;;  %v78385_v45 = vld [vmem:[#allocation81_spill] sm:$0xff]  ;;  %v73629_v24 = vld [vmem:[#allocation4 + $0xb8] sm:$0xff] }
 0x941   :  { %v77495_v48 = vmul.f32 %v61156_v62, %v61108_v17  ;;  %v61109_v57 = vadd.f32 0.0001, %v78385_v45  ;;  %v53332_v16 = vand.u32 4294901760, %v53331_v58  ;;  %v52834_v4 = vand.u32 4294901760, %v52833_v63  ;;  %v73624_v58 = vld [vmem:[#allocation2 + $0xb0] sm:$0xff]  ;;  %v73626_v63 = vld [vmem:[#allocation2 + $0xa8] sm:$0xff] }
 0x942   :  { %v61158_v11 = vadd.f32 0.0009, %v61134_v14  ;;  %v77501_v20 = vmul.f32 %v61155_v13, %v61107_v0  ;;  %v61157_v34 = vadd.f32 0.0009, %v61133_v61  ;;  %v53342_v26 = vand.u32 4294901760, %v53341_v32  ;;  %v73625_v17 = vld [vmem:[#allocation4 + $0xb0] sm:$0xff] }
 0x943   :  { %68684 = vmatmul.mubr.f32.vlgmr.msra.gmra.mrb[102].mxu0 %v77315_v29  ;;  %v73622_v29 = vld [vmem:[#allocation2 + $0xa0] sm:$0xff]  ;;  %v48681_v62 = vmul.f32 %v73625_v17, %v73624_v58  ;;  %v78388_v14 = vand.u32 4294901760, %v77436_v52  ;;  %v73627_v0 = vld [vmem:[#allocation4 + $0xa8] sm:$0xff]  ;;  %v78389_v61 = vand.u32 4294901760, %v77446_v9 }
 0x944   :  { %v77503_v22 = vmul.f32 %v61158_v11, %v61110_v42  ;;  %v77506_v15 = vmul.f32 %v61157_v34, %v61109_v57  ;;  %71899 = vmatpush3.bf16.msra.mxu0 %v73833_v10  ;;  %68732 = vmatprep.mubr.f32.mxu0 %v52824_v12  ;;  %v48680_v13 = vmul.f32 %v73627_v0, %v73626_v63  ;;  %v73628_v12 = vld [vmem:[#allocation2 + $0xb8] sm:$0xff]  ;;  %v78390_v34 = vand.u32 4294901760, %v77450_v33 }
 0x945   :  { %68726 = vmatmul.mubr.f32.vlgmr.msra.gmra.mrb[102].mxu1 %v77325_v44  ;;  %71901 = vmatprep.subr.bf16.mxu0 %v73851_v35  ;;  %v73623_v44 = vld [vmem:[#allocation4 + $0xa0] sm:$0xff]  ;;  %v48682_v42 = vmul.f32 %v73629_v24, %v73628_v12  ;;  %v78392_v63 = vld [vmem:[#allocation87_spill] sm:$0xff]  ;;  %v78395_v24 = vld [vmem:[#allocation90_spill] sm:$0xff] }
 0x946   :  { %78386 = vst [vmem:[#allocation15_spill] sm:$0xff] %v77503_v22  ;;  %78387 = vst [vmem:[#allocation17_spill] sm:$0xff] %v77506_v15  ;;  %71923 = vmatpush3.bf16.msra.mxu1 %v73833_v10  ;;  %68774 = vmatprep.mubr.f32.mxu1 %v53332_v16  ;;  %v48679_v59 = vmul.f32 %v73623_v44, %v73622_v29  ;;  %v53767_v32 = vsel %vm124_vm0, %v48680_v13, 0 }
 0x947   :  { %68733 = vmatmul.mubr.f32.vlgmr.msra.gmra.mrb[104].mxu0 %v52834_v4  ;;  %71925 = vmatprep.subr.bf16.mxu1 %v73851_v35  ;;  %v54275_v57 = vsel %vm124_vm0, %v48682_v42, 0 }
 0x948   :  { %71903 = vmatpush3.bf16.msra.mxu0 %v73851_v35  ;;  %68739 = vmatprep.mubr.f32.mxu0 %v77423_v27  ;;  %v53764_v1 = vsel %vm124_vm0, %v48679_v59, 0  ;;  %v77557_v4 = vand.u32 4294901760, %v54275_v57  ;;  %v78391_v59 = vld [vmem:[#allocation85_spill] sm:$0xff] }
 0x949   :  { %68775 = vmatmul.mubr.f32.vlgmr.msra.gmra.mrb[104].mxu1 %v53342_v26  ;;  %71905 = vmatprep.subr.bf16.mxu0 %v73854_v39  ;;  %v77539_v11 = vand.u32 4294901760, %v53764_v1 }
 0x94a   :  { %71927 = vmatpush3.bf16.msra.mxu1 %v73851_v35  ;;  %68781 = vmatprep.mubr.f32.mxu1 %v77426_v41 }
 0x94b   :  { %71929 = vmatprep.subr.bf16.mxu1 %v73854_v39  ;;  %v77552_v16 = vsub.f32 %v53764_v1, %v77539_v11  ;;  %v78393_v1 = vld [vmem:[#allocation82_spill] sm:$0xff] }
 0x94d   :  { %v78151_v29 = vand.u32 4294901760, %v77552_v16 }
 0x94f   :  { %68740 = vmatmul.mubr.f32.vlgmr.msra.gmra.mrb[104].mxu0 %v77431_v36  ;;  %v53839_v13 = vsub.f32 %v77552_v16, %v78151_v29 }
 0x950   :  { %71907 = vmatpush3.bf16.msra.mxu0 %v73854_v39  ;;  %68746 = vmatprep.mubr.f32.mxu0 %v77436_v52  ;;  %v54272_v52 = vsel %vm124_vm0, %v48681_v62, 0 }
 0x951   :  { %68782 = vmatmul.mubr.f32.vlgmr.msra.gmra.mrb[104].mxu1 %v77441_v23  ;;  %71909 = vmatprep.subr.bf16.mxu0 %v73833_v10  ;;  %v77542_v45 = vand.u32 4294901760, %v54272_v52 }
 0x952   :  { %71931 = vmatpush3.bf16.msra.mxu1 %v73854_v39  ;;  %68788 = vmatprep.mubr.f32.mxu1 %v77446_v9  ;;  %v77547_v9 = vand.u32 4294901760, %v53767_v32 }
 0x953   :  { %71933 = vmatprep.subr.bf16.mxu1 %v73833_v10 }
 0x954   :  { %v77566_v26 = vsub.f32 %v53767_v32, %v77547_v9 }
 0x956   :  { %v78153_v62 = vand.u32 4294901760, %v77566_v26 }
 0x957   :  { %68747 = vmatmul.mubr.f32.vlgmr.msra.gmra.mrb[104].mxu0 %v77450_v33  ;;  %v77562_v33 = vsub.f32 %v54272_v52, %v77542_v45 }
 0x958   :  { %71911 = vmatpush3.bf16.msra.mxu0 %v73833_v10  ;;  %68753 = vmatprep.mubr.f32.mxu0 %v78388_v14 }
 0x959   :  { %68789 = vmatmul.mubr.f32.vlgmr.msra.gmra.mrb[104].mxu1 %v77454_v53  ;;  %71913 = vmatprep.subr.bf16.mxu0 %v73869_v43  ;;  %v77570_v53 = vsub.f32 %v54275_v57, %v77557_v4  ;;  %v78152_v44 = vand.u32 4294901760, %v77562_v33  ;;  %v78396_v57 = vld [vmem:[#allocation104_spill] sm:$0xff] }
 0x95a   :  { %71935 = vmatpush3.bf16.msra.mxu1 %v73833_v10  ;;  %68795 = vmatprep.mubr.f32.mxu1 %v78389_v61  ;;  %v78394_v61 = vsub.f32 %v76670_v31, %v78393_v1  ;;  %v78401_v1 = vld [vmem:[#allocation105_spill] sm:$0xff] }
 0x95b   :  { %71937 = vmatprep.subr.bf16.mxu1 %v73869_v43  ;;  %v54356_v32 = vand.u32 4294901760, %v77570_v53  ;;  %v54347_v31 = vsub.f32 %v77562_v33, %v78152_v44 }
 0x95d   :  { %v54348_v22 = vand.u32 4294901760, %v54347_v31 }
 0x95f   :  { %68754 = vmatmul.mubr.f32.vlgmr.msra.gmra.mrb[104].mxu0 %v78390_v34  ;;  %v78397_v34 = vld [vmem:[#allocation84_spill] sm:$0xff] }
 0x960   :  { %71915 = vmatpush3.bf16.msra.mxu0 %v73869_v43  ;;  %68760 = vmatprep.mubr.f32.mxu0 %v77423_v27 }
 0x961   :  { %68796 = vmatmul.mubr.f32.vlgmr.msra.gmra.mrb[104].mxu1 %v53340_v38  ;;  %71917 = vmatprep.subr.bf16.mxu0 %v73833_v10 }
 0x962   :  { %71939 = vmatpush3.bf16.msra.mxu1 %v73869_v43  ;;  %68802 = vmatprep.mubr.f32.mxu1 %v77426_v41 }
 0x963   :  { %71941 = vmatprep.subr.bf16.mxu1 %v73833_v10 }
 0x966   :  { %v68349_v38 = vpop.f32.mrb[94].mxu0 }
 0x967   :  { %v60920_v58 = vsub.f32 %v68349_v38, %v78391_v59  ;;  %v48147_v17 = vpop.f32.mrb[95].mxu0  ;;  %68761 = vmatmul.mubr.f32.vlgmr.msra.gmra.mrb[104].mxu0 %v77431_v36  ;;  %v78399_v59 = vld [vmem:[#allocation93_spill] sm:$0xff] }
 0x968   :  { %v68391_v14 = vpop.f32.mrb[94].mxu1  ;;  %v60919_v0 = vsub.f32 %v48147_v17, %v78392_v63  ;;  %71919 = vmatpush3.bf16.msra.mxu0 %v73833_v10  ;;  %68767 = vmatprep.mubr.f32.mxu0 %v77423_v27  ;;  %v78398_v27 = vsub.f32 %v78396_v57, %v78397_v34  ;;  %v78405_v34 = vsub.f32 %v76686_v2, %v75837_v51 }
 0x969   :  { %v61136_v12 = vadd.f32 %v60920_v58, %v78394_v61  ;;  %v60922_v42 = vsub.f32 %v68391_v14, %v78395_v24  ;;  %v48649_v52 = vpop.f32.mrb[95].mxu1  ;;  %68803 = vmatmul.mubr.f32.vlgmr.msra.gmra.mrb[104].mxu1 %v77441_v23  ;;  %71945 = vmatprep.subr.bf16.mxu0 %v73833_v10  ;;  %v78400_v58 = vld [vmem:[#allocation89_spill] sm:$0xff]  ;;  %v78402_v61 = vld [vmem:[#allocation83_spill] sm:$0xff] }
 0x96a   :  { %v61135_v38 = vadd.f32 %v60919_v0, %v78398_v27  ;;  %v60921_v17 = vsub.f32 %v48649_v52, %v78399_v59  ;;  %71943 = vmatpush3.bf16.msra.mxu1 %v73833_v10  ;;  %68809 = vmatprep.mubr.f32.mxu1 %v77426_v41  ;;  %v61112_v14 = vadd.f32 0.0001, %v78400_v58  ;;  %v78403_v24 = vsub.f32 %v78401_v1, %v78402_v61  ;;  %v78404_v52 = vld [vmem:[#allocation92_spill] sm:$0xff]  ;;  %v78406_v58 = vld [vmem:[#allocation95_spill] sm:$0xff] }
 0x96b   :  { %v61160_v63 = vadd.f32 0.0009, %v61136_v12  ;;  %71969 = vmatprep.subr.bf16.mxu1 %v73833_v10  ;;  %v53849_v0 = vsub.f32 %v77566_v26, %v78153_v62  ;;  %v61111_v57 = vadd.f32 0.0001, %v78404_v52  ;;  %v53840_v59 = vand.u32 4294901760, %v53839_v13  ;;  %v78407_v61 = vld [vmem:[#allocation96_spill] sm:$0xff] }
 0x96c   :  { %v61138_v29 = vadd.f32 %v60922_v42, %v78403_v24  ;;  %v61159_v41 = vadd.f32 0.0009, %v61135_v38  ;;  %v61137_v27 = vadd.f32 %v60921_v17, %v78405_v34  ;;  %v61114_v12 = vadd.f32 0.0001, %v78406_v58 }
 0x96d   :  { %v77611_v44 = vmul.f32 %v61160_v63, %v61112_v14  ;;  %v54357_v42 = vsub.f32 %v77570_v53, %v54356_v32  ;;  %v61113_v24 = vadd.f32 0.0001, %v78407_v61  ;;  %v53850_v51 = vand.u32 4294901760, %v53849_v0 }
 0x96e   :  { %v61162_v1 = vadd.f32 0.0009, %v61138_v29  ;;  %v77615_v15 = vmul.f32 %v61159_v41, %v61111_v57  ;;  %v61161_v62 = vadd.f32 0.0009, %v61137_v27 }
 0x96f   :  { %68768 = vmatmul.mubr.f32.vlgmr.msra.gmra.mrb[104].mxu0 %v77431_v36  ;;  %v54358_v29 = vand.u32 4294901760, %v54357_v42  ;;  %v78409_v36 = vand.u32 4294901760, %v77562_v33 }
 0x970   :  { %v77617_v52 = vmul.f32 %v61162_v1, %v61114_v12  ;;  %v77620_v2 = vmul.f32 %v61161_v62, %v61113_v24  ;;  %71947 = vmatpush3.bf16.msra.mxu0 %v73833_v10  ;;  %68816 = vmatprep.mubr.f32.mxu0 %v53840_v59 }
 0x971   :  { %68810 = vmatmul.mubr.f32.vlgmr.msra.gmra.mrb[104].mxu1 %v77441_v23  ;;  %71949 = vmatprep.subr.bf16.mxu0 %v73851_v35 }
 0x972   :  { %71971 = vmatpush3.bf16.msra.mxu1 %v73833_v10  ;;  %68858 = vmatprep.mubr.f32.mxu1 %v54348_v22 }
 0x973   :  { %68817 = vmatmul.mubr.f32.vlgmr.msra.gmra.mrb[106].mxu0 %v53850_v51  ;;  %71973 = vmatprep.subr.bf16.mxu1 %v73851_v35 }
 0x974   :  { %71951 = vmatpush3.bf16.msra.mxu0 %v73851_v35  ;;  %68823 = vmatprep.mubr.f32.mxu0 %v77539_v11 }
 0x975   :  { %68859 = vmatmul.mubr.f32.vlgmr.msra.gmra.mrb[106].mxu1 %v54358_v29  ;;  %71953 = vmatprep.subr.bf16.mxu0 %v73854_v39  ;;  %v78412_v29 = vld [vmem:[#allocation12_spill] sm:$0xff] }
 0x976   :  { %71975 = vmatpush3.bf16.msra.mxu1 %v73851_v35  ;;  %68865 = vmatprep.mubr.f32.mxu1 %v77542_v45  ;;  %v78408_v35 = vand.u32 4294901760, %v77552_v16 }
 0x977   :  { %71977 = vmatprep.subr.bf16.mxu1 %v73854_v39 }
 0x97b   :  { %68824 = vmatmul.mubr.f32.vlgmr.msra.gmra.mrb[106].mxu0 %v77547_v9 }
 0x97c   :  { %71955 = vmatpush3.bf16.msra.mxu0 %v73854_v39  ;;  %68830 = vmatprep.mubr.f32.mxu0 %v77552_v16 }
 0x97d   :  { %68866 = vmatmul.mubr.f32.vlgmr.msra.gmra.mrb[106].mxu1 %v77557_v4  ;;  %71957 = vmatprep.subr.bf16.mxu0 %v73833_v10 }
 0x97e   :  { %71979 = vmatpush3.bf16.msra.mxu1 %v73854_v39  ;;  %68872 = vmatprep.mubr.f32.mxu1 %v77562_v33  ;;  %v78410_v39 = vand.u32 4294901760, %v77566_v26 }
 0x97f   :  { %71981 = vmatprep.subr.bf16.mxu1 %v73833_v10 }
 0x983   :  { %68831 = vmatmul.mubr.f32.vlgmr.msra.gmra.mrb[106].mxu0 %v77566_v26 }
 0x984   :  { %71959 = vmatpush3.bf16.msra.mxu0 %v73833_v10  ;;  %68837 = vmatprep.mubr.f32.mxu0 %v78408_v35  ;;  %v78413_v35 = vld [vmem:[#allocation14_spill] sm:$0xff] }
 0x985   :  { %68873 = vmatmul.mubr.f32.vlgmr.msra.gmra.mrb[106].mxu1 %v77570_v53  ;;  %71961 = vmatprep.subr.bf16.mxu0 %v73869_v43 }
 0x986   :  { %71983 = vmatpush3.bf16.msra.mxu1 %v73833_v10  ;;  %68879 = vmatprep.mubr.f32.mxu1 %v78409_v36 }
 0x987   :  { %71985 = vmatprep.subr.bf16.mxu1 %v73869_v43 }
 0x98b   :  { %68838 = vmatmul.mubr.f32.vlgmr.msra.gmra.mrb[106].mxu0 %v78410_v39 }
 0x98c   :  { %71963 = vmatpush3.bf16.msra.mxu0 %v73869_v43  ;;  %68844 = vmatprep.mubr.f32.mxu0 %v77539_v11 }
 0x98d   :  { %68880 = vmatmul.mubr.f32.vlgmr.msra.gmra.mrb[106].mxu1 %v54356_v32  ;;  %71965 = vmatprep.subr.bf16.mxu0 %v73833_v10 }
 0x98e   :  { %71987 = vmatpush3.bf16.msra.mxu1 %v73869_v43  ;;  %68886 = vmatprep.mubr.f32.mxu1 %v77542_v45 }
 0x98f   :  { %71989 = vmatprep.subr.bf16.mxu1 %v73833_v10 }
 0x992   :  { %v68433_v23 = vpop.f32.mrb[96].mxu0 }
 0x993   :  { %v54783_v22 = vand.u32 4294901760, %v68433_v23  ;;  %v49181_v16 = vpop.f32.mrb[97].mxu0  ;;  %68845 = vmatmul.mubr.f32.vlgmr.msra.gmra.mrb[106].mxu0 %v77547_v9 }
 0x994   :  { %v68475_v33 = vpop.f32.mrb[96].mxu1  ;;  %v54780_v26 = vand.u32 4294901760, %v49181_v16  ;;  %71967 = vmatpush3.bf16.msra.mxu0 %v73833_v10  ;;  %68851 = vmatprep.mubr.f32.mxu0 %v77539_v11 }
 0x995   :  { %v54875_v53 = vsub.f32 %v68433_v23, %v54783_v22  ;;  %v55285_v62 = vand.u32 4294901760, %v68475_v33  ;;  %v49689_v13 = vpop.f32.mrb[97].mxu1  ;;  %68887 = vmatmul.mubr.f32.vlgmr.msra.gmra.mrb[106].mxu1 %v77557_v4 }
 0x996   :  { %v77663_v43 = vpack.c.bf16 %v54783_v22, %v54780_v26  ;;  %v54868_v32 = vsub.f32 %v49181_v16, %v54780_v26  ;;  %v55282_v38 = vand.u32 4294901760, %v49689_v13  ;;  %71991 = vmatpush3.bf16.msra.mxu1 %v73833_v10  ;;  %68893 = vmatprep.mubr.f32.mxu1 %v77542_v45 }
 0x997   :  { %v54876_v17 = vand.u32 4294901760, %v54875_v53  ;;  %v55377_v31 = vsub.f32 %v68475_v33, %v55285_v62 }
 0x998   :  { %v54869_v14 = vand.u32 4294901760, %v54868_v32  ;;  %v77667_v63 = vpack.c.bf16 %v55285_v62, %v55282_v38  ;;  %v55370_v0 = vsub.f32 %v49689_v13, %v55282_v38  ;;  %71993 = vmatprep.subr.bf16.mxu0 %v77663_v43  ;;  %v72000_v11 = vpack.c.bf16 %v54875_v53, %v54868_v32 }
 0x999   :  { %v54877_v57 = vsub.f32 %v54875_v53, %v54876_v17  ;;  %v55378_v41 = vand.u32 4294901760, %v55377_v31 }
 0x99a   :  { %v54870_v34 = vsub.f32 %v54868_v32, %v54869_v14  ;;  %v55371_v27 = vand.u32 4294901760, %v55370_v0  ;;  %72017 = vmatprep.subr.bf16.mxu1 %v77667_v63  ;;  %v72024_v59 = vpack.c.bf16 %v55377_v31, %v55370_v0  ;;  %v72008_v58 = vpack.c.bf16 %v54876_v17, %v54869_v14 }
 0x99b   :  { %v55379_v10 = vsub.f32 %v55377_v31, %v55378_v41  ;;  %68852 = vmatmul.mubr.f32.vlgmr.msra.gmra.mrb[106].mxu0 %v77547_v9  ;;  %v54878_v45 = vand.u32 4294901760, %v54877_v57 }
 0x99c   :  { %v55372_v12 = vsub.f32 %v55370_v0, %v55371_v27  ;;  %71995 = vmatpush3.bf16.msra.mxu0 %v77663_v43  ;;  %68900 = vmatprep.mubr.f32.mxu0 %v74209_v25  ;;  %v54871_v1 = vand.u32 4294901760, %v54870_v34  ;;  %v72032_v42 = vpack.c.bf16 %v55378_v41, %v55371_v27 }
 0x99d   :  { %68894 = vmatmul.mubr.f32.vlgmr.msra.gmra.mrb[106].mxu1 %v77557_v4  ;;  %v55380_v61 = vand.u32 4294901760, %v55379_v10  ;;  %v78411_v4 = vld [vmem:[#allocation13_spill] sm:$0xff] }
 0x99e   :  { %72019 = vmatpush3.bf16.msra.mxu1 %v77667_v63  ;;  %68942 = vmatprep.mubr.f32.mxu1 %v74209_v25  ;;  %v71996_v24 = vpack.c.bf16 %v54878_v45, %v54871_v1  ;;  %v55373_v51 = vand.u32 4294901760, %v55372_v12 }
 0x99f   :  { %68901 = vmatmul.mubr.f32.vlgmr.msra.gmra.mrb[108].mxu0 %v74218_v40 }
 0x9a0   :  { %71997 = vmatprep.subr.bf16.mxu0 %v71996_v24  ;;  %v72020_v9 = vpack.c.bf16 %v55380_v61, %v55373_v51  ;;  %68907 = vmatprep.mubr.f32.mxu0 %v74176_v3 }
 0x9a1   :  { %68943 = vmatmul.mubr.f32.vlgmr.msra.gmra.mrb[108].mxu1 %v74218_v40  ;;  %71999 = vmatpush3.bf16.msra.mxu0 %v71996_v24 }
 0x9a2   :  { %72021 = vmatprep.subr.bf16.mxu1 %v72020_v9  ;;  %72001 = vmatprep.subr.bf16.mxu0 %v72000_v11 }
 0x9a3   :  { %72023 = vmatpush3.bf16.msra.mxu1 %v72020_v9  ;;  %68949 = vmatprep.mubr.f32.mxu1 %v74176_v3 }
 0x9a4   :  { %72025 = vmatprep.subr.bf16.mxu1 %v72024_v59 }
 0x9a7   :  { %68908 = vmatmul.mubr.f32.vlgmr.msra.gmra.mrb[108].mxu0 %v74182_v6 }
 0x9a8   :  { %72003 = vmatpush3.bf16.msra.mxu0 %v72000_v11  ;;  %68914 = vmatprep.mubr.f32.mxu0 %v74180_v5 }
 0x9a9   :  { %68950 = vmatmul.mubr.f32.vlgmr.msra.gmra.mrb[108].mxu1 %v74182_v6  ;;  %72005 = vmatprep.subr.bf16.mxu0 %v77663_v43 }
 0x9aa   :  { %72027 = vmatpush3.bf16.msra.mxu1 %v72024_v59  ;;  %68956 = vmatprep.mubr.f32.mxu1 %v74180_v5 }
 0x9ab   :  { %72029 = vmatprep.subr.bf16.mxu1 %v77667_v63 }
 0x9af   :  { %68915 = vmatmul.mubr.f32.vlgmr.msra.gmra.mrb[108].mxu0 %v78411_v4 }
 0x9b0   :  { %72007 = vmatpush3.bf16.msra.mxu0 %v77663_v43  ;;  %68921 = vmatprep.mubr.f32.mxu0 %v78412_v29 }
 0x9b1   :  { %68957 = vmatmul.mubr.f32.vlgmr.msra.gmra.mrb[108].mxu1 %v78411_v4  ;;  %72009 = vmatprep.subr.bf16.mxu0 %v72008_v58 }
 0x9b2   :  { %72031 = vmatpush3.bf16.msra.mxu1 %v77667_v63  ;;  %68963 = vmatprep.mubr.f32.mxu1 %v78412_v29 }
 0x9b3   :  { %72033 = vmatprep.subr.bf16.mxu1 %v72032_v42 }
 0x9b7   :  { %68922 = vmatmul.mubr.f32.vlgmr.msra.gmra.mrb[108].mxu0 %v78413_v35 }
 0x9b8   :  { %72011 = vmatpush3.bf16.msra.mxu0 %v72008_v58  ;;  %68928 = vmatprep.mubr.f32.mxu0 %v74176_v3 }
 0x9b9   :  { %68964 = vmatmul.mubr.f32.vlgmr.msra.gmra.mrb[108].mxu1 %v78413_v35  ;;  %72013 = vmatprep.subr.bf16.mxu0 %v77663_v43 }
 0x9ba   :  { %72035 = vmatpush3.bf16.msra.mxu1 %v72032_v42  ;;  %68970 = vmatprep.mubr.f32.mxu1 %v74176_v3 }
 0x9bb   :  { %72037 = vmatprep.subr.bf16.mxu1 %v77667_v63 }
 0x9be   :  { %v68517_v36 = vpop.f32.mrb[98].mxu0 }
 0x9bf   :  { %v55787_v39 = vand.u32 4294901760, %v68517_v36  ;;  %v50197_v23 = vpop.f32.mrb[99].mxu0  ;;  %68929 = vmatmul.mubr.f32.vlgmr.msra.gmra.mrb[108].mxu0 %v74182_v6 }
 0x9c0   :  { %v68559_v22 = vpop.f32.mrb[98].mxu1  ;;  %v55784_v16 = vand.u32 4294901760, %v50197_v23  ;;  %72015 = vmatpush3.bf16.msra.mxu0 %v77663_v43  ;;  %68935 = vmatprep.mubr.f32.mxu0 %v74176_v3 }
 0x9c1   :  { %v55879_v33 = vsub.f32 %v68517_v36, %v55787_v39  ;;  %v56289_v26 = vand.u32 4294901760, %v68559_v22  ;;  %v50705_v53 = vpop.f32.mrb[99].mxu1  ;;  %68971 = vmatmul.mubr.f32.vlgmr.msra.gmra.mrb[108].mxu1 %v74182_v6 }
 0x9c2   :  { %v77703_v62 = vpack.c.bf16 %v55787_v39, %v55784_v16  ;;  %v55872_v13 = vsub.f32 %v50197_v23, %v55784_v16  ;;  %v56286_v32 = vand.u32 4294901760, %v50705_v53  ;;  %72039 = vmatpush3.bf16.msra.mxu1 %v77667_v63  ;;  %68977 = vmatprep.mubr.f32.mxu1 %v74176_v3 }
 0x9c3   :  { %v55880_v38 = vand.u32 4294901760, %v55879_v33  ;;  %v56381_v17 = vsub.f32 %v68559_v22, %v56289_v26 }
 0x9c4   :  { %v55873_v31 = vand.u32 4294901760, %v55872_v13  ;;  %v77707_v14 = vpack.c.bf16 %v56289_v26, %v56286_v32  ;;  %v56374_v43 = vsub.f32 %v50705_v53, %v56286_v32  ;;  %72041 = vmatprep.subr.bf16.mxu0 %v77703_v62  ;;  %v72048_v0 = vpack.c.bf16 %v55879_v33, %v55872_v13 }
 0x9c5   :  { %v55881_v11 = vsub.f32 %v55879_v33, %v55880_v38  ;;  %v56382_v57 = vand.u32 4294901760, %v56381_v17 }
 0x9c6   :  { %v55874_v41 = vsub.f32 %v55872_v13, %v55873_v31  ;;  %v56375_v34 = vand.u32 4294901760, %v56374_v43  ;;  %72065 = vmatprep.subr.bf16.mxu1 %v77707_v14  ;;  %v72072_v27 = vpack.c.bf16 %v56381_v17, %v56374_v43  ;;  %v72056_v59 = vpack.c.bf16 %v55880_v38, %v55873_v31 }
 0x9c7   :  { %v56383_v63 = vsub.f32 %v56381_v17, %v56382_v57  ;;  %68936 = vmatmul.mubr.f32.vlgmr.msra.gmra.mrb[108].mxu0 %v74182_v6  ;;  %v55882_v58 = vand.u32 4294901760, %v55881_v11 }
 0x9c8   :  { %v56376_v10 = vsub.f32 %v56374_v43, %v56375_v34  ;;  %72043 = vmatpush3.bf16.msra.mxu0 %v77703_v62  ;;  %68984 = vmatprep.mubr.f32.mxu0 %v74209_v25  ;;  %v55875_v45 = vand.u32 4294901760, %v55874_v41  ;;  %v72080_v12 = vpack.c.bf16 %v56382_v57, %v56375_v34 }
 0x9c9   :  { %68978 = vmatmul.mubr.f32.vlgmr.msra.gmra.mrb[108].mxu1 %v74182_v6  ;;  %v56384_v1 = vand.u32 4294901760, %v56383_v63 }
 0x9ca   :  { %72067 = vmatpush3.bf16.msra.mxu1 %v77707_v14  ;;  %69026 = vmatprep.mubr.f32.mxu1 %v74209_v25  ;;  %v72044_v42 = vpack.c.bf16 %v55882_v58, %v55875_v45  ;;  %v56377_v61 = vand.u32 4294901760, %v56376_v10 }
 0x9cb   :  { %68985 = vmatmul.mubr.f32.vlgmr.msra.gmra.mrb[110].mxu0 %v74218_v40 }
 0x9cc   :  { %72045 = vmatprep.subr.bf16.mxu0 %v72044_v42  ;;  %v72068_v24 = vpack.c.bf16 %v56384_v1, %v56377_v61  ;;  %68991 = vmatprep.mubr.f32.mxu0 %v74176_v3 }
 0x9cd   :  { %69027 = vmatmul.mubr.f32.vlgmr.msra.gmra.mrb[110].mxu1 %v74218_v40  ;;  %72047 = vmatpush3.bf16.msra.mxu0 %v72044_v42 }
 0x9ce   :  { %72069 = vmatprep.subr.bf16.mxu1 %v72068_v24  ;;  %72049 = vmatprep.subr.bf16.mxu0 %v72048_v0 }
 0x9cf   :  { %72071 = vmatpush3.bf16.msra.mxu1 %v72068_v24  ;;  %69033 = vmatprep.mubr.f32.mxu1 %v74176_v3 }
 0x9d0   :  { %72073 = vmatprep.subr.bf16.mxu1 %v72072_v27 }
 0x9d3   :  { %68992 = vmatmul.mubr.f32.vlgmr.msra.gmra.mrb[110].mxu0 %v74182_v6 }
 0x9d4   :  { %72051 = vmatpush3.bf16.msra.mxu0 %v72048_v0  ;;  %68998 = vmatprep.mubr.f32.mxu0 %v74180_v5 }
 0x9d5   :  { %69034 = vmatmul.mubr.f32.vlgmr.msra.gmra.mrb[110].mxu1 %v74182_v6  ;;  %72053 = vmatprep.subr.bf16.mxu0 %v77703_v62 }
 0x9d6   :  { %72075 = vmatpush3.bf16.msra.mxu1 %v72072_v27  ;;  %69040 = vmatprep.mubr.f32.mxu1 %v74180_v5 }
 0x9d7   :  { %72077 = vmatprep.subr.bf16.mxu1 %v77707_v14 }
 0x9db   :  { %68999 = vmatmul.mubr.f32.vlgmr.msra.gmra.mrb[110].mxu0 %v78411_v4 }
 0x9dc   :  { %72055 = vmatpush3.bf16.msra.mxu0 %v77703_v62  ;;  %69005 = vmatprep.mubr.f32.mxu0 %v78412_v29 }
 0x9dd   :  { %69041 = vmatmul.mubr.f32.vlgmr.msra.gmra.mrb[110].mxu1 %v78411_v4  ;;  %72057 = vmatprep.subr.bf16.mxu0 %v72056_v59 }
 0x9de   :  { %72079 = vmatpush3.bf16.msra.mxu1 %v77707_v14  ;;  %69047 = vmatprep.mubr.f32.mxu1 %v78412_v29 }
 0x9df   :  { %72081 = vmatprep.subr.bf16.mxu1 %v72080_v12 }
 0x9e3   :  { %69006 = vmatmul.mubr.f32.vlgmr.msra.gmra.mrb[110].mxu0 %v78413_v35 }
 0x9e4   :  { %72059 = vmatpush3.bf16.msra.mxu0 %v72056_v59  ;;  %69012 = vmatprep.mubr.f32.mxu0 %v74176_v3 }
 0x9e5   :  { %69048 = vmatmul.mubr.f32.vlgmr.msra.gmra.mrb[110].mxu1 %v78413_v35  ;;  %72061 = vmatprep.subr.bf16.mxu0 %v77703_v62 }
 0x9e6   :  { %72083 = vmatpush3.bf16.msra.mxu1 %v72080_v12  ;;  %69054 = vmatprep.mubr.f32.mxu1 %v74176_v3 }
 0x9e7   :  { %72085 = vmatprep.subr.bf16.mxu1 %v77707_v14 }
 0x9ea   :  { %v68601_v51 = vpop.f32.mrb[100].mxu0 }
 0x9eb   :  { %v56791_v9 = vand.u32 4294901760, %v68601_v51  ;;  %v51213_v36 = vpop.f32.mrb[101].mxu0  ;;  %69013 = vmatmul.mubr.f32.vlgmr.msra.gmra.mrb[110].mxu0 %v74182_v6 }
 0x9ec   :  { %v68643_v39 = vpop.f32.mrb[100].mxu1  ;;  %v56788_v23 = vand.u32 4294901760, %v51213_v36  ;;  %72063 = vmatpush3.bf16.msra.mxu0 %v77703_v62  ;;  %69019 = vmatprep.mubr.f32.mxu0 %v74176_v3 }
 0x9ed   :  { %v56883_v22 = vsub.f32 %v68601_v51, %v56791_v9  ;;  %v57293_v16 = vand.u32 4294901760, %v68643_v39  ;;  %v51721_v33 = vpop.f32.mrb[101].mxu1  ;;  %69055 = vmatmul.mubr.f32.vlgmr.msra.gmra.mrb[110].mxu1 %v74182_v6 }
 0x9ee   :  { %v77743_v26 = vpack.c.bf16 %v56791_v9, %v56788_v23  ;;  %v56876_v53 = vsub.f32 %v51213_v36, %v56788_v23  ;;  %v57290_v13 = vand.u32 4294901760, %v51721_v33  ;;  %72087 = vmatpush3.bf16.msra.mxu1 %v77707_v14  ;;  %69061 = vmatprep.mubr.f32.mxu1 %v74176_v3 }
 0x9ef   :  { %v56884_v32 = vand.u32 4294901760, %v56883_v22  ;;  %v57385_v38 = vsub.f32 %v68643_v39, %v57293_v16 }
 0x9f0   :  { %v56877_v17 = vand.u32 4294901760, %v56876_v53  ;;  %v77747_v31 = vpack.c.bf16 %v57293_v16, %v57290_v13  ;;  %v57378_v62 = vsub.f32 %v51721_v33, %v57290_v13  ;;  %72089 = vmatprep.subr.bf16.mxu0 %v77743_v26  ;;  %v72096_v43 = vpack.c.bf16 %v56883_v22, %v56876_v53 }
 0x9f1   :  { %v56885_v0 = vsub.f32 %v56883_v22, %v56884_v32  ;;  %v57386_v11 = vand.u32 4294901760, %v57385_v38 }
 0x9f2   :  { %v56878_v57 = vsub.f32 %v56876_v53, %v56877_v17  ;;  %v57379_v41 = vand.u32 4294901760, %v57378_v62  ;;  %72113 = vmatprep.subr.bf16.mxu1 %v77747_v31  ;;  %v72120_v34 = vpack.c.bf16 %v57385_v38, %v57378_v62  ;;  %v72104_v27 = vpack.c.bf16 %v56884_v32, %v56877_v17 }
 0x9f3   :  { %v57387_v14 = vsub.f32 %v57385_v38, %v57386_v11  ;;  %69020 = vmatmul.mubr.f32.vlgmr.msra.gmra.mrb[110].mxu0 %v74182_v6  ;;  %v56886_v59 = vand.u32 4294901760, %v56885_v0 }
 0x9f4   :  { %v57380_v63 = vsub.f32 %v57378_v62, %v57379_v41  ;;  %72091 = vmatpush3.bf16.msra.mxu0 %v77743_v26  ;;  %69068 = vmatprep.mubr.f32.mxu0 %v74209_v25  ;;  %v56879_v58 = vand.u32 4294901760, %v56878_v57  ;;  %v72128_v10 = vpack.c.bf16 %v57386_v11, %v57379_v41 }
 0x9f5   :  { %69062 = vmatmul.mubr.f32.vlgmr.msra.gmra.mrb[110].mxu1 %v74182_v6  ;;  %v57388_v45 = vand.u32 4294901760, %v57387_v14 }
 0x9f6   :  { %72115 = vmatpush3.bf16.msra.mxu1 %v77747_v31  ;;  %69110 = vmatprep.mubr.f32.mxu1 %v74209_v25  ;;  %v72092_v12 = vpack.c.bf16 %v56886_v59, %v56879_v58  ;;  %v57381_v1 = vand.u32 4294901760, %v57380_v63 }
 0x9f7   :  { %69069 = vmatmul.mubr.f32.vlgmr.msra.gmra.mrb[112].mxu0 %v74218_v40 }
 0x9f8   :  { %72093 = vmatprep.subr.bf16.mxu0 %v72092_v12  ;;  %v72116_v42 = vpack.c.bf16 %v57388_v45, %v57381_v1  ;;  %69075 = vmatprep.mubr.f32.mxu0 %v74176_v3 }
 0x9f9   :  { %69111 = vmatmul.mubr.f32.vlgmr.msra.gmra.mrb[112].mxu1 %v74218_v40  ;;  %72095 = vmatpush3.bf16.msra.mxu0 %v72092_v12 }
 0x9fa   :  { %72117 = vmatprep.subr.bf16.mxu1 %v72116_v42  ;;  %72097 = vmatprep.subr.bf16.mxu0 %v72096_v43 }
 0x9fb   :  { %72119 = vmatpush3.bf16.msra.mxu1 %v72116_v42  ;;  %69117 = vmatprep.mubr.f32.mxu1 %v74176_v3 }
 0x9fc   :  { %72121 = vmatprep.subr.bf16.mxu1 %v72120_v34 }
 0x9ff   :  { %69076 = vmatmul.mubr.f32.vlgmr.msra.gmra.mrb[112].mxu0 %v74182_v6 }
 0xa00   :  { %72099 = vmatpush3.bf16.msra.mxu0 %v72096_v43  ;;  %69082 = vmatprep.mubr.f32.mxu0 %v74180_v5 }
 0xa01   :  { %69118 = vmatmul.mubr.f32.vlgmr.msra.gmra.mrb[112].mxu1 %v74182_v6  ;;  %72101 = vmatprep.subr.bf16.mxu0 %v77743_v26 }
 0xa02   :  { %72123 = vmatpush3.bf16.msra.mxu1 %v72120_v34  ;;  %69124 = vmatprep.mubr.f32.mxu1 %v74180_v5 }
 0xa03   :  { %72125 = vmatprep.subr.bf16.mxu1 %v77747_v31 }
 0xa07   :  { %69083 = vmatmul.mubr.f32.vlgmr.msra.gmra.mrb[112].mxu0 %v78411_v4 }
 0xa08   :  { %72103 = vmatpush3.bf16.msra.mxu0 %v77743_v26  ;;  %69089 = vmatprep.mubr.f32.mxu0 %v78412_v29 }
 0xa09   :  { %69125 = vmatmul.mubr.f32.vlgmr.msra.gmra.mrb[112].mxu1 %v78411_v4  ;;  %72105 = vmatprep.subr.bf16.mxu0 %v72104_v27 }
 0xa0a   :  { %72127 = vmatpush3.bf16.msra.mxu1 %v77747_v31  ;;  %69131 = vmatprep.mubr.f32.mxu1 %v78412_v29 }
 0xa0b   :  { %72129 = vmatprep.subr.bf16.mxu1 %v72128_v10 }
 0xa0f   :  { %69090 = vmatmul.mubr.f32.vlgmr.msra.gmra.mrb[112].mxu0 %v78413_v35 }
 0xa10   :  { %72107 = vmatpush3.bf16.msra.mxu0 %v72104_v27  ;;  %69096 = vmatprep.mubr.f32.mxu0 %v74176_v3 }
 0xa11   :  { %69132 = vmatmul.mubr.f32.vlgmr.msra.gmra.mrb[112].mxu1 %v78413_v35  ;;  %72109 = vmatprep.subr.bf16.mxu0 %v77743_v26 }
 0xa12   :  { %72131 = vmatpush3.bf16.msra.mxu1 %v72128_v10  ;;  %69138 = vmatprep.mubr.f32.mxu1 %v74176_v3 }
 0xa13   :  { %72133 = vmatprep.subr.bf16.mxu1 %v77747_v31 }
 0xa16   :  { %v68685_v61 = vpop.f32.mrb[102].mxu0 }
 0xa17   :  { %v57795_v24 = vand.u32 4294901760, %v68685_v61  ;;  %v52229_v51 = vpop.f32.mrb[103].mxu0  ;;  %69097 = vmatmul.mubr.f32.vlgmr.msra.gmra.mrb[112].mxu0 %v74182_v6 }
 0xa18   :  { %v68727_v9 = vpop.f32.mrb[102].mxu1  ;;  %v57792_v36 = vand.u32 4294901760, %v52229_v51  ;;  %72111 = vmatpush3.bf16.msra.mxu0 %v77743_v26  ;;  %69103 = vmatprep.mubr.f32.mxu0 %v74176_v3 }
 0xa19   :  { %v57887_v39 = vsub.f32 %v68685_v61, %v57795_v24  ;;  %v58297_v23 = vand.u32 4294901760, %v68727_v9  ;;  %v52737_v22 = vpop.f32.mrb[103].mxu1  ;;  %69139 = vmatmul.mubr.f32.vlgmr.msra.gmra.mrb[112].mxu1 %v74182_v6 }
 0xa1a   :  { %v77783_v16 = vpack.c.bf16 %v57795_v24, %v57792_v36  ;;  %v57880_v33 = vsub.f32 %v52229_v51, %v57792_v36  ;;  %v58294_v53 = vand.u32 4294901760, %v52737_v22  ;;  %72135 = vmatpush3.bf16.msra.mxu1 %v77747_v31  ;;  %69145 = vmatprep.mubr.f32.mxu1 %v74176_v3 }
 0xa1b   :  { %v57888_v13 = vand.u32 4294901760, %v57887_v39  ;;  %v58389_v32 = vsub.f32 %v68727_v9, %v58297_v23 }
 0xa1c   :  { %v57881_v38 = vand.u32 4294901760, %v57880_v33  ;;  %v77787_v17 = vpack.c.bf16 %v58297_v23, %v58294_v53  ;;  %v58382_v26 = vsub.f32 %v52737_v22, %v58294_v53  ;;  %72137 = vmatprep.subr.bf16.mxu0 %v77783_v16  ;;  %v72144_v62 = vpack.c.bf16 %v57887_v39, %v57880_v33 }
 0xa1d   :  { %v57889_v43 = vsub.f32 %v57887_v39, %v57888_v13  ;;  %v58390_v0 = vand.u32 4294901760, %v58389_v32 }
 0xa1e   :  { %v57882_v11 = vsub.f32 %v57880_v33, %v57881_v38  ;;  %v58383_v57 = vand.u32 4294901760, %v58382_v26  ;;  %72161 = vmatprep.subr.bf16.mxu1 %v77787_v17  ;;  %v72168_v41 = vpack.c.bf16 %v58389_v32, %v58382_v26  ;;  %v72152_v34 = vpack.c.bf16 %v57888_v13, %v57881_v38 }
 0xa1f   :  { %v58391_v31 = vsub.f32 %v58389_v32, %v58390_v0  ;;  %69104 = vmatmul.mubr.f32.vlgmr.msra.gmra.mrb[112].mxu0 %v74182_v6  ;;  %v57890_v27 = vand.u32 4294901760, %v57889_v43 }
 0xa20   :  { %v58384_v14 = vsub.f32 %v58382_v26, %v58383_v57  ;;  %72139 = vmatpush3.bf16.msra.mxu0 %v77783_v16  ;;  %69152 = vmatprep.mubr.f32.mxu0 %v74209_v25  ;;  %v57883_v59 = vand.u32 4294901760, %v57882_v11  ;;  %v72176_v63 = vpack.c.bf16 %v58390_v0, %v58383_v57 }
 0xa21   :  { %69146 = vmatmul.mubr.f32.vlgmr.msra.gmra.mrb[112].mxu1 %v74182_v6  ;;  %v58392_v58 = vand.u32 4294901760, %v58391_v31 }
 0xa22   :  { %72163 = vmatpush3.bf16.msra.mxu1 %v77787_v17  ;;  %69194 = vmatprep.mubr.f32.mxu1 %v74209_v25  ;;  %v72140_v10 = vpack.c.bf16 %v57890_v27, %v57883_v59  ;;  %v58385_v45 = vand.u32 4294901760, %v58384_v14 }
 0xa23   :  { %69153 = vmatmul.mubr.f32.vlgmr.msra.gmra.mrb[114].mxu0 %v74218_v40 }
 0xa24   :  { %72141 = vmatprep.subr.bf16.mxu0 %v72140_v10  ;;  %v72164_v12 = vpack.c.bf16 %v58392_v58, %v58385_v45  ;;  %69159 = vmatprep.mubr.f32.mxu0 %v74176_v3 }
 0xa25   :  { %69195 = vmatmul.mubr.f32.vlgmr.msra.gmra.mrb[114].mxu1 %v74218_v40  ;;  %72143 = vmatpush3.bf16.msra.mxu0 %v72140_v10 }
 0xa26   :  { %72165 = vmatprep.subr.bf16.mxu1 %v72164_v12  ;;  %72145 = vmatprep.subr.bf16.mxu0 %v72144_v62 }
 0xa27   :  { %72167 = vmatpush3.bf16.msra.mxu1 %v72164_v12  ;;  %69201 = vmatprep.mubr.f32.mxu1 %v74176_v3 }
 0xa28   :  { %72169 = vmatprep.subr.bf16.mxu1 %v72168_v41 }
 0xa2b   :  { %69160 = vmatmul.mubr.f32.vlgmr.msra.gmra.mrb[114].mxu0 %v74182_v6 }
 0xa2c   :  { %72147 = vmatpush3.bf16.msra.mxu0 %v72144_v62  ;;  %69166 = vmatprep.mubr.f32.mxu0 %v74180_v5 }
 0xa2d   :  { %69202 = vmatmul.mubr.f32.vlgmr.msra.gmra.mrb[114].mxu1 %v74182_v6  ;;  %72149 = vmatprep.subr.bf16.mxu0 %v77783_v16 }
 0xa2e   :  { %72171 = vmatpush3.bf16.msra.mxu1 %v72168_v41  ;;  %69208 = vmatprep.mubr.f32.mxu1 %v74180_v5 }
 0xa2f   :  { %72173 = vmatprep.subr.bf16.mxu1 %v77787_v17 }
 0xa33   :  { %69167 = vmatmul.mubr.f32.vlgmr.msra.gmra.mrb[114].mxu0 %v78411_v4 }
 0xa34   :  { %72151 = vmatpush3.bf16.msra.mxu0 %v77783_v16  ;;  %69173 = vmatprep.mubr.f32.mxu0 %v78412_v29 }
 0xa35   :  { %69209 = vmatmul.mubr.f32.vlgmr.msra.gmra.mrb[114].mxu1 %v78411_v4  ;;  %72153 = vmatprep.subr.bf16.mxu0 %v72152_v34 }
 0xa36   :  { %72175 = vmatpush3.bf16.msra.mxu1 %v77787_v17  ;;  %69215 = vmatprep.mubr.f32.mxu1 %v78412_v29 }
 0xa37   :  { %72177 = vmatprep.subr.bf16.mxu1 %v72176_v63 }
 0xa3b   :  { %69174 = vmatmul.mubr.f32.vlgmr.msra.gmra.mrb[114].mxu0 %v78413_v35 }
 0xa3c   :  { %72155 = vmatpush3.bf16.msra.mxu0 %v72152_v34  ;;  %69180 = vmatprep.mubr.f32.mxu0 %v74176_v3 }
 0xa3d   :  { %69216 = vmatmul.mubr.f32.vlgmr.msra.gmra.mrb[114].mxu1 %v78413_v35  ;;  %72157 = vmatprep.subr.bf16.mxu0 %v77783_v16 }
 0xa3e   :  { %72179 = vmatpush3.bf16.msra.mxu1 %v72176_v63  ;;  %69222 = vmatprep.mubr.f32.mxu1 %v74176_v3 }
 0xa3f   :  { %72181 = vmatprep.subr.bf16.mxu1 %v77787_v17 }
 0xa42   :  { %v68769_v1 = vpop.f32.mrb[104].mxu0 }
 0xa43   :  { %v58799_v42 = vand.u32 4294901760, %v68769_v1  ;;  %v53245_v61 = vpop.f32.mrb[105].mxu0  ;;  %69181 = vmatmul.mubr.f32.vlgmr.msra.gmra.mrb[114].mxu0 %v74182_v6 }
 0xa44   :  { %v68811_v24 = vpop.f32.mrb[104].mxu1  ;;  %v58796_v51 = vand.u32 4294901760, %v53245_v61  ;;  %72159 = vmatpush3.bf16.msra.mxu0 %v77783_v16  ;;  %69187 = vmatprep.mubr.f32.mxu0 %v74176_v3 }
 0xa45   :  { %v58891_v9 = vsub.f32 %v68769_v1, %v58799_v42  ;;  %v59301_v36 = vand.u32 4294901760, %v68811_v24  ;;  %v53753_v39 = vpop.f32.mrb[105].mxu1  ;;  %69223 = vmatmul.mubr.f32.vlgmr.msra.gmra.mrb[114].mxu1 %v74182_v6 }
 0xa46   :  { %v77823_v23 = vpack.c.bf16 %v58799_v42, %v58796_v51  ;;  %v58884_v22 = vsub.f32 %v53245_v61, %v58796_v51  ;;  %v59298_v33 = vand.u32 4294901760, %v53753_v39  ;;  %72183 = vmatpush3.bf16.msra.mxu1 %v77787_v17  ;;  %69229 = vmatprep.mubr.f32.mxu1 %v74176_v3 }
 0xa47   :  { %v58892_v53 = vand.u32 4294901760, %v58891_v9  ;;  %v59393_v13 = vsub.f32 %v68811_v24, %v59301_v36 }
 0xa48   :  { %v58885_v32 = vand.u32 4294901760, %v58884_v22  ;;  %v77827_v38 = vpack.c.bf16 %v59301_v36, %v59298_v33  ;;  %v59386_v16 = vsub.f32 %v53753_v39, %v59298_v33  ;;  %72185 = vmatprep.subr.bf16.mxu0 %v77823_v23  ;;  %v72192_v26 = vpack.c.bf16 %v58891_v9, %v58884_v22 }
 0xa49   :  { %v58893_v62 = vsub.f32 %v58891_v9, %v58892_v53  ;;  %v59394_v43 = vand.u32 4294901760, %v59393_v13 }
 0xa4a   :  { %v58886_v0 = vsub.f32 %v58884_v22, %v58885_v32  ;;  %v59387_v11 = vand.u32 4294901760, %v59386_v16  ;;  %72209 = vmatprep.subr.bf16.mxu1 %v77827_v38  ;;  %v72216_v57 = vpack.c.bf16 %v59393_v13, %v59386_v16  ;;  %v72200_v41 = vpack.c.bf16 %v58892_v53, %v58885_v32 }
 0xa4b   :  { %v59395_v17 = vsub.f32 %v59393_v13, %v59394_v43  ;;  %69188 = vmatmul.mubr.f32.vlgmr.msra.gmra.mrb[114].mxu0 %v74182_v6  ;;  %v58894_v34 = vand.u32 4294901760, %v58893_v62 }
 0xa4c   :  { %v59388_v31 = vsub.f32 %v59386_v16, %v59387_v11  ;;  %72187 = vmatpush3.bf16.msra.mxu0 %v77823_v23  ;;  %69236 = vmatprep.mubr.f32.mxu0 %v74209_v25  ;;  %v58887_v27 = vand.u32 4294901760, %v58886_v0  ;;  %v72224_v14 = vpack.c.bf16 %v59394_v43, %v59387_v11 }
 0xa4d   :  { %69230 = vmatmul.mubr.f32.vlgmr.msra.gmra.mrb[114].mxu1 %v74182_v6  ;;  %v59396_v59 = vand.u32 4294901760, %v59395_v17 }
 0xa4e   :  { %72211 = vmatpush3.bf16.msra.mxu1 %v77827_v38  ;;  %69278 = vmatprep.mubr.f32.mxu1 %v74209_v25  ;;  %v72188_v63 = vpack.c.bf16 %v58894_v34, %v58887_v27  ;;  %v59389_v58 = vand.u32 4294901760, %v59388_v31 }
 0xa4f   :  { %69237 = vmatmul.mubr.f32.vlgmr.msra.gmra.mrb[116].mxu0 %v74218_v40 }
 0xa50   :  { %72189 = vmatprep.subr.bf16.mxu0 %v72188_v63  ;;  %v72212_v10 = vpack.c.bf16 %v59396_v59, %v59389_v58  ;;  %69243 = vmatprep.mubr.f32.mxu0 %v74176_v3 }
 0xa51   :  { %69279 = vmatmul.mubr.f32.vlgmr.msra.gmra.mrb[116].mxu1 %v74218_v40  ;;  %72191 = vmatpush3.bf16.msra.mxu0 %v72188_v63 }
 0xa52   :  { %72213 = vmatprep.subr.bf16.mxu1 %v72212_v10  ;;  %72193 = vmatprep.subr.bf16.mxu0 %v72192_v26 }
 0xa53   :  { %72215 = vmatpush3.bf16.msra.mxu1 %v72212_v10  ;;  %69285 = vmatprep.mubr.f32.mxu1 %v74176_v3 }
 0xa54   :  { %72217 = vmatprep.subr.bf16.mxu1 %v72216_v57 }
 0xa57   :  { %69244 = vmatmul.mubr.f32.vlgmr.msra.gmra.mrb[116].mxu0 %v74182_v6 }
 0xa58   :  { %72195 = vmatpush3.bf16.msra.mxu0 %v72192_v26  ;;  %69250 = vmatprep.mubr.f32.mxu0 %v74180_v5 }
 0xa59   :  { %69286 = vmatmul.mubr.f32.vlgmr.msra.gmra.mrb[116].mxu1 %v74182_v6  ;;  %72197 = vmatprep.subr.bf16.mxu0 %v77823_v23 }
 0xa5a   :  { %72219 = vmatpush3.bf16.msra.mxu1 %v72216_v57  ;;  %69292 = vmatprep.mubr.f32.mxu1 %v74180_v5 }
 0xa5b   :  { %72221 = vmatprep.subr.bf16.mxu1 %v77827_v38 }
 0xa5f   :  { %69251 = vmatmul.mubr.f32.vlgmr.msra.gmra.mrb[116].mxu0 %v78411_v4 }
 0xa60   :  { %72199 = vmatpush3.bf16.msra.mxu0 %v77823_v23  ;;  %69257 = vmatprep.mubr.f32.mxu0 %v78412_v29 }
 0xa61   :  { %69293 = vmatmul.mubr.f32.vlgmr.msra.gmra.mrb[116].mxu1 %v78411_v4  ;;  %72201 = vmatprep.subr.bf16.mxu0 %v72200_v41 }
 0xa62   :  { %72223 = vmatpush3.bf16.msra.mxu1 %v77827_v38  ;;  %69299 = vmatprep.mubr.f32.mxu1 %v78412_v29 }
 0xa63   :  { %72225 = vmatprep.subr.bf16.mxu1 %v72224_v14 }
 0xa67   :  { %69258 = vmatmul.mubr.f32.vlgmr.msra.gmra.mrb[116].mxu0 %v78413_v35 }
 0xa68   :  { %72203 = vmatpush3.bf16.msra.mxu0 %v72200_v41  ;;  %69264 = vmatprep.mubr.f32.mxu0 %v74176_v3 }
 0xa69   :  { %69300 = vmatmul.mubr.f32.vlgmr.msra.gmra.mrb[116].mxu1 %v78413_v35  ;;  %72205 = vmatprep.subr.bf16.mxu0 %v77823_v23 }
 0xa6a   :  { %72227 = vmatpush3.bf16.msra.mxu1 %v72224_v14  ;;  %69306 = vmatprep.mubr.f32.mxu1 %v74176_v3 }
 0xa6b   :  { %72229 = vmatprep.subr.bf16.mxu1 %v77827_v38 }
 0xa6e   :  { %v68853_v45 = vpop.f32.mrb[106].mxu0 }
 0xa6f   :  { %v59803_v12 = vand.u32 4294901760, %v68853_v45  ;;  %v54261_v1 = vpop.f32.mrb[107].mxu0  ;;  %69265 = vmatmul.mubr.f32.vlgmr.msra.gmra.mrb[116].mxu0 %v74182_v6 }
 0xa70   :  { %v68895_v42 = vpop.f32.mrb[106].mxu1  ;;  %v59800_v61 = vand.u32 4294901760, %v54261_v1  ;;  %72207 = vmatpush3.bf16.msra.mxu0 %v77823_v23  ;;  %69271 = vmatprep.mubr.f32.mxu0 %v74176_v3 }
 0xa71   :  { %v59895_v24 = vsub.f32 %v68853_v45, %v59803_v12  ;;  %v60305_v51 = vand.u32 4294901760, %v68895_v42  ;;  %v54769_v9 = vpop.f32.mrb[107].mxu1  ;;  %69307 = vmatmul.mubr.f32.vlgmr.msra.gmra.mrb[116].mxu1 %v74182_v6 }
 0xa72   :  { %v77863_v36 = vpack.c.bf16 %v59803_v12, %v59800_v61  ;;  %v59888_v39 = vsub.f32 %v54261_v1, %v59800_v61  ;;  %v60302_v22 = vand.u32 4294901760, %v54769_v9  ;;  %72231 = vmatpush3.bf16.msra.mxu1 %v77827_v38  ;;  %69313 = vmatprep.mubr.f32.mxu1 %v74176_v3  ;;  %v78417_v1 = vld [vmem:[#allocation24_spill] sm:$0xff] }
 0xa73   :  { %v59896_v33 = vand.u32 4294901760, %v59895_v24  ;;  %v60397_v53 = vsub.f32 %v68895_v42, %v60305_v51  ;;  %v60949_v42 = vmul.f32 2.0, %v78417_v1 }
 0xa74   :  { %v59889_v13 = vand.u32 4294901760, %v59888_v39  ;;  %v77867_v32 = vpack.c.bf16 %v60305_v51, %v60302_v22  ;;  %v60390_v23 = vsub.f32 %v54769_v9, %v60302_v22  ;;  %72233 = vmatprep.subr.bf16.mxu0 %v77863_v36  ;;  %v72240_v16 = vpack.c.bf16 %v59895_v24, %v59888_v39 }
 0xa75   :  { %v59897_v26 = vsub.f32 %v59895_v24, %v59896_v33  ;;  %v60398_v62 = vand.u32 4294901760, %v60397_v53 }
 0xa76   :  { %v59890_v43 = vsub.f32 %v59888_v39, %v59889_v13  ;;  %v60391_v0 = vand.u32 4294901760, %v60390_v23  ;;  %72257 = vmatprep.subr.bf16.mxu1 %v77867_v32  ;;  %v72264_v11 = vpack.c.bf16 %v60397_v53, %v60390_v23  ;;  %v72248_v57 = vpack.c.bf16 %v59896_v33, %v59889_v13 }
 0xa77   :  { %v60399_v38 = vsub.f32 %v60397_v53, %v60398_v62  ;;  %69272 = vmatmul.mubr.f32.vlgmr.msra.gmra.mrb[116].mxu0 %v74182_v6  ;;  %v59898_v41 = vand.u32 4294901760, %v59897_v26  ;;  %v60974_v53 = vadd.f32 0.0001, %v60950_v60  ;;  %v60973_v26 = vadd.f32 0.0001, %v60949_v42 }
 0xa78   :  { %v60392_v17 = vsub.f32 %v60390_v23, %v60391_v0  ;;  %72235 = vmatpush3.bf16.msra.mxu0 %v77863_v36  ;;  %69320 = vmatprep.mubr.f32.mxu0 %v74209_v25  ;;  %v59891_v34 = vand.u32 4294901760, %v59890_v43  ;;  %v72272_v31 = vpack.c.bf16 %v60398_v62, %v60391_v0  ;;  %v60953_v60 = vmul.f32 2.0, %v78421_v56 }
 0xa79   :  { %69314 = vmatmul.mubr.f32.vlgmr.msra.gmra.mrb[116].mxu1 %v74182_v6  ;;  %v60400_v27 = vand.u32 4294901760, %v60399_v38 }
 0xa7a   :  { %72259 = vmatpush3.bf16.msra.mxu1 %v77867_v32  ;;  %69362 = vmatprep.mubr.f32.mxu1 %v74209_v25  ;;  %v72236_v14 = vpack.c.bf16 %v59898_v41, %v59891_v34  ;;  %v60393_v59 = vand.u32 4294901760, %v60392_v17  ;;  %v78414_v25 = vld [vmem:[#allocation16_spill] sm:$0xff] }
 0xa7b   :  { %69321 = vmatmul.mubr.f32.vlgmr.msra.gmra.mrb[118].mxu0 %v74218_v40 }
 0xa7c   :  { %72237 = vmatprep.subr.bf16.mxu0 %v72236_v14  ;;  %v72260_v63 = vpack.c.bf16 %v60400_v27, %v60393_v59  ;;  %69327 = vmatprep.mubr.f32.mxu0 %v74176_v3 }
 0xa7d   :  { %69363 = vmatmul.mubr.f32.vlgmr.msra.gmra.mrb[118].mxu1 %v74218_v40  ;;  %72239 = vmatpush3.bf16.msra.mxu0 %v72236_v14  ;;  %v60948_v40 = vmul.f32 2.0, %v78414_v25 }
 0xa7e   :  { %72261 = vmatprep.subr.bf16.mxu1 %v72260_v63  ;;  %72241 = vmatprep.subr.bf16.mxu0 %v72240_v16 }
 0xa7f   :  { %72263 = vmatpush3.bf16.msra.mxu1 %v72260_v63  ;;  %69369 = vmatprep.mubr.f32.mxu1 %v74176_v3  ;;  %v60972_v51 = vadd.f32 0.0001, %v60948_v40  ;;  %v78418_v63 = vld [vmem:[#allocation29_spill] sm:$0xff] }
 0xa80   :  { %72265 = vmatprep.subr.bf16.mxu1 %v72264_v11 }
 0xa83   :  { %69328 = vmatmul.mubr.f32.vlgmr.msra.gmra.mrb[118].mxu0 %v74182_v6 }
 0xa84   :  { %72243 = vmatpush3.bf16.msra.mxu0 %v72240_v16  ;;  %69334 = vmatprep.mubr.f32.mxu0 %v74180_v5  ;;  %v73487_v16 = vpop.eup %73486  ;;  %73518 = vrcp.f32 %v77495_v48 }
 0xa85   :  { %69370 = vmatmul.mubr.f32.vlgmr.msra.gmra.mrb[118].mxu1 %v74182_v6  ;;  %72245 = vmatprep.subr.bf16.mxu0 %v77863_v36  ;;  %v73489_v0 = vpop.eup %73488  ;;  %73520 = vrcp.f32 %v77501_v20 }
 0xa86   :  { %72267 = vmatpush3.bf16.msra.mxu1 %v72264_v11  ;;  %69376 = vmatprep.mubr.f32.mxu1 %v74180_v5 }
 0xa87   :  { %72269 = vmatprep.subr.bf16.mxu1 %v77867_v32 }
 0xa8b   :  { %69335 = vmatmul.mubr.f32.vlgmr.msra.gmra.mrb[118].mxu0 %v78411_v4 }
 0xa8c   :  { %72247 = vmatpush3.bf16.msra.mxu0 %v77863_v36  ;;  %69341 = vmatprep.mubr.f32.mxu0 %v78412_v29 }
 0xa8d   :  { %69377 = vmatmul.mubr.f32.vlgmr.msra.gmra.mrb[118].mxu1 %v78411_v4  ;;  %72249 = vmatprep.subr.bf16.mxu0 %v72248_v57 }
 0xa8e   :  { %72271 = vmatpush3.bf16.msra.mxu1 %v77867_v32  ;;  %69383 = vmatprep.mubr.f32.mxu1 %v78412_v29 }
 0xa8f   :  { %72273 = vmatprep.subr.bf16.mxu1 %v72272_v31 }
 0xa93   :  { %69342 = vmatmul.mubr.f32.vlgmr.msra.gmra.mrb[118].mxu0 %v78413_v35 }
 0xa94   :  { %72251 = vmatpush3.bf16.msra.mxu0 %v72248_v57  ;;  %69348 = vmatprep.mubr.f32.mxu0 %v74176_v3  ;;  %v73491_v57 = vpop.eup %73490 }
 0xa95   :  { %69384 = vmatmul.mubr.f32.vlgmr.msra.gmra.mrb[118].mxu1 %v78413_v35  ;;  %72253 = vmatprep.subr.bf16.mxu0 %v77863_v36  ;;  %v78415_v35 = vld [vmem:[#allocation18_spill] sm:$0xff]  ;;  %v73493_v41 = vpop.eup %73492 }
 0xa96   :  { %72275 = vmatpush3.bf16.msra.mxu1 %v72272_v31  ;;  %69390 = vmatprep.mubr.f32.mxu1 %v74176_v3  ;;  %v60947_v58 = vmul.f32 2.0, %v78415_v35 }
 0xa97   :  { %72277 = vmatprep.subr.bf16.mxu1 %v77867_v32 }
 0xa98   :  { %v60971_v39 = vadd.f32 0.0001, %v60947_v58 }
 0xa9a   :  { %v68937_v5 = vpop.f32.mrb[108].mxu0 }
 0xa9b   :  { %v60924_v4 = vsub.f32 %v68937_v5, %v78414_v25  ;;  %v55271_v29 = vpop.f32.mrb[109].mxu0  ;;  %69349 = vmatmul.mubr.f32.vlgmr.msra.gmra.mrb[118].mxu0 %v74182_v6  ;;  %v60952_v5 = vmul.f32 2.0, %v78418_v63 }
 0xa9c   :  { %v68979_v10 = vpop.f32.mrb[108].mxu1  ;;  %v60923_v45 = vsub.f32 %v55271_v29, %v78415_v35  ;;  %72255 = vmatpush3.bf16.msra.mxu0 %v77863_v36  ;;  %69355 = vmatprep.mubr.f32.mxu0 %v74176_v3 }
 0xa9d   :  { %v60996_v47 = vmul.f32 2.0, %v60924_v4  ;;  %v60926_v12 = vsub.f32 %v68979_v10, %v78416_v8  ;;  %v55773_v30 = vpop.f32.mrb[109].mxu1  ;;  %69391 = vmatmul.mubr.f32.vlgmr.msra.gmra.mrb[118].mxu1 %v74182_v6  ;;  %v78419_v4 = vld [vmem:[#allocation31_spill] sm:$0xff]  ;;  %v78420_v10 = vld [vmem:[#allocation34_spill] sm:$0xff]  ;;  %v60976_v46 = vadd.f32 0.0001, %v60952_v5 }
 0xa9e   :  { %v60995_v61 = vmul.f32 2.0, %v60923_v45  ;;  %v60925_v24 = vsub.f32 %v55773_v30, %v78417_v1  ;;  %72279 = vmatpush3.bf16.msra.mxu1 %v77867_v32  ;;  %69397 = vmatprep.mubr.f32.mxu1 %v74176_v3  ;;  %v60951_v29 = vmul.f32 2.0, %v78419_v4  ;;  %v60954_v45 = vmul.f32 2.0, %v78420_v10 }
 0xa9f   :  { %v61020_v9 = vadd.f32 0.0009, %v60996_v47  ;;  %v60998_v36 = vmul.f32 2.0, %v60926_v12 }
 0xaa0   :  { %v61019_v22 = vadd.f32 0.0009, %v60995_v61  ;;  %v60997_v33 = vmul.f32 2.0, %v60925_v24  ;;  %v60975_v42 = vadd.f32 0.0001, %v60951_v29  ;;  %v60957_v29 = vmul.f32 2.0, %v78425_v37 }
 0xaa1   :  { %v61044_v13 = vmul.f32 %v61020_v9, %v60972_v51  ;;  %v61022_v23 = vadd.f32 0.0009, %v60998_v36  ;;  %v60978_v51 = vadd.f32 0.0001, %v60954_v45 }
 0xaa2   :  { %v61043_v62 = vmul.f32 %v61019_v22, %v60971_v39  ;;  %v61021_v43 = vadd.f32 0.0009, %v60997_v33  ;;  %v73495_v39 = vpop.eup %73494  ;;  %v60977_v22 = vadd.f32 0.0001, %v60953_v60 }
 0xaa3   :  { %v61046_v11 = vmul.f32 %v61022_v23, %v60974_v53  ;;  %69356 = vmatmul.mubr.f32.vlgmr.msra.gmra.mrb[118].mxu0 %v74182_v6  ;;  %v61190_v32 = vmul.f32 %v73487_v16, %v61044_v13  ;;  %v73497_v13 = vpop.eup %73496 }
 0xaa4   :  { %v61045_v3 = vmul.f32 %v61021_v43, %v60973_v26  ;;  %v61188_v38 = vmul.f32 %v73489_v0, %v61043_v62  ;;  %v73499_v26 = vpop.eup %73498 }
 0xaa5   :  { %69398 = vmatmul.mubr.f32.vlgmr.msra.gmra.mrb[118].mxu1 %v74182_v6  ;;  %v61194_v17 = vmul.f32 %v73491_v57, %v61046_v11  ;;  %v61238_v34 = vsel %vm124_vm0, %v61190_v32, 0.0  ;;  %v73501_v0 = vpop.eup %73500 }
 0xaa6   :  { %61239 = vadd.xlane.f32.xlu0 %v61238_v34  ;;  %v61192_v31 = vmul.f32 %v73493_v41, %v61045_v3  ;;  %v61235_v14 = vsel %vm124_vm0, %v61188_v38, 0.0  ;;  %v78422_v34 = vld [vmem:[#allocation43_spill] sm:$0xff] }
 0xaa7   :  { %v61244_v27 = vsel %vm124_vm0, %v61194_v17, 0.0 }
 0xaa8   :  { %61245 = vadd.xlane.f32.xlu1 %v61244_v27  ;;  %v61241_v59 = vsel %vm124_vm0, %v61192_v31, 0.0  ;;  %v60956_v31 = vmul.f32 2.0, %v78422_v34 }
 0xaaa   :  { %61236 = vadd.xlane.f32.xlu0 %v61235_v14  ;;  %v60980_v55 = vadd.f32 0.0001, %v60956_v31  ;;  %v60961_v31 = vmul.f32 2.0, %v78429_v50 }
 0xaac   :  { %61242 = vadd.xlane.f32.xlu1 %v61241_v59  ;;  %v78423_v59 = vld [vmem:[#allocation45_spill] sm:$0xff] }
 0xac6   :  { %v69021_v6 = vpop.f32.mrb[110].mxu0 }
 0xac7   :  { %v60928_v25 = vsub.f32 %v69021_v6, %v78418_v63  ;;  %v56275_v40 = vpop.f32.mrb[111].mxu0  ;;  %v60955_v6 = vmul.f32 2.0, %v78423_v59 }
 0xac8   :  { %v69063_v35 = vpop.f32.mrb[110].mxu1  ;;  %v60927_v58 = vsub.f32 %v56275_v40, %v78419_v4 }
 0xac9   :  { %v61000_v54 = vmul.f32 2.0, %v60928_v25  ;;  %v60930_v28 = vsub.f32 %v69063_v35, %v78420_v10  ;;  %v56777_v8 = vpop.f32.mrb[111].mxu1  ;;  %v78424_v25 = vld [vmem:[#allocation48_spill] sm:$0xff] }
 0xaca   :  { %v60999_v47 = vmul.f32 2.0, %v60927_v58  ;;  %v60929_v12 = vsub.f32 %v56777_v8, %v78421_v56  ;;  %v60958_v40 = vmul.f32 2.0, %v78424_v25 }
 0xacb   :  { %v61024_v30 = vadd.f32 0.0009, %v61000_v54  ;;  %v61002_v1 = vmul.f32 2.0, %v60930_v28  ;;  %v60979_v54 = vadd.f32 0.0001, %v60955_v6 }
 0xacc   :  { %v61023_v61 = vadd.f32 0.0009, %v60999_v47  ;;  %v61001_v24 = vmul.f32 2.0, %v60929_v12  ;;  %v60982_v56 = vadd.f32 0.0001, %v60958_v40  ;;  %v73503_v12 = vpop.eup %73502 }
 0xacd   :  { %v61048_v9 = vmul.f32 %v61024_v30, %v60976_v46  ;;  %v61026_v36 = vadd.f32 0.0009, %v61002_v1  ;;  %v60981_v46 = vadd.f32 0.0001, %v60957_v29 }
 0xace   :  { %v61047_v33 = vmul.f32 %v61023_v61, %v60975_v42  ;;  %v61025_v53 = vadd.f32 0.0009, %v61001_v24  ;;  %v73505_v42 = vpop.eup %73504 }
 0xacf   :  { %v61050_v23 = vmul.f32 %v61026_v36, %v60978_v51  ;;  %v61198_v16 = vmul.f32 %v73495_v39, %v61048_v9  ;;  %v73507_v51 = vpop.eup %73506 }
 0xad0   :  { %v61049_v62 = vmul.f32 %v61025_v53, %v60977_v22  ;;  %v61196_v43 = vmul.f32 %v73497_v13, %v61047_v33  ;;  %v73509_v39 = vpop.eup %73508 }
 0xad1   :  { %v61250_v11 = vsel %vm124_vm0, %v61198_v16, 0.0  ;;  %v61202_v32 = vmul.f32 %v73499_v26, %v61050_v23 }
 0xad2   :  { %61251 = vadd.xlane.f32.xlu1 %v61250_v11  ;;  %v61247_v57 = vsel %vm124_vm0, %v61196_v43, 0.0  ;;  %v61200_v3 = vmul.f32 %v73501_v0, %v61049_v62  ;;  %v78426_v62 = vld [vmem:[#allocation57_spill] sm:$0xff] }
 0xad3   :  { %61248 = vadd.xlane.f32.xlu0 %v61247_v57  ;;  %v61256_v38 = vsel %vm124_vm0, %v61202_v32, 0.0  ;;  %v60960_v43 = vmul.f32 2.0, %v78426_v62  ;;  %v78427_v32 = vld [vmem:[#allocation59_spill] sm:$0xff] }
 0xad4   :  { %v61253_v41 = vsel %vm124_vm0, %v61200_v3, 0.0  ;;  %v60959_v57 = vmul.f32 2.0, %v78427_v32 }
 0xad5   :  { %v60984_v21 = vadd.f32 0.0001, %v60960_v43 }
 0xad6   :  { %61257 = vadd.xlane.f32.xlu1 %v61256_v38 }
 0xad7   :  { %61254 = vadd.xlane.f32.xlu0 %v61253_v41  ;;  %v78428_v41 = vld [vmem:[#allocation62_spill] sm:$0xff] }
 0xaf2   :  { %v69105_v17 = vpop.f32.mrb[112].mxu0 }
 0xaf3   :  { %v60932_v27 = vsub.f32 %v69105_v17, %v78422_v34  ;;  %v57279_v14 = vpop.f32.mrb[113].mxu0  ;;  %v60962_v17 = vmul.f32 2.0, %v78428_v41 }
 0xaf4   :  { %v69147_v63 = vpop.f32.mrb[112].mxu1  ;;  %v60931_v5 = vsub.f32 %v57279_v14, %v78423_v59 }
 0xaf5   :  { %v61004_v49 = vmul.f32 2.0, %v60932_v27  ;;  %v60934_v19 = vsub.f32 %v69147_v63, %v78424_v25  ;;  %v57781_v4 = vpop.f32.mrb[113].mxu1  ;;  %v60983_v63 = vadd.f32 0.0001, %v60959_v57  ;;  %v60986_v40 = vadd.f32 0.0001, %v60962_v17 }
 0xaf6   :  { %v61003_v35 = vmul.f32 2.0, %v60931_v5  ;;  %v60933_v58 = vsub.f32 %v57781_v4, %v78425_v37  ;;  %v73511_v4 = vpop.eup %73510  ;;  %v60985_v37 = vadd.f32 0.0001, %v60961_v31 }
 0xaf7   :  { %v61028_v10 = vadd.f32 0.0009, %v61004_v49  ;;  %v61006_v45 = vmul.f32 2.0, %v60934_v19 }
 0xaf8   :  { %v61027_v28 = vadd.f32 0.0009, %v61003_v35  ;;  %v61005_v8 = vmul.f32 2.0, %v60933_v58  ;;  %v73513_v58 = vpop.eup %73512 }
 0xaf9   :  { %v61052_v60 = vmul.f32 %v61028_v10, %v60980_v55  ;;  %v61030_v47 = vadd.f32 0.0009, %v61006_v45  ;;  %v73515_v45 = vpop.eup %73514 }
 0xafa   :  { %v61051_v30 = vmul.f32 %v61027_v28, %v60979_v54  ;;  %v61029_v1 = vadd.f32 0.0009, %v61005_v8  ;;  %v73517_v8 = vpop.eup %73516 }
 0xafb   :  { %v61054_v61 = vmul.f32 %v61030_v47, %v60982_v56  ;;  %v61206_v24 = vmul.f32 %v73503_v12, %v61052_v60 }
 0xafc   :  { %v61053_v9 = vmul.f32 %v61029_v1, %v60981_v46  ;;  %v61204_v36 = vmul.f32 %v73505_v42, %v61051_v30  ;;  %v78430_v1 = vld [vmem:[#allocation15_spill] sm:$0xff] }
 0xafd   :  { %v61262_v22 = vsel %vm124_vm0, %v61206_v24, 0.0  ;;  %v61210_v33 = vmul.f32 %v73507_v51, %v61054_v61  ;;  %73522 = vrcp.f32 %v78430_v1  ;;  %v78431_v61 = vld [vmem:[#allocation71_spill] sm:$0xff]  ;;  %v78432_v51 = vld [vmem:[#allocation17_spill] sm:$0xff] }
 0xafe   :  { %61263 = vadd.xlane.f32.xlu1 %v61262_v22  ;;  %v61259_v53 = vsel %vm124_vm0, %v61204_v36, 0.0  ;;  %v61208_v13 = vmul.f32 %v73509_v39, %v61053_v9  ;;  %v60964_v24 = vmul.f32 2.0, %v78431_v61  ;;  %73524 = vrcp.f32 %v78432_v51  ;;  %v78433_v39 = vld [vmem:[#allocation73_spill] sm:$0xff] }
 0xaff   :  { %61260 = vadd.xlane.f32.xlu0 %v61259_v53  ;;  %v61268_v23 = vsel %vm124_vm0, %v61210_v33, 0.0  ;;  %v60963_v22 = vmul.f32 2.0, %v78433_v39  ;;  %73526 = vrcp.f32 %v77611_v44 }
 0xb00   :  { %v61265_v16 = vsel %vm124_vm0, %v61208_v13, 0.0  ;;  %v78434_v13 = vld [vmem:[#allocation76_spill] sm:$0xff]  ;;  %73528 = vrcp.f32 %v77615_v15 }
 0xb01   :  { %73530 = vrcp.f32 %v77617_v52  ;;  %v78439_v52 = vld [vmem:[#allocation94_spill] sm:$0xff] }
 0xb02   :  { %61269 = vadd.xlane.f32.xlu1 %v61268_v23  ;;  %v60966_v23 = vmul.f32 2.0, %v78434_v13  ;;  %73532 = vrcp.f32 %v77620_v2 }
 0xb03   :  { %61266 = vadd.xlane.f32.xlu0 %v61265_v16 }
 0xb04   :  { %v60990_v17 = vadd.f32 0.0001, %v60966_v23 }
 0xb1e   :  { %v69189_v26 = vpop.f32.mrb[114].mxu0 }
 0xb1f   :  { %v60936_v0 = vsub.f32 %v69189_v26, %v78426_v62  ;;  %v58283_v11 = vpop.f32.mrb[115].mxu0  ;;  %v78435_v26 = vld [vmem:[#allocation79_spill] sm:$0xff] }
 0xb20   :  { %v69231_v3 = vpop.f32.mrb[114].mxu1  ;;  %v60935_v38 = vsub.f32 %v58283_v11, %v78427_v32  ;;  %v60965_v62 = vmul.f32 2.0, %v78435_v26  ;;  %v60988_v11 = vadd.f32 0.0001, %v60964_v24 }
 0xb21   :  { %v61008_v7 = vmul.f32 2.0, %v60936_v0  ;;  %v60938_v18 = vsub.f32 %v69231_v3, %v78428_v41  ;;  %v58785_v34 = vpop.f32.mrb[115].mxu1  ;;  %v60987_v3 = vadd.f32 0.0001, %v60963_v22 }
 0xb22   :  { %v61007_v27 = vmul.f32 2.0, %v60935_v38  ;;  %v60937_v14 = vsub.f32 %v58785_v34, %v78429_v50  ;;  %v73519_v34 = vpop.eup %73518  ;;  %v60989_v50 = vadd.f32 0.0001, %v60965_v62 }
 0xb23   :  { %v61032_v59 = vadd.f32 0.0009, %v61008_v7  ;;  %v61010_v6 = vmul.f32 2.0, %v60938_v18 }
 0xb24   :  { %v61031_v5 = vadd.f32 0.0009, %v61007_v27  ;;  %v61009_v25 = vmul.f32 2.0, %v60937_v14  ;;  %v73521_v14 = vpop.eup %73520 }
 0xb25   :  { %v61056_v49 = vmul.f32 %v61032_v59, %v60984_v21  ;;  %v61034_v19 = vadd.f32 0.0009, %v61010_v6  ;;  %v73523_v6 = vpop.eup %73522 }
 0xb26   :  { %v61055_v29 = vmul.f32 %v61031_v5, %v60983_v63  ;;  %v61033_v35 = vadd.f32 0.0009, %v61009_v25  ;;  %v73525_v25 = vpop.eup %73524 }
 0xb27   :  { %v61058_v55 = vmul.f32 %v61034_v19, %v60986_v40  ;;  %v61214_v10 = vmul.f32 %v73511_v4, %v61056_v49 }
 0xb28   :  { %v61057_v54 = vmul.f32 %v61033_v35, %v60985_v37  ;;  %v61212_v28 = vmul.f32 %v73513_v58, %v61055_v29  ;;  %v78436_v58 = vld [vmem:[#allocation86_spill] sm:$0xff] }
 0xb29   :  { %v61274_v56 = vsel %vm124_vm0, %v61214_v10, 0.0  ;;  %v61218_v60 = vmul.f32 %v73515_v45, %v61058_v55  ;;  %v60968_v55 = vmul.f32 2.0, %v78436_v58 }
 0xb2a   :  { %61275 = vadd.xlane.f32.xlu1 %v61274_v56  ;;  %v61271_v47 = vsel %vm124_vm0, %v61212_v28, 0.0  ;;  %v61216_v12 = vmul.f32 %v73517_v8, %v61057_v54  ;;  %v78437_v54 = vld [vmem:[#allocation88_spill] sm:$0xff] }
 0xb2b   :  { %61272 = vadd.xlane.f32.xlu0 %v61271_v47  ;;  %v61280_v46 = vsel %vm124_vm0, %v61218_v60, 0.0  ;;  %v60967_v28 = vmul.f32 2.0, %v78437_v54  ;;  %v78438_v60 = vld [vmem:[#allocation91_spill] sm:$0xff]  ;;  %v60992_v2 = vadd.f32 0.0001, %v60968_v55 }
 0xb2c   :  { %v61277_v30 = vsel %vm124_vm0, %v61216_v12, 0.0  ;;  %v60970_v47 = vmul.f32 2.0, %v78438_v60 }
 0xb2d   :  { %v60991_v24 = vadd.f32 0.0001, %v60967_v28 }
 0xb2e   :  { %61281 = vadd.xlane.f32.xlu1 %v61280_v46  ;;  %v60969_v46 = vmul.f32 2.0, %v78439_v52 }
 0xb2f   :  { %61278 = vadd.xlane.f32.xlu0 %v61277_v30 }
 0xb4a   :  { %v69273_v42 = vpop.f32.mrb[116].mxu0 }
 0xb4b   :  { %v60940_v9 = vsub.f32 %v69273_v42, %v78431_v61  ;;  %v59287_v36 = vpop.f32.mrb[117].mxu0 }
 0xb4c   :  { %v69315_v33 = vpop.f32.mrb[116].mxu1  ;;  %v60939_v53 = vsub.f32 %v59287_v36, %v78433_v39  ;;  %v60994_v36 = vadd.f32 0.0001, %v60970_v47 }
 0xb4d   :  { %v61012_v48 = vmul.f32 2.0, %v60940_v9  ;;  %v60942_v20 = vsub.f32 %v69315_v33, %v78434_v13  ;;  %v59789_v16 = vpop.f32.mrb[117].mxu1  ;;  %v73527_v33 = vpop.eup %73526 }
 0xb4e   :  { %v61011_v43 = vmul.f32 2.0, %v60939_v53  ;;  %v60941_v0 = vsub.f32 %v59789_v16, %v78435_v26  ;;  %v60993_v53 = vadd.f32 0.0001, %v60969_v46 }
 0xb4f   :  { %v61036_v32 = vadd.f32 0.0009, %v61012_v48  ;;  %v61014_v57 = vmul.f32 2.0, %v60942_v20  ;;  %v73529_v48 = vpop.eup %73528 }
 0xb50   :  { %v61035_v38 = vadd.f32 0.0009, %v61011_v43  ;;  %v61013_v41 = vmul.f32 2.0, %v60941_v0  ;;  %v73531_v26 = vpop.eup %73530 }
 0xb51   :  { %v61060_v7 = vmul.f32 %v61036_v32, %v60988_v11  ;;  %v61038_v18 = vadd.f32 0.0009, %v61014_v57  ;;  %v73533_v0 = vpop.eup %73532 }
 0xb52   :  { %v61059_v31 = vmul.f32 %v61035_v38, %v60987_v3  ;;  %v61037_v27 = vadd.f32 0.0009, %v61013_v41 }
 0xb53   :  { %v61062_v21 = vmul.f32 %v61038_v18, %v60990_v17  ;;  %v61222_v59 = vmul.f32 %v73519_v34, %v61060_v7  ;;  %v61246_v17 = vpop.xlane.xlu1 %61245  ;;  %v61240_v7 = vpop.xlane.xlu0 %61239 }
 0xb54   :  { %v61061_v63 = vmul.f32 %v61037_v27, %v60989_v50  ;;  %v61220_v5 = vmul.f32 %v73521_v14, %v61059_v31  ;;  %v61331_v27 = vlaneseq }
 0xb55   :  { %v61286_v40 = vsel %vm124_vm0, %v61222_v59, 0.0  ;;  %v61226_v49 = vmul.f32 %v73523_v6, %v61062_v21 }
 0xb56   :  { %61287 = vadd.xlane.f32.xlu1 %v61286_v40  ;;  %v61283_v19 = vsel %vm124_vm0, %v61220_v5, 0.0  ;;  %v61224_v4 = vmul.f32 %v73525_v25, %v61061_v63  ;;  %v61332_v14 = vand.u32 127, %v61331_v27  ;;  %v61334_v6 = vshrl.u32 %v61331_v27, 7 }
 0xb57   :  { %61284 = vadd.xlane.f32.xlu0 %v61283_v19  ;;  %v61292_v37 = vsel %vm124_vm0, %v61226_v49, 0.0  ;;  %v61243_v18 = vpop.xlane.xlu1 %61242  ;;  %v61237_v34 = vpop.xlane.xlu0 %61236 }
 0xb58   :  { %v61289_v29 = vsel %vm124_vm0, %v61224_v4, 0.0  ;;  %v61337_v63 = vadd.s32 4294967288, %v61332_v14  ;;  %v78003_v40 = vsub.s32 %v61332_v14, %v61334_v6 }
 0xb5a   :  { %61293 = vadd.xlane.f32.xlu1 %v61292_v37  ;;  %v78005_v49 = vsub.s32 %v61337_v63, %v61334_v6  ;;  %v61347_v19 = vrot.slane %v61243_v18, %v78003_v40  ;;  %v61336_v4 = vrot.slane %v61237_v34, %v78003_v40 }
 0xb5b   :  { %61290 = vadd.xlane.f32.xlu0 %v61289_v29 }
 0xb5c   :  { %v61351_v55 = vrot.slane %v61246_v17, %v78005_v49 }
 0xb5f   :  { %v61252_v50 = vpop.xlane.xlu1 %61251 }
 0xb60   :  { %v61249_v31 = vpop.xlane.xlu0 %61248  ;;  %v61360_v29 = vrot.slane %v61252_v50, %v78005_v49 }
 0xb63   :  { %v61258_v21 = vpop.xlane.xlu1 %61257 }
 0xb64   :  { %v61255_v59 = vpop.xlane.xlu0 %61254 }
 0xb76   :  { %v69357_v35 = vpop.f32.mrb[118].mxu0 }
 0xb77   :  { %v60944_v10 = vsub.f32 %v69357_v35, %v78436_v58  ;;  %v60291_v45 = vpop.f32.mrb[119].mxu0  ;;  %v61356_v35 = vrot.slane %v61249_v31, %v78003_v40 }
 0xb78   :  { %v69399_v8 = vpop.f32.mrb[118].mxu1  ;;  %v60943_v56 = vsub.f32 %v60291_v45, %v78437_v54  ;;  %v61369_v45 = vrot.slane %v61258_v21, %v78005_v49  ;;  %v61365_v54 = vrot.slane %v61255_v59, %v78003_v40 }
 0xb79   :  { %v61016_v44 = vmul.f32 2.0, %v60944_v10  ;;  %v60946_v15 = vsub.f32 %v69399_v8, %v78438_v60  ;;  %v60793_v12 = vpop.f32.mrb[119].mxu1  ;;  %v61341_v10 = vrot.slane %v61240_v7, %v78005_v49 }
 0xb7a   :  { %v61015_v30 = vmul.f32 2.0, %v60943_v56  ;;  %v60945_v1 = vsub.f32 %v60793_v12, %v78439_v52  ;;  %v61352_v56 = vsel %vm61342_vm1, %v61351_v55, %v61347_v19  ;;  %v61361_v12 = vsel %vm61342_vm1, %v61360_v29, %v61356_v35 }
 0xb7b   :  { %v61040_v42 = vadd.f32 0.0009, %v61016_v44  ;;  %v61018_v61 = vmul.f32 2.0, %v60946_v15  ;;  %v61343_v60 = vsel %vm61342_vm1, %v61341_v10, %v61336_v4 }
 0xb7c   :  { %v61039_v51 = vadd.f32 0.0009, %v61015_v30  ;;  %v61017_v9 = vmul.f32 2.0, %v60945_v1  ;;  %v61370_v30 = vsel %vm61342_vm1, %v61369_v45, %v61365_v54 }
 0xb7d   :  { %v61064_v39 = vmul.f32 %v61040_v42, %v60992_v2  ;;  %v61042_v22 = vadd.f32 0.0009, %v61018_v61  ;;  %v61444_v2 = vsel %vm61443_vm2, %v61352_v56, %v61343_v60 }
 0xb7e   :  { %v61063_v13 = vmul.f32 %v61039_v51, %v60991_v24  ;;  %v61041_v23 = vadd.f32 0.0009, %v61017_v9  ;;  %v61446_v61 = vsel %vm61445_vm3, %v61361_v12, %v61444_v2 }
 0xb7f   :  { %v61066_v20 = vmul.f32 %v61042_v22, %v60994_v36  ;;  %v61230_v16 = vmul.f32 %v73527_v33, %v61064_v39  ;;  %v61448_v9 = vsel %vm61447_vm4, %v61370_v30, %v61446_v61 }
 0xb80   :  { %v61065_v62 = vmul.f32 %v61041_v23, %v60993_v53  ;;  %v61228_v43 = vmul.f32 %v73529_v48, %v61063_v13 }
 0xb81   :  { %v61298_v11 = vsel %vm124_vm0, %v61230_v16, 0.0  ;;  %v61234_v32 = vmul.f32 %v73531_v26, %v61066_v20 }
 0xb82   :  { %61299 = vadd.xlane.f32.xlu1 %v61298_v11  ;;  %v61295_v57 = vsel %vm124_vm0, %v61228_v43, 0.0  ;;  %v61232_v3 = vmul.f32 %v73533_v0, %v61065_v62 }
 0xb83   :  { %61296 = vadd.xlane.f32.xlu0 %v61295_v57  ;;  %v61304_v38 = vsel %vm124_vm0, %v61234_v32, 0.0 }
 0xb84   :  { %v61301_v41 = vsel %vm124_vm0, %v61232_v3, 0.0 }
 0xb86   :  { %61305 = vadd.xlane.f32.xlu1 %v61304_v38 }
 0xb87   :  { %61302 = vadd.xlane.f32.xlu0 %v61301_v41 }
 0xb8b   :  { %v61264_v5 = vpop.xlane.xlu1 %61263 }
 0xb8c   :  { %v61261_v25 = vpop.xlane.xlu0 %61260  ;;  %v61378_v28 = vrot.slane %v61264_v5, %v78005_v49 }
 0xb8d   :  { %v61374_v8 = vrot.slane %v61261_v25, %v78003_v40 }
 0xb8f   :  { %v61270_v37 = vpop.xlane.xlu1 %61269  ;;  %v61379_v42 = vsel %vm61342_vm1, %v61378_v28, %v61374_v8 }
 0xb90   :  { %v61267_v58 = vpop.xlane.xlu0 %61266  ;;  %v61387_v47 = vrot.slane %v61270_v37, %v78005_v49  ;;  %v61450_v33 = vsel %vm61449_vm5, %v61379_v42, %v61448_v9 }
 0xb91   :  { %v61383_v44 = vrot.slane %v61267_v58, %v78003_v40 }
 0xb93   :  { %v61388_v24 = vsel %vm61342_vm1, %v61387_v47, %v61383_v44 }
 0xb94   :  { %v61452_v13 = vsel %vm61451_vm6, %v61388_v24, %v61450_v33 }
 0xbb7   :  { %v61276_v15 = vpop.xlane.xlu1 %61275 }
 0xbb8   :  { %v61396_v52 = vrot.slane %v61276_v15, %v78005_v49  ;;  %v61273_v46 = vpop.xlane.xlu0 %61272 }
 0xbb9   :  { %v61392_v1 = vrot.slane %v61273_v46, %v78003_v40 }
 0xbbb   :  { %v61282_v51 = vpop.xlane.xlu1 %61281  ;;  %v61397_v36 = vsel %vm61342_vm1, %v61396_v52, %v61392_v1 }
 0xbbc   :  { %v61405_v39 = vrot.slane %v61282_v51, %v78005_v49  ;;  %v61279_v22 = vpop.xlane.xlu0 %61278  ;;  %v61454_v48 = vsel %vm61453_vm7, %v61397_v36, %v61452_v13 }
 0xbbd   :  { %v61401_v53 = vrot.slane %v61279_v22, %v78003_v40 }
 0xbbf   :  { %v61406_v23 = vsel %vm61342_vm1, %v61405_v39, %v61401_v53 }
 0xbc0   :  { %v61456_v20 = vsel %vm61455_vm8, %v61406_v23, %v61454_v48 }
 0xbc1   :  { %v61462_v16 = vsel %vm124_vm0, %v61456_v20, 0.0 }
 0xbc2   :  { %61463 = vadd.xlane.f32.xlu0 %v61462_v16 }
 0xbe3   :  { %v61288_v26 = vpop.xlane.xlu1 %61287 }
 0xbe4   :  { %v61285_v62 = vpop.xlane.xlu0 %61284  ;;  %v61414_v41 = vrot.slane %v61288_v26, %v78005_v49 }
 0xbe5   :  { %v61410_v17 = vrot.slane %v61285_v62, %v78003_v40 }
 0xbe7   :  { %v61294_v43 = vpop.xlane.xlu1 %61293  ;;  %v61415_v14 = vsel %vm61342_vm1, %v61414_v41, %v61410_v17 }
 0xbe8   :  { %v61291_v0 = vpop.xlane.xlu0 %61290  ;;  %v61423_v11 = vrot.slane %v61294_v43, %v78005_v49 }
 0xbe9   :  { %v61419_v32 = vrot.slane %v61291_v0, %v78003_v40 }
 0xbeb   :  { %v61424_v18 = vsel %vm61342_vm1, %v61423_v11, %v61419_v32 }
 0xbec   :  { %v61457_v59 = vsel %vm61443_vm2, %v61424_v18, %v61415_v14 }
 0xc0f   :  { %v61300_v57 = vpop.xlane.xlu1 %61299 }
 0xc10   :  { %v61432_v3 = vrot.slane %v61300_v57, %v78005_v49  ;;  %v61297_v38 = vpop.xlane.xlu0 %61296 }
 0xc11   :  { %v61428_v7 = vrot.slane %v61297_v38, %v78003_v40 }
 0xc13   :  { %v61306_v34 = vpop.xlane.xlu1 %61305  ;;  %v61433_v50 = vsel %vm61342_vm1, %v61432_v3, %v61428_v7 }
 0xc14   :  { %v61441_v31 = vrot.slane %v61306_v34, %v78005_v49  ;;  %v61303_v27 = vpop.xlane.xlu0 %61302  ;;  %v61458_v63 = vsel %vm61445_vm3, %v61433_v50, %v61457_v59 }
 0xc15   :  { %v61437_v21 = vrot.slane %v61303_v27, %v78003_v40 }
 0xc17   :  { %v61442_v6 = vsel %vm61342_vm1, %v61441_v31, %v61437_v21 }
 0xc18   :  { %v61459_v5 = vsel %vm61447_vm4, %v61442_v6, %v61458_v63 }
 0xc19   :  { %v61466_v25 = vsel %vm61465_vm9, %v61459_v5, 0.0 }
 0xc1a   :  { %61467 = vadd.xlane.f32.xlu1 %v61466_v25 }
 0xc4f   :  { %v61464_v19 = vpop.xlane.xlu0 %61463 }
 0xc50   :  { %61470 = vst.msk [vmem:[%s78060_s4] sm:$0xff] %vm61469_vm10, %v61464_v19 }
 0xca7   :  { %v61468_v49 = vpop.xlane.xlu1 %61467 }
 0xca8   :  { %61472 = vst.msk [vmem:[%s78060_s4 + $0x8] sm:$0xf] %vm61471_vm11, %v61468_v49 }
 0xca9   :  { %61477 = vsyncpa [#allocation3], 1 }
 0xcaa   :  { %61478 = vsyncpa [#allocation5], 1 }
 0xcab   :  { %61479 = vsyncpa [#allocation8], 1 }

</bundles_post_ra>
